<compile_context>
chip_gen: v5e
topology: v5e:2x2
jax: 0.10.0
libtpu: 0.0.40
codegen_flags: <defaults>
</compile_context>

<pallas_src>
import jax
import jax.numpy as jnp
from jax import lax
from jax.experimental import pallas as pl
from jax.experimental.pallas import tpu as pltpu

EPS = 1e-5


# ---------------- fused Pallas kernel (hot path) ----------------

def make_fused_kernel(H, W, C, Cr):
    HW = H * W
    # Front/back spatial padding (in flattened rows): PADF >= W + 1 so every 3x3 tap
    # of every edge pixel lands inside a zeroed strip; rounded up to a multiple of 8
    # so the interior write and the dx=0 window reads are sublane-aligned.
    PADF = ((W + 1 + 7) // 8) * 8
    PR = PADF + HW + PADF
    COLR = HW + 2 * W            # one dx-shifted window covering all three ky taps

    def kernel(x_ref, w1_ref, ta_ref, w2_ref, b2_ref, wc1_ref, t1_ref,
               wc2_ref, t2_ref, cm_ref, out_ref, pad_a, pad_c, patch):
        x = x_ref[...]

        # Zero ONLY the padding strips; the interiors are fully overwritten below.
        pad_a[pl.ds(0, PADF), :] = jnp.zeros((PADF, Cr), jnp.float32)
        pad_a[pl.ds(PADF + HW, PADF), :] = jnp.zeros((PADF, Cr), jnp.float32)
        pad_c[pl.ds(0, PADF), :] = jnp.zeros((PADF, C), jnp.float32)
        pad_c[pl.ds(PADF + HW, PADF), :] = jnp.zeros((PADF, C), jnp.float32)

        # Build the 9-tap im2col patch for the image stored at pad[PADF:PADF+HW, :nc]
        # into patch[:, :9*nc].  Per dx: one sublane-shifted read and (for dx != 0)
        # one column-wrap mask multiply; the three ky windows are aligned static
        # slices of that register value (offsets are multiples of W).
        def build_patch(pad, nc):
            for j, dx in enumerate((-1, 0, 1)):
                col = pad[pl.ds(PADF - W + dx, COLR), :]
                if dx != 0:
                    col = col * cm_ref[:, j:j + 1]
                for ky in range(3):
                    tap = ky * 3 + j
                    patch[:, tap * nc:(tap + 1) * nc] = col[ky * W:ky * W + HW, :]

        # ---- Stage 1: attention 1x1 conv (+bias) + folded BN + ReLU -> a1 [HW, Cr]
        a1 = jnp.maximum(
            jnp.dot(x, w1_ref[...], preferred_element_type=jnp.float32)
            + ta_ref[...], 0.0)

        # ---- Stage 2: attention 3x3 conv (Cr -> 1) + bias -> sigmoid gate
        # One [HW, 9*Cr] patch, one elementwise multiply, ONE cross-lane reduce.
        pad_a[pl.ds(PADF, HW), :] = a1
        build_patch(pad_a, Cr)
        logit = (jnp.sum(patch[:, 0:9 * Cr] * w2_ref[...], axis=1, keepdims=True)
                 + b2_ref[0])
        xa = x * jax.nn.sigmoid(logit)

        # ---- Stage 3: 3x3 conv (C->C, no bias) + folded BN + ReLU -> h1 [HW, C]
        # Single K = 9*C MXU matmul on the im2col patch.
        pad_c[pl.ds(PADF, HW), :] = xa
        build_patch(pad_c, C)
        h1 = jnp.maximum(
            jnp.dot(patch[...], wc1_ref[...], preferred_element_type=jnp.float32)
            + t1_ref[...], 0.0)

        # ---- Stage 4: 3x3 conv + folded BN + residual + ReLU -> out
        pad_c[pl.ds(PADF, HW), :] = h1
        build_patch(pad_c, C)
        out_ref[...] = jnp.maximum(
            jnp.dot(patch[...], wc2_ref[...], preferred_element_type=jnp.float32)
            + t2_ref[...] + x, 0.0)

    return kernel, PR, COLR


# ---------------- wrapper (plain-JAX parameter folding + pallas_call) ----------------

def cnn_block_forward(x_nchw, P):
    # TODO(synk): BatchNorm is implemented in inference mode (running stats folded
    # into an affine); training-mode per-batch statistics are not reproduced.
    # Note: the PyTorch shortcut channel-mismatch branch never triggers (in_filters
    # == out_filters), so it is intentionally omitted.
    B, C, H, W = x_nchw.shape
    Cr = P["w1"].shape[0]
    HW = H * W
    assert W % 8 == 0 and HW % 8 == 0, "flattened-spatial layout needs W and H*W % 8 == 0"
    xf = jnp.transpose(x_nchw, (0, 2, 3, 1)).reshape(B * HW, C)

    # Fold BatchNorm (inference) scales into the conv weights; epilogues are "+ shift".
    s_a = P["g_a"] / jnp.sqrt(P["v_a"] + EPS)
    w1e = P["w1"][:, :, 0, 0].T * s_a[None, :]                        # [C, Cr]
    t_a = (P["beta_a"] + (P["b1"] - P["m_a"]) * s_a)[None, :]         # [1, Cr]

    # w2 flattened tap-major / channel-minor to match the patch column order.
    w2f = jnp.transpose(P["w2"][0], (1, 2, 0)).reshape(1, 9 * Cr)     # [1, 9*Cr]
    b2 = P["b2"].reshape(1).astype(jnp.float32)                       # scalar -> SMEM

    s1 = P["g1"] / jnp.sqrt(P["v1"] + EPS)
    wc1e = (jnp.transpose(P["wc1"], (2, 3, 1, 0)).reshape(9, C, C)
            * s1[None, None, :]).reshape(9 * C, C)                    # [9C, C]
    t1 = (P["beta1"] - P["m1"] * s1)[None, :]                         # [1, C]

    s2 = P["g2"] / jnp.sqrt(P["v2"] + EPS)
    wc2e = (jnp.transpose(P["wc2"], (2, 3, 1, 0)).reshape(9, C, C)
            * s2[None, None, :]).reshape(9 * C, C)                    # [9C, C]
    t2 = (P["beta2"] - P["m2"] * s2)[None, :]                         # [1, C]

    # Column-wrap masks for dx in (-1, 0, +1) on the extended (HW + 2W)-row window
    # read per dx (mask value only depends on i mod W, so one table serves all ky).
    COLR = HW + 2 * W
    widx = jnp.arange(COLR, dtype=jnp.int32) % W
    cmask = jnp.stack(
        [((widx + dx) >= 0) & ((widx + dx) < W) for dx in (-1, 0, 1)], axis=1
    ).astype(jnp.float32)                                             # [HW+2W, 3]

    kernel, PR, _ = make_fused_kernel(H, W, C, Cr)

    out_flat = pl.pallas_call(
        kernel,
        out_shape=jax.ShapeDtypeStruct((B * HW, C), jnp.float32),
        grid=(B,),
        in_specs=[
            pl.BlockSpec((HW, C), lambda b: (b, 0)),                  # x (one image)
            pl.BlockSpec((C, Cr), lambda b: (0, 0)),                  # w1e (BN folded)
            pl.BlockSpec((1, Cr), lambda b: (0, 0)),                  # t_a
            pl.BlockSpec((1, 9 * Cr), lambda b: (0, 0)),              # w2 flattened
            pl.BlockSpec(memory_space=pltpu.MemorySpace.SMEM),        # b2 scalar
            pl.BlockSpec((9 * C, C), lambda b: (0, 0)),               # wc1 (BN folded)
            pl.BlockSpec((1, C), lambda b: (0, 0)),                   # t1
            pl.BlockSpec((9 * C, C), lambda b: (0, 0)),               # wc2 (BN folded)
            pl.BlockSpec((1, C), lambda b: (0, 0)),                   # t2
            pl.BlockSpec((COLR, 3), lambda b: (0, 0)),                # cmask
        ],
        out_specs=pl.BlockSpec((HW, C), lambda b: (b, 0)),
        scratch_shapes=[
            pltpu.VMEM((PR, Cr), jnp.float32),      # zero-padded a1
            pltpu.VMEM((PR, C), jnp.float32),       # zero-padded xa / h1 (reused)
            pltpu.VMEM((HW, 9 * C), jnp.float32),   # im2col patch (shared, stages 2-4)
        ],
        compiler_params=pltpu.CompilerParams(
            dimension_semantics=("parallel",),
            vmem_limit_bytes=32 * 1024 * 1024),
    )(xf, w1e, t_a, w2f, b2, wc1e, t1, wc2e, t2, cmask)

    return jnp.transpose(out_flat.reshape(B, H, W, C), (0, 3, 1, 2))


# ---------------- pure-JAX reference (for validation) ----------------

def _bn(x, g, b, m, v):
    return (x - m) / jnp.sqrt(v + EPS) * g + b


def _conv3x3(x_nhwc, w):
    return lax.conv_general_dilated(
        x_nhwc, jnp.transpose(w, (2, 3, 1, 0)), (1, 1), "SAME",
        dimension_numbers=("NHWC", "HWIO", "NHWC"))


def ref_forward(x_nchw, P):
    x = jnp.transpose(x_nchw, (0, 2, 3, 1))
    a = jnp.einsum("bhwc,rc->bhwr", x, P["w1"][:, :, 0, 0]) + P["b1"]
    a = jnp.maximum(_bn(a, P["g_a"], P["beta_a"], P["m_a"], P["v_a"]), 0.0)
    a = _conv3x3(a, P["w2"]) + P["b2"]
    xa = x * (1.0 / (1.0 + jnp.exp(-a)))
    c1 = jnp.maximum(_bn(_conv3x3(xa, P["wc1"]), P["g1"], P["beta1"], P["m1"], P["v1"]), 0.0)
    c2 = _bn(_conv3x3(c1, P["wc2"]), P["g2"], P["beta2"], P["m2"], P["v2"])
    out = jnp.maximum(c2 + x, 0.0)
    return jnp.transpose(out, (0, 3, 1, 2))


if __name__ == "__main__":
    B, C, H, W = 2, 16, 16, 16   # filters=16
    R = 8
    Cr = C // R                  # = 2
    key = jax.random.PRNGKey(0)
    k = jax.random.split(key, 24)

    x = jax.random.normal(k[0], (B, C, H, W), jnp.float32)

    P = dict(
        # AreaAttentionLayer
        w1=0.1 * jax.random.normal(k[1], (Cr, C, 1, 1), jnp.float32),
        b1=0.1 * jax.random.normal(k[2], (Cr,), jnp.float32),
        g_a=1.0 + 0.1 * jax.random.normal(k[3], (Cr,), jnp.float32),
        beta_a=0.1 * jax.random.normal(k[4], (Cr,), jnp.float32),
        m_a=0.1 * jax.random.normal(k[5], (Cr,), jnp.float32),
        v_a=1.0 + 0.5 * jax.random.uniform(k[6], (Cr,), jnp.float32),
        w2=0.1 * jax.random.normal(k[7], (1, Cr, 3, 3), jnp.float32),
        b2=0.1 * jax.random.normal(k[8], (1,), jnp.float32),
        # main conv stack
        wc1=0.1 * jax.random.normal(k[9], (C, C, 3, 3), jnp.float32),
        g1=1.0 + 0.1 * jax.random.normal(k[10], (C,), jnp.float32),
        beta1=0.1 * jax.random.normal(k[11], (C,), jnp.float32),
        m1=0.1 * jax.random.normal(k[12], (C,), jnp.float32),
        v1=1.0 + 0.5 * jax.random.uniform(k[13], (C,), jnp.float32),
        wc2=0.1 * jax.random.normal(k[14], (C, C, 3, 3), jnp.float32),
        g2=1.0 + 0.1 * jax.random.normal(k[15], (C,), jnp.float32),
        beta2=0.1 * jax.random.normal(k[16], (C,), jnp.float32),
        m2=0.1 * jax.random.normal(k[17], (C,), jnp.float32),
        v2=1.0 + 0.5 * jax.random.uniform(k[18], (C,), jnp.float32),
    )

    out = jax.jit(cnn_block_forward)(x, P)
    out = jax.block_until_ready(out)

    ref = jax.block_until_ready(ref_forward(x, P))
    assert out.shape == (B, C, H, W) and out.dtype == jnp.float32
    assert bool(jnp.allclose(out, ref, rtol=1e-3, atol=1e-3)), (
        f"max abs diff = {float(jnp.max(jnp.abs(out - ref)))}")

    print("KERNEL_OK")
</pallas_src>

<mosaic_0001>
module attributes {stable_mosaic.version = 11 : i64} {
  func.func @kernel(%arg0: i32, %arg1: memref<256x16xf32, #tpu.memory_space<vmem>>, %arg2: memref<16x2xf32, #tpu.memory_space<vmem>>, %arg3: memref<1x2xf32, #tpu.memory_space<vmem>>, %arg4: memref<1x18xf32, #tpu.memory_space<vmem>>, %arg5: memref<1xf32, #tpu.memory_space<smem>>, %arg6: memref<144x16xf32, #tpu.memory_space<vmem>>, %arg7: memref<1x16xf32, #tpu.memory_space<vmem>>, %arg8: memref<144x16xf32, #tpu.memory_space<vmem>>, %arg9: memref<1x16xf32, #tpu.memory_space<vmem>>, %arg10: memref<288x3xf32, #tpu.memory_space<vmem>>, %arg11: memref<256x16xf32, #tpu.memory_space<vmem>>, %arg12: memref<304x2xf32, #tpu.memory_space<vmem>>, %arg13: memref<304x16xf32, #tpu.memory_space<vmem>>, %arg14: memref<256x144xf32, #tpu.memory_space<vmem>>) attributes {dimension_semantics = [#tpu.dimension_semantics<parallel>], iteration_bounds = array<i64: 2>, scalar_prefetch = 0 : i64, scratch_operands = 3 : i64, tpu.core_type = #tpu.core_type<tc>, window_params = [{transform_indices = @transform_0, window_bounds = array<i64: 256, 16>}, {pipeline_mode = #tpu.pipeline_mode<synchronous>, transform_indices = @transform_1, window_bounds = array<i64: 16, 2>}, {pipeline_mode = #tpu.pipeline_mode<synchronous>, transform_indices = @transform_2, window_bounds = array<i64: 1, 2>}, {pipeline_mode = #tpu.pipeline_mode<synchronous>, transform_indices = @transform_3, window_bounds = array<i64: 1, 18>}, {transform_indices = @transform_4, window_bounds = array<i64: 1>}, {pipeline_mode = #tpu.pipeline_mode<synchronous>, transform_indices = @transform_5, window_bounds = array<i64: 144, 16>}, {pipeline_mode = #tpu.pipeline_mode<synchronous>, transform_indices = @transform_6, window_bounds = array<i64: 1, 16>}, {pipeline_mode = #tpu.pipeline_mode<synchronous>, transform_indices = @transform_7, window_bounds = array<i64: 144, 16>}, {pipeline_mode = #tpu.pipeline_mode<synchronous>, transform_indices = @transform_8, window_bounds = array<i64: 1, 16>}, {pipeline_mode = #tpu.pipeline_mode<synchronous>, transform_indices = @transform_9, window_bounds = array<i64: 288, 3>}, {transform_indices = @transform_10, window_bounds = array<i64: 256, 16>}]} {
    %c0 = arith.constant 0 : index
    %c0_0 = arith.constant 0 : index
    %0 = vector.load %arg1[%c0, %c0_0] : memref<256x16xf32, #tpu.memory_space<vmem>>, vector<256x16xf32>
    %cst = arith.constant 0.000000e+00 : f32
    %1 = vector.broadcast %cst : f32 to vector<24x2xf32>
    %c0_1 = arith.constant 0 : index
    %c0_2 = arith.constant 0 : index
    %2 = vector.load %arg12[%c0_1, %c0_2] : memref<304x2xf32, #tpu.memory_space<vmem>>, vector<24x2xf32>
    tpu.vector_store %arg12[%c0_1, %c0_2], %1 {strides = array<i32>} : memref<304x2xf32, #tpu.memory_space<vmem>>, vector<24x2xf32>,
    %cst_3 = arith.constant 0.000000e+00 : f32
    %3 = vector.broadcast %cst_3 : f32 to vector<24x2xf32>
    %c280 = arith.constant 280 : index
    %c0_4 = arith.constant 0 : index
    %4 = vector.load %arg12[%c280, %c0_4] : memref<304x2xf32, #tpu.memory_space<vmem>>, vector<24x2xf32>
    tpu.vector_store %arg12[%c280, %c0_4], %3 {strides = array<i32>} : memref<304x2xf32, #tpu.memory_space<vmem>>, vector<24x2xf32>,
    %cst_5 = arith.constant 0.000000e+00 : f32
    %5 = vector.broadcast %cst_5 : f32 to vector<24x16xf32>
    %c0_6 = arith.constant 0 : index
    %c0_7 = arith.constant 0 : index
    %6 = vector.load %arg13[%c0_6, %c0_7] : memref<304x16xf32, #tpu.memory_space<vmem>>, vector<24x16xf32>
    tpu.vector_store %arg13[%c0_6, %c0_7], %5 {strides = array<i32>} : memref<304x16xf32, #tpu.memory_space<vmem>>, vector<24x16xf32>,
    %cst_8 = arith.constant 0.000000e+00 : f32
    %7 = vector.broadcast %cst_8 : f32 to vector<24x16xf32>
    %c280_9 = arith.constant 280 : index
    %c0_10 = arith.constant 0 : index
    %8 = vector.load %arg13[%c280_9, %c0_10] : memref<304x16xf32, #tpu.memory_space<vmem>>, vector<24x16xf32>
    tpu.vector_store %arg13[%c280_9, %c0_10], %7 {strides = array<i32>} : memref<304x16xf32, #tpu.memory_space<vmem>>, vector<24x16xf32>,
    %c0_11 = arith.constant 0 : index
    %c0_12 = arith.constant 0 : index
    %9 = vector.load %arg2[%c0_11, %c0_12] : memref<16x2xf32, #tpu.memory_space<vmem>>, vector<16x2xf32>
    %cst_13 = arith.constant dense<0.000000e+00> : vector<256x2xf32>
    %10 = tpu.matmul %0, %9, %cst_13 {dimension_numbers = #tpu.dot_dimension_numbers<[1], [0], [0], [1], [0, 0, 1, 1], [], []>} : vector<256x16xf32>, vector<16x2xf32>, vector<256x2xf32> -> vector<256x2xf32>
    %c0_14 = arith.constant 0 : index
    %c0_15 = arith.constant 0 : index
    %11 = vector.load %arg3[%c0_14, %c0_15] : memref<1x2xf32, #tpu.memory_space<vmem>>, vector<1x2xf32>
    %12 = vector.broadcast %11 : vector<1x2xf32> to vector<256x2xf32>
    %13 = arith.addf %10, %12 : vector<256x2xf32>
    %cst_16 = arith.constant 0.000000e+00 : f32
    %14 = vector.broadcast %cst_16 : f32 to vector<256x2xf32>
    %15 = arith.maximumf %13, %14 : vector<256x2xf32>
    %c24 = arith.constant 24 : index
    %c0_17 = arith.constant 0 : index
    %16 = vector.load %arg12[%c24, %c0_17] : memref<304x2xf32, #tpu.memory_space<vmem>>, vector<256x2xf32>
    tpu.vector_store %arg12[%c24, %c0_17], %15 {strides = array<i32>} : memref<304x2xf32, #tpu.memory_space<vmem>>, vector<256x2xf32>,
    %c7 = arith.constant 7 : index
    %c0_18 = arith.constant 0 : index
    %17 = vector.load %arg12[%c7, %c0_18] : memref<304x2xf32, #tpu.memory_space<vmem>>, vector<288x2xf32>
    %c0_19 = arith.constant 0 : index
    %c0_20 = arith.constant 0 : index
    %18 = vector.load %arg10[%c0_19, %c0_20] : memref<288x3xf32, #tpu.memory_space<vmem>>, vector<288x1xf32>
    %19 = vector.broadcast %18 : vector<288x1xf32> to vector<288x2xf32>
    %20 = arith.mulf %17, %19 : vector<288x2xf32>
    %21 = vector.extract_strided_slice %20 {offsets = [0, 0], sizes = [256, 2], strides = [1, 1]} : vector<288x2xf32> to vector<256x2xf32>
    %c0_21 = arith.constant 0 : index
    %c0_22 = arith.constant 0 : index
    %22 = vector.load %arg14[%c0_21, %c0_22] : memref<256x144xf32, #tpu.memory_space<vmem>>, vector<256x2xf32>
    tpu.vector_store %arg14[%c0_21, %c0_22], %21 {strides = array<i32>} : memref<256x144xf32, #tpu.memory_space<vmem>>, vector<256x2xf32>,
    %23 = vector.extract_strided_slice %20 {offsets = [16, 0], sizes = [256, 2], strides = [1, 1]} : vector<288x2xf32> to vector<256x2xf32>
    %c0_23 = arith.constant 0 : index
    %c6 = arith.constant 6 : index
    %24 = vector.load %arg14[%c0_23, %c6] : memref<256x144xf32, #tpu.memory_space<vmem>>, vector<256x2xf32>
    tpu.vector_store %arg14[%c0_23, %c6], %23 {strides = array<i32>} : memref<256x144xf32, #tpu.memory_space<vmem>>, vector<256x2xf32>,
    %25 = vector.extract_strided_slice %20 {offsets = [32, 0], sizes = [256, 2], strides = [1, 1]} : vector<288x2xf32> to vector<256x2xf32>
    %c0_24 = arith.constant 0 : index
    %c12 = arith.constant 12 : index
    %26 = vector.load %arg14[%c0_24, %c12] : memref<256x144xf32, #tpu.memory_space<vmem>>, vector<256x2xf32>
    tpu.vector_store %arg14[%c0_24, %c12], %25 {strides = array<i32>} : memref<256x144xf32, #tpu.memory_space<vmem>>, vector<256x2xf32>,
    %c8 = arith.constant 8 : index
    %c0_25 = arith.constant 0 : index
    %27 = vector.load %arg12[%c8, %c0_25] : memref<304x2xf32, #tpu.memory_space<vmem>>, vector<288x2xf32>
    %28 = vector.extract_strided_slice %27 {offsets = [0, 0], sizes = [256, 2], strides = [1, 1]} : vector<288x2xf32> to vector<256x2xf32>
    %c0_26 = arith.constant 0 : index
    %c2 = arith.constant 2 : index
    %29 = vector.load %arg14[%c0_26, %c2] : memref<256x144xf32, #tpu.memory_space<vmem>>, vector<256x2xf32>
    tpu.vector_store %arg14[%c0_26, %c2], %28 {strides = array<i32>} : memref<256x144xf32, #tpu.memory_space<vmem>>, vector<256x2xf32>,
    %30 = vector.extract_strided_slice %27 {offsets = [16, 0], sizes = [256, 2], strides = [1, 1]} : vector<288x2xf32> to vector<256x2xf32>
    %c0_27 = arith.constant 0 : index
    %c8_28 = arith.constant 8 : index
    %31 = vector.load %arg14[%c0_27, %c8_28] : memref<256x144xf32, #tpu.memory_space<vmem>>, vector<256x2xf32>
    tpu.vector_store %arg14[%c0_27, %c8_28], %30 {strides = array<i32>} : memref<256x144xf32, #tpu.memory_space<vmem>>, vector<256x2xf32>,
    %32 = vector.extract_strided_slice %27 {offsets = [32, 0], sizes = [256, 2], strides = [1, 1]} : vector<288x2xf32> to vector<256x2xf32>
    %c0_29 = arith.constant 0 : index
    %c14 = arith.constant 14 : index
    %33 = vector.load %arg14[%c0_29, %c14] : memref<256x144xf32, #tpu.memory_space<vmem>>, vector<256x2xf32>
    tpu.vector_store %arg14[%c0_29, %c14], %32 {strides = array<i32>} : memref<256x144xf32, #tpu.memory_space<vmem>>, vector<256x2xf32>,
    %c9 = arith.constant 9 : index
    %c0_30 = arith.constant 0 : index
    %34 = vector.load %arg12[%c9, %c0_30] : memref<304x2xf32, #tpu.memory_space<vmem>>, vector<288x2xf32>
    %c0_31 = arith.constant 0 : index
    %c2_32 = arith.constant 2 : index
    %35 = vector.load %arg10[%c0_31, %c2_32] : memref<288x3xf32, #tpu.memory_space<vmem>>, vector<288x1xf32>
    %36 = vector.broadcast %35 : vector<288x1xf32> to vector<288x2xf32>
    %37 = arith.mulf %34, %36 : vector<288x2xf32>
    %38 = vector.extract_strided_slice %37 {offsets = [0, 0], sizes = [256, 2], strides = [1, 1]} : vector<288x2xf32> to vector<256x2xf32>
    %c0_33 = arith.constant 0 : index
    %c4 = arith.constant 4 : index
    %39 = vector.load %arg14[%c0_33, %c4] : memref<256x144xf32, #tpu.memory_space<vmem>>, vector<256x2xf32>
    tpu.vector_store %arg14[%c0_33, %c4], %38 {strides = array<i32>} : memref<256x144xf32, #tpu.memory_space<vmem>>, vector<256x2xf32>,
    %40 = vector.extract_strided_slice %37 {offsets = [16, 0], sizes = [256, 2], strides = [1, 1]} : vector<288x2xf32> to vector<256x2xf32>
    %c0_34 = arith.constant 0 : index
    %c10 = arith.constant 10 : index
    %41 = vector.load %arg14[%c0_34, %c10] : memref<256x144xf32, #tpu.memory_space<vmem>>, vector<256x2xf32>
    tpu.vector_store %arg14[%c0_34, %c10], %40 {strides = array<i32>} : memref<256x144xf32, #tpu.memory_space<vmem>>, vector<256x2xf32>,
    %42 = vector.extract_strided_slice %37 {offsets = [32, 0], sizes = [256, 2], strides = [1, 1]} : vector<288x2xf32> to vector<256x2xf32>
    %c0_35 = arith.constant 0 : index
    %c16 = arith.constant 16 : index
    %43 = vector.load %arg14[%c0_35, %c16] : memref<256x144xf32, #tpu.memory_space<vmem>>, vector<256x2xf32>
    tpu.vector_store %arg14[%c0_35, %c16], %42 {strides = array<i32>} : memref<256x144xf32, #tpu.memory_space<vmem>>, vector<256x2xf32>,
    %c0_36 = arith.constant 0 : index
    %c0_37 = arith.constant 0 : index
    %44 = vector.load %arg14[%c0_36, %c0_37] : memref<256x144xf32, #tpu.memory_space<vmem>>, vector<256x18xf32>
    %c0_38 = arith.constant 0 : index
    %c0_39 = arith.constant 0 : index
    %45 = vector.load %arg4[%c0_38, %c0_39] : memref<1x18xf32, #tpu.memory_space<vmem>>, vector<1x18xf32>
    %46 = vector.broadcast %45 : vector<1x18xf32> to vector<256x18xf32>
    %47 = arith.mulf %44, %46 : vector<256x18xf32>
    %cst_40 = arith.constant dense<0.000000e+00> : vector<256xf32>
    %48 = vector.multi_reduction <add>, %47, %cst_40 [1] : vector<256x18xf32> to vector<256xf32>
    %49 = vector.shape_cast %48 : vector<256xf32> to vector<256x1xf32>
    %c0_41 = arith.constant 0 : index
    %50 = memref.load %arg5[%c0_41] : memref<1xf32, #tpu.memory_space<smem>>
    %51 = vector.broadcast %50 : f32 to vector<256x1xf32>
    %52 = arith.addf %49, %51 : vector<256x1xf32>
    %53 = arith.negf %52 : vector<256x1xf32>
    %54 = math.exp %53 : vector<256x1xf32>
    %cst_42 = arith.constant 1.000000e+00 : f32
    %55 = vector.broadcast %cst_42 : f32 to vector<256x1xf32>
    %56 = arith.addf %55, %54 : vector<256x1xf32>
    %57 = arith.divf %55, %56 : vector<256x1xf32>
    %58 = vector.broadcast %57 : vector<256x1xf32> to vector<256x16xf32>
    %59 = arith.mulf %0, %58 : vector<256x16xf32>
    %c24_43 = arith.constant 24 : index
    %c0_44 = arith.constant 0 : index
    %60 = vector.load %arg13[%c24_43, %c0_44] : memref<304x16xf32, #tpu.memory_space<vmem>>, vector<256x16xf32>
    tpu.vector_store %arg13[%c24_43, %c0_44], %59 {strides = array<i32>} : memref<304x16xf32, #tpu.memory_space<vmem>>, vector<256x16xf32>,
    %c7_45 = arith.constant 7 : index
    %c0_46 = arith.constant 0 : index
    %61 = vector.load %arg13[%c7_45, %c0_46] : memref<304x16xf32, #tpu.memory_space<vmem>>, vector<288x16xf32>
    %c0_47 = arith.constant 0 : index
    %c0_48 = arith.constant 0 : index
    %62 = vector.load %arg10[%c0_47, %c0_48] : memref<288x3xf32, #tpu.memory_space<vmem>>, vector<288x1xf32>
    %63 = vector.broadcast %62 : vector<288x1xf32> to vector<288x16xf32>
    %64 = arith.mulf %61, %63 : vector<288x16xf32>
    %65 = vector.extract_strided_slice %64 {offsets = [0, 0], sizes = [256, 16], strides = [1, 1]} : vector<288x16xf32> to vector<256x16xf32>
    %c0_49 = arith.constant 0 : index
    %c0_50 = arith.constant 0 : index
    %66 = vector.load %arg14[%c0_49, %c0_50] : memref<256x144xf32, #tpu.memory_space<vmem>>, vector<256x16xf32>
    tpu.vector_store %arg14[%c0_49, %c0_50], %65 {strides = array<i32>} : memref<256x144xf32, #tpu.memory_space<vmem>>, vector<256x16xf32>,
    %67 = vector.extract_strided_slice %64 {offsets = [16, 0], sizes = [256, 16], strides = [1, 1]} : vector<288x16xf32> to vector<256x16xf32>
    %c0_51 = arith.constant 0 : index
    %c48 = arith.constant 48 : index
    %68 = vector.load %arg14[%c0_51, %c48] : memref<256x144xf32, #tpu.memory_space<vmem>>, vector<256x16xf32>
    tpu.vector_store %arg14[%c0_51, %c48], %67 {strides = array<i32>} : memref<256x144xf32, #tpu.memory_space<vmem>>, vector<256x16xf32>,
    %69 = vector.extract_strided_slice %64 {offsets = [32, 0], sizes = [256, 16], strides = [1, 1]} : vector<288x16xf32> to vector<256x16xf32>
    %c0_52 = arith.constant 0 : index
    %c96 = arith.constant 96 : index
    %70 = vector.load %arg14[%c0_52, %c96] : memref<256x144xf32, #tpu.memory_space<vmem>>, vector<256x16xf32>
    tpu.vector_store %arg14[%c0_52, %c96], %69 {strides = array<i32>} : memref<256x144xf32, #tpu.memory_space<vmem>>, vector<256x16xf32>,
    %c8_53 = arith.constant 8 : index
    %c0_54 = arith.constant 0 : index
    %71 = vector.load %arg13[%c8_53, %c0_54] : memref<304x16xf32, #tpu.memory_space<vmem>>, vector<288x16xf32>
    %72 = vector.extract_strided_slice %71 {offsets = [0, 0], sizes = [256, 16], strides = [1, 1]} : vector<288x16xf32> to vector<256x16xf32>
    %c0_55 = arith.constant 0 : index
    %c16_56 = arith.constant 16 : index
    %73 = vector.load %arg14[%c0_55, %c16_56] : memref<256x144xf32, #tpu.memory_space<vmem>>, vector<256x16xf32>
    tpu.vector_store %arg14[%c0_55, %c16_56], %72 {strides = array<i32>} : memref<256x144xf32, #tpu.memory_space<vmem>>, vector<256x16xf32>,
    %74 = vector.extract_strided_slice %71 {offsets = [16, 0], sizes = [256, 16], strides = [1, 1]} : vector<288x16xf32> to vector<256x16xf32>
    %c0_57 = arith.constant 0 : index
    %c64 = arith.constant 64 : index
    %75 = vector.load %arg14[%c0_57, %c64] : memref<256x144xf32, #tpu.memory_space<vmem>>, vector<256x16xf32>
    tpu.vector_store %arg14[%c0_57, %c64], %74 {strides = array<i32>} : memref<256x144xf32, #tpu.memory_space<vmem>>, vector<256x16xf32>,
    %76 = vector.extract_strided_slice %71 {offsets = [32, 0], sizes = [256, 16], strides = [1, 1]} : vector<288x16xf32> to vector<256x16xf32>
    %c0_58 = arith.constant 0 : index
    %c112 = arith.constant 112 : index
    %77 = vector.load %arg14[%c0_58, %c112] : memref<256x144xf32, #tpu.memory_space<vmem>>, vector<256x16xf32>
    tpu.vector_store %arg14[%c0_58, %c112], %76 {strides = array<i32>} : memref<256x144xf32, #tpu.memory_space<vmem>>, vector<256x16xf32>,
    %c9_59 = arith.constant 9 : index
    %c0_60 = arith.constant 0 : index
    %78 = vector.load %arg13[%c9_59, %c0_60] : memref<304x16xf32, #tpu.memory_space<vmem>>, vector<288x16xf32>
    %c0_61 = arith.constant 0 : index
    %c2_62 = arith.constant 2 : index
    %79 = vector.load %arg10[%c0_61, %c2_62] : memref<288x3xf32, #tpu.memory_space<vmem>>, vector<288x1xf32>
    %80 = vector.broadcast %79 : vector<288x1xf32> to vector<288x16xf32>
    %81 = arith.mulf %78, %80 : vector<288x16xf32>
    %82 = vector.extract_strided_slice %81 {offsets = [0, 0], sizes = [256, 16], strides = [1, 1]} : vector<288x16xf32> to vector<256x16xf32>
    %c0_63 = arith.constant 0 : index
    %c32 = arith.constant 32 : index
    %83 = vector.load %arg14[%c0_63, %c32] : memref<256x144xf32, #tpu.memory_space<vmem>>, vector<256x16xf32>
    tpu.vector_store %arg14[%c0_63, %c32], %82 {strides = array<i32>} : memref<256x144xf32, #tpu.memory_space<vmem>>, vector<256x16xf32>,
    %84 = vector.extract_strided_slice %81 {offsets = [16, 0], sizes = [256, 16], strides = [1, 1]} : vector<288x16xf32> to vector<256x16xf32>
    %c0_64 = arith.constant 0 : index
    %c80 = arith.constant 80 : index
    %85 = vector.load %arg14[%c0_64, %c80] : memref<256x144xf32, #tpu.memory_space<vmem>>, vector<256x16xf32>
    tpu.vector_store %arg14[%c0_64, %c80], %84 {strides = array<i32>} : memref<256x144xf32, #tpu.memory_space<vmem>>, vector<256x16xf32>,
    %86 = vector.extract_strided_slice %81 {offsets = [32, 0], sizes = [256, 16], strides = [1, 1]} : vector<288x16xf32> to vector<256x16xf32>
    %c0_65 = arith.constant 0 : index
    %c128 = arith.constant 128 : index
    %87 = vector.load %arg14[%c0_65, %c128] : memref<256x144xf32, #tpu.memory_space<vmem>>, vector<256x16xf32>
    tpu.vector_store %arg14[%c0_65, %c128], %86 {strides = array<i32>} : memref<256x144xf32, #tpu.memory_space<vmem>>, vector<256x16xf32>,
    %c0_66 = arith.constant 0 : index
    %c0_67 = arith.constant 0 : index
    %88 = vector.load %arg14[%c0_66, %c0_67] : memref<256x144xf32, #tpu.memory_space<vmem>>, vector<256x144xf32>
    %c0_68 = arith.constant 0 : index
    %c0_69 = arith.constant 0 : index
    %89 = vector.load %arg6[%c0_68, %c0_69] : memref<144x16xf32, #tpu.memory_space<vmem>>, vector<144x16xf32>
    %cst_70 = arith.constant dense<0.000000e+00> : vector<256x16xf32>
    %90 = tpu.matmul %88, %89, %cst_70 {dimension_numbers = #tpu.dot_dimension_numbers<[1], [0], [0], [1], [0, 0, 1, 1], [], []>} : vector<256x144xf32>, vector<144x16xf32>, vector<256x16xf32> -> vector<256x16xf32>
    %c0_71 = arith.constant 0 : index
    %c0_72 = arith.constant 0 : index
    %91 = vector.load %arg7[%c0_71, %c0_72] : memref<1x16xf32, #tpu.memory_space<vmem>>, vector<1x16xf32>
    %92 = vector.broadcast %91 : vector<1x16xf32> to vector<256x16xf32>
    %93 = arith.addf %90, %92 : vector<256x16xf32>
    %cst_73 = arith.constant 0.000000e+00 : f32
    %94 = vector.broadcast %cst_73 : f32 to vector<256x16xf32>
    %95 = arith.maximumf %93, %94 : vector<256x16xf32>
    %c24_74 = arith.constant 24 : index
    %c0_75 = arith.constant 0 : index
    %96 = vector.load %arg13[%c24_74, %c0_75] : memref<304x16xf32, #tpu.memory_space<vmem>>, vector<256x16xf32>
    tpu.vector_store %arg13[%c24_74, %c0_75], %95 {strides = array<i32>} : memref<304x16xf32, #tpu.memory_space<vmem>>, vector<256x16xf32>,
    %c7_76 = arith.constant 7 : index
    %c0_77 = arith.constant 0 : index
    %97 = vector.load %arg13[%c7_76, %c0_77] : memref<304x16xf32, #tpu.memory_space<vmem>>, vector<288x16xf32>
    %c0_78 = arith.constant 0 : index
    %c0_79 = arith.constant 0 : index
    %98 = vector.load %arg10[%c0_78, %c0_79] : memref<288x3xf32, #tpu.memory_space<vmem>>, vector<288x1xf32>
    %99 = vector.broadcast %98 : vector<288x1xf32> to vector<288x16xf32>
    %100 = arith.mulf %97, %99 : vector<288x16xf32>
    %101 = vector.extract_strided_slice %100 {offsets = [0, 0], sizes = [256, 16], strides = [1, 1]} : vector<288x16xf32> to vector<256x16xf32>
    %c0_80 = arith.constant 0 : index
    %c0_81 = arith.constant 0 : index
    %102 = vector.load %arg14[%c0_80, %c0_81] : memref<256x144xf32, #tpu.memory_space<vmem>>, vector<256x16xf32>
    tpu.vector_store %arg14[%c0_80, %c0_81], %101 {strides = array<i32>} : memref<256x144xf32, #tpu.memory_space<vmem>>, vector<256x16xf32>,
    %103 = vector.extract_strided_slice %100 {offsets = [16, 0], sizes = [256, 16], strides = [1, 1]} : vector<288x16xf32> to vector<256x16xf32>
    %c0_82 = arith.constant 0 : index
    %c48_83 = arith.constant 48 : index
    %104 = vector.load %arg14[%c0_82, %c48_83] : memref<256x144xf32, #tpu.memory_space<vmem>>, vector<256x16xf32>
    tpu.vector_store %arg14[%c0_82, %c48_83], %103 {strides = array<i32>} : memref<256x144xf32, #tpu.memory_space<vmem>>, vector<256x16xf32>,
    %105 = vector.extract_strided_slice %100 {offsets = [32, 0], sizes = [256, 16], strides = [1, 1]} : vector<288x16xf32> to vector<256x16xf32>
    %c0_84 = arith.constant 0 : index
    %c96_85 = arith.constant 96 : index
    %106 = vector.load %arg14[%c0_84, %c96_85] : memref<256x144xf32, #tpu.memory_space<vmem>>, vector<256x16xf32>
    tpu.vector_store %arg14[%c0_84, %c96_85], %105 {strides = array<i32>} : memref<256x144xf32, #tpu.memory_space<vmem>>, vector<256x16xf32>,
    %c8_86 = arith.constant 8 : index
    %c0_87 = arith.constant 0 : index
    %107 = vector.load %arg13[%c8_86, %c0_87] : memref<304x16xf32, #tpu.memory_space<vmem>>, vector<288x16xf32>
    %108 = vector.extract_strided_slice %107 {offsets = [0, 0], sizes = [256, 16], strides = [1, 1]} : vector<288x16xf32> to vector<256x16xf32>
    %c0_88 = arith.constant 0 : index
    %c16_89 = arith.constant 16 : index
    %109 = vector.load %arg14[%c0_88, %c16_89] : memref<256x144xf32, #tpu.memory_space<vmem>>, vector<256x16xf32>
    tpu.vector_store %arg14[%c0_88, %c16_89], %108 {strides = array<i32>} : memref<256x144xf32, #tpu.memory_space<vmem>>, vector<256x16xf32>,
    %110 = vector.extract_strided_slice %107 {offsets = [16, 0], sizes = [256, 16], strides = [1, 1]} : vector<288x16xf32> to vector<256x16xf32>
    %c0_90 = arith.constant 0 : index
    %c64_91 = arith.constant 64 : index
    %111 = vector.load %arg14[%c0_90, %c64_91] : memref<256x144xf32, #tpu.memory_space<vmem>>, vector<256x16xf32>
    tpu.vector_store %arg14[%c0_90, %c64_91], %110 {strides = array<i32>} : memref<256x144xf32, #tpu.memory_space<vmem>>, vector<256x16xf32>,
    %112 = vector.extract_strided_slice %107 {offsets = [32, 0], sizes = [256, 16], strides = [1, 1]} : vector<288x16xf32> to vector<256x16xf32>
    %c0_92 = arith.constant 0 : index
    %c112_93 = arith.constant 112 : index
    %113 = vector.load %arg14[%c0_92, %c112_93] : memref<256x144xf32, #tpu.memory_space<vmem>>, vector<256x16xf32>
    tpu.vector_store %arg14[%c0_92, %c112_93], %112 {strides = array<i32>} : memref<256x144xf32, #tpu.memory_space<vmem>>, vector<256x16xf32>,
    %c9_94 = arith.constant 9 : index
    %c0_95 = arith.constant 0 : index
    %114 = vector.load %arg13[%c9_94, %c0_95] : memref<304x16xf32, #tpu.memory_space<vmem>>, vector<288x16xf32>
    %c0_96 = arith.constant 0 : index
    %c2_97 = arith.constant 2 : index
    %115 = vector.load %arg10[%c0_96, %c2_97] : memref<288x3xf32, #tpu.memory_space<vmem>>, vector<288x1xf32>
    %116 = vector.broadcast %115 : vector<288x1xf32> to vector<288x16xf32>
    %117 = arith.mulf %114, %116 : vector<288x16xf32>
    %118 = vector.extract_strided_slice %117 {offsets = [0, 0], sizes = [256, 16], strides = [1, 1]} : vector<288x16xf32> to vector<256x16xf32>
    %c0_98 = arith.constant 0 : index
    %c32_99 = arith.constant 32 : index
    %119 = vector.load %arg14[%c0_98, %c32_99] : memref<256x144xf32, #tpu.memory_space<vmem>>, vector<256x16xf32>
    tpu.vector_store %arg14[%c0_98, %c32_99], %118 {strides = array<i32>} : memref<256x144xf32, #tpu.memory_space<vmem>>, vector<256x16xf32>,
    %120 = vector.extract_strided_slice %117 {offsets = [16, 0], sizes = [256, 16], strides = [1, 1]} : vector<288x16xf32> to vector<256x16xf32>
    %c0_100 = arith.constant 0 : index
    %c80_101 = arith.constant 80 : index
    %121 = vector.load %arg14[%c0_100, %c80_101] : memref<256x144xf32, #tpu.memory_space<vmem>>, vector<256x16xf32>
    tpu.vector_store %arg14[%c0_100, %c80_101], %120 {strides = array<i32>} : memref<256x144xf32, #tpu.memory_space<vmem>>, vector<256x16xf32>,
    %122 = vector.extract_strided_slice %117 {offsets = [32, 0], sizes = [256, 16], strides = [1, 1]} : vector<288x16xf32> to vector<256x16xf32>
    %c0_102 = arith.constant 0 : index
    %c128_103 = arith.constant 128 : index
    %123 = vector.load %arg14[%c0_102, %c128_103] : memref<256x144xf32, #tpu.memory_space<vmem>>, vector<256x16xf32>
    tpu.vector_store %arg14[%c0_102, %c128_103], %122 {strides = array<i32>} : memref<256x144xf32, #tpu.memory_space<vmem>>, vector<256x16xf32>,
    %c0_104 = arith.constant 0 : index
    %c0_105 = arith.constant 0 : index
    %124 = vector.load %arg14[%c0_104, %c0_105] : memref<256x144xf32, #tpu.memory_space<vmem>>, vector<256x144xf32>
    %c0_106 = arith.constant 0 : index
    %c0_107 = arith.constant 0 : index
    %125 = vector.load %arg8[%c0_106, %c0_107] : memref<144x16xf32, #tpu.memory_space<vmem>>, vector<144x16xf32>
    %cst_108 = arith.constant dense<0.000000e+00> : vector<256x16xf32>
    %126 = tpu.matmul %124, %125, %cst_108 {dimension_numbers = #tpu.dot_dimension_numbers<[1], [0], [0], [1], [0, 0, 1, 1], [], []>} : vector<256x144xf32>, vector<144x16xf32>, vector<256x16xf32> -> vector<256x16xf32>
    %c0_109 = arith.constant 0 : index
    %c0_110 = arith.constant 0 : index
    %127 = vector.load %arg9[%c0_109, %c0_110] : memref<1x16xf32, #tpu.memory_space<vmem>>, vector<1x16xf32>
    %128 = vector.broadcast %127 : vector<1x16xf32> to vector<256x16xf32>
    %129 = arith.addf %126, %128 : vector<256x16xf32>
    %130 = arith.addf %129, %0 : vector<256x16xf32>
    %cst_111 = arith.constant 0.000000e+00 : f32
    %131 = vector.broadcast %cst_111 : f32 to vector<256x16xf32>
    %132 = arith.maximumf %130, %131 : vector<256x16xf32>
    %c0_112 = arith.constant 0 : index
    %c0_113 = arith.constant 0 : index
    %133 = vector.load %arg11[%c0_112, %c0_113] : memref<256x16xf32, #tpu.memory_space<vmem>>, vector<256x16xf32>
    tpu.vector_store %arg11[%c0_112, %c0_113], %132 {strides = array<i32>} : memref<256x16xf32, #tpu.memory_space<vmem>>, vector<256x16xf32>,
    return
  }
  func.func @transform_0(%arg0: i32) -> (i32, i32) {
    %c0_i32 = arith.constant 0 : i32
    %c0_i32_0 = arith.constant 0 : i32
    return %arg0, %c0_i32 : i32, i32
  }
  func.func @transform_1(%arg0: i32) -> (i32, i32) {
    %c0_i32 = arith.constant 0 : i32
    %c0_i32_0 = arith.constant 0 : i32
    %c0_i32_1 = arith.constant 0 : i32
    return %c0_i32, %c0_i32_0 : i32, i32
  }
  func.func @transform_2(%arg0: i32) -> (i32, i32) {
    %c0_i32 = arith.constant 0 : i32
    %c0_i32_0 = arith.constant 0 : i32
    %c0_i32_1 = arith.constant 0 : i32
    return %c0_i32, %c0_i32_0 : i32, i32
  }
  func.func @transform_3(%arg0: i32) -> (i32, i32) {
    %c0_i32 = arith.constant 0 : i32
    %c0_i32_0 = arith.constant 0 : i32
    %c0_i32_1 = arith.constant 0 : i32
    return %c0_i32, %c0_i32_0 : i32, i32
  }
  func.func @transform_4(%arg0: i32) -> i32 {
    %c0_i32 = arith.constant 0 : i32
    %c0_i32_0 = arith.constant 0 : i32
    return %c0_i32 : i32
  }
  func.func @transform_5(%arg0: i32) -> (i32, i32) {
    %c0_i32 = arith.constant 0 : i32
    %c0_i32_0 = arith.constant 0 : i32
    %c0_i32_1 = arith.constant 0 : i32
    return %c0_i32, %c0_i32_0 : i32, i32
  }
  func.func @transform_6(%arg0: i32) -> (i32, i32) {
    %c0_i32 = arith.constant 0 : i32
    %c0_i32_0 = arith.constant 0 : i32
    %c0_i32_1 = arith.constant 0 : i32
    return %c0_i32, %c0_i32_0 : i32, i32
  }
  func.func @transform_7(%arg0: i32) -> (i32, i32) {
    %c0_i32 = arith.constant 0 : i32
    %c0_i32_0 = arith.constant 0 : i32
    %c0_i32_1 = arith.constant 0 : i32
    return %c0_i32, %c0_i32_0 : i32, i32
  }
  func.func @transform_8(%arg0: i32) -> (i32, i32) {
    %c0_i32 = arith.constant 0 : i32
    %c0_i32_0 = arith.constant 0 : i32
    %c0_i32_1 = arith.constant 0 : i32
    return %c0_i32, %c0_i32_0 : i32, i32
  }
  func.func @transform_9(%arg0: i32) -> (i32, i32) {
    %c0_i32 = arith.constant 0 : i32
    %c0_i32_0 = arith.constant 0 : i32
    %c0_i32_1 = arith.constant 0 : i32
    return %c0_i32, %c0_i32_0 : i32, i32
  }
  func.func @transform_10(%arg0: i32) -> (i32, i32) {
    %c0_i32 = arith.constant 0 : i32
    %c0_i32_0 = arith.constant 0 : i32
    return %arg0, %c0_i32 : i32, i32
  }
}

</mosaic_0001>

<bundles_post_ra>
// kernel: cnn_block_forward.1
= control target key start
LH: loop header
LB: loop body
LE: loop exit
PB: predicated region body
PF: predicated region fallthrough
CT: control target
= control target key end

     0   :  { %s8218_s15 = smov 0   ;;  %s13355_s0 = inlined_call_operand.vmem [shape: f32[512,16], index: 0, kind: input, shape index: {}]   ;;  %s13356_s1 = inlined_call_operand.vmem [shape: f32[16,2], index: 1, kind: input, shape index: {}]   ;;  %s13357_s2 = inlined_call_operand.vmem [shape: f32[1,2], index: 2, kind: input, shape index: {}]   ;;  %s13358_s3 = inlined_call_operand.vmem [shape: f32[1,18], index: 3, kind: input, shape index: {}]   ;;  %s13359_s4 = inlined_call_operand.<no memory space> [shape: f32[1], index: 4, kind: input, shape index: {}]   ;;  %s13360_s5 = inlined_call_operand.vmem [shape: f32[144,16], index: 5, kind: input, shape index: {}]   ;;  %s13361_s6 = inlined_call_operand.vmem [shape: f32[1,16], index: 6, kind: input, shape index: {}]   ;;  %s13362_s7 = inlined_call_operand.vmem [shape: f32[144,16], index: 7, kind: input, shape index: {}]   ;;  %s13363_s8 = inlined_call_operand.vmem [shape: f32[1,16], index: 8, kind: input, shape index: {}]   ;;  %s13364_s9 = inlined_call_operand.vmem [shape: f32[288,3], index: 9, kind: input, shape index: {}]   ;;  %s13365_s10 = inlined_call_operand.vmem [shape: f32[512,16], index: 10, kind: output, shape index: {}]  }
   0x1   :  { %15 = sst [smem:[#allocation5]] %s13359_s4 }
   0x2 LB: > { %s7733_s16 = sadd.s32 4294967295, %s8141_s15   ;;  %p7737_p0 = scmp.ge.s32.totalorder %s8141_s15, 1  ;;  %s8141_s15 = sphi %s8218_s15, %s21_s15  }
   0x3   : > { %p314_p1 = scmp.lt.s32.totalorder %s8141_s15, 3 }
   0x5   : > { %p315_p2 = pnand %p7737_p0, %p314_p1 }
   0x6   : > { %s7738_s22 = sshll.u32 (!%p315_p2), %s7733_s16, 5  ;;  %s8145_s30 = smov (!%p315_p2), 6  }
   0x7   : > { %318 = sbr.rel (%p315_p2) target bundleno = 3618 (0xe22), region = 60  ;;  %p353_p3 = scmp.lt.s32.totalorder (!%p315_p2), %s7738_s22, 63 }
   0x8   : > { %s8146_s11 = smov (!%p315_p2), 12   ;;  %s8147_s13 = smov (!%p315_p2), 2  }
   0x9   : > { %s8148_s14 = smov (!%p315_p2), 8   ;;  %s8149_s16 = smov (!%p315_p2), 14  }
   0xa   : > { %s8152_s21 = smov (!%p315_p2), 10   ;;  %s8153_s23 = smov (!%p315_p2), 16  }
   0xb   : > { %s8154_s18 = smov (!%p315_p2), 48   ;;  %s8155_s4 = smov (!%p315_p2), 96  }
   0xc   : > { %v729_v0 = vld [vmem:[%s13364_s9 + $0x20] sm:$0xff]  ;;  %v727_v1 = vld [vmem:[%s13364_s9 + $0x10] sm:$0xff]  ;;  %v8143_v3 = vmov 0   ;;  %v411_v4 = vld [vmem:[%s13356_s1 + $0x8] sm:$0xff]  ;;  %s13419_s22 = smov (!%p353_p3, %s7738_s22), 63  ;;  %vm403_vm0 = vcmask 130048  }
   0xd   : > { %v725_v2 = vld [vmem:[%s13364_s9] sm:$0xff]  ;;  %7907 = vset.pattern.permute.xlu2 %v8143_v3  ;;  %7906 = vset.pattern.permute.xlu1 %v8143_v3  ;;  %s7739_s27 = sshll.u32 %s13419_s22, 3  ;;  %v730_v6 = vld [vmem:[%s13364_s9 + $0x28] sm:$0xff]  ;;  %v728_v11 = vld [vmem:[%s13364_s9 + $0x18] sm:$0xff]  ;;  %vm396_vm1 = vcmask 15360   ;;  %vm1137_vm2 = vcmask 64560  }
   0xe   : > { %7905 = vset.pattern.permute.xlu0 %v8143_v3  ;;  %783 = vperm.xlu2 %7907, %v729_v0   ;;  %v410_v5 = vld [vmem:[%s13356_s1] sm:$0xff]  ;;  %s8255_s12 = scalar_lea.vmem %s13355_s0, %s7739_s27  ;;  %v726_v12 = vld [vmem:[%s13364_s9 + $0x8] sm:$0xff]  ;;  %v732_v18 = vld [vmem:[%s13364_s9 + $0x38] sm:$0xff]  ;;  %vm1268_vm3 = vcmask 113760   ;;  %vm1465_vm4 = vcmask 31760   ;;  %vm1596_vm5 = vcmask 80960  }
   0xf   : > { %773 = vperm.xlu1 %7906, %v727_v1   ;;  %763 = vperm.xlu0 %7905, %v725_v2   ;;  %v364_v7 = vld [vmem:[%s8255_s12] sm:$0xff]  ;;  %v374_v8 = vld [vmem:[%s8255_s12 + $0x50] sm:$0xff]  ;;  %v391_v10 = vld [vmem:[%s8255_s12 + $0xd8] sm:$0xff]  ;;  %v8144_v1 = vmov 0.0   ;;  %vm1727_vm6 = vcmask 130160   ;;  %vm2176_vm7 = vcmask 48160  }
  0x10   : > { %526 = vmatpush.msra.mxu0 %v411_v4  ;;  %7872 = vmatpush.msra.mxu1 %v411_v4  ;;  %v382_v9 = vld [vmem:[%s8255_s12 + $0x90] sm:$0xff]  ;;  %v365_v13 = vld [vmem:[%s8255_s12 + $0x8] sm:$0xff]  ;;  %v375_v14 = vld [vmem:[%s8255_s12 + $0x58] sm:$0xff]  ;;  %397 = vst.msk [vmem:[#allocation2] sm:$0xff] %vm396_vm1, %v8144_v1  ;;  %vm2307_vm8 = vcmask 97360   ;;  %vm2438_vm9 = vcmask 146560  }
  0x11   : > { %7873 = vmatpush.msra.mxu2 %v411_v4  ;;  %7874 = vmatpush.msra.mxu3 %v411_v4  ;;  %v383_v15 = vld [vmem:[%s8255_s12 + $0x98] sm:$0xff]  ;;  %v392_v16 = vld [vmem:[%s8255_s12 + $0xe0] sm:$0xff]  ;;  %v731_v19 = vld [vmem:[%s13364_s9 + $0x30] sm:$0xff]  ;;  %398 = vst.msk [vmem:[#allocation2 + $0x8] sm:$0xff] %vm396_vm1, %v8144_v1  ;;  %vm2539_vm10 = vcmask 146432   ;;  %s8156_s19 = smov 64  }
  0x12   : > { %527 = vmatpush.msra.mxu0 %v410_v5  ;;  %7875 = vmatpush.msra.mxu1 %v410_v5  ;;  %v733_v17 = vld [vmem:[%s13364_s9 + $0x40] sm:$0xff]  ;;  %v366_v20 = vld [vmem:[%s8255_s12 + $0x10] sm:$0xff]  ;;  %v393_v23 = vld [vmem:[%s8255_s12 + $0xe8] sm:$0xff]  ;;  %399 = vst.msk [vmem:[#allocation2 + $0x10] sm:$0xff] %vm396_vm1, %v8144_v1  ;;  %s8157_s20 = smov 112   ;;  %s8158_s25 = smov 32  }
  0x13   : > { %7876 = vmatpush.msra.mxu2 %v410_v5  ;;  %7877 = vmatpush.msra.mxu3 %v410_v5  ;;  %v376_v21 = vld [vmem:[%s8255_s12 + $0x60] sm:$0xff]  ;;  %v736_v24 = vld [vmem:[%s13364_s9 + $0x58] sm:$0xff]  ;;  %v735_v25 = vld [vmem:[%s13364_s9 + $0x50] sm:$0xff]  ;;  %400 = vst.msk [vmem:[#allocation2 + $0x118] sm:$0xff] %vm396_vm1, %v8144_v1  ;;  %s8159_s26 = smov 80  }
  0x14   : > { %7742 = vmatmul.msk.f32.vlgmr.msra.gmra.mxu0 %vm403_vm0, %v364_v7  ;;  %7752 = vmatmul.msk.f32.vlgmr.msra.gmra.mxu1 %vm403_vm0, %v374_v8  ;;  %v384_v22 = vld [vmem:[%s8255_s12 + $0xa0] sm:$0xff]  ;;  %v734_v26 = vld [vmem:[%s13364_s9 + $0x48] sm:$0xff]  ;;  %v367_v27 = vld [vmem:[%s8255_s12 + $0x18] sm:$0xff]  ;;  %401 = vst.msk [vmem:[#allocation2 + $0x120] sm:$0xff] %vm396_vm1, %v8144_v1 }
  0x15   : > { %7760 = vmatmul.msk.f32.vlgmr.msra.gmra.mxu2 %vm403_vm0, %v382_v9  ;;  %7769 = vmatmul.msk.f32.vlgmr.msra.gmra.mxu3 %vm403_vm0, %v391_v10  ;;  %v377_v28 = vld [vmem:[%s8255_s12 + $0x68] sm:$0xff]  ;;  %v394_v30 = vld [vmem:[%s8255_s12 + $0xf0] sm:$0xff]  ;;  %v737_v33 = vld [vmem:[%s13364_s9 + $0x60] sm:$0xff]  ;;  %402 = vst.msk [vmem:[#allocation2 + $0x128] sm:$0xff] %vm396_vm1, %v8144_v1 }
  0x16   : > { %788 = vperm.xlu2 %7907, %v730_v6   ;;  %v385_v29 = vld [vmem:[%s8255_s12 + $0xa8] sm:$0xff]  ;;  %v739_v31 = vld [vmem:[%s13364_s9 + $0x70] sm:$0xff]  ;;  %v368_v34 = vld [vmem:[%s8255_s12 + $0x20] sm:$0xff]  ;;  %404 = vst.msk [vmem:[#allocation3] sm:$0xff] %vm403_vm0, %v8144_v1 }
  0x17   : > { %778 = vperm.xlu1 %7906, %v728_v11   ;;  %768 = vperm.xlu0 %7905, %v726_v12   ;;  %v738_v32 = vld [vmem:[%s13364_s9 + $0x68] sm:$0xff]  ;;  %v378_v35 = vld [vmem:[%s8255_s12 + $0x70] sm:$0xff]  ;;  %v395_v37 = vld [vmem:[%s8255_s12 + $0xf8] sm:$0xff]  ;;  %405 = vst.msk [vmem:[#allocation3 + $0x8] sm:$0xff] %vm403_vm0, %v8144_v1 }
  0x18   : > { %v386_v36 = vld [vmem:[%s8255_s12 + $0xb0] sm:$0xff]  ;;  %v742_v38 = vld [vmem:[%s13364_s9 + $0x88] sm:$0xff]  ;;  %v741_v39 = vld [vmem:[%s13364_s9 + $0x80] sm:$0xff]  ;;  %406 = vst.msk [vmem:[#allocation3 + $0x10] sm:$0xff] %vm403_vm0, %v8144_v1 }
  0x19   : > { %v740_v40 = vld [vmem:[%s13364_s9 + $0x78] sm:$0xff]  ;;  %v369_v41 = vld [vmem:[%s8255_s12 + $0x28] sm:$0xff]  ;;  %v745_v44 = vld [vmem:[%s13364_s9 + $0xa0] sm:$0xff]  ;;  %407 = vst.msk [vmem:[#allocation3 + $0x118] sm:$0xff] %vm403_vm0, %v8144_v1 }
  0x1a   : > { %v379_v42 = vld [vmem:[%s8255_s12 + $0x78] sm:$0xff]  ;;  %v743_v46 = vld [vmem:[%s13364_s9 + $0x90] sm:$0xff]  ;;  %v380_v48 = vld [vmem:[%s8255_s12 + $0x80] sm:$0xff]  ;;  %408 = vst.msk [vmem:[#allocation3 + $0x120] sm:$0xff] %vm403_vm0, %v8144_v1 }
  0x1b   : > { %v387_v43 = vld [vmem:[%s8255_s12 + $0xb8] sm:$0xff]  ;;  %v370_v47 = vld [vmem:[%s8255_s12 + $0x30] sm:$0xff]  ;;  %v388_v49 = vld [vmem:[%s8255_s12 + $0xc0] sm:$0xff]  ;;  %409 = vst.msk [vmem:[#allocation3 + $0x128] sm:$0xff] %vm403_vm0, %v8144_v1 }
  0x1c   : > { %7743 = vmatmul.msk.f32.gmra.mxu0 %vm403_vm0, %v365_v13  ;;  %7753 = vmatmul.msk.f32.gmra.mxu1 %vm403_vm0, %v375_v14  ;;  %v744_v45 = vld [vmem:[%s13364_s9 + $0x98] sm:$0xff]  ;;  %v747_v51 = vld [vmem:[%s13364_s9 + $0xb0] sm:$0xff]  ;;  %v746_v52 = vld [vmem:[%s13364_s9 + $0xa8] sm:$0xff] }
  0x1d   : > { %7761 = vmatmul.msk.f32.gmra.mxu2 %vm403_vm0, %v383_v15  ;;  %7770 = vmatmul.msk.f32.gmra.mxu3 %vm403_vm0, %v392_v16  ;;  %v748_v50 = vld [vmem:[%s13364_s9 + $0xb8] sm:$0xff]  ;;  %v381_v54 = vld [vmem:[%s8255_s12 + $0x88] sm:$0xff]  ;;  %v751_v56 = vld [vmem:[%s13364_s9 + $0xd0] sm:$0xff] }
  0x1e   : > { %803 = vperm.xlu2 %7907, %v733_v17   ;;  %v371_v53 = vld [vmem:[%s8255_s12 + $0x38] sm:$0xff]  ;;  %v389_v55 = vld [vmem:[%s8255_s12 + $0xc8] sm:$0xff]  ;;  %v749_v58 = vld [vmem:[%s13364_s9 + $0xc0] sm:$0xff] }
  0x1f   : > { %798 = vperm.xlu1 %7906, %v732_v18   ;;  %793 = vperm.xlu0 %7905, %v731_v19   ;;  %v750_v57 = vld [vmem:[%s13364_s9 + $0xc8] sm:$0xff]  ;;  %v372_v59 = vld [vmem:[%s8255_s12 + $0x40] sm:$0xff]  ;;  %v390_v60 = vld [vmem:[%s8255_s12 + $0xd0] sm:$0xff] }
  0x20   : > { %v754_v61 = vld [vmem:[%s13364_s9 + $0xe8] sm:$0xff]  ;;  %v753_v62 = vld [vmem:[%s13364_s9 + $0xe0] sm:$0xff]  ;;  %v752_v63 = vld [vmem:[%s13364_s9 + $0xd8] sm:$0xff] }
  0x21   : > { %v373_v0 = vld [vmem:[%s8255_s12 + $0x48] sm:$0xff]  ;;  %v757_v2 = vld [vmem:[%s13364_s9 + $0x100] sm:$0xff]  ;;  %v756_v4 = vld [vmem:[%s13364_s9 + $0xf8] sm:$0xff] }
  0x22   : > { %v755_v5 = vld [vmem:[%s13364_s9 + $0xf0] sm:$0xff]  ;;  %v760_v6 = vld [vmem:[%s13364_s9 + $0x118] sm:$0xff]  ;;  %v758_v8 = vld [vmem:[%s13364_s9 + $0x108] sm:$0xff] }
  0x23   : > { %v759_v7 = vld [vmem:[%s13364_s9 + $0x110] sm:$0xff]  ;;  %v689_v11 = vld [vmem:[#allocation2 + $0x7] sm:$0xff] }
  0x24   : > { %7744 = vmatmul.msk.f32.gmra.mxu0 %vm403_vm0, %v366_v20  ;;  %7754 = vmatmul.msk.f32.gmra.mxu1 %vm403_vm0, %v376_v21  ;;  %v690_v16 = vld [vmem:[#allocation2 + $0xf] sm:$0xff]  ;;  %v8440_v20 = vld [vmem:[%s13357_s2] ss:$0 sm:$0xff] }
  0x25   : > { %7762 = vmatmul.msk.f32.gmra.mxu2 %vm403_vm0, %v384_v22  ;;  %7771 = vmatmul.msk.f32.gmra.mxu3 %vm403_vm0, %v393_v23 }
  0x26   : > { %818 = vperm.xlu2 %7907, %v736_v24  }
  0x27   : > { %813 = vperm.xlu1 %7906, %v735_v25   ;;  %808 = vperm.xlu0 %7905, %v734_v26  }
  0x2c   : > { %7745 = vmatmul.msk.f32.gmra.mxu0 %vm403_vm0, %v367_v27  ;;  %7755 = vmatmul.msk.f32.gmra.mxu1 %vm403_vm0, %v377_v28 }
  0x2d   : > { %7763 = vmatmul.msk.f32.gmra.mxu2 %vm403_vm0, %v385_v29  ;;  %7772 = vmatmul.msk.f32.gmra.mxu3 %vm403_vm0, %v394_v30 }
  0x2e   : > { %833 = vperm.xlu2 %7907, %v739_v31  }
  0x2f   : > { %828 = vperm.xlu1 %7906, %v738_v32   ;;  %823 = vperm.xlu0 %7905, %v737_v33  }
  0x34   : > { %7746 = vmatmul.msk.f32.gmra.mxu0 %vm403_vm0, %v368_v34  ;;  %7756 = vmatmul.msk.f32.gmra.mxu1 %vm403_vm0, %v378_v35 }
  0x35   : > { %7764 = vmatmul.msk.f32.gmra.mxu2 %vm403_vm0, %v386_v36  ;;  %7773 = vmatmul.msk.f32.gmra.mxu3 %vm403_vm0, %v395_v37 }
  0x36   : > { %848 = vperm.xlu2 %7907, %v742_v38  }
  0x37   : > { %843 = vperm.xlu1 %7906, %v741_v39   ;;  %838 = vperm.xlu0 %7905, %v740_v40  }
  0x3c   : > { %7747 = vmatmul.msk.f32.gmra.mxu0 %vm403_vm0, %v369_v41  ;;  %7757 = vmatmul.msk.f32.gmra.mxu1 %vm403_vm0, %v379_v42 }
  0x3d   : > { %7765 = vmatmul.msk.f32.gmra.mxu2 %vm403_vm0, %v387_v43 }
  0x3e   : > { %863 = vperm.xlu2 %7907, %v745_v44  }
  0x3f   : > { %858 = vperm.xlu1 %7906, %v744_v45   ;;  %853 = vperm.xlu0 %7905, %v743_v46  }
  0x44   : > { %7748 = vmatmul.msk.f32.gmra.mxu0 %vm403_vm0, %v370_v47  ;;  %7758 = vmatmul.msk.f32.gmra.mxu1 %vm403_vm0, %v380_v48 }
  0x45   : > { %7766 = vmatmul.msk.f32.gmra.mxu2 %vm403_vm0, %v388_v49 }
  0x46   : > { %878 = vperm.xlu2 %7907, %v748_v50  }
  0x47   : > { %873 = vperm.xlu1 %7906, %v747_v51   ;;  %868 = vperm.xlu0 %7905, %v746_v52  }
  0x4c   : > { %7749 = vmatmul.msk.f32.gmra.mxu0 %vm403_vm0, %v371_v53  ;;  %7759 = vmatmul.msk.f32.gmra.mxu1 %vm403_vm0, %v381_v54 }
  0x4d   : > { %7767 = vmatmul.msk.f32.gmra.mxu2 %vm403_vm0, %v389_v55 }
  0x4e   : > { %893 = vperm.xlu2 %7907, %v751_v56  }
  0x4f   : > { %888 = vperm.xlu1 %7906, %v750_v57   ;;  %883 = vperm.xlu0 %7905, %v749_v58  }
  0x54   : > { %7750 = vmatmul.msk.f32.gmra.mxu0 %vm403_vm0, %v372_v59 }
  0x55   : > { %7768 = vmatmul.msk.f32.gmra.mxu2 %vm403_vm0, %v390_v60 }
  0x56   : > { %908 = vperm.xlu2 %7907, %v754_v61  }
  0x57   : > { %903 = vperm.xlu1 %7906, %v753_v62   ;;  %898 = vperm.xlu0 %7905, %v752_v63  }
  0x5c   : > { %7751 = vmatmul.msk.f32.gmra.mxu0 %vm403_vm0, %v373_v0 }
  0x5e   : > { %923 = vperm.xlu2 %7907, %v757_v2  }
  0x5f   : > { %918 = vperm.xlu1 %7906, %v756_v4   ;;  %913 = vperm.xlu0 %7905, %v755_v5  }
  0x66   : > { %938 = vperm.xlu2 %7907, %v760_v6  }
  0x67   : > { %933 = vperm.xlu1 %7906, %v759_v7   ;;  %928 = vperm.xlu0 %7905, %v758_v8  }
  0x68   : > { %v8429_v9 = vpop.permute.xlu2 %783 }
  0x70   : > { %v8431_v10 = vpop.permute.xlu2 %788 }
  0x78   : > { %v8434_v15 = vpop.permute.xlu2 %803 }
  0x80   : > { %v8442_v21 = vpop.permute.xlu2 %818 }
  0x81   : > { %v774_v12 = vpop.permute.xlu1 %773  ;;  %v764_v13 = vpop.permute.xlu0 %763 }
  0x82   : > { %v941_v14 = vmul.f32 %v764_v13, %v689_v11 }
  0x84   : > { %977 = vst.msk [vmem:[#allocation4] sm:$0xff] %vm396_vm1, %v941_v14 }
  0x88   : > { %v8458_v37 = vpop.permute.xlu2 %833 }
  0x89   : > { %v779_v17 = vpop.permute.xlu1 %778  ;;  %v769_v18 = vpop.permute.xlu0 %768 }
  0x8a   : > { %v942_v19 = vmul.f32 %v769_v18, %v690_v16 }
  0x8c   : > { %978 = vst.msk [vmem:[#allocation4 + $0x10] sm:$0xff] %vm396_vm1, %v942_v19 }
  0x90   : > { %v8474_v59 = vpop.permute.xlu2 %848 }
  0x91   : > { %v8444_v22 = vpop.permute.xlu1 %798  ;;  %v8446_v23 = vpop.permute.xlu0 %793 }
  0x92   : > { %v529_v24 = vpop.f32.mrf.mxu0  ;;  %v559_v25 = vpop.f32.mrf.mxu1 }
  0x93   : > { %v530_v26 = vadd.f32 %v8440_v20, %v529_v24  ;;  %v560_v27 = vadd.f32 %v8440_v20, %v559_v25 }
  0x95   : > { %v625_v28 = vmax.f32 %v530_v26, 0.0  ;;  %v635_v29 = vmax.f32 %v560_v27, 0.0 }
  0x97   : > { %657 = vst.msk [vmem:[#allocation2 + $0x18] sm:$0xff] %vm396_vm1, %v625_v28 }
  0x98   : > { %667 = vst.msk [vmem:[#allocation2 + $0x68] sm:$0xff] %vm396_vm1, %v635_v29  ;;  %v583_v30 = vpop.f32.mrf.mxu2  ;;  %v610_v31 = vpop.f32.mrf.mxu3 }
  0x99   : > { %v584_v32 = vadd.f32 %v8440_v20, %v583_v30  ;;  %v611_v33 = vadd.f32 %v8440_v20, %v610_v31  ;;  %v8454_v34 = vpop.permute.xlu1 %813  ;;  %v8456_v35 = vpop.permute.xlu0 %808 }
  0x9a   : > { %v532_v36 = vpop.f32.mrf.mxu0  ;;  %v562_v41 = vpop.f32.mrf.mxu1 }
  0x9b   : > { %v643_v38 = vmax.f32 %v584_v32, 0.0  ;;  %v652_v39 = vmax.f32 %v611_v33, 0.0  ;;  %v533_v40 = vadd.f32 %v8440_v20, %v532_v36  ;;  %v563_v42 = vadd.f32 %v8440_v20, %v562_v41  ;;  %v8492_v25 = vpop.permute.xlu2 %863 }
  0x9d   : > { %675 = vst.msk [vmem:[#allocation2 + $0xa8] sm:$0xff] %vm396_vm1, %v643_v38  ;;  %v626_v43 = vmax.f32 %v533_v40, 0.0  ;;  %v636_v44 = vmax.f32 %v563_v42, 0.0 }
  0x9e   : > { %684 = vst.msk [vmem:[#allocation2 + $0xf0] sm:$0xff] %vm396_vm1, %v652_v39  ;;  %v691_v45 = vld [vmem:[#allocation2 + $0x17] sm:$0xff] }
  0x9f   : > { %658 = vst.msk [vmem:[#allocation2 + $0x20] sm:$0xff] %vm396_vm1, %v626_v43  ;;  %v943_v46 = vmul.f32 %v774_v12, %v691_v45 }
  0xa0   : > { %668 = vst.msk [vmem:[#allocation2 + $0x70] sm:$0xff] %vm396_vm1, %v636_v44  ;;  %v586_v47 = vpop.f32.mrf.mxu2  ;;  %v613_v48 = vpop.f32.mrf.mxu3 }
  0xa1   : > { %v587_v49 = vadd.f32 %v8440_v20, %v586_v47  ;;  %v614_v50 = vadd.f32 %v8440_v20, %v613_v48  ;;  %v829_v51 = vpop.permute.xlu1 %828  ;;  %1041 = vrot.lane.b32.xlu0 %v943_v46, %s8145_s30  ;;  %979 = vst.msk [vmem:[#allocation4 + $0x20] sm:$0xff] %vm396_vm1, %v943_v46  ;;  %v8470_v52 = vpop.permute.xlu0 %823 }
  0xa2   : > { %v535_v53 = vpop.f32.mrf.mxu0  ;;  %v565_v57 = vpop.f32.mrf.mxu1 }
  0xa3   : > { %v644_v54 = vmax.f32 %v587_v49, 0.0  ;;  %v653_v55 = vmax.f32 %v614_v50, 0.0  ;;  %v536_v56 = vadd.f32 %v8440_v20, %v535_v53  ;;  %v566_v58 = vadd.f32 %v8440_v20, %v565_v57  ;;  %v879_v53 = vpop.permute.xlu2 %878 }
  0xa5   : > { %676 = vst.msk [vmem:[#allocation2 + $0xb0] sm:$0xff] %vm396_vm1, %v644_v54  ;;  %v627_v60 = vmax.f32 %v536_v56, 0.0  ;;  %v637_v61 = vmax.f32 %v566_v58, 0.0 }
  0xa6   : > { %685 = vst.msk [vmem:[#allocation2 + $0xf8] sm:$0xff] %vm396_vm1, %v653_v55  ;;  %v692_v62 = vld [vmem:[#allocation2 + $0x1f] sm:$0xff] }
  0xa7   : > { %v702_v63 = vld [vmem:[#allocation2 + $0x6f] sm:$0xff]  ;;  %659 = vst.msk [vmem:[#allocation2 + $0x28] sm:$0xff] %vm396_vm1, %v627_v60  ;;  %v944_v0 = vmul.f32 %v779_v17, %v692_v62 }
  0xa8   : > { %v954_v1 = vmul.f32 %v829_v51, %v702_v63  ;;  %669 = vst.msk [vmem:[#allocation2 + $0x78] sm:$0xff] %vm396_vm1, %v637_v61  ;;  %v589_v2 = vpop.f32.mrf.mxu2  ;;  %v616_v4 = vpop.f32.mrf.mxu3 }
  0xa9   : > { %v590_v5 = vadd.f32 %v8440_v20, %v589_v2  ;;  %v617_v6 = vadd.f32 %v8440_v20, %v616_v4  ;;  %v8482_v7 = vpop.permute.xlu1 %843  ;;  %1043 = vrot.lane.b32.xlu1 %v944_v0, %s8145_s30  ;;  %980 = vst.msk [vmem:[#allocation4 + $0x30] sm:$0xff] %vm396_vm1, %v944_v0  ;;  %v839_v8 = vpop.permute.xlu0 %838 }
  0xaa   : > { %990 = vst.msk [vmem:[#allocation4 + $0xd0] sm:$0xff] %vm396_vm1, %v954_v1  ;;  %1063 = vrot.lane.b32.xlu2 %v954_v1, %s8145_s30  ;;  %v538_v11 = vpop.f32.mrf.mxu0  ;;  %v568_v16 = vpop.f32.mrf.mxu1 }
  0xab   : > { %v645_v12 = vmax.f32 %v590_v5, 0.0  ;;  %v654_v13 = vmax.f32 %v617_v6, 0.0  ;;  %v539_v14 = vadd.f32 %v8440_v20, %v538_v11  ;;  %v569_v17 = vadd.f32 %v8440_v20, %v568_v16 }
  0xac   : > { %v710_v49 = vld [vmem:[#allocation2 + $0xaf] sm:$0xff] }
  0xad   : > { %677 = vst.msk [vmem:[#allocation2 + $0xb8] sm:$0xff] %vm396_vm1, %v645_v12  ;;  %v628_v18 = vmax.f32 %v539_v14, 0.0  ;;  %v638_v19 = vmax.f32 %v569_v17, 0.0 }
  0xae   : > { %686 = vst.msk [vmem:[#allocation2 + $0x100] sm:$0xff] %vm396_vm1, %v654_v13  ;;  %v693_v24 = vld [vmem:[#allocation2 + $0x27] sm:$0xff] }
  0xaf   : > { %660 = vst.msk [vmem:[#allocation2 + $0x30] sm:$0xff] %vm396_vm1, %v628_v18  ;;  %v703_v26 = vld [vmem:[#allocation2 + $0x77] sm:$0xff]  ;;  %v8496_v27 = vmul.f32 %v8429_v9, %v693_v24 }
  0xb0   : > { %670 = vst.msk [vmem:[#allocation2 + $0x80] sm:$0xff] %vm396_vm1, %v638_v19  ;;  %v592_v28 = vpop.f32.mrf.mxu2  ;;  %v619_v29 = vpop.f32.mrf.mxu3  ;;  %v955_v30 = vmul.f32 %v8458_v37, %v703_v26 }
  0xb1   : > { %v593_v31 = vadd.f32 %v8440_v20, %v592_v28  ;;  %v620_v32 = vadd.f32 %v8440_v20, %v619_v29  ;;  %v8502_v33 = vpop.permute.xlu1 %858  ;;  %981 = vst.msk [vmem:[#allocation4 + $0x40] sm:$0xff] %vm396_vm1, %v8496_v27  ;;  %v8506_v36 = vpop.permute.xlu0 %853 }
  0xb2   : > { %1190 = vrot.lane.b32.xlu2 %v954_v1, %s8146_s11  ;;  %1065 = vrot.lane.b32.xlu0 %v955_v30, %s8145_s30  ;;  %991 = vst.msk [vmem:[#allocation4 + $0xe0] sm:$0xff] %vm396_vm1, %v955_v30  ;;  %v541_v9 = vpop.f32.mrf.mxu0  ;;  %v571_v40 = vpop.f32.mrf.mxu1 }
  0xb3   : > { %v646_v37 = vmax.f32 %v593_v31, 0.0  ;;  %v655_v38 = vmax.f32 %v620_v32, 0.0  ;;  %v542_v39 = vadd.f32 %v8440_v20, %v541_v9  ;;  %v572_v41 = vadd.f32 %v8440_v20, %v571_v40 }
  0xb4   : > { %v711_v45 = vld [vmem:[#allocation2 + $0xb7] sm:$0xff] }
  0xb5   : > { %678 = vst.msk [vmem:[#allocation2 + $0xc0] sm:$0xff] %vm396_vm1, %v646_v37  ;;  %v629_v42 = vmax.f32 %v542_v39, 0.0  ;;  %v639_v43 = vmax.f32 %v572_v41, 0.0 }
  0xb6   : > { %687 = vst.msk [vmem:[#allocation2 + $0x108] sm:$0xff] %vm396_vm1, %v655_v38  ;;  %v694_v44 = vld [vmem:[#allocation2 + $0x2f] sm:$0xff] }
  0xb7   : > { %661 = vst.msk [vmem:[#allocation2 + $0x38] sm:$0xff] %vm396_vm1, %v629_v42  ;;  %v8517_v46 = vmul.f32 %v8431_v10, %v694_v44  ;;  %v704_v47 = vld [vmem:[#allocation2 + $0x7f] sm:$0xff] }
  0xb8   : > { %671 = vst.msk [vmem:[#allocation2 + $0x88] sm:$0xff] %vm396_vm1, %v639_v43  ;;  %v595_v48 = vpop.f32.mrf.mxu2  ;;  %v622_v50 = vpop.f32.mrf.mxu3  ;;  %v8520_v51 = vmul.f32 %v839_v8, %v704_v47 }
  0xb9   : > { %v596_v54 = vadd.f32 %v8440_v20, %v595_v48  ;;  %v874_v55 = vpop.permute.xlu1 %873  ;;  %982 = vst.msk [vmem:[#allocation4 + $0x50] sm:$0xff] %vm396_vm1, %v8517_v46  ;;  %v623_v56 = vadd.f32 %v8440_v20, %v622_v50  ;;  %v869_v10 = vpop.permute.xlu0 %868 }
  0xba   : > { %v8526_v57 = vmul.f32 %v874_v55, %v711_v45  ;;  %1045 = vrot.lane.b32.xlu2 %v8496_v27, %s8145_s30  ;;  %1192 = vrot.lane.b32.xlu0 %v955_v30, %s8146_s11  ;;  %v544_v58 = vpop.f32.mrf.mxu0  ;;  %992 = vst.msk [vmem:[#allocation4 + $0xf0] sm:$0xff] %vm396_vm1, %v8520_v51  ;;  %v8533_v61 = vmul.f32 %v869_v10, %v710_v49  ;;  %v574_v63 = vpop.f32.mrf.mxu1 }
  0xbb   : > { %v647_v60 = vmax.f32 %v596_v54, 0.0  ;;  %v545_v62 = vadd.f32 %v8440_v20, %v544_v58  ;;  %v575_v0 = vadd.f32 %v8440_v20, %v574_v63  ;;  %v656_v4 = vmax.f32 %v623_v56, 0.0 }
  0xbc   : > { %999 = vst.msk [vmem:[#allocation4 + $0x160] sm:$0xff] %vm396_vm1, %v8526_v57  ;;  %v712_v1 = vld [vmem:[#allocation2 + $0xbf] sm:$0xff]  ;;  %1079 = vrot.lane.b32.xlu1 %v8533_v61, %s8145_s30 }
  0xbd   : > { %679 = vst.msk [vmem:[#allocation2 + $0xc8] sm:$0xff] %vm396_vm1, %v647_v60  ;;  %v630_v2 = vmax.f32 %v545_v62, 0.0  ;;  %v640_v5 = vmax.f32 %v575_v0, 0.0  ;;  %v8544_v6 = vmul.f32 %v879_v53, %v712_v1  ;;  %v720_v53 = vld [vmem:[#allocation2 + $0xff] sm:$0xff]  ;;  %v719_v1 = vld [vmem:[#allocation2 + $0xf7] sm:$0xff] }
  0xbe   : > { %998 = vst.msk [vmem:[#allocation4 + $0x150] sm:$0xff] %vm396_vm1, %v8533_v61  ;;  %v695_v8 = vld [vmem:[#allocation2 + $0x37] sm:$0xff] }
  0xbf   : > { %662 = vst.msk [vmem:[#allocation2 + $0x40] sm:$0xff] %vm396_vm1, %v630_v2  ;;  %v705_v11 = vld [vmem:[#allocation2 + $0x87] sm:$0xff]  ;;  %v8552_v14 = vmul.f32 %v8446_v23, %v695_v8 }
  0xc0   : > { %672 = vst.msk [vmem:[#allocation2 + $0x90] sm:$0xff] %vm396_vm1, %v640_v5  ;;  %v598_v12 = vpop.f32.mrf.mxu2  ;;  %v8549_v13 = vmul.f32 %v8482_v7, %v705_v11  ;;  %v8562_v7 = vpop.permute.xlu2 %893  ;;  %v721_v8 = vld [vmem:[#allocation2 + $0x107] sm:$0xff] }
  0xc1   : > { %v599_v16 = vadd.f32 %v8440_v20, %v598_v12  ;;  %v889_v17 = vpop.permute.xlu1 %888  ;;  %688 = vst.msk [vmem:[#allocation2 + $0x110] sm:$0xff] %vm396_vm1, %v656_v4  ;;  %v884_v18 = vpop.permute.xlu0 %883 }
  0xc2   : > { %1172 = vrot.lane.b32.xlu2 %v8496_v27, %s8146_s11  ;;  %1047 = vrot.lane.b32.xlu0 %v8517_v46, %s8145_s30  ;;  %v547_v19 = vpop.f32.mrf.mxu0  ;;  %1000 = vst.msk [vmem:[#allocation4 + $0x170] sm:$0xff] %vm396_vm1, %v8544_v6  ;;  %v577_v26 = vpop.f32.mrf.mxu1 }
  0xc3   : > { %v648_v23 = vmax.f32 %v599_v16, 0.0  ;;  %v548_v24 = vadd.f32 %v8440_v20, %v547_v19  ;;  %993 = vst.msk [vmem:[#allocation4 + $0x100] sm:$0xff] %vm396_vm1, %v8549_v13  ;;  %v578_v29 = vadd.f32 %v8440_v20, %v577_v26 }
  0xc4   : > { %v713_v28 = vld [vmem:[#allocation2 + $0xc7] sm:$0xff]  ;;  %983 = vst.msk [vmem:[#allocation4 + $0x60] sm:$0xff] %vm396_vm1, %v8552_v14 }
  0xc5   : > { %680 = vst.msk [vmem:[#allocation2 + $0xd0] sm:$0xff] %vm396_vm1, %v648_v23  ;;  %v8571_v27 = vmul.f32 %v884_v18, %v713_v28  ;;  %v631_v30 = vmax.f32 %v548_v24, 0.0  ;;  %v641_v31 = vmax.f32 %v578_v29, 0.0 }
  0xc6   : > { %v696_v32 = vld [vmem:[#allocation2 + $0x3f] sm:$0xff] }
  0xc7   : > { %1001 = vst.msk [vmem:[#allocation4 + $0x180] sm:$0xff] %vm396_vm1, %v8571_v27  ;;  %v706_v9 = vld [vmem:[#allocation2 + $0x8f] sm:$0xff]  ;;  %v8576_v37 = vmul.f32 %v8444_v22, %v696_v32 }
  0xc8   : > { %663 = vst.msk [vmem:[#allocation2 + $0x48] sm:$0xff] %vm396_vm1, %v631_v30  ;;  %v601_v38 = vpop.f32.mrf.mxu2  ;;  %v8580_v39 = vmul.f32 %v8474_v59, %v706_v9  ;;  %v8598_v48 = vpop.permute.xlu2 %908 }
  0xc9   : > { %673 = vst.msk [vmem:[#allocation2 + $0x98] sm:$0xff] %vm396_vm1, %v641_v31  ;;  %v602_v40 = vadd.f32 %v8440_v20, %v601_v38  ;;  %v8584_v41 = vpop.permute.xlu1 %903  ;;  %v8586_v42 = vpop.permute.xlu0 %898 }
  0xca   : > { %1081 = vrot.lane.b32.xlu2 %v8526_v57, %s8145_s30  ;;  %1174 = vrot.lane.b32.xlu0 %v8517_v46, %s8146_s11  ;;  %v550_v22 = vpop.f32.mrf.mxu0  ;;  %994 = vst.msk [vmem:[#allocation4 + $0x110] sm:$0xff] %vm396_vm1, %v8580_v39  ;;  %v580_v44 = vpop.f32.mrf.mxu1 }
  0xcb   : > { %v649_v59 = vmax.f32 %v602_v40, 0.0  ;;  %v551_v43 = vadd.f32 %v8440_v20, %v550_v22  ;;  %984 = vst.msk [vmem:[#allocation4 + $0x70] sm:$0xff] %vm396_vm1, %v8576_v37  ;;  %v581_v47 = vadd.f32 %v8440_v20, %v580_v44 }
  0xcc   : > { %v714_v45 = vld [vmem:[#allocation2 + $0xcf] sm:$0xff] }
  0xcd   : > { %v8600_v49 = vmul.f32 %v889_v17, %v714_v45  ;;  %681 = vst.msk [vmem:[#allocation2 + $0xd8] sm:$0xff] %vm396_vm1, %v649_v59  ;;  %v632_v46 = vmax.f32 %v551_v43, 0.0  ;;  %v642_v50 = vmax.f32 %v581_v47, 0.0 }
  0xcf   : > { %1002 = vst.msk [vmem:[#allocation4 + $0x190] sm:$0xff] %vm396_vm1, %v8600_v49  ;;  %v697_v54 = vld [vmem:[#allocation2 + $0x47] sm:$0xff] }
  0xd0   : > { %664 = vst.msk [vmem:[#allocation2 + $0x50] sm:$0xff] %vm396_vm1, %v632_v46  ;;  %v604_v55 = vpop.f32.mrf.mxu2  ;;  %v8607_v56 = vmul.f32 %v8434_v15, %v697_v54  ;;  %v707_v10 = vld [vmem:[#allocation2 + $0x97] sm:$0xff]  ;;  %v924_v16 = vpop.permute.xlu2 %923 }
  0xd1   : > { %674 = vst.msk [vmem:[#allocation2 + $0xa0] sm:$0xff] %vm396_vm1, %v642_v50  ;;  %v605_v58 = vadd.f32 %v8440_v20, %v604_v55  ;;  %v919_v60 = vpop.permute.xlu1 %918  ;;  %v8612_v62 = vmul.f32 %v8506_v36, %v707_v10  ;;  %v914_v0 = vpop.permute.xlu0 %913  ;;  %v8638_v18 = vmul.f32 %v924_v16, %v721_v8 }
  0xd2   : > { %v8614_v63 = vmul.f32 %v919_v60, %v720_v53  ;;  %1083 = vrot.lane.b32.xlu0 %v8544_v6, %s8145_s30  ;;  %v553_v2 = vpop.f32.mrf.mxu0  ;;  %985 = vst.msk [vmem:[#allocation4 + $0x80] sm:$0xff] %vm396_vm1, %v8607_v56  ;;  %v8620_v4 = vmul.f32 %v914_v0, %v719_v1  ;;  %v723_v60 = vld [vmem:[#allocation2 + $0x117] sm:$0xff] }
  0xd3   : > { %v650_v15 = vmax.f32 %v605_v58, 0.0  ;;  %v554_v5 = vadd.f32 %v8440_v20, %v553_v2  ;;  %995 = vst.msk [vmem:[#allocation4 + $0x120] sm:$0xff] %vm396_vm1, %v8612_v62 }
  0xd4   : > { %1008 = vst.msk [vmem:[#allocation4 + $0x1f0] sm:$0xff] %vm396_vm1, %v8614_v63  ;;  %1099 = vrot.lane.b32.xlu2 %v8614_v63, %s8145_s30  ;;  %v715_v36 = vld [vmem:[#allocation2 + $0xd7] sm:$0xff]  ;;  %1097 = vrot.lane.b32.xlu1 %v8620_v4, %s8145_s30 }
  0xd5   : > { %682 = vst.msk [vmem:[#allocation2 + $0xe0] sm:$0xff] %vm396_vm1, %v650_v15  ;;  %v633_v11 = vmax.f32 %v554_v5, 0.0  ;;  %v8633_v12 = vmul.f32 %v8562_v7, %v715_v36  ;;  %v1302_v5 = vld [vmem:[#allocation2 + $0x10] sm:$0xff] }
  0xd6   : > { %1007 = vst.msk [vmem:[#allocation4 + $0x1e0] sm:$0xff] %vm396_vm1, %v8620_v4 }
  0xd7   : > { %665 = vst.msk [vmem:[#allocation2 + $0x58] sm:$0xff] %vm396_vm1, %v633_v11  ;;  %v698_v17 = vld [vmem:[#allocation2 + $0x4f] sm:$0xff]  ;;  %v8800_v11 = vld [vmem:[#allocation2 + $0x18] sm:$0xff] }
  0xd8   : > { %v607_v19 = vpop.f32.mrf.mxu2  ;;  %1003 = vst.msk [vmem:[#allocation4 + $0x1a0] sm:$0xff] %vm396_vm1, %v8633_v12  ;;  %v708_v23 = vld [vmem:[#allocation2 + $0x9f] sm:$0xff]  ;;  %v709_v24 = vld [vmem:[#allocation2 + $0xa7] sm:$0xff]  ;;  %v8643_v26 = vmul.f32 %v8456_v35, %v698_v17 }
  0xd9   : > { %v608_v7 = vadd.f32 %v8440_v20, %v607_v19  ;;  %v960_v28 = vmul.f32 %v8502_v33, %v708_v23  ;;  %v8648_v29 = vmul.f32 %v8492_v25, %v709_v24  ;;  %v8813_v19 = vld [vmem:[#allocation2 + $0x30] sm:$0xff]  ;;  %v8817_v23 = vld [vmem:[#allocation2 + $0x40] sm:$0xff] }
  0xda   : > { %1101 = vrot.lane.b32.xlu0 %v8638_v18, %s8145_s30  ;;  %v556_v30 = vpop.f32.mrf.mxu0  ;;  %986 = vst.msk [vmem:[#allocation4 + $0x90] sm:$0xff] %vm396_vm1, %v8643_v26 }
  0xdb   : > { %v651_v31 = vmax.f32 %v608_v7, 0.0  ;;  %v557_v32 = vadd.f32 %v8440_v20, %v556_v30  ;;  %996 = vst.msk [vmem:[#allocation4 + $0x130] sm:$0xff] %vm396_vm1, %v960_v28  ;;  %v8826_v7 = vld [vmem:[#allocation2 + $0x48] sm:$0xff] }
  0xdc   : > { %1069 = vrot.lane.b32.xlu2 %v8549_v13, %s8145_s30  ;;  %997 = vst.msk [vmem:[#allocation4 + $0x140] sm:$0xff] %vm396_vm1, %v8648_v29  ;;  %v716_v35 = vld [vmem:[#allocation2 + $0xdf] sm:$0xff]  ;;  %1067 = vrot.lane.b32.xlu1 %v8520_v51, %s8145_s30 }
  0xdd   : > { %683 = vst.msk [vmem:[#allocation2 + $0xe8] sm:$0xff] %vm396_vm1, %v651_v31  ;;  %v634_v25 = vmax.f32 %v557_v32, 0.0  ;;  %v8664_v33 = vmul.f32 %v8586_v42, %v716_v35 }
  0xde   : > { %v699_v9 = vld [vmem:[#allocation2 + $0x57] sm:$0xff] }
  0xdf   : > { %666 = vst.msk [vmem:[#allocation2 + $0x60] sm:$0xff] %vm396_vm1, %v634_v25  ;;  %v951_v20 = vmul.f32 %v8454_v34, %v699_v9  ;;  %v8842_v25 = vld [vmem:[#allocation2 + $0x70] sm:$0xff]  ;;  %v8846_v9 = vld [vmem:[#allocation2 + $0x20] sm:$0xff] }
  0xe0   : > { %1004 = vst.msk [vmem:[#allocation4 + $0x1b0] sm:$0xff] %vm396_vm1, %v8664_v33 }
  0xe1   : > { %987 = vst.msk [vmem:[#allocation4 + $0xa0] sm:$0xff] %vm396_vm1, %v951_v20 }
  0xe2   : > { %1071 = vrot.lane.b32.xlu0 %v8580_v39, %s8145_s30 }
  0xe4   : > { %1196 = vrot.lane.b32.xlu2 %v8549_v13, %s8146_s11  ;;  %v718_v38 = vld [vmem:[#allocation2 + $0xef] sm:$0xff]  ;;  %v717_v40 = vld [vmem:[#allocation2 + $0xe7] sm:$0xff]  ;;  %1194 = vrot.lane.b32.xlu1 %v8520_v51, %s8146_s11 }
  0xe5   : > { %v8678_v42 = vmul.f32 %v8598_v48, %v718_v38  ;;  %v8681_v34 = vmul.f32 %v8584_v41, %v717_v40  ;;  %v722_v51 = vld [vmem:[#allocation2 + $0x10f] sm:$0xff]  ;;  %v934_v41 = vpop.permute.xlu1 %933  ;;  %v8853_v40 = vld [vmem:[#allocation2 + $0x78] sm:$0xff] }
  0xe6   : > { %v700_v22 = vld [vmem:[#allocation2 + $0x5f] sm:$0xff]  ;;  %v701_v59 = vld [vmem:[#allocation2 + $0x67] sm:$0xff]  ;;  %v975_v0 = vmul.f32 %v934_v41, %v723_v60 }
  0xe7   : > { %v952_v43 = vmul.f32 %v8442_v21, %v700_v22  ;;  %1006 = vst.msk [vmem:[#allocation4 + $0x1d0] sm:$0xff] %vm396_vm1, %v8678_v42  ;;  %v8687_v13 = vmul.f32 %v8470_v52, %v701_v59  ;;  %v8708_v21 = vpop.permute.xlu2 %938  ;;  %v929_v52 = vpop.permute.xlu0 %928  ;;  %v8838_v35 = vld [vmem:[#allocation2 + $0x60] sm:$0xff]  ;;  %v8861_v22 = vld [vmem:[#allocation2 + $0x38] sm:$0xff]  ;;  %v8883_v41 = vld [vmem:[#allocation2 + $0xa8] sm:$0xff] }
  0xe8   : > { %1005 = vst.msk [vmem:[#allocation4 + $0x1c0] sm:$0xff] %vm396_vm1, %v8681_v34 }
  0xe9   : > { %988 = vst.msk [vmem:[#allocation4 + $0xb0] sm:$0xff] %vm396_vm1, %v952_v43 }
  0xea   : > { %1198 = vrot.lane.b32.xlu0 %v8580_v39, %s8146_s11  ;;  %989 = vst.msk [vmem:[#allocation4 + $0xc0] sm:$0xff] %vm396_vm1, %v8687_v13 }
  0xec   : > { %1051 = vrot.lane.b32.xlu2 %v8576_v37, %s8145_s30  ;;  %1049 = vrot.lane.b32.xlu1 %v8552_v14, %s8145_s30 }
  0xf2   : > { %1053 = vrot.lane.b32.xlu0 %v8607_v56, %s8145_s30 }
  0xf4   : > { %1178 = vrot.lane.b32.xlu2 %v8576_v37, %s8146_s11  ;;  %1176 = vrot.lane.b32.xlu1 %v8552_v14, %s8146_s11  ;;  %v8716_v37 = vmul.f32 %v929_v52, %v722_v51  ;;  %v8876_v51 = vld [vmem:[#allocation2 + $0x50] sm:$0xff] }
  0xfa   : > { %1180 = vrot.lane.b32.xlu0 %v8607_v56, %s8146_s11 }
  0xfc   : > { %1087 = vrot.lane.b32.xlu2 %v8600_v49, %s8145_s30  ;;  %1085 = vrot.lane.b32.xlu1 %v8571_v27, %s8145_s30 }
 0x102   : > { %1089 = vrot.lane.b32.xlu0 %v8633_v12, %s8145_s30 }
 0x104   : > { %v1064_v14 = vpop.permute.xlu2 %1063  ;;  %1075 = vrot.lane.b32.xlu2 %v960_v28, %s8145_s30  ;;  %1103 = vrot.lane.b32.xlu1 %v8716_v37, %s8145_s30 }
 0x105   : > { %1149 = vst.msk [vmem:[#allocation4 + $0xb0] sm:$0xff] %vm1137_vm2, %v1064_v14 }
 0x10a   : > { %1077 = vrot.lane.b32.xlu0 %v8648_v29, %s8145_s30 }
 0x10c   : > { %v8724_v39 = vpop.permute.xlu2 %1190  ;;  %1202 = vrot.lane.b32.xlu2 %v960_v28, %s8146_s11  ;;  %1073 = vrot.lane.b32.xlu1 %v8612_v62, %s8145_s30  ;;  %v1301_v28 = vld [vmem:[#allocation2 + $0x8] sm:$0xff] }
 0x112   : > { %1095 = vrot.lane.b32.xlu0 %v8678_v42, %s8145_s30 }
 0x113   : > { %v1042_v44 = vpop.permute.xlu0 %1041 }
 0x114   : > { %v1046_v45 = vpop.permute.xlu2 %1045  ;;  %1057 = vrot.lane.b32.xlu2 %v951_v20, %s8145_s30  ;;  %1138 = vst.msk [vmem:[#allocation4] sm:$0xff] %vm1137_vm2, %v1042_v44  ;;  %1200 = vrot.lane.b32.xlu1 %v8612_v62, %s8146_s11  ;;  %v8887_v44 = vld [vmem:[#allocation2 + $0xb8] sm:$0xff] }
 0x115   : > { %1140 = vst.msk [vmem:[#allocation4 + $0x20] sm:$0xff] %vm1137_vm2, %v1046_v45 }
 0x11a   : > { %1059 = vrot.lane.b32.xlu0 %v952_v43, %s8145_s30 }
 0x11b   : > { %v1044_v47 = vpop.permute.xlu1 %1043 }
 0x11c   : > { %v1173_v48 = vpop.permute.xlu2 %1172  ;;  %1184 = vrot.lane.b32.xlu2 %v951_v20, %s8146_s11  ;;  %1139 = vst.msk [vmem:[#allocation4 + $0x10] sm:$0xff] %vm1137_vm2, %v1044_v47  ;;  %1055 = vrot.lane.b32.xlu1 %v8643_v26, %s8145_s30  ;;  %v8891_v47 = vld [vmem:[#allocation2 + $0x68] sm:$0xff] }
 0x11d   : > { %1269 = vst.msk [vmem:[#allocation4] sm:$0xff] %vm1268_vm3, %v1173_v48 }
 0x122   : > { %1186 = vrot.lane.b32.xlu0 %v952_v43, %s8146_s11 }
 0x124   : > { %v1082_v46 = vpop.permute.xlu2 %1081  ;;  %v1066_v50 = vpop.permute.xlu0 %1065  ;;  %1093 = vrot.lane.b32.xlu2 %v8681_v34, %s8145_s30  ;;  %1182 = vrot.lane.b32.xlu1 %v8643_v26, %s8146_s11 }
 0x125   : > { %1158 = vst.msk [vmem:[#allocation4 + $0x140] sm:$0xff] %vm1137_vm2, %v1082_v46 }
 0x126   : > { %1150 = vst.msk [vmem:[#allocation4 + $0xc0] sm:$0xff] %vm1137_vm2, %v1066_v50  ;;  %v8900_v50 = vld [vmem:[#allocation2 + $0xc0] sm:$0xff] }
 0x12a   : > { %1204 = vrot.lane.b32.xlu0 %v8648_v29, %s8146_s11  ;;  %v8830_v29 = vld [vmem:[#allocation2 + $0x58] sm:$0xff] }
 0x12c   : > { %v8751_v53 = vpop.permute.xlu0 %1192  ;;  %1208 = vrot.lane.b32.xlu2 %v8526_v57, %s8146_s11  ;;  %1091 = vrot.lane.b32.xlu1 %v8664_v33, %s8145_s30 }
 0x12e   : > { %v1100_v54 = vpop.permute.xlu2 %1099  ;;  %v1080_v55 = vpop.permute.xlu1 %1079 }
 0x12f   : > { %1167 = vst.msk [vmem:[#allocation4 + $0x1d0] sm:$0xff] %vm1137_vm2, %v1100_v54  ;;  %v8904_v54 = vld [vmem:[#allocation2 + $0xd0] sm:$0xff] }
 0x130   : > { %1157 = vst.msk [vmem:[#allocation4 + $0x130] sm:$0xff] %vm1137_vm2, %v1080_v55 }
 0x132   : > { %1210 = vrot.lane.b32.xlu0 %v8544_v6, %s8146_s11 }
 0x134   : > { %v1048_v56 = vpop.permute.xlu0 %1047  ;;  %1214 = vrot.lane.b32.xlu2 %v8600_v49, %s8146_s11  ;;  %1061 = vrot.lane.b32.xlu1 %v8687_v13, %s8145_s30 }
 0x135   : > { %1141 = vst.msk [vmem:[#allocation4 + $0x30] sm:$0xff] %vm1137_vm2, %v1048_v56  ;;  %v8908_v56 = vld [vmem:[#allocation2 + $0x80] sm:$0xff] }
 0x136   : > { %v1070_v57 = vpop.permute.xlu2 %1069 }
 0x137   : > { %1152 = vst.msk [vmem:[#allocation4 + $0xe0] sm:$0xff] %vm1137_vm2, %v1070_v57 }
 0x13a   : > { %1216 = vrot.lane.b32.xlu0 %v8633_v12, %s8146_s11  ;;  %v8804_v12 = vld [vmem:[#allocation2 + $0x28] sm:$0xff] }
 0x13c   : > { %v1175_v10 = vpop.permute.xlu0 %1174  ;;  %1220 = vrot.lane.b32.xlu2 %v8681_v34, %s8146_s11  ;;  %1188 = vrot.lane.b32.xlu1 %v8687_v13, %s8146_s11  ;;  %v8868_v13 = vld [vmem:[#allocation2 + $0x90] sm:$0xff] }
 0x13d   : > { %1270 = vst.msk [vmem:[#allocation4 + $0x10] sm:$0xff] %vm1268_vm3, %v1175_v10  ;;  %v8915_v10 = vld [vmem:[#allocation2 + $0xd8] sm:$0xff] }
 0x13e   : > { %v1197_v6 = vpop.permute.xlu2 %1196 }
 0x13f   : > { %1281 = vst.msk [vmem:[#allocation4 + $0xc0] sm:$0xff] %vm1268_vm3, %v1197_v6  ;;  %v8919_v6 = vld [vmem:[#allocation2 + $0xe8] sm:$0xff] }
 0x142   : > { %1222 = vrot.lane.b32.xlu0 %v8678_v42, %s8146_s11  ;;  %v8857_v42 = vld [vmem:[#allocation2 + $0x88] sm:$0xff] }
 0x144   : > { %v1084_v49 = vpop.permute.xlu0 %1083  ;;  %1226 = vrot.lane.b32.xlu2 %v8614_v63, %s8146_s11  ;;  %1206 = vrot.lane.b32.xlu1 %v8533_v61, %s8146_s11  ;;  %v724_v63 = vld [vmem:[#allocation2 + $0x11f] sm:$0xff] }
 0x145   : > { %1159 = vst.msk [vmem:[#allocation4 + $0x150] sm:$0xff] %vm1137_vm2, %v1084_v49  ;;  %v976_v15 = vmul.f32 %v8708_v21, %v724_v63  ;;  %v8872_v21 = vld [vmem:[#allocation2 + $0xa0] sm:$0xff] }
 0x146   : > { %v1052_v58 = vpop.permute.xlu2 %1051  ;;  %v1098_v62 = vpop.permute.xlu1 %1097 }
 0x147   : > { %1143 = vst.msk [vmem:[#allocation4 + $0x50] sm:$0xff] %vm1137_vm2, %v1052_v58  ;;  %v8923_v58 = vld [vmem:[#allocation2 + $0x98] sm:$0xff] }
 0x148   : > { %1166 = vst.msk [vmem:[#allocation4 + $0x1c0] sm:$0xff] %vm1137_vm2, %v1098_v62 }
 0x14a   : > { %1228 = vrot.lane.b32.xlu0 %v8638_v18, %s8146_s11 }
 0x14c   : > { %v1102_v1 = vpop.permute.xlu0 %1101  ;;  %1232 = vrot.lane.b32.xlu2 %v975_v0, %s8146_s11  ;;  %1212 = vrot.lane.b32.xlu1 %v8571_v27, %s8146_s11  ;;  %v8930_v0 = vld [vmem:[#allocation2 + $0xf0] sm:$0xff] }
 0x14d   : > { %1168 = vst.msk [vmem:[#allocation4 + $0x1e0] sm:$0xff] %vm1137_vm2, %v1102_v1  ;;  %v8934_v1 = vld [vmem:[#allocation2 + $0x100] sm:$0xff] }
 0x14e   : > { %v1179_v61 = vpop.permute.xlu2 %1178  ;;  %v1068_v2 = vpop.permute.xlu1 %1067 }
 0x14f   : > { %1272 = vst.msk [vmem:[#allocation4 + $0x30] sm:$0xff] %vm1268_vm3, %v1179_v61  ;;  %v8938_v61 = vld [vmem:[#allocation2 + $0xb0] sm:$0xff] }
 0x150   : > { %1151 = vst.msk [vmem:[#allocation4 + $0xd0] sm:$0xff] %vm1137_vm2, %v1068_v2 }
 0x152   : > { %1234 = vrot.lane.b32.xlu0 %v976_v15, %s8146_s11 }
 0x154   : > { %v1072_v36 = vpop.permute.xlu0 %1071  ;;  %1371 = vrot.lane.b32.xlu2 %v1302_v5, %s8147_s13  ;;  %1218 = vrot.lane.b32.xlu1 %v8664_v33, %s8146_s11 }
 0x155   : > { %1153 = vst.msk [vmem:[#allocation4 + $0xf0] sm:$0xff] %vm1137_vm2, %v1072_v36  ;;  %v8951_v36 = vld [vmem:[#allocation2 + $0xc8] sm:$0xff] }
 0x156   : > { %v1088_v27 = vpop.permute.xlu2 %1087  ;;  %v1195_v8 = vpop.permute.xlu1 %1194 }
 0x157   : > { %1161 = vst.msk [vmem:[#allocation4 + $0x170] sm:$0xff] %vm1137_vm2, %v1088_v27 }
 0x158   : > { %1280 = vst.msk [vmem:[#allocation4 + $0xb0] sm:$0xff] %vm1268_vm3, %v1195_v8 }
 0x15a   : > { %1373 = vrot.lane.b32.xlu0 %v8800_v11, %s8147_s13 }
 0x15c   : > { %v1199_v16 = vpop.permute.xlu0 %1198  ;;  %1377 = vrot.lane.b32.xlu2 %v8804_v12, %s8147_s13  ;;  %1224 = vrot.lane.b32.xlu1 %v8620_v4, %s8146_s11 }
 0x15d   : > { %1282 = vst.msk [vmem:[#allocation4 + $0xd0] sm:$0xff] %vm1268_vm3, %v1199_v16 }
 0x15e   : > { %v1076_v17 = vpop.permute.xlu2 %1075  ;;  %v1050_v18 = vpop.permute.xlu1 %1049 }
 0x15f   : > { %1155 = vst.msk [vmem:[#allocation4 + $0x110] sm:$0xff] %vm1137_vm2, %v1076_v17 }
 0x160   : > { %1142 = vst.msk [vmem:[#allocation4 + $0x40] sm:$0xff] %vm1137_vm2, %v1050_v18 }
 0x162   : > { %1379 = vrot.lane.b32.xlu0 %v8813_v19, %s8147_s13 }
 0x164   : > { %v1054_v24 = vpop.permute.xlu0 %1053  ;;  %1383 = vrot.lane.b32.xlu2 %v8817_v23, %s8147_s13  ;;  %1230 = vrot.lane.b32.xlu1 %v8716_v37, %s8146_s11  ;;  %s8151_s11 = smov 4  }
 0x165   : > { %1144 = vst.msk [vmem:[#allocation4 + $0x60] sm:$0xff] %vm1137_vm2, %v1054_v24  ;;  %v8973_v24 = vld [vmem:[#allocation2 + $0xf8] sm:$0xff] }
 0x166   : > { %v1203_v4 = vpop.permute.xlu2 %1202  ;;  %v1177_v26 = vpop.permute.xlu1 %1176 }
 0x167   : > { %1284 = vst.msk [vmem:[#allocation4 + $0xf0] sm:$0xff] %vm1268_vm3, %v1203_v4 }
 0x168   : > { %1271 = vst.msk [vmem:[#allocation4 + $0x20] sm:$0xff] %vm1268_vm3, %v1177_v26 }
 0x16a   : > { %1385 = vrot.lane.b32.xlu0 %v8826_v7, %s8147_s13 }
 0x16c   : > { %v1181_v30 = vpop.permute.xlu0 %1180  ;;  %1389 = vrot.lane.b32.xlu2 %v8830_v29, %s8147_s13  ;;  %1369 = vrot.lane.b32.xlu1 %v1301_v28, %s8147_s13 }
 0x16d   : > { %1273 = vst.msk [vmem:[#allocation4 + $0x40] sm:$0xff] %vm1268_vm3, %v1181_v30 }
 0x16e   : > { %v1058_v31 = vpop.permute.xlu2 %1057  ;;  %v1086_v32 = vpop.permute.xlu1 %1085 }
 0x16f   : > { %1146 = vst.msk [vmem:[#allocation4 + $0x80] sm:$0xff] %vm1137_vm2, %v1058_v31 }
 0x170   : > { %1160 = vst.msk [vmem:[#allocation4 + $0x160] sm:$0xff] %vm1137_vm2, %v1086_v32 }
 0x172   : > { %1391 = vrot.lane.b32.xlu0 %v8838_v35, %s8147_s13 }
 0x174   : > { %v1090_v33 = vpop.permute.xlu0 %1089  ;;  %1395 = vrot.lane.b32.xlu2 %v8842_v25, %s8147_s13  ;;  %1375 = vrot.lane.b32.xlu1 %v8846_v9, %s8147_s13 }
 0x175   : > { %1162 = vst.msk [vmem:[#allocation4 + $0x180] sm:$0xff] %vm1137_vm2, %v1090_v33 }
 0x176   : > { %v1185_v20 = vpop.permute.xlu2 %1184  ;;  %v1104_v38 = vpop.permute.xlu1 %1103 }
 0x177   : > { %1275 = vst.msk [vmem:[#allocation4 + $0x60] sm:$0xff] %vm1268_vm3, %v1185_v20 }
 0x178   : > { %1169 = vst.msk [vmem:[#allocation4 + $0x1f0] sm:$0xff] %vm1137_vm2, %v1104_v38 }
 0x17a   : > { %1397 = vrot.lane.b32.xlu0 %v8853_v40, %s8147_s13 }
 0x17c   : > { %v1078_v34 = vpop.permute.xlu0 %1077  ;;  %1401 = vrot.lane.b32.xlu2 %v8857_v42, %s8147_s13  ;;  %1381 = vrot.lane.b32.xlu1 %v8861_v22, %s8147_s13 }
 0x17d   : > { %1156 = vst.msk [vmem:[#allocation4 + $0x120] sm:$0xff] %vm1137_vm2, %v1078_v34 }
 0x17e   : > { %v1094_v59 = vpop.permute.xlu2 %1093  ;;  %v1074_v43 = vpop.permute.xlu1 %1073 }
 0x17f   : > { %1164 = vst.msk [vmem:[#allocation4 + $0x1a0] sm:$0xff] %vm1137_vm2, %v1094_v59 }
 0x180   : > { %1154 = vst.msk [vmem:[#allocation4 + $0x100] sm:$0xff] %vm1137_vm2, %v1074_v43 }
 0x182   : > { %1403 = vrot.lane.b32.xlu0 %v8868_v13, %s8147_s13 }
 0x184   : > { %v1096_v52 = vpop.permute.xlu0 %1095  ;;  %1407 = vrot.lane.b32.xlu2 %v8872_v21, %s8147_s13  ;;  %1387 = vrot.lane.b32.xlu1 %v8876_v51, %s8147_s13 }
 0x185   : > { %1165 = vst.msk [vmem:[#allocation4 + $0x1b0] sm:$0xff] %vm1137_vm2, %v1096_v52 }
 0x186   : > { %v1209_v37 = vpop.permute.xlu2 %1208  ;;  %v1201_v14 = vpop.permute.xlu1 %1200 }
 0x187   : > { %1287 = vst.msk [vmem:[#allocation4 + $0x120] sm:$0xff] %vm1268_vm3, %v1209_v37 }
 0x188   : > { %1283 = vst.msk [vmem:[#allocation4 + $0xe0] sm:$0xff] %vm1268_vm3, %v1201_v14 }
 0x18a   : > { %1409 = vrot.lane.b32.xlu0 %v8883_v41, %s8147_s13 }
 0x18c   : > { %v1060_v45 = vpop.permute.xlu0 %1059  ;;  %1413 = vrot.lane.b32.xlu2 %v8887_v44, %s8147_s13  ;;  %1393 = vrot.lane.b32.xlu1 %v8891_v47, %s8147_s13 }
 0x18d   : > { %1147 = vst.msk [vmem:[#allocation4 + $0x90] sm:$0xff] %vm1137_vm2, %v1060_v45 }
 0x18e   : > { %1278 = vst.msk [vmem:[#allocation4 + $0x90] sm:$0xff] %vm1268_vm3, %v8724_v39  ;;  %v1215_v48 = vpop.permute.xlu2 %1214  ;;  %v1056_v46 = vpop.permute.xlu1 %1055 }
 0x18f   : > { %1290 = vst.msk [vmem:[#allocation4 + $0x150] sm:$0xff] %vm1268_vm3, %v1215_v48 }
 0x190   : > { %1145 = vst.msk [vmem:[#allocation4 + $0x70] sm:$0xff] %vm1137_vm2, %v1056_v46 }
 0x192   : > { %1415 = vrot.lane.b32.xlu0 %v8900_v50, %s8147_s13 }
 0x194   : > { %v1187_v55 = vpop.permute.xlu0 %1186  ;;  %1419 = vrot.lane.b32.xlu2 %v8904_v54, %s8147_s13  ;;  %1399 = vrot.lane.b32.xlu1 %v8908_v56, %s8147_s13 }
 0x195   : > { %1276 = vst.msk [vmem:[#allocation4 + $0x70] sm:$0xff] %vm1268_vm3, %v1187_v55 }
 0x196   : > { %v1221_v39 = vpop.permute.xlu2 %1220  ;;  %v1183_v57 = vpop.permute.xlu1 %1182 }
 0x197   : > { %1293 = vst.msk [vmem:[#allocation4 + $0x180] sm:$0xff] %vm1268_vm3, %v1221_v39 }
 0x198   : > { %1274 = vst.msk [vmem:[#allocation4 + $0x50] sm:$0xff] %vm1268_vm3, %v1183_v57 }
 0x19a   : > { %1421 = vrot.lane.b32.xlu0 %v8915_v10, %s8147_s13 }
 0x19c   : > { %v1205_v49 = vpop.permute.xlu0 %1204  ;;  %1425 = vrot.lane.b32.xlu2 %v8919_v6, %s8147_s13  ;;  %1405 = vrot.lane.b32.xlu1 %v8923_v58, %s8147_s13 }
 0x19d   : > { %1285 = vst.msk [vmem:[#allocation4 + $0x100] sm:$0xff] %vm1268_vm3, %v1205_v49 }
 0x19e   : > { %v1227_v60 = vpop.permute.xlu2 %1226  ;;  %v1092_v62 = vpop.permute.xlu1 %1091 }
 0x19f   : > { %1296 = vst.msk [vmem:[#allocation4 + $0x1b0] sm:$0xff] %vm1268_vm3, %v1227_v60  ;;  %v9043_v60 = vld [vmem:[#allocation2 + $0x108] sm:$0xff] }
 0x1a0   : > { %1163 = vst.msk [vmem:[#allocation4 + $0x190] sm:$0xff] %vm1137_vm2, %v1092_v62 }
 0x1a2   : > { %1427 = vrot.lane.b32.xlu0 %v8930_v0, %s8147_s13 }
 0x1a4   : > { %v1211_v63 = vpop.permute.xlu0 %1210  ;;  %1431 = vrot.lane.b32.xlu2 %v8934_v1, %s8147_s13  ;;  %1411 = vrot.lane.b32.xlu1 %v8938_v61, %s8147_s13 }
 0x1a5   : > { %1288 = vst.msk [vmem:[#allocation4 + $0x130] sm:$0xff] %vm1268_vm3, %v1211_v63 }
 0x1a6   : > { %v1233_v2 = vpop.permute.xlu2 %1232  ;;  %v1062_v15 = vpop.permute.xlu1 %1061 }
 0x1a7   : > { %1299 = vst.msk [vmem:[#allocation4 + $0x1e0] sm:$0xff] %vm1268_vm3, %v1233_v2 }
 0x1a8   : > { %1148 = vst.msk [vmem:[#allocation4 + $0xa0] sm:$0xff] %vm1137_vm2, %v1062_v15 }
 0x1a9   : > { %1279 = vst.msk [vmem:[#allocation4 + $0xa0] sm:$0xff] %vm1268_vm3, %v8751_v53 }
 0x1aa   : > { %1500 = vrot.lane.b32.xlu0 %v8800_v11, %s8148_s14  ;;  %v8962_v11 = vld [vmem:[#allocation2 + $0xe0] sm:$0xff] }
 0x1ac   : > { %v1217_v5 = vpop.permute.xlu0 %1216  ;;  %1504 = vrot.lane.b32.xlu2 %v8804_v12, %s8148_s14  ;;  %1417 = vrot.lane.b32.xlu1 %v8951_v36, %s8147_s13 }
 0x1ad   : > { %1291 = vst.msk [vmem:[#allocation4 + $0x160] sm:$0xff] %vm1268_vm3, %v1217_v5 }
 0x1ae   : > { %v1372_v27 = vpop.permute.xlu2 %1371  ;;  %v1189_v53 = vpop.permute.xlu1 %1188 }
 0x1af   : > { %1467 = vst.msk [vmem:[#allocation4 + $0x10] sm:$0xff] %vm1465_vm4, %v1372_v27 }
 0x1b0   : > { %1277 = vst.msk [vmem:[#allocation4 + $0x80] sm:$0xff] %vm1268_vm3, %v1189_v53 }
 0x1b2   : > { %1506 = vrot.lane.b32.xlu0 %v8813_v19, %s8148_s14 }
 0x1b4   : > { %v1223_v8 = vpop.permute.xlu0 %1222  ;;  %1510 = vrot.lane.b32.xlu2 %v8817_v23, %s8148_s14  ;;  %1423 = vrot.lane.b32.xlu1 %v8962_v11, %s8147_s13 }
 0x1b5   : > { %1294 = vst.msk [vmem:[#allocation4 + $0x190] sm:$0xff] %vm1268_vm3, %v1223_v8 }
 0x1b6   : > { %v1378_v16 = vpop.permute.xlu2 %1377  ;;  %v1207_v17 = vpop.permute.xlu1 %1206 }
 0x1b7   : > { %1470 = vst.msk [vmem:[#allocation4 + $0x40] sm:$0xff] %vm1465_vm4, %v1378_v16 }
 0x1b8   : > { %1286 = vst.msk [vmem:[#allocation4 + $0x110] sm:$0xff] %vm1268_vm3, %v1207_v17 }
 0x1ba   : > { %1512 = vrot.lane.b32.xlu0 %v8826_v7, %s8148_s14 }
 0x1bc   : > { %v1229_v18 = vpop.permute.xlu0 %1228  ;;  %1516 = vrot.lane.b32.xlu2 %v8830_v29, %s8148_s14  ;;  %1429 = vrot.lane.b32.xlu1 %v8973_v24, %s8147_s13 }
 0x1bd   : > { %1297 = vst.msk [vmem:[#allocation4 + $0x1c0] sm:$0xff] %vm1268_vm3, %v1229_v18 }
 0x1be   : > { %v1384_v4 = vpop.permute.xlu2 %1383  ;;  %v1213_v26 = vpop.permute.xlu1 %1212 }
 0x1bf   : > { %1473 = vst.msk [vmem:[#allocation4 + $0x70] sm:$0xff] %vm1465_vm4, %v1384_v4  ;;  %v1336_v4 = vld [vmem:[#allocation2 + $0x120] sm:$0xff] }
 0x1c0   : > { %1289 = vst.msk [vmem:[#allocation4 + $0x140] sm:$0xff] %vm1268_vm3, %v1213_v26  ;;  %v1797_v26 = vld [vmem:[%s13364_s9 + $0x8] sm:$0xff] }
 0x1c2   : > { %1518 = vrot.lane.b32.xlu0 %v8838_v35, %s8148_s14 }
 0x1c4   : > { %v1235_v28 = vpop.permute.xlu0 %1234  ;;  %1522 = vrot.lane.b32.xlu2 %v8842_v25, %s8148_s14  ;;  %1502 = vrot.lane.b32.xlu1 %v8846_v9, %s8148_s14 }
 0x1c5   : > { %1300 = vst.msk [vmem:[#allocation4 + $0x1f0] sm:$0xff] %vm1268_vm3, %v1235_v28 }
 0x1c6   : > { %v1390_v30 = vpop.permute.xlu2 %1389  ;;  %v1219_v31 = vpop.permute.xlu1 %1218 }
 0x1c7   : > { %1476 = vst.msk [vmem:[#allocation4 + $0xa0] sm:$0xff] %vm1465_vm4, %v1390_v30 }
 0x1c8   : > { %1292 = vst.msk [vmem:[#allocation4 + $0x170] sm:$0xff] %vm1268_vm3, %v1219_v31  ;;  %v1798_v31 = vld [vmem:[%s13364_s9 + $0x10] sm:$0xff] }
 0x1ca   : > { %1524 = vrot.lane.b32.xlu0 %v8853_v40, %s8148_s14 }
 0x1cc   : > { %v1374_v32 = vpop.permute.xlu0 %1373  ;;  %1528 = vrot.lane.b32.xlu2 %v8857_v42, %s8148_s14  ;;  %1508 = vrot.lane.b32.xlu1 %v8861_v22, %s8148_s14 }
 0x1cd   : > { %1468 = vst.msk [vmem:[#allocation4 + $0x20] sm:$0xff] %vm1465_vm4, %v1374_v32  ;;  %v1800_v32 = vld [vmem:[%s13364_s9 + $0x20] sm:$0xff] }
 0x1ce   : > { %v1396_v33 = vpop.permute.xlu2 %1395  ;;  %v1225_v9 = vpop.permute.xlu1 %1224 }
 0x1cf   : > { %1479 = vst.msk [vmem:[#allocation4 + $0xd0] sm:$0xff] %vm1465_vm4, %v1396_v33 }
 0x1d0   : > { %1295 = vst.msk [vmem:[#allocation4 + $0x1a0] sm:$0xff] %vm1268_vm3, %v1225_v9 }
 0x1d2   : > { %1530 = vrot.lane.b32.xlu0 %v8868_v13, %s8148_s14 }
 0x1d4   : > { %v1380_v20 = vpop.permute.xlu0 %1379  ;;  %1534 = vrot.lane.b32.xlu2 %v8872_v21, %s8148_s14  ;;  %1514 = vrot.lane.b32.xlu1 %v8876_v51, %s8148_s14 }
 0x1d5   : > { %1471 = vst.msk [vmem:[#allocation4 + $0x50] sm:$0xff] %vm1465_vm4, %v1380_v20  ;;  %v1803_v20 = vld [vmem:[%s13364_s9 + $0x38] sm:$0xff] }
 0x1d6   : > { %v1402_v38 = vpop.permute.xlu2 %1401  ;;  %v1231_v34 = vpop.permute.xlu1 %1230 }
 0x1d7   : > { %1482 = vst.msk [vmem:[#allocation4 + $0x100] sm:$0xff] %vm1465_vm4, %v1402_v38  ;;  %v1802_v38 = vld [vmem:[%s13364_s9 + $0x30] sm:$0xff] }
 0x1d8   : > { %1298 = vst.msk [vmem:[#allocation4 + $0x1d0] sm:$0xff] %vm1268_vm3, %v1231_v34 }
 0x1da   : > { %1536 = vrot.lane.b32.xlu0 %v8883_v41, %s8148_s14 }
 0x1dc   : > { %v1386_v59 = vpop.permute.xlu0 %1385  ;;  %1540 = vrot.lane.b32.xlu2 %v8887_v44, %s8148_s14  ;;  %1520 = vrot.lane.b32.xlu1 %v8891_v47, %s8148_s14 }
 0x1dd   : > { %1474 = vst.msk [vmem:[#allocation4 + $0x80] sm:$0xff] %vm1465_vm4, %v1386_v59 }
 0x1de   : > { %v1408_v43 = vpop.permute.xlu2 %1407  ;;  %v1370_v52 = vpop.permute.xlu1 %1369 }
 0x1df   : > { %1485 = vst.msk [vmem:[#allocation4 + $0x130] sm:$0xff] %vm1465_vm4, %v1408_v43  ;;  %v1806_v43 = vld [vmem:[%s13364_s9 + $0x50] sm:$0xff] }
 0x1e0   : > { %1466 = vst.msk [vmem:[#allocation4] sm:$0xff] %vm1465_vm4, %v1370_v52  ;;  %v1805_v52 = vld [vmem:[%s13364_s9 + $0x48] sm:$0xff] }
 0x1e2   : > { %1542 = vrot.lane.b32.xlu0 %v8900_v50, %s8148_s14 }
 0x1e4   : > { %v1392_v37 = vpop.permute.xlu0 %1391  ;;  %1546 = vrot.lane.b32.xlu2 %v8904_v54, %s8148_s14  ;;  %1526 = vrot.lane.b32.xlu1 %v8908_v56, %s8148_s14 }
 0x1e5   : > { %1477 = vst.msk [vmem:[#allocation4 + $0xb0] sm:$0xff] %vm1465_vm4, %v1392_v37  ;;  %v1796_v37 = vld [vmem:[%s13364_s9] sm:$0xff] }
 0x1e6   : > { %v1414_v14 = vpop.permute.xlu2 %1413  ;;  %v1376_v45 = vpop.permute.xlu1 %1375 }
 0x1e7   : > { %1488 = vst.msk [vmem:[#allocation4 + $0x160] sm:$0xff] %vm1465_vm4, %v1414_v14 }
 0x1e8   : > { %1469 = vst.msk [vmem:[#allocation4 + $0x30] sm:$0xff] %vm1465_vm4, %v1376_v45 }
 0x1ea   : > { %1548 = vrot.lane.b32.xlu0 %v8915_v10, %s8148_s14 }
 0x1ec   : > { %v1398_v48 = vpop.permute.xlu0 %1397  ;;  %1552 = vrot.lane.b32.xlu2 %v8919_v6, %s8148_s14  ;;  %1532 = vrot.lane.b32.xlu1 %v8923_v58, %s8148_s14 }
 0x1ed   : > { %1480 = vst.msk [vmem:[#allocation4 + $0xe0] sm:$0xff] %vm1465_vm4, %v1398_v48 }
 0x1ee   : > { %v1420_v46 = vpop.permute.xlu2 %1419  ;;  %v1382_v55 = vpop.permute.xlu1 %1381 }
 0x1ef   : > { %1491 = vst.msk [vmem:[#allocation4 + $0x190] sm:$0xff] %vm1465_vm4, %v1420_v46  ;;  %v1809_v46 = vld [vmem:[%s13364_s9 + $0x68] sm:$0xff] }
 0x1f0   : > { %1472 = vst.msk [vmem:[#allocation4 + $0x60] sm:$0xff] %vm1465_vm4, %v1382_v55  ;;  %v1808_v55 = vld [vmem:[%s13364_s9 + $0x60] sm:$0xff] }
 0x1f2   : > { %1554 = vrot.lane.b32.xlu0 %v8930_v0, %s8148_s14 }
 0x1f4   : > { %v1404_v39 = vpop.permute.xlu0 %1403  ;;  %1558 = vrot.lane.b32.xlu2 %v8934_v1, %s8148_s14  ;;  %1538 = vrot.lane.b32.xlu1 %v8938_v61, %s8148_s14 }
 0x1f5   : > { %1483 = vst.msk [vmem:[#allocation4 + $0x110] sm:$0xff] %vm1465_vm4, %v1404_v39  ;;  %v1799_v39 = vld [vmem:[%s13364_s9 + $0x18] sm:$0xff] }
 0x1f6   : > { %v1426_v57 = vpop.permute.xlu2 %1425  ;;  %v1388_v49 = vpop.permute.xlu1 %1387 }
 0x1f7   : > { %1494 = vst.msk [vmem:[#allocation4 + $0x1c0] sm:$0xff] %vm1465_vm4, %v1426_v57 }
 0x1f8   : > { %1475 = vst.msk [vmem:[#allocation4 + $0x90] sm:$0xff] %vm1465_vm4, %v1388_v49 }
 0x1fa   : > { %1560 = vrot.lane.b32.xlu0 %v9043_v60, %s8148_s14 }
 0x1fc   : > { %v1410_v62 = vpop.permute.xlu0 %1409  ;;  %1631 = vrot.lane.b32.xlu2 %v8804_v12, %s8149_s16  ;;  %1544 = vrot.lane.b32.xlu1 %v8951_v36, %s8148_s14 }
 0x1fd   : > { %1486 = vst.msk [vmem:[#allocation4 + $0x140] sm:$0xff] %vm1465_vm4, %v1410_v62  ;;  %v1812_v62 = vld [vmem:[%s13364_s9 + $0x80] sm:$0xff] }
 0x1fe   : > { %v1432_v63 = vpop.permute.xlu2 %1431  ;;  %v1394_v2 = vpop.permute.xlu1 %1393 }
 0x1ff   : > { %1497 = vst.msk [vmem:[#allocation4 + $0x1f0] sm:$0xff] %vm1465_vm4, %v1432_v63  ;;  %v1811_v63 = vld [vmem:[%s13364_s9 + $0x78] sm:$0xff] }
 0x200   : > { %1478 = vst.msk [vmem:[#allocation4 + $0xc0] sm:$0xff] %vm1465_vm4, %v1394_v2  ;;  %v1801_v2 = vld [vmem:[%s13364_s9 + $0x28] sm:$0xff] }
 0x202   : > { %1633 = vrot.lane.b32.xlu0 %v8813_v19, %s8149_s16 }
 0x204   : > { %v1416_v15 = vpop.permute.xlu0 %1415  ;;  %1637 = vrot.lane.b32.xlu2 %v8817_v23, %s8149_s16  ;;  %1550 = vrot.lane.b32.xlu1 %v8962_v11, %s8148_s14 }
 0x205   : > { %1489 = vst.msk [vmem:[#allocation4 + $0x170] sm:$0xff] %vm1465_vm4, %v1416_v15 }
 0x206   : > { %v1505_v12 = vpop.permute.xlu2 %1504  ;;  %v1400_v5 = vpop.permute.xlu1 %1399 }
 0x207   : > { %1599 = vst.msk [vmem:[#allocation4 + $0x20] sm:$0xff] %vm1596_vm5, %v1505_v12 }
 0x208   : > { %1481 = vst.msk [vmem:[#allocation4 + $0xf0] sm:$0xff] %vm1465_vm4, %v1400_v5 }
 0x20a   : > { %1639 = vrot.lane.b32.xlu0 %v8826_v7, %s8149_s16  ;;  %v9076_v7 = vld [vmem:[#allocation2 + $0x110] sm:$0xff] }
 0x20c   : > { %v1422_v19 = vpop.permute.xlu0 %1421  ;;  %1643 = vrot.lane.b32.xlu2 %v8830_v29, %s8149_s16  ;;  %1556 = vrot.lane.b32.xlu1 %v8973_v24, %s8148_s14 }
 0x20d   : > { %1492 = vst.msk [vmem:[#allocation4 + $0x1a0] sm:$0xff] %vm1465_vm4, %v1422_v19  ;;  %v1815_v19 = vld [vmem:[%s13364_s9 + $0x98] sm:$0xff] }
 0x20e   : > { %v1511_v23 = vpop.permute.xlu2 %1510  ;;  %v1406_v27 = vpop.permute.xlu1 %1405 }
 0x20f   : > { %1602 = vst.msk [vmem:[#allocation4 + $0x50] sm:$0xff] %vm1596_vm5, %v1511_v23  ;;  %v1814_v23 = vld [vmem:[%s13364_s9 + $0x90] sm:$0xff] }
 0x210   : > { %1484 = vst.msk [vmem:[#allocation4 + $0x120] sm:$0xff] %vm1465_vm4, %v1406_v27  ;;  %v1804_v27 = vld [vmem:[%s13364_s9 + $0x40] sm:$0xff] }
 0x212   : > { %1645 = vrot.lane.b32.xlu0 %v8838_v35, %s8149_s16 }
 0x214   : > { %v1428_v53 = vpop.permute.xlu0 %1427  ;;  %1649 = vrot.lane.b32.xlu2 %v8842_v25, %s8149_s16  ;;  %1562 = vrot.lane.b32.xlu1 %v9076_v7, %s8148_s14 }
 0x215   : > { %1495 = vst.msk [vmem:[#allocation4 + $0x1d0] sm:$0xff] %vm1465_vm4, %v1428_v53 }
 0x216   : > { %v1517_v29 = vpop.permute.xlu2 %1516  ;;  %v1412_v8 = vpop.permute.xlu1 %1411 }
 0x217   : > { %1605 = vst.msk [vmem:[#allocation4 + $0x80] sm:$0xff] %vm1596_vm5, %v1517_v29 }
 0x218   : > { %1487 = vst.msk [vmem:[#allocation4 + $0x150] sm:$0xff] %vm1465_vm4, %v1412_v8  ;;  %v1818_v8 = vld [vmem:[%s13364_s9 + $0xb0] sm:$0xff] }
 0x21a   : > { %1651 = vrot.lane.b32.xlu0 %v8853_v40, %s8149_s16 }
 0x21c   : > { %v1501_v35 = vpop.permute.xlu0 %1500  ;;  %1655 = vrot.lane.b32.xlu2 %v8857_v42, %s8149_s16  ;;  %1635 = vrot.lane.b32.xlu1 %v8861_v22, %s8149_s16 }
 0x21d   : > { %1597 = vst.msk [vmem:[#allocation4] sm:$0xff] %vm1596_vm5, %v1501_v35  ;;  %v1817_v35 = vld [vmem:[%s13364_s9 + $0xa8] sm:$0xff] }
 0x21e   : > { %v1523_v25 = vpop.permute.xlu2 %1522  ;;  %v1418_v16 = vpop.permute.xlu1 %1417 }
 0x21f   : > { %1608 = vst.msk [vmem:[#allocation4 + $0xb0] sm:$0xff] %vm1596_vm5, %v1523_v25  ;;  %v1807_v25 = vld [vmem:[%s13364_s9 + $0x58] sm:$0xff] }
 0x220   : > { %1490 = vst.msk [vmem:[#allocation4 + $0x180] sm:$0xff] %vm1465_vm4, %v1418_v16 }
 0x222   : > { %1657 = vrot.lane.b32.xlu0 %v8868_v13, %s8149_s16 }
 0x224   : > { %v1507_v17 = vpop.permute.xlu0 %1506  ;;  %1661 = vrot.lane.b32.xlu2 %v8872_v21, %s8149_s16  ;;  %1641 = vrot.lane.b32.xlu1 %v8876_v51, %s8149_s16  ;;  %v8150_v51 = vmov 2  }
 0x225   : > { %1600 = vst.msk [vmem:[#allocation4 + $0x30] sm:$0xff] %vm1596_vm5, %v1507_v17  ;;  %7909 = vset.pattern.permute.xlu2 %v8150_v51  ;;  %7910 = vset.pattern.permute.xlu0 %v8150_v51 }
 0x226   : > { %v1529_v40 = vpop.permute.xlu2 %1528  ;;  %v1424_v42 = vpop.permute.xlu1 %1423  ;;  %7908 = vset.pattern.permute.xlu1 %v8150_v51 }
 0x227   : > { %1611 = vst.msk [vmem:[#allocation4 + $0xe0] sm:$0xff] %vm1596_vm5, %v1529_v40 }
 0x228   : > { %1493 = vst.msk [vmem:[#allocation4 + $0x1b0] sm:$0xff] %vm1465_vm4, %v1424_v42  ;;  %v1821_v42 = vld [vmem:[%s13364_s9 + $0xc8] sm:$0xff] }
 0x22a   : > { %1663 = vrot.lane.b32.xlu0 %v8883_v41, %s8149_s16 }
 0x22c   : > { %v1513_v22 = vpop.permute.xlu0 %1512  ;;  %1667 = vrot.lane.b32.xlu2 %v8887_v44, %s8149_s16  ;;  %1647 = vrot.lane.b32.xlu1 %v8891_v47, %s8149_s16 }
 0x22d   : > { %1603 = vst.msk [vmem:[#allocation4 + $0x60] sm:$0xff] %vm1596_vm5, %v1513_v22  ;;  %v1820_v22 = vld [vmem:[%s13364_s9 + $0xc0] sm:$0xff] }
 0x22e   : > { %v1535_v13 = vpop.permute.xlu2 %1534  ;;  %v1430_v21 = vpop.permute.xlu1 %1429 }
 0x22f   : > { %1614 = vst.msk [vmem:[#allocation4 + $0x110] sm:$0xff] %vm1596_vm5, %v1535_v13  ;;  %v1810_v13 = vld [vmem:[%s13364_s9 + $0x70] sm:$0xff] }
 0x230   : > { %1496 = vst.msk [vmem:[#allocation4 + $0x1e0] sm:$0xff] %vm1465_vm4, %v1430_v21 }
 0x232   : > { %1669 = vrot.lane.b32.xlu0 %v8900_v50, %s8149_s16 }
 0x234   : > { %v1519_v41 = vpop.permute.xlu0 %1518  ;;  %1673 = vrot.lane.b32.xlu2 %v8904_v54, %s8149_s16  ;;  %1653 = vrot.lane.b32.xlu1 %v8908_v56, %s8149_s16 }
 0x235   : > { %1606 = vst.msk [vmem:[#allocation4 + $0x90] sm:$0xff] %vm1596_vm5, %v1519_v41 }
 0x236   : > { %v1541_v44 = vpop.permute.xlu2 %1540  ;;  %v1503_v47 = vpop.permute.xlu1 %1502 }
 0x237   : > { %1617 = vst.msk [vmem:[#allocation4 + $0x140] sm:$0xff] %vm1596_vm5, %v1541_v44 }
 0x238   : > { %1598 = vst.msk [vmem:[#allocation4 + $0x10] sm:$0xff] %vm1596_vm5, %v1503_v47  ;;  %v1824_v47 = vld [vmem:[%s13364_s9 + $0xe0] sm:$0xff] }
 0x23a   : > { %1675 = vrot.lane.b32.xlu0 %v8915_v10, %s8149_s16 }
 0x23c   : > { %v1525_v50 = vpop.permute.xlu0 %1524  ;;  %1679 = vrot.lane.b32.xlu2 %v8919_v6, %s8149_s16  ;;  %1659 = vrot.lane.b32.xlu1 %v8923_v58, %s8149_s16  ;;  %v1335_v58 = vld [vmem:[#allocation2 + $0x118] sm:$0xff] }
 0x23d   : > { %1609 = vst.msk [vmem:[#allocation4 + $0xc0] sm:$0xff] %vm1596_vm5, %v1525_v50  ;;  %v1823_v50 = vld [vmem:[%s13364_s9 + $0xd8] sm:$0xff] }
 0x23e   : > { %v1547_v54 = vpop.permute.xlu2 %1546  ;;  %v1509_v56 = vpop.permute.xlu1 %1508 }
 0x23f   : > { %1620 = vst.msk [vmem:[#allocation4 + $0x170] sm:$0xff] %vm1596_vm5, %v1547_v54  ;;  %v1813_v54 = vld [vmem:[%s13364_s9 + $0x88] sm:$0xff] }
 0x240   : > { %1601 = vst.msk [vmem:[#allocation4 + $0x40] sm:$0xff] %vm1596_vm5, %v1509_v56 }
 0x242   : > { %1681 = vrot.lane.b32.xlu0 %v8930_v0, %s8149_s16 }
 0x244   : > { %v1531_v18 = vpop.permute.xlu0 %1530  ;;  %1685 = vrot.lane.b32.xlu2 %v8934_v1, %s8149_s16  ;;  %1665 = vrot.lane.b32.xlu1 %v8938_v61, %s8149_s16 }
 0x245   : > { %1612 = vst.msk [vmem:[#allocation4 + $0xf0] sm:$0xff] %vm1596_vm5, %v1531_v18 }
 0x246   : > { %v1553_v10 = vpop.permute.xlu2 %1552  ;;  %v1515_v6 = vpop.permute.xlu1 %1514 }
 0x247   : > { %1623 = vst.msk [vmem:[#allocation4 + $0x1a0] sm:$0xff] %vm1596_vm5, %v1553_v10 }
 0x248   : > { %1604 = vst.msk [vmem:[#allocation4 + $0x70] sm:$0xff] %vm1596_vm5, %v1515_v6  ;;  %v1827_v6 = vld [vmem:[%s13364_s9 + $0xf8] sm:$0xff] }
 0x24a   : > { %1687 = vrot.lane.b32.xlu0 %v9043_v60, %s8149_s16 }
 0x24c   : > { %v1537_v0 = vpop.permute.xlu0 %1536  ;;  %1691 = vrot.lane.b32.xlu2 %v1335_v58, %s8149_s16  ;;  %1671 = vrot.lane.b32.xlu1 %v8951_v36, %s8149_s16  ;;  %v1826_v58 = vld [vmem:[%s13364_s9 + $0xf0] sm:$0xff] }
 0x24d   : > { %1615 = vst.msk [vmem:[#allocation4 + $0x120] sm:$0xff] %vm1596_vm5, %v1537_v0  ;;  %v1816_v0 = vld [vmem:[%s13364_s9 + $0xa0] sm:$0xff] }
 0x24e   : > { %v1559_v1 = vpop.permute.xlu2 %1558  ;;  %v1521_v61 = vpop.permute.xlu1 %1520 }
 0x24f   : > { %1626 = vst.msk [vmem:[#allocation4 + $0x1d0] sm:$0xff] %vm1596_vm5, %v1559_v1 }
 0x250   : > { %1607 = vst.msk [vmem:[#allocation4 + $0xa0] sm:$0xff] %vm1596_vm5, %v1521_v61 }
 0x252   : > { %1693 = vrot.lane.b32.xlu0 %v1336_v4, %s8149_s16 }
 0x254   : > { %v1543_v28 = vpop.permute.xlu0 %1542  ;;  %1839 = vperm.xlu2 %7909, %v1797_v26   ;;  %1677 = vrot.lane.b32.xlu1 %v8962_v11, %s8149_s16  ;;  %v1830_v26 = vld [vmem:[%s13364_s9 + $0x110] sm:$0xff] }
 0x255   : > { %1618 = vst.msk [vmem:[#allocation4 + $0x150] sm:$0xff] %vm1596_vm5, %v1543_v28  ;;  %v1829_v28 = vld [vmem:[%s13364_s9 + $0x108] sm:$0xff] }
 0x256   : > { %v1632_v36 = vpop.permute.xlu2 %1631  ;;  %v1527_v30 = vpop.permute.xlu1 %1526 }
 0x257   : > { %1728 = vst.msk [vmem:[#allocation4] sm:$0xff] %vm1727_vm6, %v1632_v36  ;;  %v1819_v36 = vld [vmem:[%s13364_s9 + $0xb8] sm:$0xff] }
 0x258   : > { %1610 = vst.msk [vmem:[#allocation4 + $0xd0] sm:$0xff] %vm1596_vm5, %v1527_v30 }
 0x25a   : > { %1844 = vperm.xlu0 %7910, %v1798_v31  }
 0x25c   : > { %v1549_v33 = vpop.permute.xlu0 %1548  ;;  %1854 = vperm.xlu2 %7909, %v1800_v32   ;;  %1683 = vrot.lane.b32.xlu1 %v8973_v24, %s8149_s16  ;;  %v1761_v32 = vld [vmem:[#allocation2 + $0x11] sm:$0xff] }
 0x25d   : > { %1621 = vst.msk [vmem:[#allocation4 + $0x180] sm:$0xff] %vm1596_vm5, %v1549_v33 }
 0x25e   : > { %v1638_v11 = vpop.permute.xlu2 %1637  ;;  %v1533_v9 = vpop.permute.xlu1 %1532 }
 0x25f   : > { %1731 = vst.msk [vmem:[#allocation4 + $0x30] sm:$0xff] %vm1727_vm6, %v1638_v11 }
 0x260   : > { %1613 = vst.msk [vmem:[#allocation4 + $0x100] sm:$0xff] %vm1596_vm5, %v1533_v9  ;;  %v1822_v9 = vld [vmem:[%s13364_s9 + $0xd0] sm:$0xff] }
 0x262   : > { %1869 = vperm.xlu0 %7910, %v1803_v20  }
 0x264   : > { %v1555_v34 = vpop.permute.xlu0 %1554  ;;  %1864 = vperm.xlu2 %7909, %v1802_v38   ;;  %1689 = vrot.lane.b32.xlu1 %v9076_v7, %s8149_s16  ;;  %v1764_v38 = vld [vmem:[#allocation2 + $0x29] sm:$0xff] }
 0x265   : > { %1624 = vst.msk [vmem:[#allocation4 + $0x1b0] sm:$0xff] %vm1596_vm5, %v1555_v34 }
 0x266   : > { %v1644_v24 = vpop.permute.xlu2 %1643  ;;  %v1539_v59 = vpop.permute.xlu1 %1538 }
 0x267   : > { %1734 = vst.msk [vmem:[#allocation4 + $0x60] sm:$0xff] %vm1727_vm6, %v1644_v24 }
 0x268   : > { %1616 = vst.msk [vmem:[#allocation4 + $0x130] sm:$0xff] %vm1596_vm5, %v1539_v59 }
 0x26a   : > { %1884 = vperm.xlu0 %7910, %v1806_v43   ;;  %v1825_v43 = vld [vmem:[%s13364_s9 + $0xe8] sm:$0xff] }
 0x26c   : > { %v1561_v14 = vpop.permute.xlu0 %1560  ;;  %1879 = vperm.xlu2 %7909, %v1805_v52   ;;  %1834 = vperm.xlu1 %7908, %v1796_v37  }
 0x26d   : > { %1627 = vst.msk [vmem:[#allocation4 + $0x1e0] sm:$0xff] %vm1596_vm5, %v1561_v14  ;;  %v1828_v14 = vld [vmem:[%s13364_s9 + $0x100] sm:$0xff] }
 0x26e   : > { %v1650_v45 = vpop.permute.xlu2 %1649  ;;  %v1545_v48 = vpop.permute.xlu1 %1544 }
 0x26f   : > { %1737 = vst.msk [vmem:[#allocation4 + $0x90] sm:$0xff] %vm1727_vm6, %v1650_v45 }
 0x270   : > { %1619 = vst.msk [vmem:[#allocation4 + $0x160] sm:$0xff] %vm1596_vm5, %v1545_v48 }
 0x272   : > { %1899 = vperm.xlu0 %7910, %v1809_v46   ;;  %v1831_v46 = vld [vmem:[%s13364_s9 + $0x118] sm:$0xff] }
 0x274   : > { %v1634_v57 = vpop.permute.xlu0 %1633  ;;  %1894 = vperm.xlu2 %7909, %v1808_v55   ;;  %1849 = vperm.xlu1 %7908, %v1799_v39  }
 0x275   : > { %1729 = vst.msk [vmem:[#allocation4 + $0x10] sm:$0xff] %vm1727_vm6, %v1634_v57  ;;  %v1762_v57 = vld [vmem:[#allocation2 + $0x19] sm:$0xff] }
 0x276   : > { %v1656_v49 = vpop.permute.xlu2 %1655  ;;  %v1551_v60 = vpop.permute.xlu1 %1550 }
 0x277   : > { %1740 = vst.msk [vmem:[#allocation4 + $0xc0] sm:$0xff] %vm1727_vm6, %v1656_v49 }
 0x278   : > { %1622 = vst.msk [vmem:[#allocation4 + $0x190] sm:$0xff] %vm1596_vm5, %v1551_v60  ;;  %v1767_v60 = vld [vmem:[#allocation2 + $0x41] sm:$0xff] }
 0x27a   : > { %1914 = vperm.xlu0 %7910, %v1812_v62  }
 0x27c   : > { %v1640_v15 = vpop.permute.xlu0 %1639  ;;  %1909 = vperm.xlu2 %7909, %v1811_v63   ;;  %1859 = vperm.xlu1 %7908, %v1801_v2  }
 0x27d   : > { %1732 = vst.msk [vmem:[#allocation4 + $0x40] sm:$0xff] %vm1727_vm6, %v1640_v15 }
 0x27e   : > { %v1662_v12 = vpop.permute.xlu2 %1661  ;;  %v1557_v5 = vpop.permute.xlu1 %1556 }
 0x27f   : > { %1743 = vst.msk [vmem:[#allocation4 + $0xf0] sm:$0xff] %vm1727_vm6, %v1662_v12  ;;  %v1770_v12 = vld [vmem:[#allocation2 + $0x59] sm:$0xff] }
 0x280   : > { %1625 = vst.msk [vmem:[#allocation4 + $0x1c0] sm:$0xff] %vm1596_vm5, %v1557_v5 }
 0x282   : > { %1929 = vperm.xlu0 %7910, %v1815_v19  }
 0x284   : > { %v1646_v53 = vpop.permute.xlu0 %1645  ;;  %1924 = vperm.xlu2 %7909, %v1814_v23   ;;  %1874 = vperm.xlu1 %7908, %v1804_v27   ;;  %v1760_v23 = vld [vmem:[#allocation2 + $0x9] sm:$0xff] }
 0x285   : > { %1735 = vst.msk [vmem:[#allocation4 + $0x70] sm:$0xff] %vm1727_vm6, %v1646_v53 }
 0x286   : > { %v1668_v7 = vpop.permute.xlu2 %1667  ;;  %v1563_v29 = vpop.permute.xlu1 %1562 }
 0x287   : > { %1746 = vst.msk [vmem:[#allocation4 + $0x120] sm:$0xff] %vm1727_vm6, %v1668_v7 }
 0x288   : > { %1628 = vst.msk [vmem:[#allocation4 + $0x1f0] sm:$0xff] %vm1596_vm5, %v1563_v29  ;;  %v1773_v29 = vld [vmem:[#allocation2 + $0x71] sm:$0xff] }
 0x28a   : > { %1944 = vperm.xlu0 %7910, %v1818_v8  }
 0x28c   : > { %v1652_v16 = vpop.permute.xlu0 %1651  ;;  %1939 = vperm.xlu2 %7909, %v1817_v35   ;;  %1889 = vperm.xlu1 %7908, %v1807_v25   ;;  %v1763_v25 = vld [vmem:[#allocation2 + $0x21] sm:$0xff] }
 0x28d   : > { %1738 = vst.msk [vmem:[#allocation4 + $0xa0] sm:$0xff] %vm1727_vm6, %v1652_v16 }
 0x28e   : > { %v1674_v17 = vpop.permute.xlu2 %1673  ;;  %v1636_v40 = vpop.permute.xlu1 %1635 }
 0x28f   : > { %1749 = vst.msk [vmem:[#allocation4 + $0x150] sm:$0xff] %vm1727_vm6, %v1674_v17 }
 0x290   : > { %1730 = vst.msk [vmem:[#allocation4 + $0x20] sm:$0xff] %vm1727_vm6, %v1636_v40  ;;  %v1776_v40 = vld [vmem:[#allocation2 + $0x89] sm:$0xff] }
 0x292   : > { %1959 = vperm.xlu0 %7910, %v1821_v42  }
 0x294   : > { %v1658_v21 = vpop.permute.xlu0 %1657  ;;  %1954 = vperm.xlu2 %7909, %v1820_v22   ;;  %1904 = vperm.xlu1 %7908, %v1810_v13  }
 0x295   : > { %1741 = vst.msk [vmem:[#allocation4 + $0xd0] sm:$0xff] %vm1727_vm6, %v1658_v21  ;;  %v1766_v21 = vld [vmem:[#allocation2 + $0x39] sm:$0xff] }
 0x296   : > { %v1680_v41 = vpop.permute.xlu2 %1679  ;;  %v1642_v44 = vpop.permute.xlu1 %1641 }
 0x297   : > { %1752 = vst.msk [vmem:[#allocation4 + $0x180] sm:$0xff] %vm1727_vm6, %v1680_v41  ;;  %v1765_v41 = vld [vmem:[#allocation2 + $0x31] sm:$0xff] }
 0x298   : > { %1733 = vst.msk [vmem:[#allocation4 + $0x50] sm:$0xff] %vm1727_vm6, %v1642_v44 }
 0x29a   : > { %1974 = vperm.xlu0 %7910, %v1824_v47  }
 0x29c   : > { %v1664_v56 = vpop.permute.xlu0 %1663  ;;  %1969 = vperm.xlu2 %7909, %v1823_v50   ;;  %1919 = vperm.xlu1 %7908, %v1813_v54   ;;  %v1779_v54 = vld [vmem:[#allocation2 + $0xa1] sm:$0xff] }
 0x29d   : > { %1744 = vst.msk [vmem:[#allocation4 + $0x100] sm:$0xff] %vm1727_vm6, %v1664_v56 }
 0x29e   : > { %v1686_v18 = vpop.permute.xlu2 %1685  ;;  %v1648_v10 = vpop.permute.xlu1 %1647 }
 0x29f   : > { %1755 = vst.msk [vmem:[#allocation4 + $0x1b0] sm:$0xff] %vm1727_vm6, %v1686_v18 }
 0x2a0   : > { %1736 = vst.msk [vmem:[#allocation4 + $0x80] sm:$0xff] %vm1727_vm6, %v1648_v10  ;;  %v1769_v10 = vld [vmem:[#allocation2 + $0x51] sm:$0xff] }
 0x2a2   : > { %1989 = vperm.xlu0 %7910, %v1827_v6   ;;  %v1768_v6 = vld [vmem:[#allocation2 + $0x49] sm:$0xff] }
 0x2a4   : > { %v1670_v1 = vpop.permute.xlu0 %1669  ;;  %1984 = vperm.xlu2 %7909, %v1826_v58   ;;  %1934 = vperm.xlu1 %7908, %v1816_v0  }
 0x2a5   : > { %1747 = vst.msk [vmem:[#allocation4 + $0x130] sm:$0xff] %vm1727_vm6, %v1670_v1 }
 0x2a6   : > { %v1692_v61 = vpop.permute.xlu2 %1691  ;;  %v1654_v4 = vpop.permute.xlu1 %1653 }
 0x2a7   : > { %1758 = vst.msk [vmem:[#allocation4 + $0x1e0] sm:$0xff] %vm1727_vm6, %v1692_v61 }
 0x2a8   : > { %1739 = vst.msk [vmem:[#allocation4 + $0xb0] sm:$0xff] %vm1727_vm6, %v1654_v4  ;;  %v1782_v4 = vld [vmem:[#allocation2 + $0xb9] sm:$0xff] }
 0x2aa   : > { %2004 = vperm.xlu0 %7910, %v1830_v26  }
 0x2ac   : > { %v1676_v30 = vpop.permute.xlu0 %1675  ;;  %1999 = vperm.xlu2 %7909, %v1829_v28   ;;  %1949 = vperm.xlu1 %7908, %v1819_v36   ;;  %v1772_v36 = vld [vmem:[#allocation2 + $0x69] sm:$0xff] }
 0x2ad   : > { %1750 = vst.msk [vmem:[#allocation4 + $0x160] sm:$0xff] %vm1727_vm6, %v1676_v30  ;;  %v1771_v30 = vld [vmem:[#allocation2 + $0x61] sm:$0xff] }
 0x2ae   : > { %v1840_v31 = vpop.permute.xlu2 %1839  ;;  %v1660_v11 = vpop.permute.xlu1 %1659 }
 0x2af   : > { %v2013_v33 = vmul.f32 %v1840_v31, %v1761_v32  ;;  %1742 = vst.msk [vmem:[#allocation4 + $0xe0] sm:$0xff] %vm1727_vm6, %v1660_v11 }
 0x2b2   : > { %2082 = vrot.lane.b32.xlu0 %v2013_v33, %s8151_s11 }
 0x2b3   : > { %7911 = vset.pattern.permute.xlu0 %v8143_v3 }
 0x2b4   : > { %v1682_v20 = vpop.permute.xlu0 %1681  ;;  %7913 = vset.pattern.permute.xlu2 %v8143_v3  ;;  %1964 = vperm.xlu1 %7908, %v1822_v9   ;;  %v1785_v9 = vld [vmem:[#allocation2 + $0xd1] sm:$0xff] }
 0x2b5   : > { %1753 = vst.msk [vmem:[#allocation4 + $0x190] sm:$0xff] %vm1727_vm6, %v1682_v20 }
 0x2b6   : > { %v1855_v34 = vpop.permute.xlu2 %1854  ;;  %v1666_v59 = vpop.permute.xlu1 %1665 }
 0x2b7   : > { %v9293_v24 = vmul.f32 %v1855_v34, %v1764_v38  ;;  %1745 = vst.msk [vmem:[#allocation4 + $0x110] sm:$0xff] %vm1727_vm6, %v1666_v59  ;;  %v1775_v34 = vld [vmem:[#allocation2 + $0x81] sm:$0xff]  ;;  %v1774_v59 = vld [vmem:[#allocation2 + $0x79] sm:$0xff] }
 0x2ba   : > { %2088 = vrot.lane.b32.xlu0 %v9293_v24, %s8151_s11 }
 0x2bc   : > { %v1688_v52 = vpop.permute.xlu0 %1687  ;;  %1979 = vperm.xlu1 %7908, %v1825_v43  }
 0x2bd   : > { %1756 = vst.msk [vmem:[#allocation4 + $0x1c0] sm:$0xff] %vm1727_vm6, %v1688_v52 }
 0x2be   : > { %v1672_v37 = vpop.permute.xlu1 %1671  ;;  %v1865_v15 = vpop.permute.xlu2 %1864 }
 0x2bf   : > { %1748 = vst.msk [vmem:[#allocation4 + $0x140] sm:$0xff] %vm1727_vm6, %v1672_v37  ;;  %v9339_v47 = vmul.f32 %v1865_v15, %v1766_v21 }
 0x2c4   : > { %v1694_v45 = vpop.permute.xlu0 %1693  ;;  %1994 = vperm.xlu1 %7908, %v1828_v14  }
 0x2c5   : > { %1759 = vst.msk [vmem:[#allocation4 + $0x1f0] sm:$0xff] %vm1727_vm6, %v1694_v45  ;;  %v1788_v45 = vld [vmem:[#allocation2 + $0xe9] sm:$0xff] }
 0x2c6   : > { %v1678_v48 = vpop.permute.xlu1 %1677  ;;  %v1880_v7 = vpop.permute.xlu2 %1879 }
 0x2c7   : > { %1751 = vst.msk [vmem:[#allocation4 + $0x170] sm:$0xff] %vm1727_vm6, %v1678_v48  ;;  %v9351_v0 = vmul.f32 %v1880_v7, %v1769_v10 }
 0x2cc   : > { %v1845_v55 = vpop.permute.xlu0 %1844  ;;  %2009 = vperm.xlu1 %7908, %v1831_v46  }
 0x2cd   : > { %v9312_v49 = vmul.f32 %v1845_v55, %v1762_v57  ;;  %v1778_v55 = vld [vmem:[#allocation2 + $0x99] sm:$0xff] }
 0x2ce   : > { %v1684_v39 = vpop.permute.xlu1 %1683  ;;  %v1895_v13 = vpop.permute.xlu2 %1894 }
 0x2cf   : > { %1754 = vst.msk [vmem:[#allocation4 + $0x1a0] sm:$0xff] %vm1727_vm6, %v1684_v39  ;;  %v9363_v32 = vmul.f32 %v1895_v13, %v1772_v36  ;;  %v1777_v39 = vld [vmem:[#allocation2 + $0x91] sm:$0xff] }
 0x2d4   : > { %v1870_v62 = vpop.permute.xlu0 %1869  ;;  %2084 = vrot.lane.b32.xlu1 %v9312_v49, %s8151_s11 }
 0x2d5   : > { %v9314_v63 = vmul.f32 %v1870_v62, %v1767_v60  ;;  %7912 = vset.pattern.permute.xlu1 %v8143_v3 }
 0x2d6   : > { %v1690_v2 = vpop.permute.xlu1 %1689  ;;  %v1910_v1 = vpop.permute.xlu2 %1909 }
 0x2d7   : > { %2094 = vrot.lane.b32.xlu0 %v9314_v63, %s8151_s11  ;;  %1757 = vst.msk [vmem:[#allocation4 + $0x1d0] sm:$0xff] %vm1727_vm6, %v1690_v2  ;;  %v9375_v52 = vmul.f32 %v1910_v1, %v1775_v34  ;;  %v1791_v2 = vld [vmem:[#allocation2 + $0x101] sm:$0xff] }
 0x2dc   : > { %v1885_v5 = vpop.permute.xlu0 %1884 }
 0x2dd   : > { %v9322_v19 = vmul.f32 %v1885_v5, %v1770_v12 }
 0x2de   : > { %v1835_v27 = vpop.permute.xlu1 %1834  ;;  %v1925_v11 = vpop.permute.xlu2 %1924 }
 0x2df   : > { %2100 = vrot.lane.b32.xlu0 %v9322_v19, %s8151_s11  ;;  %v2012_v53 = vmul.f32 %v1835_v27, %v1760_v23  ;;  %v9387_v60 = vmul.f32 %v1925_v11, %v1778_v55  ;;  %v1781_v23 = vld [vmem:[#allocation2 + $0xb1] sm:$0xff]  ;;  %v1780_v27 = vld [vmem:[#allocation2 + $0xa9] sm:$0xff] }
 0x2e1   : > { %2080 = vrot.lane.b32.xlu2 %v2012_v53, %s8151_s11 }
 0x2e4   : > { %v1900_v8 = vpop.permute.xlu0 %1899 }
 0x2e5   : > { %v9327_v35 = vmul.f32 %v1900_v8, %v1773_v29 }
 0x2e6   : > { %v1850_v16 = vpop.permute.xlu1 %1849  ;;  %v1940_v14 = vpop.permute.xlu2 %1939 }
 0x2e7   : > { %2106 = vrot.lane.b32.xlu0 %v9327_v35, %s8151_s11  ;;  %v9331_v17 = vmul.f32 %v1850_v16, %v1763_v25  ;;  %v9399_v7 = vmul.f32 %v1940_v14, %v1781_v23  ;;  %v1784_v25 = vld [vmem:[#allocation2 + $0xc9] sm:$0xff]  ;;  %v1783_v16 = vld [vmem:[#allocation2 + $0xc1] sm:$0xff] }
 0x2e9   : > { %2086 = vrot.lane.b32.xlu2 %v9331_v17, %s8151_s11 }
 0x2ec   : > { %v1915_v42 = vpop.permute.xlu0 %1914 }
 0x2ed   : > { %v9335_v22 = vmul.f32 %v1915_v42, %v1776_v40 }
 0x2ee   : > { %v1860_v44 = vpop.permute.xlu1 %1859  ;;  %v1955_v5 = vpop.permute.xlu2 %1954 }
 0x2ef   : > { %2112 = vrot.lane.b32.xlu0 %v9335_v22, %s8151_s11  ;;  %v9341_v50 = vmul.f32 %v1860_v44, %v1765_v41  ;;  %v9411_v42 = vmul.f32 %v1955_v5, %v1784_v25  ;;  %v1787_v44 = vld [vmem:[#allocation2 + $0xe1] sm:$0xff] }
 0x2f1   : > { %2092 = vrot.lane.b32.xlu2 %v9339_v47, %s8151_s11  ;;  %2090 = vrot.lane.b32.xlu1 %v9341_v50, %s8151_s11 }
 0x2f4   : > { %v1930_v56 = vpop.permute.xlu0 %1929 }
 0x2f5   : > { %v9347_v18 = vmul.f32 %v1930_v56, %v1779_v54  ;;  %v1786_v54 = vld [vmem:[#allocation2 + $0xd9] sm:$0xff] }
 0x2f6   : > { %v1875_v58 = vpop.permute.xlu1 %1874  ;;  %v1970_v13 = vpop.permute.xlu2 %1969 }
 0x2f7   : > { %2118 = vrot.lane.b32.xlu0 %v9347_v18, %s8151_s11  ;;  %v9353_v61 = vmul.f32 %v1875_v58, %v1768_v6  ;;  %v9422_v10 = vmul.f32 %v1970_v13, %v1787_v44  ;;  %v1793_v44 = vld [vmem:[#allocation2 + $0x111] sm:$0xff] }
 0x2f9   : > { %2098 = vrot.lane.b32.xlu2 %v9351_v0, %s8151_s11  ;;  %2096 = vrot.lane.b32.xlu1 %v9353_v61, %s8151_s11 }
 0x2fc   : > { %v1945_v26 = vpop.permute.xlu0 %1944 }
 0x2fd   : > { %v9359_v28 = vmul.f32 %v1945_v26, %v1782_v4  ;;  %v1790_v4 = vld [vmem:[#allocation2 + $0xf9] sm:$0xff]  ;;  %v1789_v26 = vld [vmem:[#allocation2 + $0xf1] sm:$0xff] }
 0x2fe   : > { %v1890_v31 = vpop.permute.xlu1 %1889  ;;  %v1985_v58 = vpop.permute.xlu2 %1984 }
 0x2ff   : > { %2124 = vrot.lane.b32.xlu0 %v9359_v28, %s8151_s11  ;;  %v9365_v33 = vmul.f32 %v1890_v31, %v1771_v30  ;;  %v9433_v30 = vmul.f32 %v1985_v58, %v1790_v4 }
 0x301   : > { %2104 = vrot.lane.b32.xlu2 %v9363_v32, %s8151_s11  ;;  %2102 = vrot.lane.b32.xlu1 %v9365_v33, %s8151_s11 }
 0x304   : > { %v1960_v20 = vpop.permute.xlu0 %1959 }
 0x305   : > { %v9371_v38 = vmul.f32 %v1960_v20, %v1785_v9 }
 0x306   : > { %v1905_v43 = vpop.permute.xlu1 %1904  ;;  %v9441_v11 = vpop.permute.xlu2 %1999 }
 0x307   : > { %2130 = vrot.lane.b32.xlu0 %v9371_v38, %s8151_s11  ;;  %v9377_v37 = vmul.f32 %v1905_v43, %v1774_v59 }
 0x309   : > { %2110 = vrot.lane.b32.xlu2 %v9375_v52, %s8151_s11  ;;  %2108 = vrot.lane.b32.xlu1 %v9377_v37, %s8151_s11 }
 0x30c   : > { %v1975_v48 = vpop.permute.xlu0 %1974 }
 0x30d   : > { %v9383_v46 = vmul.f32 %v1975_v48, %v1788_v45 }
 0x30e   : > { %v1920_v57 = vpop.permute.xlu1 %1919 }
 0x30f   : > { %2136 = vrot.lane.b32.xlu0 %v9383_v46, %s8151_s11  ;;  %v9389_v62 = vmul.f32 %v1920_v57, %v1777_v39 }
 0x311   : > { %2116 = vrot.lane.b32.xlu2 %v9387_v60, %s8151_s11  ;;  %2114 = vrot.lane.b32.xlu1 %v9389_v62, %s8151_s11 }
 0x314   : > { %v1990_v15 = vpop.permute.xlu0 %1989 }
 0x315   : > { %v9395_v12 = vmul.f32 %v1990_v15, %v1791_v2 }
 0x316   : > { %v1935_v53 = vpop.permute.xlu1 %1934 }
 0x317   : > { %2142 = vrot.lane.b32.xlu0 %v9395_v12, %s8151_s11  ;;  %v9401_v29 = vmul.f32 %v1935_v53, %v1780_v27 }
 0x319   : > { %2122 = vrot.lane.b32.xlu2 %v9399_v7, %s8151_s11  ;;  %2120 = vrot.lane.b32.xlu1 %v9401_v29, %s8151_s11 }
 0x31c   : > { %v9407_v8 = vpop.permute.xlu0 %2004 }
 0x31e   : > { %v1950_v40 = vpop.permute.xlu1 %1949 }
 0x31f   : > { %2215 = vrot.lane.b32.xlu0 %v9293_v24, %s8152_s21  ;;  %v9413_v21 = vmul.f32 %v1950_v40, %v1783_v16 }
 0x321   : > { %2128 = vrot.lane.b32.xlu2 %v9411_v42, %s8151_s11  ;;  %2126 = vrot.lane.b32.xlu1 %v9413_v21, %s8151_s11 }
 0x324   : > { %v2083_v41 = vpop.permute.xlu0 %2082 }
 0x325   : > { %2178 = vst.msk [vmem:[#allocation4 + $0x10] sm:$0xff] %vm2176_vm7, %v2083_v41 }
 0x326   : > { %v1965_v56 = vpop.permute.xlu1 %1964 }
 0x327   : > { %2221 = vrot.lane.b32.xlu0 %v9314_v63, %s8152_s21  ;;  %v9424_v6 = vmul.f32 %v1965_v56, %v1786_v54  ;;  %v1792_v54 = vld [vmem:[#allocation2 + $0x109] sm:$0xff] }
 0x329   : > { %2134 = vrot.lane.b32.xlu2 %v9422_v10, %s8151_s11  ;;  %2132 = vrot.lane.b32.xlu1 %v9424_v6, %s8151_s11 }
 0x32c   : > { %v2089_v1 = vpop.permute.xlu0 %2088 }
 0x32d   : > { %2181 = vst.msk [vmem:[#allocation4 + $0x40] sm:$0xff] %vm2176_vm7, %v2089_v1 }
 0x32e   : > { %v1980_v36 = vpop.permute.xlu1 %1979 }
 0x32f   : > { %2227 = vrot.lane.b32.xlu0 %v9322_v19, %s8152_s21  ;;  %v9435_v31 = vmul.f32 %v1980_v36, %v1789_v26 }
 0x331   : > { %2140 = vrot.lane.b32.xlu2 %v9433_v30, %s8151_s11  ;;  %2138 = vrot.lane.b32.xlu1 %v9435_v31, %s8151_s11  ;;  %s2636_s11 = sld [smem:[#allocation5]] }
 0x336   : > { %v9443_v9 = vpop.permute.xlu1 %1994 }
 0x337   : > { %2233 = vrot.lane.b32.xlu0 %v9327_v35, %s8152_s21  ;;  %v9537_v56 = vmul.f32 %v9443_v9, %v1792_v54 }
 0x339   : > { %2213 = vrot.lane.b32.xlu2 %v9331_v17, %s8152_s21  ;;  %2211 = vrot.lane.b32.xlu1 %v9312_v49, %s8152_s21 }
 0x33b   : > { %v2081_v20 = vpop.permute.xlu2 %2080 }
 0x33c   : > { %2177 = vst.msk [vmem:[#allocation4] sm:$0xff] %vm2176_vm7, %v2081_v20 }
 0x33e   : > { %v9452_v34 = vpop.permute.xlu1 %2009 }
 0x33f   : > { %2239 = vrot.lane.b32.xlu0 %v9335_v22, %s8152_s21 }
 0x341   : > { %2219 = vrot.lane.b32.xlu2 %v9339_v47, %s8152_s21  ;;  %2217 = vrot.lane.b32.xlu1 %v9341_v50, %s8152_s21 }
 0x343   : > { %v2087_v59 = vpop.permute.xlu2 %2086 }
 0x344   : > { %2180 = vst.msk [vmem:[#allocation4 + $0x30] sm:$0xff] %vm2176_vm7, %v2087_v59 }
 0x346   : > { %v2085_v17 = vpop.permute.xlu1 %2084 }
 0x347   : > { %2245 = vrot.lane.b32.xlu0 %v9347_v18, %s8152_s21  ;;  %2179 = vst.msk [vmem:[#allocation4 + $0x20] sm:$0xff] %vm2176_vm7, %v2085_v17 }
 0x349   : > { %v2095_v49 = vpop.permute.xlu0 %2094  ;;  %2225 = vrot.lane.b32.xlu2 %v9351_v0, %s8152_s21  ;;  %2223 = vrot.lane.b32.xlu1 %v9353_v61, %s8152_s21 }
 0x34a   : > { %2184 = vst.msk [vmem:[#allocation4 + $0x70] sm:$0xff] %vm2176_vm7, %v2095_v49  ;;  %v1795_v49 = vld [vmem:[#allocation2 + $0x121] sm:$0xff] }
 0x34b   : > { %v2093_v43 = vpop.permute.xlu2 %2092 }
 0x34c   : > { %2183 = vst.msk [vmem:[#allocation4 + $0x60] sm:$0xff] %vm2176_vm7, %v2093_v43 }
 0x34f   : > { %2251 = vrot.lane.b32.xlu0 %v9359_v28, %s8152_s21 }
 0x351   : > { %v2101_v14 = vpop.permute.xlu0 %2100  ;;  %2231 = vrot.lane.b32.xlu2 %v9363_v32, %s8152_s21  ;;  %2229 = vrot.lane.b32.xlu1 %v9365_v33, %s8152_s21 }
 0x352   : > { %2187 = vst.msk [vmem:[#allocation4 + $0xa0] sm:$0xff] %vm2176_vm7, %v2101_v14 }
 0x353   : > { %v2099_v45 = vpop.permute.xlu2 %2098 }
 0x354   : > { %2186 = vst.msk [vmem:[#allocation4 + $0x90] sm:$0xff] %vm2176_vm7, %v2099_v45 }
 0x357   : > { %2257 = vrot.lane.b32.xlu0 %v9371_v38, %s8152_s21 }
 0x359   : > { %v2107_v48 = vpop.permute.xlu0 %2106  ;;  %2237 = vrot.lane.b32.xlu2 %v9375_v52, %s8152_s21  ;;  %2235 = vrot.lane.b32.xlu1 %v9377_v37, %s8152_s21 }
 0x35a   : > { %2190 = vst.msk [vmem:[#allocation4 + $0xd0] sm:$0xff] %vm2176_vm7, %v2107_v48 }
 0x35b   : > { %v2105_v55 = vpop.permute.xlu2 %2104 }
 0x35c   : > { %2189 = vst.msk [vmem:[#allocation4 + $0xc0] sm:$0xff] %vm2176_vm7, %v2105_v55 }
 0x35f   : > { %2263 = vrot.lane.b32.xlu0 %v9383_v46, %s8152_s21 }
 0x361   : > { %v2113_v39 = vpop.permute.xlu0 %2112  ;;  %2243 = vrot.lane.b32.xlu2 %v9387_v60, %s8152_s21  ;;  %2241 = vrot.lane.b32.xlu1 %v9389_v62, %s8152_s21 }
 0x362   : > { %2193 = vst.msk [vmem:[#allocation4 + $0x100] sm:$0xff] %vm2176_vm7, %v2113_v39 }
 0x363   : > { %v2111_v57 = vpop.permute.xlu2 %2110  ;;  %v2091_v2 = vpop.permute.xlu1 %2090 }
 0x364   : > { %2192 = vst.msk [vmem:[#allocation4 + $0xf0] sm:$0xff] %vm2176_vm7, %v2111_v57 }
 0x365   : > { %2182 = vst.msk [vmem:[#allocation4 + $0x50] sm:$0xff] %vm2176_vm7, %v2091_v2 }
 0x367   : > { %2269 = vrot.lane.b32.xlu0 %v9395_v12, %s8152_s21 }
 0x369   : > { %v2119_v15 = vpop.permute.xlu0 %2118  ;;  %2249 = vrot.lane.b32.xlu2 %v9399_v7, %s8152_s21  ;;  %2247 = vrot.lane.b32.xlu1 %v9401_v29, %s8152_s21 }
 0x36a   : > { %2196 = vst.msk [vmem:[#allocation4 + $0x130] sm:$0xff] %vm2176_vm7, %v2119_v15 }
 0x36b   : > { %v2117_v5 = vpop.permute.xlu2 %2116  ;;  %v2097_v23 = vpop.permute.xlu1 %2096 }
 0x36c   : > { %2195 = vst.msk [vmem:[#allocation4 + $0x120] sm:$0xff] %vm2176_vm7, %v2117_v5  ;;  %v9645_v5 = vld [vmem:[%s13358_s3] ss:$0 sm:$0xff] }
 0x36d   : > { %2185 = vst.msk [vmem:[#allocation4 + $0x80] sm:$0xff] %vm2176_vm7, %v2097_v23 }
 0x36f   : > { %2342 = vrot.lane.b32.xlu0 %v9293_v24, %s8153_s23 }
 0x371   : > { %v2125_v27 = vpop.permute.xlu0 %2124  ;;  %2255 = vrot.lane.b32.xlu2 %v9411_v42, %s8152_s21  ;;  %2253 = vrot.lane.b32.xlu1 %v9413_v21, %s8152_s21 }
 0x372   : > { %2199 = vst.msk [vmem:[#allocation4 + $0x160] sm:$0xff] %vm2176_vm7, %v2125_v27 }
 0x373   : > { %v2123_v53 = vpop.permute.xlu2 %2122  ;;  %v2103_v25 = vpop.permute.xlu1 %2102 }
 0x374   : > { %2198 = vst.msk [vmem:[#allocation4 + $0x150] sm:$0xff] %vm2176_vm7, %v2123_v53 }
 0x375   : > { %2188 = vst.msk [vmem:[#allocation4 + $0xb0] sm:$0xff] %vm2176_vm7, %v2103_v25 }
 0x377   : > { %2348 = vrot.lane.b32.xlu0 %v9314_v63, %s8153_s23 }
 0x379   : > { %v2131_v16 = vpop.permute.xlu0 %2130  ;;  %2261 = vrot.lane.b32.xlu2 %v9422_v10, %s8152_s21  ;;  %2259 = vrot.lane.b32.xlu1 %v9424_v6, %s8152_s21 }
 0x37a   : > { %2202 = vst.msk [vmem:[#allocation4 + $0x190] sm:$0xff] %vm2176_vm7, %v2131_v16 }
 0x37b   : > { %v2129_v24 = vpop.permute.xlu2 %2128  ;;  %v2109_v40 = vpop.permute.xlu1 %2108 }
 0x37c   : > { %2201 = vst.msk [vmem:[#allocation4 + $0x180] sm:$0xff] %vm2176_vm7, %v2129_v24 }
 0x37d   : > { %2191 = vst.msk [vmem:[#allocation4 + $0xe0] sm:$0xff] %vm2176_vm7, %v2109_v40 }
 0x37f   : > { %2354 = vrot.lane.b32.xlu0 %v9322_v19, %s8153_s23  ;;  %v9534_v19 = vmul.f32 %v9441_v11, %v1793_v44 }
 0x381   : > { %v2137_v13 = vpop.permute.xlu0 %2136  ;;  %2267 = vrot.lane.b32.xlu2 %v9433_v30, %s8152_s21  ;;  %2265 = vrot.lane.b32.xlu1 %v9435_v31, %s8152_s21 }
 0x382   : > { %2205 = vst.msk [vmem:[#allocation4 + $0x1c0] sm:$0xff] %vm2176_vm7, %v2137_v13 }
 0x383   : > { %v2135_v63 = vpop.permute.xlu2 %2134  ;;  %v2115_v41 = vpop.permute.xlu1 %2114 }
 0x384   : > { %2204 = vst.msk [vmem:[#allocation4 + $0x1b0] sm:$0xff] %vm2176_vm7, %v2135_v63 }
 0x385   : > { %2194 = vst.msk [vmem:[#allocation4 + $0x110] sm:$0xff] %vm2176_vm7, %v2115_v41 }
 0x387   : > { %2360 = vrot.lane.b32.xlu0 %v9327_v35, %s8153_s23 }
 0x389   : > { %v2143_v58 = vpop.permute.xlu0 %2142  ;;  %2273 = vrot.lane.b32.xlu2 %v9534_v19, %s8152_s21  ;;  %2271 = vrot.lane.b32.xlu1 %v9537_v56, %s8152_s21  ;;  %s13022_s21 = scalar_lea.vmem %s13365_s10, %s7739_s27 }
 0x38a   : > { %2208 = vst.msk [vmem:[#allocation4 + $0x1f0] sm:$0xff] %vm2176_vm7, %v2143_v58 }
 0x38b   : > { %v2141_v1 = vpop.permute.xlu2 %2140  ;;  %v2121_v4 = vpop.permute.xlu1 %2120 }
 0x38c   : > { %2207 = vst.msk [vmem:[#allocation4 + $0x1e0] sm:$0xff] %vm2176_vm7, %v2141_v1 }
 0x38d   : > { %2197 = vst.msk [vmem:[#allocation4 + $0x140] sm:$0xff] %vm2176_vm7, %v2121_v4 }
 0x38f   : > { %2366 = vrot.lane.b32.xlu0 %v9335_v22, %s8153_s23 }
 0x391   : > { %v2216_v35 = vpop.permute.xlu0 %2215  ;;  %2346 = vrot.lane.b32.xlu2 %v9339_v47, %s8153_s23  ;;  %2344 = vrot.lane.b32.xlu1 %v9341_v50, %s8153_s23 }
 0x392   : > { %2310 = vst.msk [vmem:[#allocation4 + $0x20] sm:$0xff] %vm2307_vm8, %v2216_v35 }
 0x393   : > { %v2214_v26 = vpop.permute.xlu2 %2213  ;;  %v2127_v36 = vpop.permute.xlu1 %2126 }
 0x394   : > { %2309 = vst.msk [vmem:[#allocation4 + $0x10] sm:$0xff] %vm2307_vm8, %v2214_v26 }
 0x395   : > { %2200 = vst.msk [vmem:[#allocation4 + $0x170] sm:$0xff] %vm2176_vm7, %v2127_v36 }
 0x397   : > { %2372 = vrot.lane.b32.xlu0 %v9347_v18, %s8153_s23 }
 0x399   : > { %v2222_v22 = vpop.permute.xlu0 %2221  ;;  %2352 = vrot.lane.b32.xlu2 %v9351_v0, %s8153_s23  ;;  %2350 = vrot.lane.b32.xlu1 %v9353_v61, %s8153_s23 }
 0x39a   : > { %2313 = vst.msk [vmem:[#allocation4 + $0x50] sm:$0xff] %vm2307_vm8, %v2222_v22 }
 0x39b   : > { %v2220_v47 = vpop.permute.xlu2 %2219  ;;  %v2133_v50 = vpop.permute.xlu1 %2132 }
 0x39c   : > { %2312 = vst.msk [vmem:[#allocation4 + $0x40] sm:$0xff] %vm2307_vm8, %v2220_v47 }
 0x39d   : > { %2203 = vst.msk [vmem:[#allocation4 + $0x1a0] sm:$0xff] %vm2176_vm7, %v2133_v50 }
 0x39f   : > { %2378 = vrot.lane.b32.xlu0 %v9359_v28, %s8153_s23 }
 0x3a1   : > { %v2228_v11 = vpop.permute.xlu0 %2227  ;;  %2358 = vrot.lane.b32.xlu2 %v9363_v32, %s8153_s23  ;;  %2356 = vrot.lane.b32.xlu1 %v9365_v33, %s8153_s23 }
 0x3a2   : > { %2316 = vst.msk [vmem:[#allocation4 + $0x80] sm:$0xff] %vm2307_vm8, %v2228_v11 }
 0x3a3   : > { %v2226_v18 = vpop.permute.xlu2 %2225  ;;  %v2139_v0 = vpop.permute.xlu1 %2138 }
 0x3a4   : > { %2315 = vst.msk [vmem:[#allocation4 + $0x70] sm:$0xff] %vm2307_vm8, %v2226_v18 }
 0x3a5   : > { %2206 = vst.msk [vmem:[#allocation4 + $0x1d0] sm:$0xff] %vm2176_vm7, %v2139_v0 }
 0x3a7   : > { %2384 = vrot.lane.b32.xlu0 %v9371_v38, %s8153_s23 }
 0x3a9   : > { %v2234_v61 = vpop.permute.xlu0 %2233  ;;  %2364 = vrot.lane.b32.xlu2 %v9375_v52, %s8153_s23  ;;  %2362 = vrot.lane.b32.xlu1 %v9377_v37, %s8153_s23 }
 0x3aa   : > { %2319 = vst.msk [vmem:[#allocation4 + $0xb0] sm:$0xff] %vm2307_vm8, %v2234_v61 }
 0x3ab   : > { %v2232_v28 = vpop.permute.xlu2 %2231  ;;  %v2212_v32 = vpop.permute.xlu1 %2211 }
 0x3ac   : > { %2318 = vst.msk [vmem:[#allocation4 + $0xa0] sm:$0xff] %vm2307_vm8, %v2232_v28 }
 0x3ad   : > { %2308 = vst.msk [vmem:[#allocation4] sm:$0xff] %vm2307_vm8, %v2212_v32 }
 0x3af   : > { %2390 = vrot.lane.b32.xlu0 %v9383_v46, %s8153_s23  ;;  %v1794_v46 = vld [vmem:[#allocation2 + $0x119] sm:$0xff] }
 0x3b0   : > { %v2046_v9 = vmul.f32 %v9407_v8, %v1794_v46 }
 0x3b1   : > { %v2240_v33 = vpop.permute.xlu0 %2239  ;;  %2370 = vrot.lane.b32.xlu2 %v9387_v60, %s8153_s23  ;;  %2368 = vrot.lane.b32.xlu1 %v9389_v62, %s8153_s23 }
 0x3b2   : > { %2322 = vst.msk [vmem:[#allocation4 + $0xe0] sm:$0xff] %vm2307_vm8, %v2240_v33 }
 0x3b3   : > { %v2238_v38 = vpop.permute.xlu2 %2237  ;;  %v2218_v52 = vpop.permute.xlu1 %2217 }
 0x3b4   : > { %2321 = vst.msk [vmem:[#allocation4 + $0xd0] sm:$0xff] %vm2307_vm8, %v2238_v38 }
 0x3b5   : > { %2311 = vst.msk [vmem:[#allocation4 + $0x30] sm:$0xff] %vm2307_vm8, %v2218_v52 }
 0x3b7   : > { %2396 = vrot.lane.b32.xlu0 %v9395_v12, %s8153_s23 }
 0x3b9   : > { %v2246_v37 = vpop.permute.xlu0 %2245  ;;  %2376 = vrot.lane.b32.xlu2 %v9399_v7, %s8153_s23  ;;  %2374 = vrot.lane.b32.xlu1 %v9401_v29, %s8153_s23 }
 0x3ba   : > { %2325 = vst.msk [vmem:[#allocation4 + $0x110] sm:$0xff] %vm2307_vm8, %v2246_v37 }
 0x3bb   : > { %v2244_v60 = vpop.permute.xlu2 %2243  ;;  %v2224_v62 = vpop.permute.xlu1 %2223 }
 0x3bc   : > { %2324 = vst.msk [vmem:[#allocation4 + $0x100] sm:$0xff] %vm2307_vm8, %v2244_v60 }
 0x3bd   : > { %2314 = vst.msk [vmem:[#allocation4 + $0x60] sm:$0xff] %vm2307_vm8, %v2224_v62 }
 0x3bf   : > { %2402 = vrot.lane.b32.xlu0 %v2046_v9, %s8153_s23 }
 0x3c1   : > { %v2252_v12 = vpop.permute.xlu0 %2251  ;;  %2382 = vrot.lane.b32.xlu2 %v9411_v42, %s8153_s23  ;;  %2380 = vrot.lane.b32.xlu1 %v9413_v21, %s8153_s23 }
 0x3c2   : > { %2328 = vst.msk [vmem:[#allocation4 + $0x140] sm:$0xff] %vm2307_vm8, %v2252_v12 }
 0x3c3   : > { %v2250_v7 = vpop.permute.xlu2 %2249  ;;  %v2230_v29 = vpop.permute.xlu1 %2229 }
 0x3c4   : > { %2327 = vst.msk [vmem:[#allocation4 + $0x130] sm:$0xff] %vm2307_vm8, %v2250_v7 }
 0x3c5   : > { %2317 = vst.msk [vmem:[#allocation4 + $0x90] sm:$0xff] %vm2307_vm8, %v2230_v29 }
 0x3c9   : > { %v2258_v8 = vpop.permute.xlu0 %2257  ;;  %2388 = vrot.lane.b32.xlu2 %v9422_v10, %s8153_s23  ;;  %2386 = vrot.lane.b32.xlu1 %v9424_v6, %s8153_s23 }
 0x3ca   : > { %2331 = vst.msk [vmem:[#allocation4 + $0x170] sm:$0xff] %vm2307_vm8, %v2258_v8 }
 0x3cb   : > { %v2256_v20 = vpop.permute.xlu2 %2255  ;;  %v2236_v42 = vpop.permute.xlu1 %2235 }
 0x3cc   : > { %2330 = vst.msk [vmem:[#allocation4 + $0x160] sm:$0xff] %vm2307_vm8, %v2256_v20 }
 0x3cd   : > { %2320 = vst.msk [vmem:[#allocation4 + $0xc0] sm:$0xff] %vm2307_vm8, %v2236_v42 }
 0x3d1   : > { %v2264_v21 = vpop.permute.xlu0 %2263  ;;  %2394 = vrot.lane.b32.xlu2 %v9433_v30, %s8153_s23  ;;  %2392 = vrot.lane.b32.xlu1 %v9435_v31, %s8153_s23  ;;  %v2047_v31 = vmul.f32 %v9452_v34, %v1795_v49 }
 0x3d2   : > { %2334 = vst.msk [vmem:[#allocation4 + $0x1a0] sm:$0xff] %vm2307_vm8, %v2264_v21 }
 0x3d3   : > { %v2262_v59 = vpop.permute.xlu2 %2261  ;;  %v2242_v10 = vpop.permute.xlu1 %2241 }
 0x3d4   : > { %2333 = vst.msk [vmem:[#allocation4 + $0x190] sm:$0xff] %vm2307_vm8, %v2262_v59 }
 0x3d5   : > { %2323 = vst.msk [vmem:[#allocation4 + $0xf0] sm:$0xff] %vm2307_vm8, %v2242_v10 }
 0x3d9   : > { %v2270_v6 = vpop.permute.xlu0 %2269  ;;  %2400 = vrot.lane.b32.xlu2 %v9534_v19, %s8153_s23  ;;  %2398 = vrot.lane.b32.xlu1 %v9537_v56, %s8153_s23 }
 0x3da   : > { %2337 = vst.msk [vmem:[#allocation4 + $0x1d0] sm:$0xff] %vm2307_vm8, %v2270_v6 }
 0x3db   : > { %v2268_v17 = vpop.permute.xlu2 %2267  ;;  %v2248_v30 = vpop.permute.xlu1 %2247 }
 0x3dc   : > { %2336 = vst.msk [vmem:[#allocation4 + $0x1c0] sm:$0xff] %vm2307_vm8, %v2268_v17 }
 0x3dd   : > { %2326 = vst.msk [vmem:[#allocation4 + $0x120] sm:$0xff] %vm2307_vm8, %v2248_v30 }
 0x3e1   : > { %v2343_v43 = vpop.permute.xlu0 %2342  ;;  %2404 = vrot.lane.b32.xlu1 %v2047_v31, %s8153_s23 }
 0x3e2   : > { %2439 = vst.msk [vmem:[#allocation4] sm:$0xff] %vm2438_vm9, %v2343_v43 }
 0x3e3   : > { %v2274_v14 = vpop.permute.xlu2 %2273  ;;  %v2254_v45 = vpop.permute.xlu1 %2253 }
 0x3e4   : > { %2339 = vst.msk [vmem:[#allocation4 + $0x1f0] sm:$0xff] %vm2307_vm8, %v2274_v14 }
 0x3e5   : > { %2329 = vst.msk [vmem:[#allocation4 + $0x150] sm:$0xff] %vm2307_vm8, %v2254_v45 }
 0x3e9   : > { %v2349_v48 = vpop.permute.xlu0 %2348  ;;  %v2471_v23 = vld [vmem:[#allocation4] sm:$0xff] }
 0x3ea   : > { %2442 = vst.msk [vmem:[#allocation4 + $0x30] sm:$0xff] %vm2438_vm9, %v2349_v48  ;;  %v2507_v25 = vmul.f32 %v9645_v5, %v2471_v23 }
 0x3eb   : > { %v2347_v55 = vpop.permute.xlu2 %2346  ;;  %v2260_v39 = vpop.permute.xlu1 %2259 }
 0x3ec   : > { %2441 = vst.msk [vmem:[#allocation4 + $0x20] sm:$0xff] %vm2438_vm9, %v2347_v55  ;;  %v2540_v24 = vsel %vm2539_vm10, %v2507_v25, 0.0 }
 0x3ed   : > { %2332 = vst.msk [vmem:[#allocation4 + $0x180] sm:$0xff] %vm2307_vm8, %v2260_v39 }
 0x3f1   : > { %v2355_v34 = vpop.permute.xlu0 %2354  ;;  %v2474_v40 = vld [vmem:[#allocation4 + $0x30] sm:$0xff] }
 0x3f2   : > { %2445 = vst.msk [vmem:[#allocation4 + $0x60] sm:$0xff] %vm2438_vm9, %v2355_v34  ;;  %v2510_v44 = vmul.f32 %v9645_v5, %v2474_v40 }
 0x3f3   : > { %v2353_v57 = vpop.permute.xlu2 %2352  ;;  %v2266_v2 = vpop.permute.xlu1 %2265  ;;  %v2473_v41 = vld [vmem:[#allocation4 + $0x20] sm:$0xff] }
 0x3f4   : > { %2444 = vst.msk [vmem:[#allocation4 + $0x50] sm:$0xff] %vm2438_vm9, %v2353_v57  ;;  %v2509_v54 = vmul.f32 %v9645_v5, %v2473_v41  ;;  %v2549_v56 = vsel %vm2539_vm10, %v2510_v44, 0.0 }
 0x3f5   : > { %2335 = vst.msk [vmem:[#allocation4 + $0x1b0] sm:$0xff] %vm2307_vm8, %v2266_v2 }
 0x3f6   : > { %v2546_v58 = vsel %vm2539_vm10, %v2509_v54, 0.0 }
 0x3f9   : > { %v2361_v15 = vpop.permute.xlu0 %2360  ;;  %v2477_v35 = vld [vmem:[#allocation4 + $0x60] sm:$0xff] }
 0x3fa   : > { %2448 = vst.msk [vmem:[#allocation4 + $0x90] sm:$0xff] %vm2438_vm9, %v2361_v15  ;;  %v2513_v22 = vmul.f32 %v9645_v5, %v2477_v35 }
 0x3fb   : > { %v2359_v27 = vpop.permute.xlu2 %2358  ;;  %v2272_v53 = vpop.permute.xlu1 %2271  ;;  %v2476_v11 = vld [vmem:[#allocation4 + $0x50] sm:$0xff] }
 0x3fc   : > { %2447 = vst.msk [vmem:[#allocation4 + $0x80] sm:$0xff] %vm2438_vm9, %v2359_v27  ;;  %v2558_v18 = vsel %vm2539_vm10, %v2513_v22, 0.0  ;;  %v2512_v28 = vmul.f32 %v9645_v5, %v2476_v11 }
 0x3fd   : > { %2338 = vst.msk [vmem:[#allocation4 + $0x1e0] sm:$0xff] %vm2307_vm8, %v2272_v53 }
 0x3fe   : > { %v2555_v37 = vsel %vm2539_vm10, %v2512_v28, 0.0 }
 0x401   : > { %v2367_v16 = vpop.permute.xlu0 %2366  ;;  %v2480_v32 = vld [vmem:[#allocation4 + $0x90] sm:$0xff] }
 0x402   : > { %2451 = vst.msk [vmem:[#allocation4 + $0xc0] sm:$0xff] %vm2438_vm9, %v2367_v16  ;;  %2541 = vadd.xlane.f32.xlu2 %v2540_v24  ;;  %v2516_v52 = vmul.f32 %v9645_v5, %v2480_v32 }
 0x403   : > { %v2365_v13 = vpop.permute.xlu2 %2364  ;;  %v2345_v63 = vpop.permute.xlu1 %2344  ;;  %v2479_v62 = vld [vmem:[#allocation4 + $0x80] sm:$0xff] }
 0x404   : > { %2450 = vst.msk [vmem:[#allocation4 + $0xb0] sm:$0xff] %vm2438_vm9, %v2365_v13  ;;  %v2567_v9 = vsel %vm2539_vm10, %v2516_v52, 0.0  ;;  %v2515_v29 = vmul.f32 %v9645_v5, %v2479_v62 }
 0x405   : > { %2440 = vst.msk [vmem:[#allocation4 + $0x10] sm:$0xff] %vm2438_vm9, %v2345_v63 }
 0x406   : > { %v2564_v59 = vsel %vm2539_vm10, %v2515_v29, 0.0 }
 0x409   : > { %v2373_v19 = vpop.permute.xlu0 %2372  ;;  %v2483_v8 = vld [vmem:[#allocation4 + $0xc0] sm:$0xff] }
 0x40a   : > { %2454 = vst.msk [vmem:[#allocation4 + $0xf0] sm:$0xff] %vm2438_vm9, %v2373_v19  ;;  %2550 = vadd.xlane.f32.xlu2 %v2549_v56  ;;  %v2519_v21 = vmul.f32 %v9645_v5, %v2483_v8 }
 0x40b   : > { %v2371_v1 = vpop.permute.xlu2 %2370  ;;  %v2351_v4 = vpop.permute.xlu1 %2350  ;;  %2547 = vadd.xlane.f32.xlu1 %v2546_v58  ;;  %v2482_v17 = vld [vmem:[#allocation4 + $0xb0] sm:$0xff] }
 0x40c   : > { %2453 = vst.msk [vmem:[#allocation4 + $0xe0] sm:$0xff] %vm2438_vm9, %v2371_v1  ;;  %v2472_v26 = vld [vmem:[#allocation4 + $0x10] sm:$0xff]  ;;  %v2576_v30 = vsel %vm2539_vm10, %v2519_v21, 0.0  ;;  %v2518_v43 = vmul.f32 %v9645_v5, %v2482_v17 }
 0x40d   : > { %2443 = vst.msk [vmem:[#allocation4 + $0x40] sm:$0xff] %vm2438_vm9, %v2351_v4  ;;  %v2508_v36 = vmul.f32 %v9645_v5, %v2472_v26 }
 0x40e   : > { %v2573_v39 = vsel %vm2539_vm10, %v2518_v43, 0.0 }
 0x40f   : > { %v2543_v47 = vsel %vm2539_vm10, %v2508_v36, 0.0 }
 0x410   : > { %2544 = vadd.xlane.f32.xlu0 %v2543_v47 }
 0x411   : > { %v2379_v50 = vpop.permute.xlu0 %2378  ;;  %v2486_v14 = vld [vmem:[#allocation4 + $0xf0] sm:$0xff] }
 0x412   : > { %2457 = vst.msk [vmem:[#allocation4 + $0x120] sm:$0xff] %vm2438_vm9, %v2379_v50  ;;  %v2522_v55 = vmul.f32 %v9645_v5, %v2486_v14 }
 0x413   : > { %v2377_v0 = vpop.permute.xlu2 %2376  ;;  %v2357_v61 = vpop.permute.xlu1 %2356  ;;  %2559 = vadd.xlane.f32.xlu1 %v2558_v18  ;;  %v2485_v2 = vld [vmem:[#allocation4 + $0xe0] sm:$0xff] }
 0x414   : > { %2456 = vst.msk [vmem:[#allocation4 + $0x110] sm:$0xff] %vm2438_vm9, %v2377_v0  ;;  %v2475_v33 = vld [vmem:[#allocation4 + $0x40] sm:$0xff]  ;;  %v2585_v15 = vsel %vm2539_vm10, %v2522_v55, 0.0  ;;  %v2521_v53 = vmul.f32 %v9645_v5, %v2485_v2 }
 0x415   : > { %2446 = vst.msk [vmem:[#allocation4 + $0x70] sm:$0xff] %vm2438_vm9, %v2357_v61  ;;  %v2511_v38 = vmul.f32 %v9645_v5, %v2475_v33 }
 0x416   : > { %v2582_v13 = vsel %vm2539_vm10, %v2521_v53, 0.0  ;;  %v3379_v53 = vld [vmem:[%s13364_s9 + $0x8] sm:$0xff] }
 0x417   : > { %v2552_v46 = vsel %vm2539_vm10, %v2511_v38, 0.0 }
 0x418   : > { %2556 = vadd.xlane.f32.xlu0 %v2555_v37  ;;  %2553 = vadd.xlane.f32.xlu2 %v2552_v46 }
 0x419   : > { %v2385_v60 = vpop.permute.xlu0 %2384  ;;  %v2489_v25 = vld [vmem:[#allocation4 + $0x120] sm:$0xff] }
 0x41a   : > { %2460 = vst.msk [vmem:[#allocation4 + $0x150] sm:$0xff] %vm2438_vm9, %v2385_v60  ;;  %v2525_v40 = vmul.f32 %v9645_v5, %v2489_v25  ;;  %v3385_v25 = vld [vmem:[%s13364_s9 + $0x38] sm:$0xff] }
 0x41b   : > { %v2383_v12 = vpop.permute.xlu2 %2382  ;;  %v2363_v7 = vpop.permute.xlu1 %2362  ;;  %2568 = vadd.xlane.f32.xlu1 %v2567_v9  ;;  %v2488_v44 = vld [vmem:[#allocation4 + $0x110] sm:$0xff] }
 0x41c   : > { %2459 = vst.msk [vmem:[#allocation4 + $0x140] sm:$0xff] %vm2438_vm9, %v2383_v12  ;;  %v2478_v20 = vld [vmem:[#allocation4 + $0x70] sm:$0xff]  ;;  %v2594_v54 = vsel %vm2539_vm10, %v2525_v40, 0.0  ;;  %v2524_v58 = vmul.f32 %v9645_v5, %v2488_v44  ;;  %v3383_v44 = vld [vmem:[%s13364_s9 + $0x28] sm:$0xff] }
 0x41d   : > { %2449 = vst.msk [vmem:[#allocation4 + $0xa0] sm:$0xff] %vm2438_vm9, %v2363_v7  ;;  %v2514_v42 = vmul.f32 %v9645_v5, %v2478_v20  ;;  %v3380_v40 = vld [vmem:[%s13364_s9 + $0x10] sm:$0xff] }
 0x41e   : > { %v2591_v36 = vsel %vm2539_vm10, %v2524_v58, 0.0 }
 0x41f   : > { %v2561_v10 = vsel %vm2539_vm10, %v2514_v42, 0.0 }
 0x420   : > { %2565 = vadd.xlane.f32.xlu0 %v2564_v59  ;;  %2562 = vadd.xlane.f32.xlu2 %v2561_v10 }
 0x421   : > { %v2391_v6 = vpop.permute.xlu0 %2390  ;;  %v2492_v1 = vld [vmem:[#allocation4 + $0x150] sm:$0xff] }
 0x422   : > { %2463 = vst.msk [vmem:[#allocation4 + $0x180] sm:$0xff] %vm2438_vm9, %v2391_v6  ;;  %v2528_v26 = vmul.f32 %v9645_v5, %v2492_v1 }
 0x423   : > { %v2389_v49 = vpop.permute.xlu2 %2388  ;;  %v2369_v31 = vpop.permute.xlu1 %2368  ;;  %2577 = vadd.xlane.f32.xlu1 %v2576_v30  ;;  %v2491_v47 = vld [vmem:[#allocation4 + $0x140] sm:$0xff] }
 0x424   : > { %2462 = vst.msk [vmem:[#allocation4 + $0x170] sm:$0xff] %vm2438_vm9, %v2389_v49  ;;  %v2481_v45 = vld [vmem:[#allocation4 + $0xa0] sm:$0xff]  ;;  %v2603_v50 = vsel %vm2539_vm10, %v2528_v26, 0.0  ;;  %v2527_v18 = vmul.f32 %v9645_v5, %v2491_v47 }
 0x425   : > { %2452 = vst.msk [vmem:[#allocation4 + $0xd0] sm:$0xff] %vm2438_vm9, %v2369_v31  ;;  %v2517_v48 = vmul.f32 %v9645_v5, %v2481_v45  ;;  %v3386_v47 = vld [vmem:[%s13364_s9 + $0x40] sm:$0xff] }
 0x426   : > { %v2600_v33 = vsel %vm2539_vm10, %v2527_v18, 0.0  ;;  %v3384_v18 = vld [vmem:[%s13364_s9 + $0x30] sm:$0xff] }
 0x427   : > { %v2570_v34 = vsel %vm2539_vm10, %v2517_v48, 0.0 }
 0x428   : > { %2574 = vadd.xlane.f32.xlu0 %v2573_v39  ;;  %2571 = vadd.xlane.f32.xlu2 %v2570_v34 }
 0x429   : > { %v2397_v57 = vpop.permute.xlu0 %2396  ;;  %v2495_v0 = vld [vmem:[#allocation4 + $0x180] sm:$0xff] }
 0x42a   : > { %2466 = vst.msk [vmem:[#allocation4 + $0x1b0] sm:$0xff] %vm2438_vm9, %v2397_v57  ;;  %v2531_v32 = vmul.f32 %v9645_v5, %v2495_v0 }
 0x42b   : > { %v2395_v23 = vpop.permute.xlu2 %2394  ;;  %v2375_v27 = vpop.permute.xlu1 %2374  ;;  %2586 = vadd.xlane.f32.xlu1 %v2585_v15  ;;  %v2494_v52 = vld [vmem:[#allocation4 + $0x170] sm:$0xff] }
 0x42c   : > { %2465 = vst.msk [vmem:[#allocation4 + $0x1a0] sm:$0xff] %vm2438_vm9, %v2395_v23  ;;  %v2484_v16 = vld [vmem:[#allocation4 + $0xd0] sm:$0xff]  ;;  %v2612_v37 = vsel %vm2539_vm10, %v2531_v32, 0.0  ;;  %v2530_v60 = vmul.f32 %v9645_v5, %v2494_v52 }
 0x42d   : > { %2455 = vst.msk [vmem:[#allocation4 + $0x100] sm:$0xff] %vm2438_vm9, %v2375_v27  ;;  %v2520_v24 = vmul.f32 %v9645_v5, %v2484_v16  ;;  %v3378_v27 = vld [vmem:[%s13364_s9] sm:$0xff]  ;;  %v9750_v16 = vstv %s2636_s11 }
 0x42e   : > { %v2609_v8 = vsel %vm2539_vm10, %v2530_v60, 0.0 }
 0x42f   : > { %v2579_v63 = vsel %vm2539_vm10, %v2520_v24, 0.0 }
 0x430   : > { %2583 = vadd.xlane.f32.xlu0 %v2582_v13  ;;  %2580 = vadd.xlane.f32.xlu2 %v2579_v63 }
 0x431   : > { %v2403_v41 = vpop.permute.xlu0 %2402  ;;  %v2498_v9 = vld [vmem:[#allocation4 + $0x1b0] sm:$0xff] }
 0x432   : > { %2469 = vst.msk [vmem:[#allocation4 + $0x1e0] sm:$0xff] %vm2438_vm9, %v2403_v41  ;;  %v2534_v29 = vmul.f32 %v9645_v5, %v2498_v9  ;;  %v3388_v41 = vld [vmem:[%s13364_s9 + $0x50] sm:$0xff] }
 0x433   : > { %v2401_v19 = vpop.permute.xlu2 %2400  ;;  %v2381_v56 = vpop.permute.xlu1 %2380  ;;  %2595 = vadd.xlane.f32.xlu1 %v2594_v54  ;;  %v2497_v20 = vld [vmem:[#allocation4 + $0x1a0] sm:$0xff] }
 0x434   : > { %2468 = vst.msk [vmem:[#allocation4 + $0x1d0] sm:$0xff] %vm2438_vm9, %v2401_v19  ;;  %v2487_v4 = vld [vmem:[#allocation4 + $0x100] sm:$0xff]  ;;  %v2621_v42 = vsel %vm2539_vm10, %v2534_v29, 0.0  ;;  %v2533_v59 = vmul.f32 %v9645_v5, %v2497_v20 }
 0x435   : > { %2458 = vst.msk [vmem:[#allocation4 + $0x130] sm:$0xff] %vm2438_vm9, %v2381_v56  ;;  %v2523_v35 = vmul.f32 %v9645_v5, %v2487_v4  ;;  %v3382_v19 = vld [vmem:[%s13364_s9 + $0x20] sm:$0xff] }
 0x436   : > { %v2618_v31 = vsel %vm2539_vm10, %v2533_v59, 0.0  ;;  %v3387_v59 = vld [vmem:[%s13364_s9 + $0x48] sm:$0xff] }
 0x437   : > { %v2588_v22 = vsel %vm2539_vm10, %v2523_v35, 0.0 }
 0x438   : > { %2592 = vadd.xlane.f32.xlu0 %v2591_v36  ;;  %2589 = vadd.xlane.f32.xlu2 %v2588_v22  ;;  %v3391_v22 = vld [vmem:[%s13364_s9 + $0x68] sm:$0xff] }
 0x439   : > { %v2501_v6 = vld [vmem:[#allocation4 + $0x1e0] sm:$0xff] }
 0x43a   : > { %v2537_v49 = vmul.f32 %v9645_v5, %v2501_v6 }
 0x43b   : > { %v2387_v11 = vpop.permute.xlu1 %2386  ;;  %2604 = vadd.xlane.f32.xlu1 %v2603_v50  ;;  %v2500_v43 = vld [vmem:[#allocation4 + $0x1d0] sm:$0xff] }
 0x43c   : > { %2461 = vst.msk [vmem:[#allocation4 + $0x160] sm:$0xff] %vm2438_vm9, %v2387_v11  ;;  %v2490_v61 = vld [vmem:[#allocation4 + $0x130] sm:$0xff]  ;;  %v2630_v14 = vsel %vm2539_vm10, %v2537_v49, 0.0  ;;  %v2536_v48 = vmul.f32 %v9645_v5, %v2500_v43 }
 0x43d   : > { %v2526_v28 = vmul.f32 %v9645_v5, %v2490_v61 }
 0x43e   : > { %v2627_v57 = vsel %vm2539_vm10, %v2536_v48, 0.0 }
 0x43f   : > { %v2597_v38 = vsel %vm2539_vm10, %v2526_v28, 0.0 }
 0x440   : > { %2601 = vadd.xlane.f32.xlu0 %v2600_v33  ;;  %2598 = vadd.xlane.f32.xlu2 %v2597_v38 }
 0x443   : > { %v2393_v46 = vpop.permute.xlu1 %2392  ;;  %2613 = vadd.xlane.f32.xlu1 %v2612_v37  ;;  %v2493_v62 = vld [vmem:[#allocation4 + $0x160] sm:$0xff] }
 0x444   : > { %2464 = vst.msk [vmem:[#allocation4 + $0x190] sm:$0xff] %vm2438_vm9, %v2393_v46  ;;  %v2529_v12 = vmul.f32 %v9645_v5, %v2493_v62  ;;  %v3394_v37 = vld [vmem:[%s13364_s9 + $0x80] sm:$0xff]  ;;  %v3389_v46 = vld [vmem:[%s13364_s9 + $0x58] sm:$0xff] }
 0x446   : > { %v2606_v7 = vsel %vm2539_vm10, %v2529_v12, 0.0 }
 0x448   : > { %2610 = vadd.xlane.f32.xlu0 %v2609_v8  ;;  %2607 = vadd.xlane.f32.xlu2 %v2606_v7 }
 0x44b   : > { %v2399_v21 = vpop.permute.xlu1 %2398  ;;  %2622 = vadd.xlane.f32.xlu1 %v2621_v42  ;;  %v2496_v10 = vld [vmem:[#allocation4 + $0x190] sm:$0xff] }
 0x44c   : > { %2467 = vst.msk [vmem:[#allocation4 + $0x1c0] sm:$0xff] %vm2438_vm9, %v2399_v21  ;;  %v2532_v17 = vmul.f32 %v9645_v5, %v2496_v10 }
 0x44e   : > { %v2615_v30 = vsel %vm2539_vm10, %v2532_v17, 0.0 }
 0x450   : > { %2619 = vadd.xlane.f32.xlu0 %v2618_v31  ;;  %2616 = vadd.xlane.f32.xlu2 %v2615_v30 }
 0x453   : > { %v2405_v45 = vpop.permute.xlu1 %2404  ;;  %2631 = vadd.xlane.f32.xlu1 %v2630_v14  ;;  %v2499_v55 = vld [vmem:[#allocation4 + $0x1c0] sm:$0xff] }
 0x454   : > { %2470 = vst.msk [vmem:[#allocation4 + $0x1f0] sm:$0xff] %vm2438_vm9, %v2405_v45  ;;  %v2535_v39 = vmul.f32 %v9645_v5, %v2499_v55 }
 0x456   : > { %v2624_v34 = vsel %vm2539_vm10, %v2535_v39, 0.0 }
 0x458   : > { %2628 = vadd.xlane.f32.xlu0 %v2627_v57  ;;  %2625 = vadd.xlane.f32.xlu2 %v2624_v34  ;;  %v3397_v57 = vld [vmem:[%s13364_s9 + $0x98] sm:$0xff] }
 0x45b   : > { %v2502_v2 = vld [vmem:[#allocation4 + $0x1f0] sm:$0xff] }
 0x45c   : > { %v2538_v15 = vmul.f32 %v9645_v5, %v2502_v2  ;;  %v3381_v5 = vld [vmem:[%s13364_s9 + $0x18] sm:$0xff]  ;;  %v3392_v2 = vld [vmem:[%s13364_s9 + $0x70] sm:$0xff] }
 0x45e   : > { %v2633_v23 = vsel %vm2539_vm10, %v2538_v15, 0.0 }
 0x460   : > { %2634 = vadd.xlane.f32.xlu2 %v2633_v23 }
 0x46c   : > { %3416 = vperm.xlu0 %7911, %v3378_v27   ;;  %3421 = vperm.xlu1 %7912, %v3379_v53  }
 0x474   : > { %3451 = vperm.xlu0 %7911, %v3385_v25   ;;  %3431 = vperm.xlu1 %7912, %v3381_v5  }
 0x475   : > { %v2542_v24 = vpop.xlane.xlu2 %2541 }
 0x476   : > { %v2638_v13 = vadd.f32 %v9750_v16, %v2542_v24 }
 0x478   : > { %v7774_v63 = vmul.f32 -1.442695, %v2638_v13  ;;  %3426 = vperm.xlu2 %7913, %v3380_v40  }
 0x47a   : > { %7927 = vpow2.f32 %v7774_v63  ;;  %v8055_v63 = vld [vmem:[%s8255_s12] sm:$0xff] }
 0x47c   : > { %3466 = vperm.xlu0 %7911, %v3388_v41   ;;  %3441 = vperm.xlu1 %7912, %v3383_v44  }
 0x47d   : > { %v2551_v54 = vpop.xlane.xlu2 %2550 }
 0x47e   : > { %v2641_v56 = vadd.f32 %v9750_v16, %v2551_v54  ;;  %v2548_v58 = vpop.xlane.xlu1 %2547 }
 0x47f   : > { %v2640_v1 = vadd.f32 %v9750_v16, %v2548_v58 }
 0x480   : > { %v7928_v4 = vpop.eup %7927  ;;  %v7777_v35 = vmul.f32 -1.442695, %v2641_v56  ;;  %3436 = vperm.xlu2 %7913, %v3382_v19  }
 0x481   : > { %v2766_v26 = vadd.f32 1.0, %v7928_v4  ;;  %v7776_v36 = vmul.f32 -1.442695, %v2640_v1  ;;  %v3390_v1 = vld [vmem:[%s13364_s9 + $0x60] sm:$0xff] }
 0x482   : > { %7929 = vpow2.f32 %v7777_v35 }
 0x483   : > { %7931 = vrcp.f32 %v2766_v26  ;;  %v2545_v50 = vpop.xlane.xlu0 %2544  ;;  %v2807_v9 = vand.u32 2147483647, %v2766_v26  ;;  %v2809_v42 = vand.u32 2147483648, %v2766_v26  ;;  %vm2803_vm12 = vweird.f32 %v2766_v26 }
 0x484   : > { %7933 = vpow2.f32 %v7776_v36  ;;  %v2639_v11 = vadd.f32 %v9750_v16, %v2545_v50  ;;  %3481 = vperm.xlu0 %7911, %v3391_v22   ;;  %3456 = vperm.xlu1 %7912, %v3386_v47  }
 0x485   : > { %vm9798_vm13 = vcmp.eq.f32.partialorder %v2807_v9, 8.507059e+37  ;;  %v2810_v39 = vor.u32 1.1754944e-38, %v2809_v42 }
 0x486   : > { %v7775_v0 = vmul.f32 -1.442695, %v2639_v11  ;;  %v2560_v61 = vpop.xlane.xlu1 %2559 }
 0x487   : > { %v2644_v28 = vadd.f32 %v9750_v16, %v2560_v61 }
 0x488   : > { %v7930_v32 = vpop.eup %7929  ;;  %7935 = vpow2.f32 %v7775_v0  ;;  %3446 = vperm.xlu2 %7913, %v3384_v18  }
 0x489   : > { %v7932_v33 = vpop.eup %7931  ;;  %v9778_v38 = vadd.f32 1.0, %v7930_v32  ;;  %v7780_v52 = vmul.f32 -1.442695, %v2644_v28 }
 0x48a   : > { %v7934_v60 = vpop.eup %7933  ;;  %v2799_v62 = vmul.f32 %v7932_v33, %v2766_v26  ;;  %vm2804_vm11 = vweird.f32 %v7932_v33 }
 0x48b   : > { %7937 = vrcp.f32 %v9778_v38  ;;  %v2554_v12 = vpop.xlane.xlu2 %2553  ;;  %v2557_v7 = vpop.xlane.xlu0 %2556  ;;  %v9787_v8 = vadd.f32 1.0, %v7934_v60  ;;  %v2852_v17 = vand.u32 2147483647, %v9778_v38  ;;  %v2854_v45 = vand.u32 2147483648, %v9778_v38  ;;  %vm2805_vm14 = vmor %vm2803_vm12, %vm2804_vm11 }
 0x48c   : > { %v2800_v29 = vsub.f32 1.0, %v2799_v62  ;;  %7939 = vpow2.f32 %v7780_v52  ;;  %v2642_v20 = vadd.f32 %v9750_v16, %v2554_v12  ;;  %3496 = vperm.xlu0 %7911, %v3394_v37   ;;  %3471 = vperm.xlu1 %7912, %v3389_v46   ;;  %v2643_v21 = vadd.f32 %v9750_v16, %v2557_v7  ;;  %v3400_v37 = vld [vmem:[%s13364_s9 + $0xb0] sm:$0xff]  ;;  %v3395_v46 = vld [vmem:[%s13364_s9 + $0x88] sm:$0xff] }
 0x48d   : > { %7941 = vrcp.f32 %v9787_v8  ;;  %vm2848_vm15 = vweird.f32 %v9778_v38  ;;  %v2837_v34 = vand.u32 2147483647, %v9787_v8  ;;  %vm9816_vm1 = vcmp.eq.f32.partialorder %v2852_v17, 8.507059e+37 }
 0x48e   : > { %v7936_v10 = vpop.eup %7935  ;;  %v2801_v6 = vmul.f32 %v7932_v33, %v2800_v29  ;;  %v7778_v49 = vmul.f32 -1.442695, %v2642_v20  ;;  %v2569_v31 = vpop.xlane.xlu1 %2568  ;;  %v7779_v48 = vmul.f32 -1.442695, %v2643_v21  ;;  %v2839_v24 = vand.u32 2147483648, %v9787_v8  ;;  %v8056_v21 = vld [vmem:[%s8255_s12 + $0x18] sm:$0xff] }
 0x48f   : > { %v9796_v30 = vadd.f32 1.0, %v7936_v10  ;;  %v2647_v25 = vadd.f32 %v9750_v16, %v2569_v31  ;;  %v2855_v54 = vor.u32 1.1754944e-38, %v2854_v45  ;;  %vm2833_vm2 = vweird.f32 %v9787_v8 }
 0x490   : > { %v2802_v43 = vadd.f32 %v7932_v33, %v2801_v6  ;;  %3461 = vperm.xlu2 %7913, %v3387_v59   ;;  %vm9832_vm3 = vcmp.eq.f32.partialorder %v2837_v34, 8.507059e+37  ;;  %v2840_v50 = vor.u32 1.1754944e-38, %v2839_v24  ;;  %v8057_v34 = vld [vmem:[%s8255_s12 + $0x10] sm:$0xff] }
 0x491   : > { %v9803_v55 = vpop.eup %7937  ;;  %7943 = vrcp.f32 %v9796_v30  ;;  %v2822_v35 = vand.u32 2147483647, %v9796_v30  ;;  %v7783_v26 = vmul.f32 -1.442695, %v2647_v25  ;;  %vm2818_vm5 = vweird.f32 %v9796_v30 }
 0x492   : > { %v7940_v15 = vpop.eup %7939  ;;  %v2806_v23 = vsel %vm2805_vm14, %v7932_v33, %v2802_v43  ;;  %v2844_v27 = vmul.f32 %v9803_v55, %v9778_v38  ;;  %7945 = vpow2.f32 %v7778_v49  ;;  %vm2849_vm4 = vweird.f32 %v9803_v55 }
 0x493   : > { %v2811_v5 = vsel %vm9798_vm13, %v2810_v39, %v2806_v23  ;;  %v9824_v40 = vadd.f32 1.0, %v7940_v15  ;;  %v9826_v13 = vpop.eup %7941  ;;  %7947 = vpow2.f32 %v7779_v48  ;;  %v2563_v19 = vpop.xlane.xlu2 %2562  ;;  %v2824_v61 = vand.u32 2147483648, %v9796_v30  ;;  %vm2850_vm7 = vmor %vm2848_vm15, %vm2849_vm4 }
 0x494   : > { %v3278_v41 = vmul.f32 %v8055_v63, %v2811_v5  ;;  %v2845_v44 = vsub.f32 1.0, %v2844_v27  ;;  %3511 = vperm.xlu0 %7911, %v3397_v57   ;;  %3486 = vperm.xlu1 %7912, %v3392_v2   ;;  %v2829_v56 = vmul.f32 %v9826_v13, %v9787_v8  ;;  %v2566_v36 = vpop.xlane.xlu0 %2565  ;;  %v2645_v11 = vadd.f32 %v9750_v16, %v2563_v19  ;;  %v3393_v8 = vld [vmem:[%s13364_s9 + $0x78] sm:$0xff]  ;;  %v3398_v63 = vld [vmem:[%s13364_s9 + $0xa0] sm:$0xff] }
 0x495   : > { %7949 = vrcp.f32 %v9824_v40  ;;  %vm2834_vm6 = vweird.f32 %v9826_v13  ;;  %v2646_v52 = vadd.f32 %v9750_v16, %v2566_v36  ;;  %vm9866_vm8 = vcmp.eq.f32.partialorder %v2822_v35, 8.507059e+37 }
 0x496   : > { %3310 = vst.msk [vmem:[#allocation3 + $0x18] sm:$0xff] %vm403_vm0, %v3278_v41  ;;  %v2846_v4 = vmul.f32 %v9803_v55, %v2845_v44  ;;  %v2830_v47 = vsub.f32 1.0, %v2829_v56  ;;  %7951 = vpow2.f32 %v7783_v26  ;;  %v7781_v33 = vmul.f32 -1.442695, %v2645_v11  ;;  %vm2835_vm9 = vmor %vm2833_vm2, %vm2834_vm6  ;;  %v8058_v41 = vld [vmem:[%s8255_s12 + $0x8] sm:$0xff]  ;;  %v3396_v11 = vld [vmem:[%s13364_s9 + $0x90] sm:$0xff] }
 0x497   : > { %v9844_v22 = vpop.eup %7943  ;;  %v2825_v49 = vor.u32 1.1754944e-38, %v2824_v61  ;;  %v7782_v31 = vmul.f32 -1.442695, %v2646_v52  ;;  %v2897_v48 = vand.u32 2147483647, %v9824_v40  ;;  %vm2893_vm12 = vweird.f32 %v9824_v40 }
 0x498   : > { %v2847_v18 = vadd.f32 %v9803_v55, %v2846_v4  ;;  %v2814_v0 = vmul.f32 %v9844_v22, %v9796_v30  ;;  %3476 = vperm.xlu2 %7913, %v3390_v1   ;;  %v7946_v28 = vpop.eup %7945  ;;  %v2831_v32 = vmul.f32 %v9826_v13, %v2830_v47  ;;  %7953 = vpow2.f32 %v7781_v33 }
 0x499   : > { %v7948_v60 = vpop.eup %7947  ;;  %v9870_v12 = vadd.f32 1.0, %v7946_v28  ;;  %vm2819_vm10 = vweird.f32 %v9844_v22  ;;  %v2899_v2 = vand.u32 2147483648, %v9824_v40  ;;  %vm9926_vm14 = vcmp.eq.f32.partialorder %v2897_v48, 8.507059e+37 }
 0x49a   : > { %v2851_v62 = vsel %vm2850_vm7, %v9803_v55, %v2847_v18  ;;  %v2815_v38 = vsub.f32 1.0, %v2814_v0  ;;  %v2832_v20 = vadd.f32 %v9826_v13, %v2831_v32  ;;  %v9877_v42 = vadd.f32 1.0, %v7948_v60  ;;  %v2578_v55 = vpop.xlane.xlu1 %2577  ;;  %vm2820_vm11 = vmor %vm2818_vm5, %vm2819_vm10  ;;  %v8059_v18 = vld [vmem:[%s8255_s12 + $0x30] sm:$0xff] }
 0x49b   : > { %v9872_v7 = vpop.eup %7949  ;;  %v2856_v29 = vsel %vm9816_vm1, %v2855_v54, %v2851_v62  ;;  %7955 = vrcp.f32 %v9870_v12  ;;  %v9906_v15 = vpop.xlane.xlu2 %2571  ;;  %v2867_v53 = vand.u32 2147483647, %v9870_v12  ;;  %v2650_v24 = vadd.f32 %v9750_v16, %v2578_v55 }
 0x49c   : > { %v3281_v59 = vmul.f32 %v8056_v21, %v2856_v29  ;;  %v2816_v10 = vmul.f32 %v9844_v22, %v2815_v38  ;;  %v2889_v6 = vmul.f32 %v9872_v7, %v9824_v40  ;;  %3526 = vperm.xlu0 %7911, %v3400_v37   ;;  %3501 = vperm.xlu1 %7912, %v3395_v46   ;;  %v7952_v39 = vpop.eup %7951  ;;  %7957 = vrcp.f32 %v9877_v42  ;;  %v2575_v33 = vpop.xlane.xlu0 %2574  ;;  %v3399_v46 = vld [vmem:[%s13364_s9 + $0xa8] sm:$0xff] }
 0x49d   : > { %v2836_v17 = vsel %vm2835_vm9, %v9826_v13, %v2832_v20  ;;  %vm2894_vm13 = vweird.f32 %v9872_v7  ;;  %v9915_v5 = vadd.f32 1.0, %v7952_v39  ;;  %7959 = vpow2.f32 %v7782_v31  ;;  %v3403_v13 = vld [vmem:[%s13364_s9 + $0xc8] sm:$0xff] }
 0x49e   : > { %3313 = vst.msk [vmem:[#allocation3 + $0x30] sm:$0xff] %vm403_vm0, %v3281_v59  ;;  %v2841_v43 = vsel %vm9832_vm3, %v2840_v50, %v2836_v17  ;;  %v2817_v14 = vadd.f32 %v9844_v22, %v2816_v10  ;;  %v2890_v45 = vsub.f32 1.0, %v2889_v6  ;;  %v7954_v30 = vpop.eup %7953  ;;  %vm2895_vm15 = vmor %vm2893_vm12, %vm2894_vm13  ;;  %v2900_v1 = vor.u32 1.1754944e-38, %v2899_v2 }
 0x49f   : > { %v3280_v57 = vmul.f32 %v8057_v34, %v2841_v43  ;;  %v9930_v56 = vadd.f32 1.0, %v7954_v30  ;;  %v2869_v4 = vand.u32 2147483648, %v9870_v12  ;;  %v2882_v35 = vand.u32 2147483647, %v9877_v42 }
 0x4a0   : > { %v2821_v23 = vsel %vm2820_vm11, %v9844_v22, %v2817_v14  ;;  %v2891_v27 = vmul.f32 %v9872_v7, %v2890_v45  ;;  %3491 = vperm.xlu2 %7913, %v3393_v8   ;;  %7961 = vrcp.f32 %v9915_v5  ;;  %vm2863_vm1 = vweird.f32 %v9870_v12  ;;  %v3401_v22 = vld [vmem:[%s13364_s9 + $0xb8] sm:$0xff] }
 0x4a1   : > { %3312 = vst.msk [vmem:[#allocation3 + $0x28] sm:$0xff] %vm403_vm0, %v3280_v57  ;;  %v2826_v25 = vsel %vm9866_vm8, %v2825_v49, %v2821_v23  ;;  %v7956_v58 = vpop.eup %7955  ;;  %vm9943_vm2 = vcmp.eq.f32.partialorder %v2867_v53, 8.507059e+37  ;;  %vm2878_vm3 = vweird.f32 %v9877_v42  ;;  %v2884_v50 = vand.u32 2147483648, %v9877_v42 }
 0x4a2   : > { %v3279_v44 = vmul.f32 %v8058_v41, %v2826_v25  ;;  %v2892_v54 = vadd.f32 %v9872_v7, %v2891_v27  ;;  %v2859_v36 = vmul.f32 %v7956_v58, %v9870_v12  ;;  %v7958_v40 = vpop.eup %7957  ;;  %7963 = vrcp.f32 %v9930_v56  ;;  %v2587_v29 = vpop.xlane.xlu1 %2586 }
 0x4a3   : > { %v2874_v28 = vmul.f32 %v7958_v40, %v9877_v42  ;;  %v2942_v32 = vand.u32 2147483647, %v9915_v5  ;;  %v7960_v52 = vpop.eup %7959  ;;  %v2870_v37 = vor.u32 1.1754944e-38, %v2869_v4  ;;  %vm9958_vm4 = vcmp.eq.f32.partialorder %v2882_v35, 8.507059e+37  ;;  %v2581_v10 = vpop.xlane.xlu2 %2580 }
 0x4a4   : > { %3311 = vst.msk [vmem:[#allocation3 + $0x20] sm:$0xff] %vm403_vm0, %v3279_v44  ;;  %v2896_v26 = vsel %vm2895_vm15, %v9872_v7, %v2892_v54  ;;  %3541 = vperm.xlu0 %7911, %v3403_v13   ;;  %3516 = vperm.xlu1 %7912, %v3398_v63   ;;  %v2860_v61 = vsub.f32 1.0, %v2859_v36  ;;  %v2944_v60 = vand.u32 2147483648, %v9915_v5  ;;  %v7786_v62 = vmul.f32 -1.442695, %v2650_v24  ;;  %v8061_v63 = vld [vmem:[%s8255_s12 + $0x28] sm:$0xff] }
 0x4a5   : > { %v2901_v47 = vsel %vm9926_vm14, %v2900_v1, %v2896_v26  ;;  %vm2864_vm5 = vweird.f32 %v7956_v58  ;;  %v2875_v9 = vsub.f32 1.0, %v2874_v28  ;;  %v9964_v7 = vadd.f32 1.0, %v7960_v52  ;;  %v3406_v1 = vld [vmem:[%s13364_s9 + $0xe0] sm:$0xff]  ;;  %v8062_v28 = vld [vmem:[%s8255_s12 + $0x48] sm:$0xff] }
 0x4a6   : > { %v3284_v0 = vmul.f32 %v8059_v18, %v2901_v47  ;;  %v2861_v38 = vmul.f32 %v7956_v58, %v2860_v61  ;;  %v7962_v20 = vpop.eup %7961  ;;  %v2885_v21 = vor.u32 1.1754944e-38, %v2884_v50  ;;  %vm2938_vm6 = vweird.f32 %v9915_v5  ;;  %vm2865_vm10 = vmor %vm2863_vm1, %vm2864_vm5 }
 0x4a7   : > { %v2912_v59 = vand.u32 2147483647, %v9930_v56  ;;  %7965 = vpow2.f32 %v7786_v62  ;;  %v2876_v17 = vmul.f32 %v7958_v40, %v2875_v9  ;;  %vm2879_vm7 = vweird.f32 %v7958_v40 }
 0x4a8   : > { %3316 = vst.msk [vmem:[#allocation3 + $0x48] sm:$0xff] %vm403_vm0, %v3284_v0  ;;  %3506 = vperm.xlu2 %7913, %v3396_v11   ;;  %v2862_v6 = vadd.f32 %v7956_v58, %v2861_v38  ;;  %v2934_v49 = vmul.f32 %v7962_v20, %v9915_v5  ;;  %vm9969_vm8 = vcmp.eq.f32.partialorder %v2942_v32, 8.507059e+37  ;;  %vm2908_vm9 = vweird.f32 %v9930_v56  ;;  %v7964_v8 = vpop.eup %7963  ;;  %vm2880_vm11 = vmor %vm2878_vm3, %vm2879_vm7  ;;  %v8063_v38 = vld [vmem:[%s8255_s12 + $0x38] sm:$0xff] }
 0x4a9   : > { %v2945_v43 = vor.u32 1.1754944e-38, %v2944_v60  ;;  %v2914_v14 = vand.u32 2147483648, %v9930_v56  ;;  %7967 = vrcp.f32 %v9964_v7  ;;  %v2648_v45 = vadd.f32 %v9750_v16, %v9906_v15  ;;  %v8060_v15 = vld [vmem:[%s8255_s12 + $0x20] sm:$0xff] }
 0x4aa   : > { %v2866_v48 = vsel %vm2865_vm10, %v7956_v58, %v2862_v6  ;;  %v2877_v55 = vadd.f32 %v7958_v40, %v2876_v17  ;;  %v2935_v39 = vsub.f32 1.0, %v2934_v49  ;;  %v2904_v34 = vmul.f32 %v7964_v8, %v9930_v56  ;;  %v2584_v58 = vpop.xlane.xlu0 %2583  ;;  %v2596_v11 = vpop.xlane.xlu1 %2595  ;;  %v3407_v17 = vld [vmem:[%s13364_s9 + $0xe8] sm:$0xff] }
 0x4ab   : > { %v2871_v57 = vsel %vm9943_vm2, %v2870_v37, %v2866_v48  ;;  %vm2939_vm12 = vweird.f32 %v7962_v20  ;;  %vm9987_vm13 = vcmp.eq.f32.partialorder %v2912_v59, 8.507059e+37  ;;  %v2649_v2 = vadd.f32 %v9750_v16, %v2575_v33  ;;  %v2590_v61 = vpop.xlane.xlu2 %2589 }
 0x4ac   : > { %v3282_v23 = vmul.f32 %v8060_v15, %v2871_v57  ;;  %v2881_v27 = vsel %vm2880_vm11, %v7958_v40, %v2877_v55  ;;  %v2936_v53 = vmul.f32 %v7962_v20, %v2935_v39  ;;  %v2905_v30 = vsub.f32 1.0, %v2904_v34  ;;  %vm2940_vm15 = vmor %vm2938_vm6, %vm2939_vm12  ;;  %3556 = vperm.xlu0 %7911, %v3406_v1   ;;  %3531 = vperm.xlu1 %7912, %v3401_v22   ;;  %v3404_v55 = vld [vmem:[%s13364_s9 + $0xd0] sm:$0xff]  ;;  %v8064_v15 = vld [vmem:[%s8255_s12 + $0x40] sm:$0xff] }
 0x4ad   : > { %v7966_v25 = vpop.eup %7965  ;;  %v2886_v24 = vsel %vm9958_vm4, %v2885_v21, %v2881_v27  ;;  %vm2909_vm14 = vweird.f32 %v7964_v8  ;;  %v7784_v42 = vmul.f32 -1.442695, %v2648_v45  ;;  %v2653_v13 = vadd.f32 %v9750_v16, %v2587_v29 }
 0x4ae   : > { %3314 = vst.msk [vmem:[#allocation3 + $0x38] sm:$0xff] %vm403_vm0, %v3282_v23  ;;  %v3283_v41 = vmul.f32 %v8061_v63, %v2886_v24  ;;  %v2937_v44 = vadd.f32 %v7962_v20, %v2936_v53  ;;  %v2906_v54 = vmul.f32 %v7964_v8, %v2905_v30  ;;  %v9998_v19 = vadd.f32 1.0, %v7966_v25  ;;  %vm2910_vm1 = vmor %vm2908_vm9, %vm2909_vm14  ;;  %v3402_v24 = vld [vmem:[%s13364_s9 + $0xc0] sm:$0xff] }
 0x4af   : > { %v10003_v4 = vpop.eup %7967  ;;  %v2915_v35 = vor.u32 1.1754944e-38, %v2914_v14  ;;  %7969 = vpow2.f32 %v7784_v42  ;;  %v7785_v26 = vmul.f32 -1.442695, %v2649_v2  ;;  %v2651_v36 = vadd.f32 %v9750_v16, %v2581_v10 }
 0x4b0   : > { %3315 = vst.msk [vmem:[#allocation3 + $0x40] sm:$0xff] %vm403_vm0, %v3283_v41  ;;  %v2941_v40 = vsel %vm2940_vm15, %v7962_v20, %v2937_v44  ;;  %v2907_v47 = vadd.f32 %v7964_v8, %v2906_v54  ;;  %v2919_v50 = vmul.f32 %v10003_v4, %v9964_v7  ;;  %v7789_v5 = vmul.f32 -1.442695, %v2653_v13  ;;  %3521 = vperm.xlu2 %7913, %v3399_v46   ;;  %v8066_v13 = vld [vmem:[%s8255_s12 + $0x50] sm:$0xff] }
 0x4b1   : > { %v2946_v18 = vsel %vm9969_vm8, %v2945_v43, %v2941_v40  ;;  %vm2923_vm2 = vweird.f32 %v9964_v7  ;;  %7971 = vrcp.f32 %v9998_v19  ;;  %v2652_v0 = vadd.f32 %v9750_v16, %v2584_v58 }
 0x4b2   : > { %v3287_v32 = vmul.f32 %v8062_v28, %v2946_v18  ;;  %v2911_v33 = vsel %vm2910_vm1, %v7964_v8, %v2907_v47  ;;  %v2920_v52 = vsub.f32 1.0, %v2919_v50  ;;  %v2927_v37 = vand.u32 2147483647, %v9964_v7  ;;  %v3409_v8 = vld [vmem:[%s13364_s9 + $0xf8] sm:$0xff]  ;;  %v2593_v30 = vpop.xlane.xlu0 %2592  ;;  %v2605_v25 = vpop.xlane.xlu1 %2604 }
 0x4b3   : > { %v2916_v56 = vsel %vm9987_vm13, %v2915_v35, %v2911_v33  ;;  %v2929_v60 = vand.u32 2147483648, %v9964_v7  ;;  %7973 = vpow2.f32 %v7785_v26  ;;  %v7787_v62 = vmul.f32 -1.442695, %v2651_v36  ;;  %v2599_v44 = vpop.xlane.xlu2 %2598 }
 0x4b4   : > { %3319 = vst.msk [vmem:[#allocation3 + $0x60] sm:$0xff] %vm403_vm0, %v3287_v32  ;;  %v3285_v9 = vmul.f32 %v8063_v38, %v2916_v56  ;;  %v2921_v29 = vmul.f32 %v10003_v4, %v2920_v52  ;;  %vm2924_vm3 = vweird.f32 %v10003_v4  ;;  %7975 = vpow2.f32 %v7789_v5  ;;  %3571 = vperm.xlu0 %7911, %v3409_v8   ;;  %3546 = vperm.xlu1 %7912, %v3404_v55   ;;  %v8065_v56 = vld [vmem:[%s8255_s12 + $0x60] sm:$0xff] }
 0x4b5   : > { %v7970_v20 = vpop.eup %7969  ;;  %7977 = vpow2.f32 %v7787_v62  ;;  %v7788_v21 = vmul.f32 -1.442695, %v2652_v0  ;;  %v2656_v59 = vadd.f32 %v9750_v16, %v2596_v11  ;;  %v2654_v10 = vadd.f32 %v9750_v16, %v2590_v61  ;;  %vm2925_vm5 = vmor %vm2923_vm2, %vm2924_vm3 }
 0x4b6   : > { %3317 = vst.msk [vmem:[#allocation3 + $0x50] sm:$0xff] %vm403_vm0, %v3285_v9  ;;  %v2922_v6 = vadd.f32 %v10003_v4, %v2921_v29  ;;  %vm10039_vm4 = vcmp.eq.f32.partialorder %v2927_v37, 8.507059e+37  ;;  %v2987_v49 = vand.u32 2147483647, %v9998_v19  ;;  %v10044_v31 = vadd.f32 1.0, %v7970_v20  ;;  %v3412_v9 = vld [vmem:[%s13364_s9 + $0x110] sm:$0xff] }
 0x4b7   : > { %v7972_v43 = vpop.eup %7971  ;;  %v2930_v14 = vor.u32 1.1754944e-38, %v2929_v60  ;;  %v7792_v45 = vmul.f32 -1.442695, %v2656_v59  ;;  %v7790_v48 = vmul.f32 -1.442695, %v2654_v10  ;;  %v2989_v57 = vand.u32 2147483648, %v9998_v19 }
 0x4b8   : > { %v2926_v39 = vsel %vm2925_vm5, %v10003_v4, %v2922_v6  ;;  %v2979_v34 = vmul.f32 %v7972_v43, %v9998_v19  ;;  %7979 = vrcp.f32 %v10044_v31  ;;  %vm2983_vm6 = vweird.f32 %v9998_v19  ;;  %3536 = vperm.xlu2 %7913, %v3402_v24  }
 0x4b9   : > { %v7974_v7 = vpop.eup %7973  ;;  %v2931_v12 = vsel %vm10039_vm4, %v2930_v14, %v2926_v39  ;;  %7981 = vpow2.f32 %v7788_v21  ;;  %vm10067_vm7 = vcmp.eq.f32.partialorder %v2987_v49, 8.507059e+37  ;;  %v2957_v63 = vand.u32 2147483647, %v10044_v31 }
 0x4ba   : > { %v7976_v2 = vpop.eup %7975  ;;  %v3286_v23 = vmul.f32 %v8064_v15, %v2931_v12  ;;  %v2980_v27 = vsub.f32 1.0, %v2979_v34  ;;  %v10062_v53 = vadd.f32 1.0, %v7974_v7  ;;  %7983 = vpow2.f32 %v7792_v45  ;;  %v3405_v7 = vld [vmem:[%s13364_s9 + $0xd8] sm:$0xff] }
 0x4bb   : > { %v7978_v42 = vpop.eup %7977  ;;  %v10072_v41 = vadd.f32 1.0, %v7976_v2  ;;  %7985 = vpow2.f32 %v7790_v48  ;;  %vm2984_vm8 = vweird.f32 %v7972_v43  ;;  %v2990_v58 = vor.u32 1.1754944e-38, %v2989_v57  ;;  %v10155_v57 = vpop.xlane.xlu2 %2607 }
 0x4bc   : > { %3318 = vst.msk [vmem:[#allocation3 + $0x58] sm:$0xff] %vm403_vm0, %v3286_v23  ;;  %v2981_v54 = vmul.f32 %v7972_v43, %v2980_v27  ;;  %7987 = vrcp.f32 %v10062_v53  ;;  %v2959_v1 = vand.u32 2147483648, %v10044_v31  ;;  %v10079_v4 = vadd.f32 %v9750_v16, %v2593_v30  ;;  %vm2985_vm10 = vmor %vm2983_vm6, %vm2984_vm8  ;;  %3586 = vperm.xlu0 %7911, %v3412_v9   ;;  %3561 = vperm.xlu1 %7912, %v3407_v17   ;;  %v10169_v27 = vpop.xlane.xlu0 %2601 }
 0x4bd   : > { %7989 = vrcp.f32 %v10072_v41  ;;  %v10082_v35 = vadd.f32 %v9750_v16, %v2605_v25  ;;  %vm2953_vm9 = vweird.f32 %v10044_v31  ;;  %v10087_v22 = vadd.f32 1.0, %v7978_v42 }
 0x4be   : > { %v10084_v26 = vpop.eup %7979  ;;  %v2982_v36 = vadd.f32 %v7972_v43, %v2981_v54  ;;  %v10090_v40 = vadd.f32 %v9750_v16, %v2599_v44  ;;  %vm10096_vm11 = vcmp.eq.f32.partialorder %v2957_v63, 8.507059e+37  ;;  %v2972_v11 = vand.u32 2147483647, %v10062_v53 }
 0x4bf   : > { %v7982_v47 = vpop.eup %7981  ;;  %v2949_v50 = vmul.f32 %v10084_v26, %v10044_v31  ;;  %v2974_v18 = vand.u32 2147483648, %v10062_v53  ;;  %v3032_v28 = vand.u32 2147483647, %v10072_v41  ;;  %v3034_v32 = vand.u32 2147483648, %v10072_v41 }
 0x4c0   : > { %v7984_v0 = vpop.eup %7983  ;;  %v2986_v61 = vsel %vm2985_vm10, %v7972_v43, %v2982_v36  ;;  %7991 = vrcp.f32 %v10087_v22  ;;  %v2960_v37 = vor.u32 1.1754944e-38, %v2959_v1  ;;  %vm2968_vm12 = vweird.f32 %v10062_v53  ;;  %3551 = vperm.xlu2 %7913, %v3405_v7  }
 0x4c1   : > { %v7986_v19 = vpop.eup %7985  ;;  %v2991_v33 = vsel %vm10067_vm7, %v2990_v58, %v2986_v61  ;;  %v2950_v52 = vsub.f32 1.0, %v2949_v50  ;;  %vm2954_vm13 = vweird.f32 %v10084_v26  ;;  %vm3028_vm14 = vweird.f32 %v10072_v41  ;;  %v2614_v61 = vpop.xlane.xlu1 %2613 }
 0x4c2   : > { %v10108_v46 = vpop.eup %7987  ;;  %v3290_v60 = vmul.f32 %v8065_v56, %v2991_v33  ;;  %v10113_v62 = vadd.f32 1.0, %v7982_v47  ;;  %v10115_v38 = vadd.f32 1.0, %v7984_v0  ;;  %vm10125_vm15 = vcmp.eq.f32.partialorder %v2972_v11, 8.507059e+37  ;;  %vm2955_vm3 = vmor %vm2953_vm9, %vm2954_vm13 }
 0x4c3   : > { %v10120_v29 = vpop.eup %7989  ;;  %v2951_v20 = vmul.f32 %v10084_v26, %v2950_v52  ;;  %v2964_v21 = vmul.f32 %v10108_v46, %v10062_v53  ;;  %v2975_v10 = vor.u32 1.1754944e-38, %v2974_v18  ;;  %v3002_v6 = vand.u32 2147483647, %v10087_v22  ;;  %v10234_v17 = vpop.xlane.xlu2 %2616 }
 0x4c4   : > { %3322 = vst.msk [vmem:[#allocation3 + $0x78] sm:$0xff] %vm403_vm0, %v3290_v60  ;;  %v3024_v49 = vmul.f32 %v10120_v29, %v10072_v41  ;;  %vm10136_vm1 = vcmp.eq.f32.partialorder %v3032_v28, 8.507059e+37  ;;  %v3035_v43 = vor.u32 1.1754944e-38, %v3034_v32  ;;  %v3004_v14 = vand.u32 2147483648, %v10087_v22  ;;  %7914 = vset.pattern.permute.xlu0 %v8150_v51  ;;  %v8067_v28 = vld [vmem:[%s8255_s12 + $0x58] sm:$0xff] }
 0x4c5   : > { %7993 = vrcp.f32 %v10113_v62  ;;  %v2952_v45 = vadd.f32 %v10084_v26, %v2951_v20  ;;  %v2965_v48 = vsub.f32 1.0, %v2964_v21  ;;  %vm2998_vm2 = vweird.f32 %v10087_v22 }
 0x4c6   : > { %v10144_v55 = vadd.f32 1.0, %v7986_v19  ;;  %v10146_v39 = vpop.eup %7991  ;;  %vm2969_vm4 = vweird.f32 %v10108_v46  ;;  %v3025_v34 = vsub.f32 1.0, %v3024_v49  ;;  %vm3029_vm5 = vweird.f32 %v10120_v29  ;;  %v8069_v49 = vld [vmem:[%s8255_s12 + $0x68] sm:$0xff] }
 0x4c7   : > { %7995 = vrcp.f32 %v10115_v38  ;;  %v2956_v12 = vsel %vm2955_vm3, %v10084_v26, %v2952_v45  ;;  %v2966_v2 = vmul.f32 %v10108_v46, %v2965_v48  ;;  %v2994_v31 = vmul.f32 %v10146_v39, %v10087_v22  ;;  %vm2970_vm8 = vmor %vm2968_vm12, %vm2969_vm4  ;;  %v2611_v45 = vpop.xlane.xlu0 %2610 }
 0x4c8   : > { %vm10164_vm6 = vcmp.eq.f32.partialorder %v3002_v6, 8.507059e+37  ;;  %v3017_v23 = vand.u32 2147483647, %v10113_v62  ;;  %v2961_v30 = vsel %vm10096_vm11, %v2960_v37, %v2956_v12  ;;  %v3026_v25 = vmul.f32 %v10120_v29, %v3025_v34  ;;  %vm3030_vm10 = vmor %vm3028_vm14, %vm3029_vm5  ;;  %v8068_v37 = vld [vmem:[%s8255_s12 + $0x78] sm:$0xff] }
 0x4c9   : > { %v3005_v24 = vor.u32 1.1754944e-38, %v3004_v14  ;;  %v3019_v42 = vand.u32 2147483648, %v10113_v62  ;;  %v3288_v63 = vmul.f32 %v8066_v13, %v2961_v30  ;;  %v2967_v44 = vadd.f32 %v10108_v46, %v2966_v2  ;;  %v2623_v13 = vpop.xlane.xlu1 %2622 }
 0x4ca   : > { %v2995_v54 = vsub.f32 1.0, %v2994_v31  ;;  %vm3013_vm7 = vweird.f32 %v10113_v62  ;;  %v3027_v1 = vadd.f32 %v10120_v29, %v3026_v25  ;;  %vm2999_vm9 = vweird.f32 %v10146_v39  ;;  %v8070_v31 = vld [vmem:[%s8255_s12 + $0x70] sm:$0xff] }
 0x4cb   : > { %v10178_v58 = vpop.eup %7993  ;;  %v3079_v26 = vand.u32 2147483648, %v10115_v38  ;;  %7997 = vrcp.f32 %v10144_v55  ;;  %3320 = vst.msk [vmem:[#allocation3 + $0x68] sm:$0xff] %vm403_vm0, %v3288_v63  ;;  %v2971_v36 = vsel %vm2970_vm8, %v10108_v46, %v2967_v44  ;;  %vm10197_vm11 = vcmp.eq.f32.partialorder %v3017_v23, 8.507059e+37  ;;  %vm3000_vm13 = vmor %vm2998_vm2, %vm2999_vm9  ;;  %v3408_v63 = vld [vmem:[%s13364_s9 + $0xf0] sm:$0xff] }
 0x4cc   : > { %v2996_v53 = vmul.f32 %v10146_v39, %v2995_v54  ;;  %v3009_v47 = vmul.f32 %v10178_v58, %v10113_v62  ;;  %v2976_v11 = vsel %vm10125_vm15, %v2975_v10, %v2971_v36  ;;  %v3031_v41 = vsel %vm3030_vm10, %v10120_v29, %v3027_v1  ;;  %v3410_v62 = vld [vmem:[%s13364_s9 + $0x100] sm:$0xff]  ;;  %3566 = vperm.xlu2 %7913, %v3408_v63  }
 0x4cd   : > { %v10202_v5 = vpop.eup %7995  ;;  %v3020_v18 = vor.u32 1.1754944e-38, %v3019_v42  ;;  %vm3073_vm12 = vweird.f32 %v10115_v38  ;;  %v3077_v0 = vand.u32 2147483647, %v10115_v38  ;;  %v3289_v32 = vmul.f32 %v8067_v28, %v2976_v11  ;;  %3576 = vperm.xlu1 %7912, %v3410_v62  }
 0x4ce   : > { %v3036_v19 = vsel %vm10136_vm1, %v3035_v43, %v3031_v41  ;;  %v2997_v33 = vadd.f32 %v10146_v39, %v2996_v53  ;;  %v3010_v52 = vsub.f32 1.0, %v3009_v47  ;;  %vm3014_vm14 = vweird.f32 %v10178_v58 }
 0x4cf   : > { %v3293_v46 = vmul.f32 %v8068_v37, %v3036_v19  ;;  %v3069_v56 = vmul.f32 %v10202_v5, %v10115_v38  ;;  %v3080_v60 = vor.u32 1.1754944e-38, %v3079_v26  ;;  %3321 = vst.msk [vmem:[#allocation3 + $0x70] sm:$0xff] %vm403_vm0, %v3289_v32  ;;  %vm3074_vm15 = vweird.f32 %v10202_v5  ;;  %vm3015_vm2 = vmor %vm3013_vm7, %vm3014_vm14  ;;  %v2620_v28 = vpop.xlane.xlu0 %2619  ;;  %v3413_v32 = vld [vmem:[%s13364_s9 + $0x118] sm:$0xff] }
 0x4d0   : > { %v3001_v9 = vsel %vm3000_vm13, %v10146_v39, %v2997_v33  ;;  %v3011_v29 = vmul.f32 %v10178_v58, %v3010_v52  ;;  %vm3043_vm1 = vweird.f32 %v10144_v55  ;;  %v7791_v22 = vmul.f32 -1.442695, %v10079_v4  ;;  %vm3075_vm4 = vmor %vm3073_vm12, %vm3074_vm15 }
 0x4d1   : > { %v10227_v20 = vpop.eup %7997  ;;  %3325 = vst.msk [vmem:[#allocation3 + $0x90] sm:$0xff] %vm403_vm0, %v3293_v46  ;;  %v3006_v21 = vsel %vm10164_vm6, %v3005_v24, %v3001_v9  ;;  %v3070_v59 = vsub.f32 1.0, %v3069_v56  ;;  %v3047_v10 = vand.u32 2147483647, %v10144_v55  ;;  %v7795_v6 = vmul.f32 -1.442695, %v10082_v35 }
 0x4d2   : > { %v3291_v8 = vmul.f32 %v8069_v49, %v3006_v21  ;;  %v3012_v43 = vadd.f32 %v10178_v58, %v3011_v29  ;;  %v3039_v4 = vmul.f32 %v10227_v20, %v10144_v55  ;;  %v3049_v14 = vand.u32 2147483648, %v10144_v55  ;;  %v3411_v9 = vld [vmem:[%s13364_s9 + $0x108] sm:$0xff] }
 0x4d3   : > { %v3071_v35 = vmul.f32 %v10202_v5, %v3070_v59  ;;  %vm3044_vm3 = vweird.f32 %v10227_v20  ;;  %7999 = vpow2.f32 %v7791_v22  ;;  %v7793_v48 = vmul.f32 -1.442695, %v10090_v40 }
 0x4d4   : > { %3323 = vst.msk [vmem:[#allocation3 + $0x80] sm:$0xff] %vm403_vm0, %v3291_v8  ;;  %v3016_v39 = vsel %vm3015_vm2, %v10178_v58, %v3012_v43  ;;  %v3040_v34 = vsub.f32 1.0, %v3039_v4  ;;  %8001 = vpow2.f32 %v7795_v6  ;;  %v2658_v7 = vadd.f32 %v9750_v16, %v10169_v27  ;;  %v8071_v58 = vld [vmem:[%s8255_s12 + $0x90] sm:$0xff]  ;;  %vm3045_vm6 = vmor %vm3043_vm1, %vm3044_vm3  ;;  %3581 = vperm.xlu2 %7913, %v3411_v9  }
 0x4d5   : > { %v3021_v12 = vsel %vm10197_vm11, %v3020_v18, %v3016_v39  ;;  %v3072_v2 = vadd.f32 %v10202_v5, %v3071_v35  ;;  %8003 = vpow2.f32 %v7793_v48  ;;  %v2662_v40 = vadd.f32 %v9750_v16, %v2614_v61  ;;  %v10286_v18 = vpop.xlane.xlu2 %2625  ;;  %3591 = vperm.xlu1 %7912, %v3413_v32  }
 0x4d6   : > { %v3292_v15 = vmul.f32 %v8070_v31, %v3021_v12  ;;  %v3041_v23 = vmul.f32 %v10227_v20, %v3040_v34  ;;  %v7794_v27 = vmul.f32 -1.442695, %v2658_v7  ;;  %v2660_v30 = vadd.f32 %v9750_v16, %v10155_v57 }
 0x4d7   : > { %v3076_v25 = vsel %vm3075_vm4, %v10202_v5, %v3072_v2  ;;  %vm3078_vm5 = vcmp.eq.f32.partialorder %v3077_v0, 8.507059e+37  ;;  %v7798_v24 = vmul.f32 -1.442695, %v2662_v40  ;;  %v2661_v42 = vadd.f32 %v9750_v16, %v2611_v45  ;;  %v8072_v0 = vld [vmem:[%s8255_s12 + $0x80] sm:$0xff] }
 0x4d8   : > { %3324 = vst.msk [vmem:[#allocation3 + $0x88] sm:$0xff] %vm403_vm0, %v3292_v15  ;;  %v3081_v38 = vsel %vm3078_vm5, %v3080_v60, %v3076_v25  ;;  %v3042_v44 = vadd.f32 %v10227_v20, %v3041_v23  ;;  %8005 = vpow2.f32 %v7794_v27  ;;  %v7796_v54 = vmul.f32 -1.442695, %v2660_v30  ;;  %v10351_v23 = vpop.xlane.xlu0 %2628 }
 0x4d9   : > { %v8000_v57 = vpop.eup %7999  ;;  %v3296_v1 = vmul.f32 %v8071_v58, %v3081_v38  ;;  %vm3048_vm7 = vcmp.eq.f32.partialorder %v3047_v10, 8.507059e+37  ;;  %v3050_v26 = vor.u32 1.1754944e-38, %v3049_v14  ;;  %8007 = vpow2.f32 %v7798_v24 }
 0x4da   : > { %v8002_v36 = vpop.eup %8001  ;;  %v3046_v53 = vsel %vm3045_vm6, %v10227_v20, %v3042_v44  ;;  %v10280_v47 = vadd.f32 1.0, %v8000_v57  ;;  %8009 = vpow2.f32 %v7796_v54  ;;  %v2665_v50 = vadd.f32 %v9750_v16, %v2623_v13  ;;  %v10363_v13 = vpop.xlane.xlu1 %2631 }
 0x4db   : > { %v8004_v5 = vpop.eup %8003  ;;  %3328 = vst.msk [vmem:[#allocation3 + $0xa8] sm:$0xff] %vm403_vm0, %v3296_v1  ;;  %v3051_v11 = vsel %vm3048_vm7, %v3050_v26, %v3046_v53  ;;  %v10284_v41 = vadd.f32 1.0, %v8002_v36  ;;  %v7797_v55 = vmul.f32 -1.442695, %v2661_v42  ;;  %v2663_v20 = vadd.f32 %v9750_v16, %v10234_v17 }
 0x4dc   : > { %v3294_v61 = vmul.f32 %v8072_v0, %v3051_v11  ;;  %8011 = vrcp.f32 %v10280_v47  ;;  %v10295_v33 = vadd.f32 1.0, %v8004_v5  ;;  %v7801_v52 = vmul.f32 -1.442695, %v2665_v50  ;;  %7916 = vset.pattern.permute.xlu2 %v8150_v51 }
 0x4dd   : > { %8013 = vrcp.f32 %v10284_v41  ;;  %v3062_v46 = vand.u32 2147483647, %v10280_v47  ;;  %v3064_v56 = vand.u32 2147483648, %v10280_v47  ;;  %v3122_v22 = vand.u32 2147483647, %v10284_v41  ;;  %v10331_v35 = vpop.xlane.xlu2 %2634  ;;  %7915 = vset.pattern.permute.xlu1 %v8150_v51 }
 0x4de   : > { %v8006_v19 = vpop.eup %8005  ;;  %3326 = vst.msk [vmem:[#allocation3 + $0x98] sm:$0xff] %vm403_vm0, %v3294_v61  ;;  %8015 = vpow2.f32 %v7797_v55  ;;  %vm3058_vm8 = vweird.f32 %v10280_v47  ;;  %v3124_v21 = vand.u32 2147483648, %v10284_v41  ;;  %v10312_v59 = vadd.f32 %v9750_v16, %v2620_v28 }
 0x4df   : > { %v8008_v37 = vpop.eup %8007  ;;  %v10299_v60 = vadd.f32 1.0, %v8006_v19  ;;  %8017 = vrcp.f32 %v10295_v33  ;;  %vm3118_vm9 = vweird.f32 %v10284_v41  ;;  %vm10325_vm10 = vcmp.eq.f32.partialorder %v3062_v46, 8.507059e+37  ;;  %v8073_v46 = vld [vmem:[%s8255_s12 + $0x88] sm:$0xff] }
 0x4e0   : > { %v8010_v29 = vpop.eup %8009  ;;  %v10317_v6 = vadd.f32 1.0, %v8008_v37  ;;  %v3065_v4 = vor.u32 1.1754944e-38, %v3064_v56  ;;  %v3092_v14 = vand.u32 2147483647, %v10295_v33  ;;  %v3094_v45 = vand.u32 2147483648, %v10295_v33  ;;  %v10417_v43 = vpop.permute.xlu0 %3416 }
 0x4e1   : > { %8019 = vrcp.f32 %v10299_v60  ;;  %v10319_v49 = vadd.f32 1.0, %v8010_v29  ;;  %vm10335_vm11 = vcmp.eq.f32.partialorder %v3122_v22, 8.507059e+37  ;;  %v3107_v34 = vand.u32 2147483647, %v10299_v60 }
 0x4e2   : > { %v10314_v10 = vpop.eup %8011  ;;  %8021 = vpow2.f32 %v7801_v52  ;;  %v3109_v7 = vand.u32 2147483648, %v10299_v60  ;;  %v3125_v2 = vor.u32 1.1754944e-38, %v3124_v21  ;;  %vm3088_vm12 = vweird.f32 %v10295_v33 }
 0x4e3   : > { %v10321_v17 = vpop.eup %8013  ;;  %v3054_v8 = vmul.f32 %v10314_v10, %v10280_v47  ;;  %8023 = vrcp.f32 %v10317_v6  ;;  %v10343_v40 = vmul.f32 -1.442695, %v2663_v20  ;;  %vm3059_vm13 = vweird.f32 %v10314_v10  ;;  %v8074_v20 = vld [vmem:[%s8255_s12 + $0xa8] sm:$0xff] }
 0x4e4   : > { %v3114_v48 = vmul.f32 %v10321_v17, %v10284_v41  ;;  %v8016_v62 = vpop.eup %8015  ;;  %vm3103_vm14 = vweird.f32 %v10299_v60  ;;  %8025 = vrcp.f32 %v10319_v49  ;;  %vm3119_vm15 = vweird.f32 %v10321_v17  ;;  %vm3060_vm4 = vmor %vm3058_vm8, %vm3059_vm13 }
 0x4e5   : > { %v3055_v12 = vsub.f32 1.0, %v3054_v8  ;;  %v10346_v31 = vpop.eup %8017  ;;  %vm10359_vm1 = vcmp.eq.f32.partialorder %v3092_v14, 8.507059e+37  ;;  %v3095_v42 = vor.u32 1.1754944e-38, %v3094_v45  ;;  %vm10368_vm2 = vcmp.eq.f32.partialorder %v3107_v34, 8.507059e+37  ;;  %vm3120_vm7 = vmor %vm3118_vm9, %vm3119_vm15  ;;  %v10394_v28 = vpop.permute.xlu2 %3426  ;;  %v8075_v34 = vld [vmem:[%s8255_s12 + $0x98] sm:$0xff] }
 0x4e6   : > { %v3115_v15 = vsub.f32 1.0, %v3114_v48  ;;  %v3084_v25 = vmul.f32 %v10346_v31, %v10295_v33  ;;  %v3110_v57 = vor.u32 1.1754944e-38, %v3109_v7  ;;  %v3167_v58 = vand.u32 2147483647, %v10317_v6  ;;  %v10426_v14 = vpop.permute.xlu1 %3421 }
 0x4e7   : > { %v10353_v27 = vpop.eup %8019  ;;  %v3056_v30 = vmul.f32 %v10314_v10, %v3055_v12  ;;  %vm3163_vm3 = vweird.f32 %v10317_v6  ;;  %v3169_v36 = vand.u32 2147483648, %v10317_v6  ;;  %v3137_v53 = vand.u32 2147483647, %v10319_v49 }
 0x4e8   : > { %v8022_v63 = vpop.eup %8021  ;;  %v3116_v38 = vmul.f32 %v10321_v17, %v3115_v15  ;;  %v3099_v44 = vmul.f32 %v10353_v27, %v10299_v60  ;;  %v3085_v26 = vsub.f32 1.0, %v3084_v25  ;;  %vm3089_vm5 = vweird.f32 %v10346_v31 }
 0x4e9   : > { %v3057_v1 = vadd.f32 %v10314_v10, %v3056_v30  ;;  %v8024_v50 = vpop.eup %8023  ;;  %vm3104_vm6 = vweird.f32 %v10353_v27  ;;  %v10392_v61 = vadd.f32 1.0, %v8016_v62  ;;  %v3139_v41 = vand.u32 2147483648, %v10319_v49  ;;  %vm3090_vm8 = vmor %vm3088_vm12, %vm3089_vm5  ;;  %v3345_v30 = vld [vmem:[#allocation3 + $0x1f] sm:$0xff] }
 0x4ea   : > { %v3117_v5 = vadd.f32 %v10321_v17, %v3116_v38  ;;  %v3100_v11 = vsub.f32 1.0, %v3099_v44  ;;  %v3086_v0 = vmul.f32 %v10346_v31, %v3085_v26  ;;  %v3159_v47 = vmul.f32 %v8024_v50, %v10317_v6  ;;  %v10396_v32 = vpop.eup %8025  ;;  %vm3105_vm9 = vmor %vm3103_vm14, %vm3104_vm6  ;;  %v8077_v44 = vld [vmem:[%s8255_s12 + $0xc0] sm:$0xff] }
 0x4eb   : > { %v3061_v55 = vsel %vm3060_vm4, %v10314_v10, %v3057_v1  ;;  %v10415_v8 = vadd.f32 1.0, %v8022_v63  ;;  %8027 = vrcp.f32 %v10392_v61  ;;  %v3170_v12 = vor.u32 1.1754944e-38, %v3169_v36 }
 0x4ec   : > { %v3066_v19 = vsel %vm10325_vm10, %v3065_v4, %v3061_v55  ;;  %v3121_v52 = vsel %vm3120_vm7, %v10321_v17, %v3117_v5  ;;  %v3101_v37 = vmul.f32 %v10353_v27, %v3100_v11  ;;  %v3087_v29 = vadd.f32 %v10346_v31, %v3086_v0  ;;  %v8078_v55 = vld [vmem:[%s8255_s12 + $0xb0] sm:$0xff] }
 0x4ed   : > { %v3295_v56 = vmul.f32 %v8073_v46, %v3066_v19  ;;  %v3126_v9 = vsel %vm10335_vm11, %v3125_v2, %v3121_v52  ;;  %v3160_v22 = vsub.f32 1.0, %v3159_v47  ;;  %v3129_v17 = vmul.f32 %v10396_v32, %v10319_v49  ;;  %v8076_v2 = vld [vmem:[%s8255_s12 + $0xa0] sm:$0xff]  ;;  %v3437_v24 = vpop.permute.xlu2 %3436  ;;  %v3342_v52 = vld [vmem:[#allocation3 + $0x7] sm:$0xff] }
 0x4ee   : > { %v3299_v21 = vmul.f32 %v8074_v20, %v3126_v9  ;;  %v3102_v10 = vadd.f32 %v10353_v27, %v3101_v37  ;;  %v3091_v4 = vsel %vm3090_vm8, %v10346_v31, %v3087_v29  ;;  %vm3164_vm10 = vweird.f32 %v8024_v50  ;;  %v10474_v5 = vpop.permute.xlu1 %3431  ;;  %v3343_v46 = vld [vmem:[#allocation3 + $0xf] sm:$0xff] }
 0x4ef   : > { %3327 = vst.msk [vmem:[#allocation3 + $0xa0] sm:$0xff] %vm403_vm0, %v3295_v56  ;;  %v3161_v33 = vmul.f32 %v8024_v50, %v3160_v22  ;;  %v3096_v45 = vsel %vm10359_vm1, %v3095_v42, %v3091_v4  ;;  %v3130_v39 = vsub.f32 1.0, %v3129_v17  ;;  %vm3133_vm11 = vweird.f32 %v10319_v49  ;;  %vm3165_vm12 = vmor %vm3163_vm3, %vm3164_vm10 }
 0x4f0   : > { %3331 = vst.msk [vmem:[#allocation3 + $0xc0] sm:$0xff] %vm403_vm0, %v3299_v21  ;;  %v3106_v48 = vsel %vm3105_vm9, %v10353_v27, %v3102_v10  ;;  %v3297_v60 = vmul.f32 %v8075_v34, %v3096_v45  ;;  %vm3134_vm13 = vweird.f32 %v10396_v32  ;;  %8029 = vrcp.f32 %v10415_v8  ;;  %v3346_v21 = vld [vmem:[#allocation3 + $0x27] sm:$0xff] }
 0x4f1   : > { %v3111_v7 = vsel %vm10368_vm2, %v3110_v57, %v3106_v48  ;;  %v3162_v62 = vadd.f32 %v8024_v50, %v3161_v33  ;;  %v3131_v15 = vmul.f32 %v10396_v32, %v3130_v39  ;;  %vm3168_vm14 = vcmp.eq.f32.partialorder %v3167_v58, 8.507059e+37  ;;  %v10453_v38 = vpop.eup %8027  ;;  %vm3135_vm2 = vmor %vm3133_vm11, %vm3134_vm13  ;;  %v3349_v39 = vld [vmem:[#allocation3 + $0x3f] sm:$0xff] }
 0x4f2   : > { %v3298_v31 = vmul.f32 %v8076_v2, %v3111_v7  ;;  %3329 = vst.msk [vmem:[#allocation3 + $0xb0] sm:$0xff] %vm403_vm0, %v3297_v60  ;;  %vm10444_vm15 = vcmp.eq.f32.partialorder %v3137_v53, 8.507059e+37  ;;  %v3140_v25 = vor.u32 1.1754944e-38, %v3139_v41  ;;  %vm3148_vm1 = vweird.f32 %v10392_v61  ;;  %v3344_v41 = vld [vmem:[#allocation3 + $0x17] sm:$0xff] }
 0x4f3   : > { %v3166_v27 = vsel %vm3165_vm12, %v8024_v50, %v3162_v62  ;;  %v3132_v42 = vadd.f32 %v10396_v32, %v3131_v15  ;;  %v3152_v63 = vand.u32 2147483647, %v10392_v61  ;;  %8031 = vpow2.f32 %v10343_v40  ;;  %v3452_v50 = vpop.permute.xlu0 %3451 }
 0x4f4   : > { %3330 = vst.msk [vmem:[#allocation3 + $0xb8] sm:$0xff] %vm403_vm0, %v3298_v31  ;;  %v3171_v6 = vsel %vm3168_vm14, %v3170_v12, %v3166_v27  ;;  %v3154_v57 = vand.u32 2147483648, %v10392_v61  ;;  %v7800_v58 = vmul.f32 -1.442695, %v10312_v59  ;;  %v2668_v1 = vadd.f32 %v9750_v16, %v10363_v13  ;;  %v8079_v31 = vld [vmem:[%s8255_s12 + $0xb8] sm:$0xff] }
 0x4f5   : > { %v3302_v54 = vmul.f32 %v8077_v44, %v3171_v6  ;;  %v3136_v26 = vsel %vm3135_vm2, %v10396_v32, %v3132_v42  ;;  %v3144_v40 = vmul.f32 %v10453_v38, %v10392_v61  ;;  %v3212_v36 = vand.u32 2147483647, %v10415_v8  ;;  %v3447_v10 = vpop.permute.xlu2 %3446 }
 0x4f6   : > { %v3214_v53 = vand.u32 2147483648, %v10415_v8  ;;  %v3141_v49 = vsel %vm10444_vm15, %v3140_v25, %v3136_v26  ;;  %8033 = vpow2.f32 %v7800_v58  ;;  %v7804_v59 = vmul.f32 -1.442695, %v2668_v1  ;;  %v10476_v11 = vpop.eup %8029  ;;  %v10526_v2 = vpop.permute.xlu1 %3441  ;;  %v8080_v26 = vld [vmem:[%s8255_s12 + $0xd8] sm:$0xff] }
 0x4f7   : > { %3334 = vst.msk [vmem:[#allocation3 + $0xd8] sm:$0xff] %vm403_vm0, %v3302_v54  ;;  %v2666_v13 = vadd.f32 %v9750_v16, %v10286_v18  ;;  %v3300_v0 = vmul.f32 %v8078_v55, %v3141_v49  ;;  %v3145_v47 = vsub.f32 1.0, %v3144_v40  ;;  %v2667_v32 = vadd.f32 %v9750_v16, %v10351_v23 }
 0x4f8   : > { %v2669_v19 = vadd.f32 %v9750_v16, %v10331_v35  ;;  %vm3149_vm3 = vweird.f32 %v10453_v38  ;;  %v3204_v37 = vmul.f32 %v10476_v11, %v10415_v8  ;;  %8035 = vpow2.f32 %v7804_v59 }
 0x4f9   : > { %v7802_v18 = vmul.f32 -1.442695, %v2666_v13  ;;  %v8032_v56 = vpop.eup %8031  ;;  %3332 = vst.msk [vmem:[#allocation3 + $0xc8] sm:$0xff] %vm403_vm0, %v3300_v0  ;;  %v3146_v9 = vmul.f32 %v10453_v38, %v3145_v47  ;;  %v7803_v29 = vmul.f32 -1.442695, %v2667_v32  ;;  %v3596_v22 = vmul.f32 %v10394_v28, %v3344_v41  ;;  %vm10502_vm4 = vmor %vm3148_vm1, %vm3149_vm3 }
 0x4fa   : > { %v7805_v23 = vmul.f32 -1.442695, %v2669_v19  ;;  %v3205_v16 = vsub.f32 1.0, %v3204_v37  ;;  %v10489_v35 = vadd.f32 1.0, %v8032_v56  ;;  %v3594_v20 = vmul.f32 %v10417_v43, %v3342_v52 }
 0x4fb   : > { %8037 = vpow2.f32 %v7802_v18  ;;  %v3147_v17 = vadd.f32 %v10453_v38, %v3146_v9  ;;  %3632 = vst.msk [vmem:[#allocation4 + $0x20] sm:$0xff] %vm403_vm0, %v3596_v22  ;;  %3694 = vrot.lane.b32.xlu2 %v3596_v22, %s8154_s18  ;;  %v3595_v4 = vmul.f32 %v10426_v14, %v3343_v46  ;;  %v10496_v33 = vmul.f32 %v3437_v24, %v3346_v21  ;;  %v10519_v34 = vpop.permute.xlu0 %3466 }
 0x4fc   : > { %8039 = vpow2.f32 %v7803_v29  ;;  %v8034_v28 = vpop.eup %8033  ;;  %v3155_v45 = vor.u32 1.1754944e-38, %v3154_v57  ;;  %v3206_v48 = vmul.f32 %v10476_v11, %v3205_v16  ;;  %vm3209_vm5 = vweird.f32 %v10476_v11  ;;  %3630 = vst.msk [vmem:[#allocation4] sm:$0xff] %vm403_vm0, %v3594_v20  ;;  %v3352_v16 = vld [vmem:[#allocation3 + $0x57] sm:$0xff] }
 0x4fd   : > { %8041 = vrcp.f32 %v10489_v35  ;;  %v3151_v14 = vsel %vm10502_vm4, %v10453_v38, %v3147_v17  ;;  %vm3153_vm6 = vcmp.eq.f32.partialorder %v3152_v63, 8.507059e+37  ;;  %vm3208_vm7 = vweird.f32 %v10415_v8  ;;  %3631 = vst.msk [vmem:[#allocation4 + $0x10] sm:$0xff] %vm403_vm0, %v3595_v4  ;;  %3698 = vrot.lane.b32.xlu1 %v10496_v33, %s8154_s18  ;;  %v3348_v38 = vld [vmem:[#allocation3 + $0x37] sm:$0xff] }
 0x4fe   : > { %v10514_v61 = vadd.f32 1.0, %v8034_v28  ;;  %v8036_v60 = vpop.eup %8035  ;;  %v3156_v7 = vsel %vm3153_vm6, %v3155_v45, %v3151_v14  ;;  %v3207_v62 = vadd.f32 %v10476_v11, %v3206_v48  ;;  %8043 = vpow2.f32 %v7805_v23  ;;  %3634 = vst.msk [vmem:[#allocation4 + $0x40] sm:$0xff] %vm403_vm0, %v10496_v33  ;;  %vm3210_vm8 = vmor %vm3208_vm7, %vm3209_vm5  ;;  %v10583_v41 = vpop.permute.xlu1 %3456 }
 0x4ff   : > { %v10524_v12 = vmul.f32 %v3452_v50, %v3349_v39  ;;  %v3301_v15 = vmul.f32 %v8079_v31, %v3156_v7  ;;  %vm3213_vm9 = vcmp.eq.f32.partialorder %v3212_v36, 8.507059e+37  ;;  %v3215_v27 = vor.u32 1.1754944e-38, %v3214_v53  ;;  %v10555_v50 = vpop.permute.xlu2 %3461 }
 0x500   : > { %8045 = vrcp.f32 %v10514_v61  ;;  %v3211_v24 = vsel %vm3210_vm8, %v10476_v11, %v3207_v62  ;;  %v3182_v6 = vand.u32 2147483647, %v10489_v35  ;;  %v3184_v42 = vand.u32 2147483648, %v10489_v35 }
 0x501   : > { %v8038_v25 = vpop.eup %8037  ;;  %v10541_v63 = vadd.f32 1.0, %v8036_v60  ;;  %3637 = vst.msk [vmem:[#allocation4 + $0x70] sm:$0xff] %vm403_vm0, %v10524_v12  ;;  %v3216_v8 = vsel %vm3213_vm9, %v3215_v27, %v3211_v24  ;;  %v3597_v57 = vmul.f32 %v10474_v5, %v3345_v30  ;;  %v10549_v58 = vmul.f32 %v3447_v10, %v3348_v38 }
 0x502   : > { %v8040_v44 = vpop.eup %8039  ;;  %3333 = vst.msk [vmem:[#allocation3 + $0xd0] sm:$0xff] %vm403_vm0, %v3301_v15  ;;  %v10546_v54 = vadd.f32 1.0, %v8038_v25  ;;  %v3305_v40 = vmul.f32 %v8080_v26, %v3216_v8  ;;  %v3197_v36 = vand.u32 2147483647, %v10514_v61  ;;  %v3199_v53 = vand.u32 2147483648, %v10514_v61  ;;  %v8081_v15 = vld [vmem:[%s8255_s12 + $0xc8] sm:$0xff] }
 0x503   : > { %v8042_v1 = vpop.eup %8041  ;;  %8047 = vrcp.f32 %v10541_v63  ;;  %3633 = vst.msk [vmem:[#allocation4 + $0x30] sm:$0xff] %vm403_vm0, %v3597_v57  ;;  %3696 = vrot.lane.b32.xlu0 %v3597_v57, %s8154_s18  ;;  %vm3178_vm10 = vweird.f32 %v10489_v35  ;;  %vm10562_vm11 = vcmp.eq.f32.partialorder %v3182_v6, 8.507059e+37  ;;  %v3185_v5 = vor.u32 1.1754944e-38, %v3184_v42  ;;  %v10575_v32 = vpop.permute.xlu0 %3481  ;;  %v3351_v26 = vld [vmem:[#allocation3 + $0x4f] sm:$0xff] }
 0x504   : > { %v3174_v49 = vmul.f32 %v8042_v1, %v10489_v35  ;;  %v8044_v59 = vpop.eup %8043  ;;  %3337 = vst.msk [vmem:[#allocation3 + $0xf0] sm:$0xff] %vm403_vm0, %v3305_v40  ;;  %8049 = vrcp.f32 %v10546_v54  ;;  %vm3193_vm12 = vweird.f32 %v10514_v61  ;;  %v3257_v0 = vand.u32 2147483647, %v10541_v63 }
 0x505   : > { %v10569_v47 = vadd.f32 1.0, %v8040_v44  ;;  %3636 = vst.msk [vmem:[#allocation4 + $0x60] sm:$0xff] %vm403_vm0, %v10549_v58  ;;  %3704 = vrot.lane.b32.xlu1 %v10524_v12, %s8154_s18  ;;  %vm10578_vm13 = vcmp.eq.f32.partialorder %v3197_v36, 8.507059e+37  ;;  %v3200_v37 = vor.u32 1.1754944e-38, %v3199_v53  ;;  %v3259_v18 = vand.u32 2147483648, %v10541_v63  ;;  %v8082_v36 = vld [vmem:[%s8255_s12 + $0xd0] sm:$0xff] }
 0x506   : > { %v8046_v11 = vpop.eup %8045  ;;  %v3175_v55 = vsub.f32 1.0, %v3174_v49  ;;  %vm3179_vm14 = vweird.f32 %v8042_v1  ;;  %v3227_v56 = vand.u32 2147483647, %v10546_v54  ;;  %vm3253_vm15 = vweird.f32 %v10541_v63  ;;  %v10640_v38 = vpop.permute.xlu1 %3471 }
 0x507   : > { %v3189_v19 = vmul.f32 %v8046_v11, %v10514_v61  ;;  %8051 = vrcp.f32 %v10569_v47  ;;  %v3229_v23 = vand.u32 2147483648, %v10546_v54  ;;  %v10591_v22 = vadd.f32 1.0, %v8044_v59  ;;  %vm3180_vm3 = vmor %vm3178_vm10, %vm3179_vm14  ;;  %v10609_v45 = vpop.permute.xlu2 %3476 }
 0x508   : > { %v3176_v46 = vmul.f32 %v8042_v1, %v3175_v55  ;;  %vm10595_vm1 = vcmp.eq.f32.partialorder %v3257_v0, 8.507059e+37  ;;  %vm3223_vm2 = vweird.f32 %v10546_v54  ;;  %v10601_v17 = vmul.f32 %v10519_v34, %v3352_v16  ;;  %v3353_v34 = vld [vmem:[#allocation3 + $0x5f] sm:$0xff] }
 0x509   : > { %v10587_v9 = vpop.eup %8047  ;;  %v3190_v29 = vsub.f32 1.0, %v3189_v19  ;;  %vm3194_vm4 = vweird.f32 %v8046_v11  ;;  %v3260_v43 = vor.u32 1.1754944e-38, %v3259_v18  ;;  %8053 = vrcp.f32 %v10591_v22  ;;  %v3355_v19 = vld [vmem:[#allocation3 + $0x6f] sm:$0xff] }
 0x50a   : > { %v3177_v20 = vadd.f32 %v8042_v1, %v3176_v46  ;;  %v3249_v21 = vmul.f32 %v10587_v9, %v10541_v63  ;;  %v10603_v4 = vpop.eup %8049  ;;  %vm10613_vm5 = vcmp.eq.f32.partialorder %v3227_v56, 8.507059e+37  ;;  %3640 = vst.msk [vmem:[#allocation4 + $0xa0] sm:$0xff] %vm403_vm0, %v10601_v17  ;;  %v3230_v7 = vor.u32 1.1754944e-38, %v3229_v23  ;;  %vm3195_vm6 = vmor %vm3193_vm12, %vm3194_vm4 }
 0x50b   : > { %v3191_v28 = vmul.f32 %v8046_v11, %v3190_v29  ;;  %v3219_v39 = vmul.f32 %v10603_v4, %v10546_v54  ;;  %3702 = vrot.lane.b32.xlu0 %v10549_v58, %s8154_s18  ;;  %v3244_v62 = vand.u32 2147483648, %v10569_v47  ;;  %vm3254_vm7 = vweird.f32 %v10587_v9  ;;  %v10634_v24 = vpop.permute.xlu0 %3496 }
 0x50c   : > { %v3181_v48 = vsel %vm3180_vm3, %v8042_v1, %v3177_v20  ;;  %v3250_v14 = vsub.f32 1.0, %v3249_v21  ;;  %vm3238_vm8 = vweird.f32 %v10569_v47  ;;  %v3242_v61 = vand.u32 2147483647, %v10569_v47  ;;  %v3347_v1 = vld [vmem:[#allocation3 + $0x2f] sm:$0xff]  ;;  %vm3255_vm10 = vmor %vm3253_vm15, %vm3254_vm7  ;;  %v3354_v20 = vld [vmem:[#allocation3 + $0x67] sm:$0xff] }
 0x50d   : > { %v3186_v35 = vsel %vm10562_vm11, %v3185_v5, %v3181_v48  ;;  %v3192_v60 = vadd.f32 %v8046_v11, %v3191_v28  ;;  %v10624_v31 = vpop.eup %8051  ;;  %v3220_v25 = vsub.f32 1.0, %v3219_v39  ;;  %3710 = vrot.lane.b32.xlu1 %v10601_v17, %s8154_s18  ;;  %vm3224_vm9 = vweird.f32 %v10603_v4  ;;  %v8084_v21 = vld [vmem:[%s8255_s12 + $0xe0] sm:$0xff] }
 0x50e   : > { %v3303_v27 = vmul.f32 %v8081_v15, %v3186_v35  ;;  %v3251_v30 = vmul.f32 %v10587_v9, %v3250_v14  ;;  %v3234_v42 = vmul.f32 %v10624_v31, %v10569_v47  ;;  %v10656_v59 = vmul.f32 %v10526_v2, %v3347_v1  ;;  %vm3225_vm11 = vmor %vm3223_vm2, %vm3224_vm9  ;;  %v3358_v47 = vld [vmem:[#allocation3 + $0x87] sm:$0xff]  ;;  %v3487_v48 = vpop.permute.xlu1 %3486  ;;  %v8085_v35 = vld [vmem:[%s8255_s12 + $0xe8] sm:$0xff] }
 0x50f   : > { %v3196_v6 = vsel %vm3195_vm6, %v8046_v11, %v3192_v60  ;;  %v3221_v57 = vmul.f32 %v10603_v4, %v3220_v25  ;;  %v10648_v40 = vpop.eup %8053  ;;  %v10659_v13 = vmul.f32 %v10555_v50, %v3351_v26  ;;  %v3245_v55 = vor.u32 1.1754944e-38, %v3244_v62  ;;  %v3492_v52 = vpop.permute.xlu2 %3491 }
 0x510   : > { %3335 = vst.msk [vmem:[#allocation3 + $0xe0] sm:$0xff] %vm403_vm0, %v3303_v27  ;;  %v3201_v44 = vsel %vm10578_vm13, %v3200_v37, %v3196_v6  ;;  %v3252_v8 = vadd.f32 %v10587_v9, %v3251_v30  ;;  %v3235_v49 = vsub.f32 1.0, %v3234_v42  ;;  %v3264_v0 = vmul.f32 %v10648_v40, %v10591_v22  ;;  %3700 = vrot.lane.b32.xlu2 %v10656_v59, %s8154_s18  ;;  %v8083_v37 = vld [vmem:[%s8255_s12 + $0xf0] sm:$0xff] }
 0x511   : > { %v3304_v53 = vmul.f32 %v8082_v36, %v3201_v44  ;;  %v3222_v11 = vadd.f32 %v10603_v4, %v3221_v57  ;;  %vm3239_vm12 = vweird.f32 %v10624_v31  ;;  %v10677_v50 = vmul.f32 %v10575_v32, %v3355_v19  ;;  %3635 = vst.msk [vmem:[#allocation4 + $0x50] sm:$0xff] %vm403_vm0, %v10656_v59  ;;  %v3361_v30 = vld [vmem:[#allocation3 + $0x9f] sm:$0xff]  ;;  %v3360_v44 = vld [vmem:[#allocation3 + $0x97] sm:$0xff] }
 0x512   : > { %v3256_v5 = vsel %vm3255_vm10, %v10587_v9, %v3252_v8  ;;  %v3236_v2 = vmul.f32 %v10624_v31, %v3235_v49  ;;  %v3265_v56 = vsub.f32 1.0, %v3264_v0  ;;  %v3272_v54 = vand.u32 2147483647, %v10591_v22  ;;  %v3350_v9 = vld [vmem:[#allocation3 + $0x47] sm:$0xff]  ;;  %3639 = vst.msk [vmem:[#allocation4 + $0x90] sm:$0xff] %vm403_vm0, %v10659_v13  ;;  %vm3240_vm13 = vmor %vm3238_vm8, %vm3239_vm12  ;;  %v3364_v57 = vld [vmem:[#allocation3 + $0xb7] sm:$0xff] }
 0x513   : > { %3336 = vst.msk [vmem:[#allocation3 + $0xe8] sm:$0xff] %vm403_vm0, %v3304_v53  ;;  %v3261_v63 = vsel %vm10595_vm1, %v3260_v43, %v3256_v5  ;;  %v3226_v46 = vsel %vm3225_vm11, %v10603_v4, %v3222_v11  ;;  %3708 = vrot.lane.b32.xlu0 %v10659_v13, %s8154_s18  ;;  %v3274_v23 = vand.u32 2147483648, %v10591_v22  ;;  %v10693_v16 = vmul.f32 %v10583_v41, %v3350_v9  ;;  %v3512_v41 = vpop.permute.xlu0 %3511  ;;  %v3363_v5 = vld [vmem:[#allocation3 + $0xaf] sm:$0xff] }
 0x514   : > { %v3308_v18 = vmul.f32 %v8083_v37, %v3261_v63  ;;  %v3231_v32 = vsel %vm10613_vm5, %v3230_v7, %v3226_v46  ;;  %v3237_v29 = vadd.f32 %v10624_v31, %v3236_v2  ;;  %v3266_v4 = vmul.f32 %v10648_v40, %v3265_v56  ;;  %3643 = vst.msk [vmem:[#allocation4 + $0xd0] sm:$0xff] %vm403_vm0, %v10677_v50  ;;  %v3362_v63 = vld [vmem:[#allocation3 + $0xa7] sm:$0xff] }
 0x515   : > { %v3306_v10 = vmul.f32 %v8084_v21, %v3231_v32  ;;  %vm3269_vm14 = vweird.f32 %v10648_v40  ;;  %v10704_v28 = vmul.f32 %v10609_v45, %v3354_v20  ;;  %3716 = vrot.lane.b32.xlu1 %v10677_v50, %s8154_s18  ;;  %vm3243_vm15 = vcmp.eq.f32.partialorder %v3242_v61, 8.507059e+37  ;;  %3638 = vst.msk [vmem:[#allocation4 + $0x80] sm:$0xff] %vm403_vm0, %v10693_v16  ;;  %v3356_v61 = vld [vmem:[#allocation3 + $0x77] sm:$0xff]  ;;  %v3365_v32 = vld [vmem:[#allocation3 + $0xbf] sm:$0xff] }
 0x516   : > { %3340 = vst.msk [vmem:[#allocation3 + $0x108] sm:$0xff] %vm403_vm0, %v3308_v18  ;;  %v3241_v43 = vsel %vm3240_vm13, %v10624_v31, %v3237_v29  ;;  %v3267_v39 = vadd.f32 %v10648_v40, %v3266_v4  ;;  %vm3268_vm1 = vweird.f32 %v10591_v22  ;;  %v10715_v45 = vmul.f32 %v10634_v24, %v3358_v47  ;;  %v3357_v22 = vld [vmem:[#allocation3 + $0x7f] sm:$0xff]  ;;  %v8086_v24 = vld [vmem:[%s8255_s12 + $0xf8] sm:$0xff]  ;;  %v3502_v36 = vpop.permute.xlu1 %3501  ;;  %v3368_v47 = vld [vmem:[#allocation3 + $0xd7] sm:$0xff] }
 0x517   : > { %3338 = vst.msk [vmem:[#allocation3 + $0xf8] sm:$0xff] %vm403_vm0, %v3306_v10  ;;  %v3246_v14 = vsel %vm3243_vm15, %v3245_v55, %v3241_v43  ;;  %vm3270_vm2 = vmor %vm3268_vm1, %vm3269_vm14  ;;  %v3275_v7 = vor.u32 1.1754944e-38, %v3274_v23  ;;  %v10723_v62 = vmul.f32 %v10640_v38, %v3353_v34  ;;  %vm3273_vm3 = vcmp.eq.f32.partialorder %v3272_v54, 8.507059e+37  ;;  %v3507_v25 = vpop.permute.xlu2 %3506  ;;  %v3367_v55 = vld [vmem:[#allocation3 + $0xcf] sm:$0xff]  ;;  %v3366_v18 = vld [vmem:[#allocation3 + $0xc7] sm:$0xff] }
 0x518   : > { %v3307_v60 = vmul.f32 %v8085_v35, %v3246_v14  ;;  %v3271_v31 = vsel %vm3270_vm2, %v10648_v40, %v3267_v39  ;;  %3642 = vst.msk [vmem:[#allocation4 + $0xc0] sm:$0xff] %vm403_vm0, %v10704_v28  ;;  %3706 = vrot.lane.b32.xlu2 %v10693_v16, %s8154_s18  ;;  %v10731_v27 = vmul.f32 %v3492_v52, %v3357_v22  ;;  %v3359_v40 = vld [vmem:[#allocation3 + $0x8f] sm:$0xff]  ;;  %v3369_v21 = vld [vmem:[#allocation3 + $0xdf] sm:$0xff]  ;;  %vm3790_vm4 = vcmask 523648  }
 0x519   : > { %v3276_v15 = vsel %vm3273_vm3, %v3275_v7, %v3271_v31  ;;  %3646 = vst.msk [vmem:[#allocation4 + $0x100] sm:$0xff] %vm403_vm0, %v10715_v45  ;;  %v10738_v42 = vmul.f32 %v3512_v41, %v3361_v30  ;;  %v10742_v38 = vmul.f32 %v3487_v48, %v3356_v61  ;;  %v10747_v8 = vmul.f32 %v3507_v25, %v3360_v44 }
 0x51a   : > { %3339 = vst.msk [vmem:[#allocation3 + $0x100] sm:$0xff] %vm403_vm0, %v3307_v60  ;;  %v3309_v6 = vmul.f32 %v8086_v24, %v3276_v15  ;;  %v10755_v53 = vmul.f32 %v3502_v36, %v3359_v40  ;;  %v3370_v56 = vld [vmem:[#allocation3 + $0xe7] sm:$0xff]  ;;  %v3371_v60 = vld [vmem:[#allocation3 + $0xef] sm:$0xff]  ;;  %vm3921_vm5 = vcmask 917248   ;;  %vm4118_vm6 = vcmask 261248  }
 0x51b   : > { %3714 = vrot.lane.b32.xlu0 %v10704_v28, %s8154_s18  ;;  %3641 = vst.msk [vmem:[#allocation4 + $0xb0] sm:$0xff] %vm403_vm0, %v10723_v62  ;;  %v3527_v1 = vpop.permute.xlu0 %3526  ;;  %vm4249_vm7 = vcmask 654848   ;;  %vm4380_vm8 = vcmask 1048448   ;;  %vm4829_vm9 = vcmask 392448   ;;  %vm4960_vm10 = vcmask 786048  }
 0x51c   : > { %3341 = vst.msk [vmem:[#allocation3 + $0x110] sm:$0xff] %vm403_vm0, %v3309_v6  ;;  %v10751_v26 = vmul.f32 %v3527_v1, %v3364_v57 }
 0x51d   : > { %3722 = vrot.lane.b32.xlu1 %v10715_v45, %s8154_s18  ;;  %3645 = vst.msk [vmem:[#allocation4 + $0xf0] sm:$0xff] %vm403_vm0, %v10731_v27 }
 0x51e   : > { %3649 = vst.msk [vmem:[#allocation4 + $0x130] sm:$0xff] %vm403_vm0, %v10738_v42  ;;  %v3517_v2 = vpop.permute.xlu1 %3516  ;;  %v3372_v34 = vld [vmem:[#allocation3 + $0xf7] sm:$0xff] }
 0x51f   : > { %3644 = vst.msk [vmem:[#allocation4 + $0xe0] sm:$0xff] %vm403_vm0, %v10742_v38  ;;  %v3522_v49 = vpop.permute.xlu2 %3521  ;;  %v10777_v52 = vmul.f32 %v3517_v2, %v3362_v63  ;;  %v3954_v63 = vld [vmem:[#allocation3 + $0x8] sm:$0xff] }
 0x520   : > { %3648 = vst.msk [vmem:[#allocation4 + $0x120] sm:$0xff] %vm403_vm0, %v10747_v8  ;;  %3712 = vrot.lane.b32.xlu2 %v10723_v62, %s8154_s18  ;;  %v10769_v11 = vmul.f32 %v3522_v49, %v3363_v5 }
 0x521   : > { %3652 = vst.msk [vmem:[#allocation4 + $0x160] sm:$0xff] %vm403_vm0, %v10751_v26  ;;  %v3373_v4 = vld [vmem:[#allocation3 + $0xff] sm:$0xff]  ;;  %v3374_v24 = vld [vmem:[#allocation3 + $0x107] sm:$0xff] }
 0x522   : > { %3647 = vst.msk [vmem:[#allocation4 + $0x110] sm:$0xff] %vm403_vm0, %v10755_v53 }
 0x523   : > { %3720 = vrot.lane.b32.xlu0 %v10731_v27, %s8154_s18  ;;  %3651 = vst.msk [vmem:[#allocation4 + $0x150] sm:$0xff] %vm403_vm0, %v10769_v11  ;;  %v3542_v0 = vpop.permute.xlu0 %3541  ;;  %v3375_v15 = vld [vmem:[#allocation3 + $0x10f] sm:$0xff]  ;;  %v3376_v40 = vld [vmem:[#allocation3 + $0x117] sm:$0xff] }
 0x524   : > { %v10775_v19 = vmul.f32 %v3542_v0, %v3367_v55  ;;  %3650 = vst.msk [vmem:[#allocation4 + $0x140] sm:$0xff] %vm403_vm0, %v10777_v52 }
 0x525   : > { %3728 = vrot.lane.b32.xlu1 %v10738_v42, %s8154_s18 }
 0x526   : > { %3655 = vst.msk [vmem:[#allocation4 + $0x190] sm:$0xff] %vm403_vm0, %v10775_v19  ;;  %v3532_v29 = vpop.permute.xlu1 %3531 }
 0x527   : > { %v3537_v37 = vpop.permute.xlu2 %3536  ;;  %v10795_v23 = vmul.f32 %v3532_v29, %v3365_v32  ;;  %v10955_v32 = vld [vmem:[#allocation3 + $0x40] sm:$0xff] }
 0x528   : > { %3718 = vrot.lane.b32.xlu2 %v10742_v38, %s8154_s18  ;;  %v10787_v46 = vmul.f32 %v3537_v37, %v3366_v18  ;;  %v3377_v37 = vld [vmem:[#allocation3 + $0x11f] sm:$0xff] }
 0x529   : > { %3653 = vst.msk [vmem:[#allocation4 + $0x170] sm:$0xff] %vm403_vm0, %v10795_v23 }
 0x52a   : > { %3654 = vst.msk [vmem:[#allocation4 + $0x180] sm:$0xff] %vm403_vm0, %v10787_v46 }
 0x52b   : > { %3726 = vrot.lane.b32.xlu0 %v10747_v8, %s8154_s18  ;;  %v3557_v54 = vpop.permute.xlu0 %3556 }
 0x52c   : > { %v10793_v9 = vmul.f32 %v3557_v54, %v3370_v56  ;;  %v10951_v54 = vld [vmem:[#allocation3 + $0x20] sm:$0xff] }
 0x52d   : > { %3734 = vrot.lane.b32.xlu1 %v10751_v26, %s8154_s18 }
 0x52e   : > { %3658 = vst.msk [vmem:[#allocation4 + $0x1c0] sm:$0xff] %vm403_vm0, %v10793_v9  ;;  %v3547_v48 = vpop.permute.xlu1 %3546 }
 0x52f   : > { %v3552_v20 = vpop.permute.xlu2 %3551  ;;  %v10813_v14 = vmul.f32 %v3547_v48, %v3368_v47  ;;  %v10977_v47 = vld [vmem:[#allocation3 + $0x30] sm:$0xff] }
 0x530   : > { %3724 = vrot.lane.b32.xlu2 %v10755_v53, %s8154_s18  ;;  %v10805_v10 = vmul.f32 %v3552_v20, %v3369_v21  ;;  %v10962_v20 = vld [vmem:[#allocation3 + $0x18] sm:$0xff]  ;;  %v10981_v48 = vld [vmem:[#allocation3 + $0x50] sm:$0xff] }
 0x531   : > { %3656 = vst.msk [vmem:[#allocation4 + $0x1a0] sm:$0xff] %vm403_vm0, %v10813_v14  ;;  %v10966_v21 = vld [vmem:[#allocation3 + $0x38] sm:$0xff] }
 0x532   : > { %3657 = vst.msk [vmem:[#allocation4 + $0x1b0] sm:$0xff] %vm403_vm0, %v10805_v10 }
 0x533   : > { %3732 = vrot.lane.b32.xlu0 %v10769_v11, %s8154_s18  ;;  %v3572_v41 = vpop.permute.xlu0 %3571 }
 0x534   : > { %v10811_v43 = vmul.f32 %v3572_v41, %v3373_v4  ;;  %v10970_v4 = vld [vmem:[#allocation3 + $0x58] sm:$0xff] }
 0x535   : > { %3740 = vrot.lane.b32.xlu1 %v10775_v19, %s8154_s18 }
 0x536   : > { %3661 = vst.msk [vmem:[#allocation4 + $0x1f0] sm:$0xff] %vm403_vm0, %v10811_v43  ;;  %v3562_v7 = vpop.permute.xlu1 %3561 }
 0x537   : > { %v3567_v39 = vpop.permute.xlu2 %3566  ;;  %v10829_v31 = vmul.f32 %v3562_v7, %v3371_v60  ;;  %v10992_v60 = vld [vmem:[#allocation3 + $0x48] sm:$0xff] }
 0x538   : > { %3730 = vrot.lane.b32.xlu2 %v10777_v52, %s8154_s18  ;;  %v10823_v35 = vmul.f32 %v3567_v39, %v3372_v34  ;;  %v10985_v39 = vld [vmem:[#allocation3 + $0x70] sm:$0xff]  ;;  %v10996_v7 = vld [vmem:[#allocation3 + $0x68] sm:$0xff] }
 0x539   : > { %3659 = vst.msk [vmem:[#allocation4 + $0x1d0] sm:$0xff] %vm403_vm0, %v10829_v31 }
 0x53a   : > { %3660 = vst.msk [vmem:[#allocation4 + $0x1e0] sm:$0xff] %vm403_vm0, %v10823_v35 }
 0x53b   : > { %3738 = vrot.lane.b32.xlu0 %v10787_v46, %s8154_s18 }
 0x53d   : > { %3746 = vrot.lane.b32.xlu1 %v10793_v9, %s8154_s18 }
 0x53f   : > { %v3582_v22 = vpop.permute.xlu2 %3581  ;;  %v3577_v25 = vpop.permute.xlu1 %3576 }
 0x540   : > { %3736 = vrot.lane.b32.xlu2 %v10795_v23, %s8154_s18  ;;  %v10845_v30 = vmul.f32 %v3582_v22, %v3375_v15  ;;  %v10853_v61 = vmul.f32 %v3577_v25, %v3374_v24  ;;  %v11000_v22 = vld [vmem:[#allocation3 + $0x88] sm:$0xff]  ;;  %v11007_v25 = vld [vmem:[#allocation3 + $0x60] sm:$0xff] }
 0x541   : > { %v11011_v24 = vld [vmem:[#allocation3 + $0x80] sm:$0xff] }
 0x543   : > { %3744 = vrot.lane.b32.xlu0 %v10805_v10, %s8154_s18 }
 0x545   : > { %3752 = vrot.lane.b32.xlu1 %v10811_v43, %s8154_s18 }
 0x548   : > { %3742 = vrot.lane.b32.xlu2 %v10813_v14, %s8154_s18 }
 0x54b   : > { %3750 = vrot.lane.b32.xlu0 %v10823_v35, %s8154_s18 }
 0x54d   : > { %3825 = vrot.lane.b32.xlu1 %v10496_v33, %s8155_s4  ;;  %v10868_v33 = vpop.permute.xlu1 %3591 }
 0x54e   : > { %v3629_v56 = vmul.f32 %v10868_v33, %v3377_v37 }
 0x550   : > { %3748 = vrot.lane.b32.xlu2 %v10829_v31, %s8154_s18 }
 0x553   : > { %3756 = vrot.lane.b32.xlu0 %v10845_v30, %s8154_s18 }
 0x555   : > { %v3695_v6 = vpop.permute.xlu2 %3694  ;;  %3831 = vrot.lane.b32.xlu1 %v10524_v12, %s8155_s4 }
 0x556   : > { %3791 = vst.msk [vmem:[#allocation4] sm:$0xff] %vm3790_vm4, %v3695_v6 }
 0x558   : > { %3754 = vrot.lane.b32.xlu2 %v10853_v61, %s8154_s18 }
 0x55b   : > { %3829 = vrot.lane.b32.xlu0 %v10549_v58, %s8155_s4  ;;  %v3587_v58 = vpop.permute.xlu0 %3586 }
 0x55c   : > { %v3628_v36 = vmul.f32 %v3587_v58, %v3376_v40  ;;  %v11022_v58 = vld [vmem:[#allocation3 + $0x78] sm:$0xff] }
 0x55d   : > { %3837 = vrot.lane.b32.xlu1 %v10601_v17, %s8155_s4 }
 0x560   : > { %3827 = vrot.lane.b32.xlu2 %v10656_v59, %s8155_s4 }
 0x563   : > { %3835 = vrot.lane.b32.xlu0 %v10659_v13, %s8155_s4 }
 0x565   : > { %3843 = vrot.lane.b32.xlu1 %v10677_v50, %s8155_s4 }
 0x568   : > { %3833 = vrot.lane.b32.xlu2 %v10693_v16, %s8155_s4 }
 0x56a   : > { %v3701_v12 = vpop.permute.xlu2 %3700 }
 0x56b   : > { %3841 = vrot.lane.b32.xlu0 %v10704_v28, %s8155_s4  ;;  %3794 = vst.msk [vmem:[#allocation4 + $0x30] sm:$0xff] %vm3790_vm4, %v3701_v12 }
 0x56d   : > { %3849 = vrot.lane.b32.xlu1 %v10715_v45, %s8155_s4 }
 0x56f   : > { %v3699_v17 = vpop.permute.xlu1 %3698 }
 0x570   : > { %3793 = vst.msk [vmem:[#allocation4 + $0x20] sm:$0xff] %vm3790_vm4, %v3699_v17  ;;  %3839 = vrot.lane.b32.xlu2 %v10723_v62, %s8155_s4  ;;  %v11026_v17 = vld [vmem:[#allocation3 + $0x98] sm:$0xff] }
 0x572   : > { %v3707_v59 = vpop.permute.xlu2 %3706 }
 0x573   : > { %3847 = vrot.lane.b32.xlu0 %v10731_v27, %s8155_s4  ;;  %3797 = vst.msk [vmem:[#allocation4 + $0x60] sm:$0xff] %vm3790_vm4, %v3707_v59 }
 0x575   : > { %v3697_v13 = vpop.permute.xlu0 %3696  ;;  %3855 = vrot.lane.b32.xlu1 %v10738_v42, %s8155_s4 }
 0x576   : > { %3792 = vst.msk [vmem:[#allocation4 + $0x10] sm:$0xff] %vm3790_vm4, %v3697_v13  ;;  %v11030_v13 = vld [vmem:[#allocation3 + $0xb8] sm:$0xff] }
 0x577   : > { %v3705_v50 = vpop.permute.xlu1 %3704 }
 0x578   : > { %3796 = vst.msk [vmem:[#allocation4 + $0x50] sm:$0xff] %vm3790_vm4, %v3705_v50  ;;  %3845 = vrot.lane.b32.xlu2 %v10742_v38, %s8155_s4 }
 0x57a   : > { %v3713_v16 = vpop.permute.xlu2 %3712 }
 0x57b   : > { %3853 = vrot.lane.b32.xlu0 %v10747_v8, %s8155_s4  ;;  %3800 = vst.msk [vmem:[#allocation4 + $0x90] sm:$0xff] %vm3790_vm4, %v3713_v16 }
 0x57d   : > { %v3703_v28 = vpop.permute.xlu0 %3702  ;;  %3861 = vrot.lane.b32.xlu1 %v10751_v26, %s8155_s4 }
 0x57e   : > { %3795 = vst.msk [vmem:[#allocation4 + $0x40] sm:$0xff] %vm3790_vm4, %v3703_v28  ;;  %v11037_v28 = vld [vmem:[#allocation3 + $0x90] sm:$0xff] }
 0x57f   : > { %v3711_v45 = vpop.permute.xlu1 %3710 }
 0x580   : > { %3799 = vst.msk [vmem:[#allocation4 + $0x80] sm:$0xff] %vm3790_vm4, %v3711_v45  ;;  %3851 = vrot.lane.b32.xlu2 %v10755_v53, %s8155_s4  ;;  %v11041_v45 = vld [vmem:[#allocation3 + $0xb0] sm:$0xff] }
 0x582   : > { %v3719_v62 = vpop.permute.xlu2 %3718 }
 0x583   : > { %3859 = vrot.lane.b32.xlu0 %v10769_v11, %s8155_s4  ;;  %3803 = vst.msk [vmem:[#allocation4 + $0xc0] sm:$0xff] %vm3790_vm4, %v3719_v62  ;;  %v3955_v11 = vld [vmem:[#allocation3 + $0x10] sm:$0xff] }
 0x585   : > { %v3709_v27 = vpop.permute.xlu0 %3708  ;;  %3867 = vrot.lane.b32.xlu1 %v10775_v19, %s8155_s4 }
 0x586   : > { %3798 = vst.msk [vmem:[#allocation4 + $0x70] sm:$0xff] %vm3790_vm4, %v3709_v27  ;;  %v11045_v27 = vld [vmem:[#allocation3 + $0xd0] sm:$0xff] }
 0x587   : > { %v3717_v42 = vpop.permute.xlu1 %3716 }
 0x588   : > { %3802 = vst.msk [vmem:[#allocation4 + $0xb0] sm:$0xff] %vm3790_vm4, %v3717_v42  ;;  %3857 = vrot.lane.b32.xlu2 %v10777_v52, %s8155_s4  ;;  %v10942_v52 = vld [vmem:[#allocation3 + $0x28] sm:$0xff] }
 0x58a   : > { %v3725_v38 = vpop.permute.xlu2 %3724 }
 0x58b   : > { %3865 = vrot.lane.b32.xlu0 %v10787_v46, %s8155_s4  ;;  %3806 = vst.msk [vmem:[#allocation4 + $0xf0] sm:$0xff] %vm3790_vm4, %v3725_v38 }
 0x58d   : > { %v3715_v44 = vpop.permute.xlu0 %3714  ;;  %3873 = vrot.lane.b32.xlu1 %v10793_v9, %s8155_s4 }
 0x58e   : > { %3801 = vst.msk [vmem:[#allocation4 + $0xa0] sm:$0xff] %vm3790_vm4, %v3715_v44  ;;  %v11052_v44 = vld [vmem:[#allocation3 + $0xa8] sm:$0xff] }
 0x58f   : > { %v3723_v8 = vpop.permute.xlu1 %3722 }
 0x590   : > { %3805 = vst.msk [vmem:[#allocation4 + $0xe0] sm:$0xff] %vm3790_vm4, %v3723_v8  ;;  %3863 = vrot.lane.b32.xlu2 %v10795_v23, %s8155_s4  ;;  %v11056_v8 = vld [vmem:[#allocation3 + $0xc8] sm:$0xff] }
 0x592   : > { %v3731_v57 = vpop.permute.xlu2 %3730 }
 0x593   : > { %3871 = vrot.lane.b32.xlu0 %v10805_v10, %s8155_s4  ;;  %3809 = vst.msk [vmem:[#allocation4 + $0x120] sm:$0xff] %vm3790_vm4, %v3731_v57 }
 0x595   : > { %v3721_v1 = vpop.permute.xlu0 %3720  ;;  %3879 = vrot.lane.b32.xlu1 %v10811_v43, %s8155_s4 }
 0x596   : > { %3804 = vst.msk [vmem:[#allocation4 + $0xd0] sm:$0xff] %vm3790_vm4, %v3721_v1  ;;  %v11060_v1 = vld [vmem:[#allocation3 + $0xe8] sm:$0xff] }
 0x597   : > { %v3729_v26 = vpop.permute.xlu1 %3728 }
 0x598   : > { %3808 = vst.msk [vmem:[#allocation4 + $0x110] sm:$0xff] %vm3790_vm4, %v3729_v26  ;;  %3869 = vrot.lane.b32.xlu2 %v10813_v14, %s8155_s4 }
 0x59a   : > { %v3737_v53 = vpop.permute.xlu2 %3736 }
 0x59b   : > { %3877 = vrot.lane.b32.xlu0 %v10823_v35, %s8155_s4  ;;  %3812 = vst.msk [vmem:[#allocation4 + $0x150] sm:$0xff] %vm3790_vm4, %v3737_v53  ;;  %v11071_v53 = vld [vmem:[#allocation3 + $0xe0] sm:$0xff] }
 0x59d   : > { %v3727_v49 = vpop.permute.xlu0 %3726  ;;  %3885 = vrot.lane.b32.xlu1 %v3628_v36, %s8155_s4  ;;  %v11067_v36 = vld [vmem:[#allocation3 + $0xc0] sm:$0xff] }
 0x59e   : > { %3807 = vst.msk [vmem:[#allocation4 + $0x100] sm:$0xff] %vm3790_vm4, %v3727_v49 }
 0x59f   : > { %v3735_v5 = vpop.permute.xlu1 %3734 }
 0x5a0   : > { %3811 = vst.msk [vmem:[#allocation4 + $0x140] sm:$0xff] %vm3790_vm4, %v3735_v5  ;;  %3875 = vrot.lane.b32.xlu2 %v10829_v31, %s8155_s4  ;;  %v11075_v5 = vld [vmem:[#allocation3 + $0x100] sm:$0xff] }
 0x5a2   : > { %v3743_v55 = vpop.permute.xlu2 %3742 }
 0x5a3   : > { %3883 = vrot.lane.b32.xlu0 %v10845_v30, %s8155_s4  ;;  %3815 = vst.msk [vmem:[#allocation4 + $0x180] sm:$0xff] %vm3790_vm4, %v3743_v55 }
 0x5a5   : > { %v3733_v0 = vpop.permute.xlu0 %3732  ;;  %4024 = vrot.lane.b32.xlu1 %v3955_v11, %s8153_s23 }
 0x5a6   : > { %3810 = vst.msk [vmem:[#allocation4 + $0x130] sm:$0xff] %vm3790_vm4, %v3733_v0  ;;  %v11082_v0 = vld [vmem:[#allocation3 + $0xd8] sm:$0xff] }
 0x5a7   : > { %v3741_v19 = vpop.permute.xlu1 %3740 }
 0x5a8   : > { %3814 = vst.msk [vmem:[#allocation4 + $0x170] sm:$0xff] %vm3790_vm4, %v3741_v19  ;;  %3881 = vrot.lane.b32.xlu2 %v10853_v61, %s8155_s4  ;;  %v11015_v61 = vld [vmem:[#allocation3 + $0xa0] sm:$0xff]  ;;  %v11086_v19 = vld [vmem:[#allocation3 + $0xf8] sm:$0xff] }
 0x5aa   : > { %v3749_v2 = vpop.permute.xlu2 %3748 }
 0x5ab   : > { %4022 = vrot.lane.b32.xlu0 %v3954_v63, %s8153_s23  ;;  %3818 = vst.msk [vmem:[#allocation4 + $0x1b0] sm:$0xff] %vm3790_vm4, %v3749_v2 }
 0x5ad   : > { %v3739_v18 = vpop.permute.xlu0 %3738  ;;  %4030 = vrot.lane.b32.xlu1 %v10942_v52, %s8153_s23 }
 0x5ae   : > { %3813 = vst.msk [vmem:[#allocation4 + $0x160] sm:$0xff] %vm3790_vm4, %v3739_v18  ;;  %v11095_v18 = vld [vmem:[#allocation3 + $0xf0] sm:$0xff] }
 0x5af   : > { %v3747_v46 = vpop.permute.xlu1 %3746 }
 0x5b0   : > { %3817 = vst.msk [vmem:[#allocation4 + $0x1a0] sm:$0xff] %vm3790_vm4, %v3747_v46  ;;  %3887 = vrot.lane.b32.xlu2 %v3629_v56, %s8155_s4 }
 0x5b2   : > { %v3755_v9 = vpop.permute.xlu2 %3754 }
 0x5b3   : > { %4028 = vrot.lane.b32.xlu0 %v10951_v54, %s8153_s23  ;;  %3821 = vst.msk [vmem:[#allocation4 + $0x1e0] sm:$0xff] %vm3790_vm4, %v3755_v9 }
 0x5b5   : > { %v3745_v29 = vpop.permute.xlu0 %3744  ;;  %4036 = vrot.lane.b32.xlu1 %v10955_v32, %s8153_s23 }
 0x5b6   : > { %3816 = vst.msk [vmem:[#allocation4 + $0x190] sm:$0xff] %vm3790_vm4, %v3745_v29 }
 0x5b7   : > { %v3753_v23 = vpop.permute.xlu1 %3752 }
 0x5b8   : > { %3820 = vst.msk [vmem:[#allocation4 + $0x1d0] sm:$0xff] %vm3790_vm4, %v3753_v23  ;;  %4026 = vrot.lane.b32.xlu2 %v10962_v20, %s8153_s23 }
 0x5ba   : > { %v3828_v10 = vpop.permute.xlu2 %3827 }
 0x5bb   : > { %4034 = vrot.lane.b32.xlu0 %v10966_v21, %s8153_s23  ;;  %3923 = vst.msk [vmem:[#allocation4 + $0x10] sm:$0xff] %vm3921_vm5, %v3828_v10 }
 0x5bd   : > { %v3751_v41 = vpop.permute.xlu0 %3750  ;;  %4042 = vrot.lane.b32.xlu1 %v10970_v4, %s8153_s23 }
 0x5be   : > { %3819 = vst.msk [vmem:[#allocation4 + $0x1c0] sm:$0xff] %vm3790_vm4, %v3751_v41 }
 0x5bf   : > { %v3826_v43 = vpop.permute.xlu1 %3825 }
 0x5c0   : > { %3922 = vst.msk [vmem:[#allocation4] sm:$0xff] %vm3921_vm5, %v3826_v43  ;;  %4032 = vrot.lane.b32.xlu2 %v10977_v47, %s8153_s23 }
 0x5c2   : > { %v3834_v14 = vpop.permute.xlu2 %3833 }
 0x5c3   : > { %4040 = vrot.lane.b32.xlu0 %v10981_v48, %s8153_s23  ;;  %3926 = vst.msk [vmem:[#allocation4 + $0x40] sm:$0xff] %vm3921_vm5, %v3834_v14 }
 0x5c5   : > { %v3757_v34 = vpop.permute.xlu0 %3756  ;;  %4048 = vrot.lane.b32.xlu1 %v10985_v39, %s8153_s23 }
 0x5c6   : > { %3822 = vst.msk [vmem:[#allocation4 + $0x1f0] sm:$0xff] %vm3790_vm4, %v3757_v34 }
 0x5c7   : > { %v3832_v35 = vpop.permute.xlu1 %3831 }
 0x5c8   : > { %3925 = vst.msk [vmem:[#allocation4 + $0x30] sm:$0xff] %vm3921_vm5, %v3832_v35  ;;  %4038 = vrot.lane.b32.xlu2 %v10992_v60, %s8153_s23 }
 0x5ca   : > { %v3840_v31 = vpop.permute.xlu2 %3839 }
 0x5cb   : > { %4046 = vrot.lane.b32.xlu0 %v10996_v7, %s8153_s23  ;;  %3929 = vst.msk [vmem:[#allocation4 + $0x70] sm:$0xff] %vm3921_vm5, %v3840_v31 }
 0x5cd   : > { %v3830_v15 = vpop.permute.xlu0 %3829  ;;  %4054 = vrot.lane.b32.xlu1 %v11000_v22, %s8153_s23 }
 0x5ce   : > { %3924 = vst.msk [vmem:[#allocation4 + $0x20] sm:$0xff] %vm3921_vm5, %v3830_v15 }
 0x5cf   : > { %v3838_v30 = vpop.permute.xlu1 %3837 }
 0x5d0   : > { %3928 = vst.msk [vmem:[#allocation4 + $0x60] sm:$0xff] %vm3921_vm5, %v3838_v30  ;;  %4044 = vrot.lane.b32.xlu2 %v11007_v25, %s8153_s23 }
 0x5d2   : > { %v3846_v6 = vpop.permute.xlu2 %3845 }
 0x5d3   : > { %4052 = vrot.lane.b32.xlu0 %v11011_v24, %s8153_s23  ;;  %3932 = vst.msk [vmem:[#allocation4 + $0xa0] sm:$0xff] %vm3921_vm5, %v3846_v6 }
 0x5d5   : > { %v3836_v33 = vpop.permute.xlu0 %3835  ;;  %4060 = vrot.lane.b32.xlu1 %v11015_v61, %s8153_s23 }
 0x5d6   : > { %3927 = vst.msk [vmem:[#allocation4 + $0x50] sm:$0xff] %vm3921_vm5, %v3836_v33 }
 0x5d7   : > { %v3844_v12 = vpop.permute.xlu1 %3843 }
 0x5d8   : > { %3931 = vst.msk [vmem:[#allocation4 + $0x90] sm:$0xff] %vm3921_vm5, %v3844_v12  ;;  %4050 = vrot.lane.b32.xlu2 %v11022_v58, %s8153_s23 }
 0x5da   : > { %v3852_v59 = vpop.permute.xlu2 %3851 }
 0x5db   : > { %4058 = vrot.lane.b32.xlu0 %v11026_v17, %s8153_s23  ;;  %3935 = vst.msk [vmem:[#allocation4 + $0xd0] sm:$0xff] %vm3921_vm5, %v3852_v59 }
 0x5dd   : > { %v3842_v50 = vpop.permute.xlu0 %3841  ;;  %4066 = vrot.lane.b32.xlu1 %v11030_v13, %s8153_s23 }
 0x5de   : > { %3930 = vst.msk [vmem:[#allocation4 + $0x80] sm:$0xff] %vm3921_vm5, %v3842_v50 }
 0x5df   : > { %v3850_v16 = vpop.permute.xlu1 %3849 }
 0x5e0   : > { %3934 = vst.msk [vmem:[#allocation4 + $0xc0] sm:$0xff] %vm3921_vm5, %v3850_v16  ;;  %4056 = vrot.lane.b32.xlu2 %v11037_v28, %s8153_s23 }
 0x5e2   : > { %v3858_v62 = vpop.permute.xlu2 %3857 }
 0x5e3   : > { %4064 = vrot.lane.b32.xlu0 %v11041_v45, %s8153_s23  ;;  %3938 = vst.msk [vmem:[#allocation4 + $0x100] sm:$0xff] %vm3921_vm5, %v3858_v62 }
 0x5e5   : > { %v3848_v42 = vpop.permute.xlu0 %3847  ;;  %4072 = vrot.lane.b32.xlu1 %v11045_v27, %s8153_s23 }
 0x5e6   : > { %3933 = vst.msk [vmem:[#allocation4 + $0xb0] sm:$0xff] %vm3921_vm5, %v3848_v42 }
 0x5e7   : > { %v3856_v38 = vpop.permute.xlu1 %3855 }
 0x5e8   : > { %3937 = vst.msk [vmem:[#allocation4 + $0xf0] sm:$0xff] %vm3921_vm5, %v3856_v38  ;;  %4062 = vrot.lane.b32.xlu2 %v11052_v44, %s8153_s23 }
 0x5ea   : > { %v3864_v57 = vpop.permute.xlu2 %3863 }
 0x5eb   : > { %4070 = vrot.lane.b32.xlu0 %v11056_v8, %s8153_s23  ;;  %3941 = vst.msk [vmem:[#allocation4 + $0x130] sm:$0xff] %vm3921_vm5, %v3864_v57 }
 0x5ed   : > { %v3854_v26 = vpop.permute.xlu0 %3853  ;;  %4078 = vrot.lane.b32.xlu1 %v11060_v1, %s8153_s23 }
 0x5ee   : > { %3936 = vst.msk [vmem:[#allocation4 + $0xe0] sm:$0xff] %vm3921_vm5, %v3854_v26 }
 0x5ef   : > { %v3862_v40 = vpop.permute.xlu1 %3861 }
 0x5f0   : > { %3940 = vst.msk [vmem:[#allocation4 + $0x120] sm:$0xff] %vm3921_vm5, %v3862_v40  ;;  %4068 = vrot.lane.b32.xlu2 %v11067_v36, %s8153_s23 }
 0x5f2   : > { %v3870_v49 = vpop.permute.xlu2 %3869 }
 0x5f3   : > { %4076 = vrot.lane.b32.xlu0 %v11071_v53, %s8153_s23  ;;  %3944 = vst.msk [vmem:[#allocation4 + $0x160] sm:$0xff] %vm3921_vm5, %v3870_v49 }
 0x5f5   : > { %v3860_v11 = vpop.permute.xlu0 %3859  ;;  %4084 = vrot.lane.b32.xlu1 %v11075_v5, %s8153_s23 }
 0x5f6   : > { %3939 = vst.msk [vmem:[#allocation4 + $0x110] sm:$0xff] %vm3921_vm5, %v3860_v11 }
 0x5f7   : > { %v3868_v55 = vpop.permute.xlu1 %3867 }
 0x5f8   : > { %3943 = vst.msk [vmem:[#allocation4 + $0x150] sm:$0xff] %vm3921_vm5, %v3868_v55  ;;  %4074 = vrot.lane.b32.xlu2 %v11082_v0, %s8153_s23  ;;  %v11189_v55 = vld [vmem:[#allocation3 + $0x110] sm:$0xff] }
 0x5fa   : > { %v3876_v63 = vpop.permute.xlu2 %3875 }
 0x5fb   : > { %4082 = vrot.lane.b32.xlu0 %v11086_v19, %s8153_s23  ;;  %3947 = vst.msk [vmem:[#allocation4 + $0x190] sm:$0xff] %vm3921_vm5, %v3876_v63 }
 0x5fd   : > { %v3866_v2 = vpop.permute.xlu0 %3865  ;;  %4157 = vrot.lane.b32.xlu1 %v10942_v52, %s8156_s19 }
 0x5fe   : > { %3942 = vst.msk [vmem:[#allocation4 + $0x140] sm:$0xff] %vm3921_vm5, %v3866_v2 }
 0x5ff   : > { %v3874_v37 = vpop.permute.xlu1 %3873 }
 0x600   : > { %3946 = vst.msk [vmem:[#allocation4 + $0x180] sm:$0xff] %vm3921_vm5, %v3874_v37  ;;  %4080 = vrot.lane.b32.xlu2 %v11095_v18, %s8153_s23  ;;  %v11198_v37 = vld [vmem:[#allocation3 + $0x108] sm:$0xff] }
 0x602   : > { %v3882_v46 = vpop.permute.xlu2 %3881 }
 0x603   : > { %4155 = vrot.lane.b32.xlu0 %v10951_v54, %s8156_s19  ;;  %3950 = vst.msk [vmem:[#allocation4 + $0x1c0] sm:$0xff] %vm3921_vm5, %v3882_v46 }
 0x605   : > { %v3872_v56 = vpop.permute.xlu0 %3871  ;;  %4163 = vrot.lane.b32.xlu1 %v10955_v32, %s8156_s19 }
 0x606   : > { %3945 = vst.msk [vmem:[#allocation4 + $0x170] sm:$0xff] %vm3921_vm5, %v3872_v56 }
 0x607   : > { %v3880_v9 = vpop.permute.xlu1 %3879 }
 0x608   : > { %3949 = vst.msk [vmem:[#allocation4 + $0x1b0] sm:$0xff] %vm3921_vm5, %v3880_v9  ;;  %4153 = vrot.lane.b32.xlu2 %v10962_v20, %s8156_s19 }
 0x60a   : > { %v3888_v29 = vpop.permute.xlu2 %3887 }
 0x60b   : > { %4161 = vrot.lane.b32.xlu0 %v10966_v21, %s8156_s19  ;;  %3953 = vst.msk [vmem:[#allocation4 + $0x1f0] sm:$0xff] %vm3921_vm5, %v3888_v29  ;;  %v3988_v29 = vld [vmem:[#allocation3 + $0x118] sm:$0xff] }
 0x60d   : > { %v3878_v54 = vpop.permute.xlu0 %3877  ;;  %4169 = vrot.lane.b32.xlu1 %v10970_v4, %s8156_s19 }
 0x60e   : > { %3948 = vst.msk [vmem:[#allocation4 + $0x1a0] sm:$0xff] %vm3921_vm5, %v3878_v54 }
 0x60f   : > { %v3886_v23 = vpop.permute.xlu1 %3885 }
 0x610   : > { %3952 = vst.msk [vmem:[#allocation4 + $0x1e0] sm:$0xff] %vm3921_vm5, %v3886_v23  ;;  %4159 = vrot.lane.b32.xlu2 %v10977_v47, %s8156_s19 }
 0x612   : > { %v4027_v20 = vpop.permute.xlu2 %4026 }
 0x613   : > { %4167 = vrot.lane.b32.xlu0 %v10981_v48, %s8156_s19  ;;  %4121 = vst.msk [vmem:[#allocation4 + $0x20] sm:$0xff] %vm4118_vm6, %v4027_v20  ;;  %v4452_v20 = vld [vmem:[%s13364_s9 + $0x18] sm:$0xff] }
 0x615   : > { %v3884_v10 = vpop.permute.xlu0 %3883  ;;  %4175 = vrot.lane.b32.xlu1 %v10985_v39, %s8156_s19 }
 0x616   : > { %3951 = vst.msk [vmem:[#allocation4 + $0x1d0] sm:$0xff] %vm3921_vm5, %v3884_v10 }
 0x617   : > { %v4025_v41 = vpop.permute.xlu1 %4024 }
 0x618   : > { %4120 = vst.msk [vmem:[#allocation4 + $0x10] sm:$0xff] %vm4118_vm6, %v4025_v41  ;;  %4165 = vrot.lane.b32.xlu2 %v10992_v60, %s8156_s19 }
 0x61a   : > { %v4033_v43 = vpop.permute.xlu2 %4032 }
 0x61b   : > { %4173 = vrot.lane.b32.xlu0 %v10996_v7, %s8156_s19  ;;  %4124 = vst.msk [vmem:[#allocation4 + $0x50] sm:$0xff] %vm4118_vm6, %v4033_v43  ;;  %v3989_v43 = vld [vmem:[#allocation3 + $0x120] sm:$0xff] }
 0x61d   : > { %v4023_v14 = vpop.permute.xlu0 %4022  ;;  %4181 = vrot.lane.b32.xlu1 %v11000_v22, %s8156_s19 }
 0x61e   : > { %4119 = vst.msk [vmem:[#allocation4] sm:$0xff] %vm4118_vm6, %v4023_v14 }
 0x61f   : > { %v4031_v34 = vpop.permute.xlu1 %4030 }
 0x620   : > { %4123 = vst.msk [vmem:[#allocation4 + $0x40] sm:$0xff] %vm4118_vm6, %v4031_v34  ;;  %4171 = vrot.lane.b32.xlu2 %v11007_v25, %s8156_s19  ;;  %v4454_v34 = vld [vmem:[%s13364_s9 + $0x28] sm:$0xff] }
 0x622   : > { %v4039_v35 = vpop.permute.xlu2 %4038 }
 0x623   : > { %4179 = vrot.lane.b32.xlu0 %v11011_v24, %s8156_s19  ;;  %4127 = vst.msk [vmem:[#allocation4 + $0x80] sm:$0xff] %vm4118_vm6, %v4039_v35  ;;  %v11311_v35 = vld [vmem:[%s13364_s9 + $0x30] sm:$0xff] }
 0x625   : > { %v4029_v31 = vpop.permute.xlu0 %4028  ;;  %4187 = vrot.lane.b32.xlu1 %v11015_v61, %s8156_s19 }
 0x626   : > { %4122 = vst.msk [vmem:[#allocation4 + $0x30] sm:$0xff] %vm4118_vm6, %v4029_v31 }
 0x627   : > { %v4037_v15 = vpop.permute.xlu1 %4036 }
 0x628   : > { %4126 = vst.msk [vmem:[#allocation4 + $0x70] sm:$0xff] %vm4118_vm6, %v4037_v15  ;;  %4177 = vrot.lane.b32.xlu2 %v11022_v58, %s8156_s19 }
 0x62a   : > { %v4045_v30 = vpop.permute.xlu2 %4044 }
 0x62b   : > { %4185 = vrot.lane.b32.xlu0 %v11026_v17, %s8156_s19  ;;  %4130 = vst.msk [vmem:[#allocation4 + $0xb0] sm:$0xff] %vm4118_vm6, %v4045_v30  ;;  %v4451_v30 = vld [vmem:[%s13364_s9 + $0x10] sm:$0xff] }
 0x62d   : > { %v4035_v6 = vpop.permute.xlu0 %4034  ;;  %4193 = vrot.lane.b32.xlu1 %v11030_v13, %s8156_s19 }
 0x62e   : > { %4125 = vst.msk [vmem:[#allocation4 + $0x60] sm:$0xff] %vm4118_vm6, %v4035_v6 }
 0x62f   : > { %v4043_v33 = vpop.permute.xlu1 %4042 }
 0x630   : > { %4129 = vst.msk [vmem:[#allocation4 + $0xa0] sm:$0xff] %vm4118_vm6, %v4043_v33  ;;  %4183 = vrot.lane.b32.xlu2 %v11037_v28, %s8156_s19  ;;  %v4457_v33 = vld [vmem:[%s13364_s9 + $0x40] sm:$0xff] }
 0x632   : > { %v4051_v12 = vpop.permute.xlu2 %4050 }
 0x633   : > { %4191 = vrot.lane.b32.xlu0 %v11041_v45, %s8156_s19  ;;  %4133 = vst.msk [vmem:[#allocation4 + $0xe0] sm:$0xff] %vm4118_vm6, %v4051_v12  ;;  %v11326_v12 = vld [vmem:[%s13364_s9 + $0x48] sm:$0xff] }
 0x635   : > { %v4041_v59 = vpop.permute.xlu0 %4040  ;;  %4199 = vrot.lane.b32.xlu1 %v11045_v27, %s8156_s19 }
 0x636   : > { %4128 = vst.msk [vmem:[#allocation4 + $0x90] sm:$0xff] %vm4118_vm6, %v4041_v59 }
 0x637   : > { %v4049_v50 = vpop.permute.xlu1 %4048 }
 0x638   : > { %4132 = vst.msk [vmem:[#allocation4 + $0xd0] sm:$0xff] %vm4118_vm6, %v4049_v50  ;;  %4189 = vrot.lane.b32.xlu2 %v11052_v44, %s8156_s19 }
 0x63a   : > { %v4057_v16 = vpop.permute.xlu2 %4056 }
 0x63b   : > { %4197 = vrot.lane.b32.xlu0 %v11056_v8, %s8156_s19  ;;  %4136 = vst.msk [vmem:[#allocation4 + $0x110] sm:$0xff] %vm4118_vm6, %v4057_v16  ;;  %v4453_v16 = vld [vmem:[%s13364_s9 + $0x20] sm:$0xff] }
 0x63d   : > { %v4047_v62 = vpop.permute.xlu0 %4046  ;;  %4205 = vrot.lane.b32.xlu1 %v11060_v1, %s8156_s19 }
 0x63e   : > { %4131 = vst.msk [vmem:[#allocation4 + $0xc0] sm:$0xff] %vm4118_vm6, %v4047_v62 }
 0x63f   : > { %v4055_v42 = vpop.permute.xlu1 %4054 }
 0x640   : > { %4135 = vst.msk [vmem:[#allocation4 + $0x100] sm:$0xff] %vm4118_vm6, %v4055_v42  ;;  %4195 = vrot.lane.b32.xlu2 %v11067_v36, %s8156_s19  ;;  %v4460_v42 = vld [vmem:[%s13364_s9 + $0x58] sm:$0xff] }
 0x642   : > { %v4063_v38 = vpop.permute.xlu2 %4062 }
 0x643   : > { %4203 = vrot.lane.b32.xlu0 %v11071_v53, %s8156_s19  ;;  %4139 = vst.msk [vmem:[#allocation4 + $0x140] sm:$0xff] %vm4118_vm6, %v4063_v38  ;;  %v11341_v38 = vld [vmem:[%s13364_s9 + $0x60] sm:$0xff] }
 0x645   : > { %v4053_v57 = vpop.permute.xlu0 %4052  ;;  %4211 = vrot.lane.b32.xlu1 %v11075_v5, %s8156_s19 }
 0x646   : > { %4134 = vst.msk [vmem:[#allocation4 + $0xf0] sm:$0xff] %vm4118_vm6, %v4053_v57 }
 0x647   : > { %v4061_v26 = vpop.permute.xlu1 %4060 }
 0x648   : > { %4138 = vst.msk [vmem:[#allocation4 + $0x130] sm:$0xff] %vm4118_vm6, %v4061_v26  ;;  %4201 = vrot.lane.b32.xlu2 %v11082_v0, %s8156_s19 }
 0x64a   : > { %v4069_v40 = vpop.permute.xlu2 %4068 }
 0x64b   : > { %4209 = vrot.lane.b32.xlu0 %v11086_v19, %s8156_s19  ;;  %4142 = vst.msk [vmem:[#allocation4 + $0x170] sm:$0xff] %vm4118_vm6, %v4069_v40  ;;  %v4456_v40 = vld [vmem:[%s13364_s9 + $0x38] sm:$0xff] }
 0x64d   : > { %v4059_v49 = vpop.permute.xlu0 %4058  ;;  %4284 = vrot.lane.b32.xlu1 %v10942_v52, %s8157_s20 }
 0x64e   : > { %4137 = vst.msk [vmem:[#allocation4 + $0x120] sm:$0xff] %vm4118_vm6, %v4059_v49 }
 0x64f   : > { %v4067_v11 = vpop.permute.xlu1 %4066 }
 0x650   : > { %4141 = vst.msk [vmem:[#allocation4 + $0x160] sm:$0xff] %vm4118_vm6, %v4067_v11  ;;  %4207 = vrot.lane.b32.xlu2 %v11095_v18, %s8156_s19  ;;  %v4463_v11 = vld [vmem:[%s13364_s9 + $0x70] sm:$0xff] }
 0x652   : > { %v4075_v63 = vpop.permute.xlu2 %4074 }
 0x653   : > { %4215 = vrot.lane.b32.xlu0 %v11189_v55, %s8156_s19  ;;  %4145 = vst.msk [vmem:[#allocation4 + $0x1a0] sm:$0xff] %vm4118_vm6, %v4075_v63 }
 0x655   : > { %v4065_v2 = vpop.permute.xlu0 %4064  ;;  %4290 = vrot.lane.b32.xlu1 %v10955_v32, %s8157_s20 }
 0x656   : > { %4140 = vst.msk [vmem:[#allocation4 + $0x150] sm:$0xff] %vm4118_vm6, %v4065_v2 }
 0x657   : > { %v4073_v52 = vpop.permute.xlu1 %4072 }
 0x658   : > { %4144 = vst.msk [vmem:[#allocation4 + $0x190] sm:$0xff] %vm4118_vm6, %v4073_v52  ;;  %4213 = vrot.lane.b32.xlu2 %v11198_v37, %s8156_s19  ;;  %v4459_v52 = vld [vmem:[%s13364_s9 + $0x50] sm:$0xff] }
 0x65a   : > { %v4081_v46 = vpop.permute.xlu2 %4080 }
 0x65b   : > { %4288 = vrot.lane.b32.xlu0 %v10966_v21, %s8157_s20  ;;  %4148 = vst.msk [vmem:[#allocation4 + $0x1d0] sm:$0xff] %vm4118_vm6, %v4081_v46  ;;  %v4466_v46 = vld [vmem:[%s13364_s9 + $0x88] sm:$0xff] }
 0x65d   : > { %v4071_v56 = vpop.permute.xlu0 %4070  ;;  %4296 = vrot.lane.b32.xlu1 %v10970_v4, %s8157_s20 }
 0x65e   : > { %4143 = vst.msk [vmem:[#allocation4 + $0x180] sm:$0xff] %vm4118_vm6, %v4071_v56  ;;  %v11371_v56 = vld [vmem:[%s13364_s9 + $0x90] sm:$0xff] }
 0x65f   : > { %v4079_v32 = vpop.permute.xlu1 %4078 }
 0x660   : > { %4147 = vst.msk [vmem:[#allocation4 + $0x1c0] sm:$0xff] %vm4118_vm6, %v4079_v32  ;;  %4286 = vrot.lane.b32.xlu2 %v10977_v47, %s8157_s20 }
 0x662   : > { %v4154_v21 = vpop.permute.xlu2 %4153 }
 0x663   : > { %4294 = vrot.lane.b32.xlu0 %v10981_v48, %s8157_s20  ;;  %4250 = vst.msk [vmem:[#allocation4] sm:$0xff] %vm4249_vm7, %v4154_v21 }
 0x665   : > { %v4077_v9 = vpop.permute.xlu0 %4076  ;;  %4302 = vrot.lane.b32.xlu1 %v10985_v39, %s8157_s20 }
 0x666   : > { %4146 = vst.msk [vmem:[#allocation4 + $0x1b0] sm:$0xff] %vm4118_vm6, %v4077_v9  ;;  %v4462_v9 = vld [vmem:[%s13364_s9 + $0x68] sm:$0xff] }
 0x667   : > { %v4085_v4 = vpop.permute.xlu1 %4084 }
 0x668   : > { %4150 = vst.msk [vmem:[#allocation4 + $0x1f0] sm:$0xff] %vm4118_vm6, %v4085_v4  ;;  %4292 = vrot.lane.b32.xlu2 %v10992_v60, %s8157_s20 }
 0x66a   : > { %v4160_v47 = vpop.permute.xlu2 %4159 }
 0x66b   : > { %4300 = vrot.lane.b32.xlu0 %v10996_v7, %s8157_s20  ;;  %4253 = vst.msk [vmem:[#allocation4 + $0x30] sm:$0xff] %vm4249_vm7, %v4160_v47  ;;  %v4469_v47 = vld [vmem:[%s13364_s9 + $0xa0] sm:$0xff] }
 0x66d   : > { %v4083_v48 = vpop.permute.xlu0 %4082  ;;  %4308 = vrot.lane.b32.xlu1 %v11000_v22, %s8157_s20 }
 0x66e   : > { %4149 = vst.msk [vmem:[#allocation4 + $0x1e0] sm:$0xff] %vm4118_vm6, %v4083_v48  ;;  %v11386_v48 = vld [vmem:[%s13364_s9 + $0xa8] sm:$0xff] }
 0x66f   : > { %v4158_v39 = vpop.permute.xlu1 %4157 }
 0x670   : > { %4252 = vst.msk [vmem:[#allocation4 + $0x20] sm:$0xff] %vm4249_vm7, %v4158_v39  ;;  %4298 = vrot.lane.b32.xlu2 %v11007_v25, %s8157_s20 }
 0x672   : > { %v4166_v60 = vpop.permute.xlu2 %4165 }
 0x673   : > { %4306 = vrot.lane.b32.xlu0 %v11011_v24, %s8157_s20  ;;  %4256 = vst.msk [vmem:[#allocation4 + $0x60] sm:$0xff] %vm4249_vm7, %v4166_v60 }
 0x675   : > { %v4156_v7 = vpop.permute.xlu0 %4155  ;;  %4314 = vrot.lane.b32.xlu1 %v11015_v61, %s8157_s20 }
 0x676   : > { %4251 = vst.msk [vmem:[#allocation4 + $0x10] sm:$0xff] %vm4249_vm7, %v4156_v7  ;;  %v4465_v7 = vld [vmem:[%s13364_s9 + $0x80] sm:$0xff] }
 0x677   : > { %v4164_v22 = vpop.permute.xlu1 %4163 }
 0x678   : > { %4255 = vst.msk [vmem:[#allocation4 + $0x50] sm:$0xff] %vm4249_vm7, %v4164_v22  ;;  %4304 = vrot.lane.b32.xlu2 %v11022_v58, %s8157_s20 }
 0x67a   : > { %v4172_v25 = vpop.permute.xlu2 %4171 }
 0x67b   : > { %4312 = vrot.lane.b32.xlu0 %v11026_v17, %s8157_s20  ;;  %4259 = vst.msk [vmem:[#allocation4 + $0x90] sm:$0xff] %vm4249_vm7, %v4172_v25  ;;  %v4472_v25 = vld [vmem:[%s13364_s9 + $0xb8] sm:$0xff] }
 0x67d   : > { %v4162_v24 = vpop.permute.xlu0 %4161  ;;  %4320 = vrot.lane.b32.xlu1 %v11030_v13, %s8157_s20 }
 0x67e   : > { %4254 = vst.msk [vmem:[#allocation4 + $0x40] sm:$0xff] %vm4249_vm7, %v4162_v24  ;;  %v11401_v24 = vld [vmem:[%s13364_s9 + $0xc0] sm:$0xff] }
 0x67f   : > { %v4170_v61 = vpop.permute.xlu1 %4169 }
 0x680   : > { %4258 = vst.msk [vmem:[#allocation4 + $0x80] sm:$0xff] %vm4249_vm7, %v4170_v61  ;;  %4310 = vrot.lane.b32.xlu2 %v11037_v28, %s8157_s20 }
 0x682   : > { %v4178_v58 = vpop.permute.xlu2 %4177 }
 0x683   : > { %4318 = vrot.lane.b32.xlu0 %v11041_v45, %s8157_s20  ;;  %4262 = vst.msk [vmem:[#allocation4 + $0xc0] sm:$0xff] %vm4249_vm7, %v4178_v58 }
 0x685   : > { %v4168_v17 = vpop.permute.xlu0 %4167  ;;  %4326 = vrot.lane.b32.xlu1 %v11045_v27, %s8157_s20 }
 0x686   : > { %4257 = vst.msk [vmem:[#allocation4 + $0x70] sm:$0xff] %vm4249_vm7, %v4168_v17  ;;  %v4468_v17 = vld [vmem:[%s13364_s9 + $0x98] sm:$0xff] }
 0x687   : > { %v4176_v13 = vpop.permute.xlu1 %4175 }
 0x688   : > { %4261 = vst.msk [vmem:[#allocation4 + $0xb0] sm:$0xff] %vm4249_vm7, %v4176_v13  ;;  %4316 = vrot.lane.b32.xlu2 %v11052_v44, %s8157_s20 }
 0x68a   : > { %v4184_v28 = vpop.permute.xlu2 %4183 }
 0x68b   : > { %4324 = vrot.lane.b32.xlu0 %v11056_v8, %s8157_s20  ;;  %4265 = vst.msk [vmem:[#allocation4 + $0xf0] sm:$0xff] %vm4249_vm7, %v4184_v28  ;;  %v4475_v28 = vld [vmem:[%s13364_s9 + $0xd0] sm:$0xff] }
 0x68d   : > { %v4174_v45 = vpop.permute.xlu0 %4173  ;;  %4332 = vrot.lane.b32.xlu1 %v11060_v1, %s8157_s20 }
 0x68e   : > { %4260 = vst.msk [vmem:[#allocation4 + $0xa0] sm:$0xff] %vm4249_vm7, %v4174_v45  ;;  %v11416_v45 = vld [vmem:[%s13364_s9 + $0xd8] sm:$0xff] }
 0x68f   : > { %v4182_v27 = vpop.permute.xlu1 %4181 }
 0x690   : > { %4264 = vst.msk [vmem:[#allocation4 + $0xe0] sm:$0xff] %vm4249_vm7, %v4182_v27  ;;  %4322 = vrot.lane.b32.xlu2 %v11067_v36, %s8157_s20 }
 0x692   : > { %v4190_v44 = vpop.permute.xlu2 %4189 }
 0x693   : > { %4330 = vrot.lane.b32.xlu0 %v11071_v53, %s8157_s20  ;;  %4268 = vst.msk [vmem:[#allocation4 + $0x120] sm:$0xff] %vm4249_vm7, %v4190_v44 }
 0x695   : > { %v4180_v8 = vpop.permute.xlu0 %4179  ;;  %4338 = vrot.lane.b32.xlu1 %v11075_v5, %s8157_s20 }
 0x696   : > { %4263 = vst.msk [vmem:[#allocation4 + $0xd0] sm:$0xff] %vm4249_vm7, %v4180_v8  ;;  %v4471_v8 = vld [vmem:[%s13364_s9 + $0xb0] sm:$0xff] }
 0x697   : > { %v4188_v1 = vpop.permute.xlu1 %4187 }
 0x698   : > { %4267 = vst.msk [vmem:[#allocation4 + $0x110] sm:$0xff] %vm4249_vm7, %v4188_v1  ;;  %4328 = vrot.lane.b32.xlu2 %v11082_v0, %s8157_s20  ;;  %v11285_v0 = vld [vmem:[%s13364_s9 + $0x8] sm:$0xff] }
 0x69a   : > { %v4196_v36 = vpop.permute.xlu2 %4195 }
 0x69b   : > { %4336 = vrot.lane.b32.xlu0 %v11086_v19, %s8157_s20  ;;  %4271 = vst.msk [vmem:[#allocation4 + $0x150] sm:$0xff] %vm4249_vm7, %v4196_v36  ;;  %v11431_v36 = vld [vmem:[%s13364_s9 + $0xf0] sm:$0xff] }
 0x69d   : > { %v4186_v53 = vpop.permute.xlu0 %4185  ;;  %4344 = vrot.lane.b32.xlu1 %v3988_v29, %s8157_s20  ;;  %v4478_v29 = vld [vmem:[%s13364_s9 + $0xe8] sm:$0xff] }
 0x69e   : > { %4266 = vst.msk [vmem:[#allocation4 + $0x100] sm:$0xff] %vm4249_vm7, %v4186_v53 }
 0x69f   : > { %v4194_v5 = vpop.permute.xlu1 %4193 }
 0x6a0   : > { %4270 = vst.msk [vmem:[#allocation4 + $0x140] sm:$0xff] %vm4249_vm7, %v4194_v5  ;;  %4334 = vrot.lane.b32.xlu2 %v11095_v18, %s8157_s20  ;;  %v4449_v18 = vld [vmem:[%s13364_s9] sm:$0xff] }
 0x6a2   : > { %v4202_v19 = vpop.permute.xlu2 %4201 }
 0x6a3   : > { %4342 = vrot.lane.b32.xlu0 %v11189_v55, %s8157_s20  ;;  %4274 = vst.msk [vmem:[#allocation4 + $0x180] sm:$0xff] %vm4249_vm7, %v4202_v19  ;;  %v11356_v55 = vld [vmem:[%s13364_s9 + $0x78] sm:$0xff]  ;;  %v4474_v19 = vld [vmem:[%s13364_s9 + $0xc8] sm:$0xff] }
 0x6a5   : > { %v4192_v54 = vpop.permute.xlu0 %4191  ;;  %4492 = vperm.xlu1 %7915, %v11285_v0  }
 0x6a6   : > { %4269 = vst.msk [vmem:[#allocation4 + $0x130] sm:$0xff] %vm4249_vm7, %v4192_v54 }
 0x6a7   : > { %v4200_v23 = vpop.permute.xlu1 %4199 }
 0x6a8   : > { %4273 = vst.msk [vmem:[#allocation4 + $0x170] sm:$0xff] %vm4249_vm7, %v4200_v23  ;;  %4340 = vrot.lane.b32.xlu2 %v11198_v37, %s8157_s20  ;;  %v4481_v23 = vld [vmem:[%s13364_s9 + $0x100] sm:$0xff] }
 0x6aa   : > { %v4208_v10 = vpop.permute.xlu2 %4207 }
 0x6ab   : > { %4487 = vperm.xlu0 %7914, %v4449_v18   ;;  %4277 = vst.msk [vmem:[#allocation4 + $0x1b0] sm:$0xff] %vm4249_vm7, %v4208_v10  ;;  %v11446_v18 = vld [vmem:[%s13364_s9 + $0x108] sm:$0xff] }
 0x6ad   : > { %v4198_v41 = vpop.permute.xlu0 %4197  ;;  %4502 = vperm.xlu1 %7915, %v4452_v20  }
 0x6ae   : > { %4272 = vst.msk [vmem:[#allocation4 + $0x160] sm:$0xff] %vm4249_vm7, %v4198_v41  ;;  %v4477_v41 = vld [vmem:[%s13364_s9 + $0xe0] sm:$0xff] }
 0x6af   : > { %v4206_v14 = vpop.permute.xlu1 %4205 }
 0x6b0   : > { %4276 = vst.msk [vmem:[#allocation4 + $0x1a0] sm:$0xff] %vm4249_vm7, %v4206_v14  ;;  %4346 = vrot.lane.b32.xlu2 %v3989_v43, %s8157_s20  ;;  %v5106_v14 = vld [vmem:[%s13360_s5 + $0x88] sm:$0xff] }
 0x6b1   : > { %5334 = vmatpush.msrb.mxu2 %v5106_v14 }
 0x6b2   : > { %v4214_v31 = vpop.permute.xlu2 %4213 }
 0x6b3   : > { %4512 = vperm.xlu0 %7914, %v4454_v34   ;;  %4280 = vst.msk [vmem:[#allocation4 + $0x1e0] sm:$0xff] %vm4249_vm7, %v4214_v31 }
 0x6b5   : > { %v4204_v15 = vpop.permute.xlu0 %4203  ;;  %4517 = vperm.xlu1 %7915, %v11311_v35  }
 0x6b6   : > { %4275 = vst.msk [vmem:[#allocation4 + $0x190] sm:$0xff] %vm4249_vm7, %v4204_v15  ;;  %v4480_v15 = vld [vmem:[%s13364_s9 + $0xf8] sm:$0xff] }
 0x6b7   : > { %v4212_v6 = vpop.permute.xlu1 %4211 }
 0x6b8   : > { %4279 = vst.msk [vmem:[#allocation4 + $0x1d0] sm:$0xff] %vm4249_vm7, %v4212_v6  ;;  %4497 = vperm.xlu2 %7916, %v4451_v30   ;;  %v5105_v6 = vld [vmem:[%s13360_s5 + $0x80] sm:$0xff] }
 0x6b9   : > { %5335 = vmatpush.msrb.mxu2 %v5105_v6 }
 0x6ba   : > { %v4287_v59 = vpop.permute.xlu2 %4286 }
 0x6bb   : > { %4527 = vperm.xlu0 %7914, %v4457_v33   ;;  %4382 = vst.msk [vmem:[#allocation4 + $0x10] sm:$0xff] %vm4380_vm8, %v4287_v59 }
 0x6bd   : > { %v4210_v50 = vpop.permute.xlu0 %4209  ;;  %4532 = vperm.xlu1 %7915, %v11326_v12  }
 0x6be   : > { %4278 = vst.msk [vmem:[#allocation4 + $0x1c0] sm:$0xff] %vm4249_vm7, %v4210_v50  ;;  %v4483_v50 = vld [vmem:[%s13364_s9 + $0x110] sm:$0xff] }
 0x6bf   : > { %v4285_v62 = vpop.permute.xlu1 %4284 }
 0x6c0   : > { %4381 = vst.msk [vmem:[#allocation4] sm:$0xff] %vm4380_vm8, %v4285_v62  ;;  %4507 = vperm.xlu2 %7916, %v4453_v16   ;;  %v4415_v62 = vld [vmem:[#allocation3 + $0x19] sm:$0xff] }
 0x6c2   : > { %v4293_v57 = vpop.permute.xlu2 %4292 }
 0x6c3   : > { %4542 = vperm.xlu0 %7914, %v4460_v42   ;;  %4385 = vst.msk [vmem:[#allocation4 + $0x40] sm:$0xff] %vm4380_vm8, %v4293_v57 }
 0x6c5   : > { %v4216_v26 = vpop.permute.xlu0 %4215  ;;  %4547 = vperm.xlu1 %7915, %v11341_v38  }
 0x6c6   : > { %4281 = vst.msk [vmem:[#allocation4 + $0x1f0] sm:$0xff] %vm4249_vm7, %v4216_v26 }
 0x6c7   : > { %v4291_v49 = vpop.permute.xlu1 %4290 }
 0x6c8   : > { %4384 = vst.msk [vmem:[#allocation4 + $0x30] sm:$0xff] %vm4380_vm8, %v4291_v49  ;;  %4522 = vperm.xlu2 %7916, %v4456_v40   ;;  %v4414_v40 = vld [vmem:[#allocation3 + $0x11] sm:$0xff] }
 0x6ca   : > { %v4299_v63 = vpop.permute.xlu2 %4298 }
 0x6cb   : > { %4557 = vperm.xlu0 %7914, %v4463_v11   ;;  %4388 = vst.msk [vmem:[#allocation4 + $0x70] sm:$0xff] %vm4380_vm8, %v4299_v63  ;;  %v4413_v63 = vld [vmem:[#allocation3 + $0x9] sm:$0xff] }
 0x6cd   : > { %v4289_v2 = vpop.permute.xlu0 %4288  ;;  %4562 = vperm.xlu1 %7915, %v11356_v55  }
 0x6ce   : > { %4383 = vst.msk [vmem:[#allocation4 + $0x20] sm:$0xff] %vm4380_vm8, %v4289_v2  ;;  %v4417_v2 = vld [vmem:[#allocation3 + $0x29] sm:$0xff] }
 0x6cf   : > { %v4297_v37 = vpop.permute.xlu1 %4296 }
 0x6d0   : > { %4387 = vst.msk [vmem:[#allocation4 + $0x60] sm:$0xff] %vm4380_vm8, %v4297_v37  ;;  %4537 = vperm.xlu2 %7916, %v4459_v52  }
 0x6d2   : > { %v4305_v32 = vpop.permute.xlu2 %4304 }
 0x6d3   : > { %4572 = vperm.xlu0 %7914, %v4466_v46   ;;  %4391 = vst.msk [vmem:[#allocation4 + $0xa0] sm:$0xff] %vm4380_vm8, %v4305_v32 }
 0x6d5   : > { %v4295_v21 = vpop.permute.xlu0 %4294  ;;  %4577 = vperm.xlu1 %7915, %v11371_v56  }
 0x6d6   : > { %4386 = vst.msk [vmem:[#allocation4 + $0x50] sm:$0xff] %vm4380_vm8, %v4295_v21 }
 0x6d7   : > { %v4303_v4 = vpop.permute.xlu1 %4302 }
 0x6d8   : > { %4390 = vst.msk [vmem:[#allocation4 + $0x90] sm:$0xff] %vm4380_vm8, %v4303_v4  ;;  %4552 = vperm.xlu2 %7916, %v4462_v9   ;;  %v4420_v9 = vld [vmem:[#allocation3 + $0x41] sm:$0xff] }
 0x6da   : > { %v4311_v39 = vpop.permute.xlu2 %4310 }
 0x6db   : > { %4587 = vperm.xlu0 %7914, %v4469_v47   ;;  %4394 = vst.msk [vmem:[#allocation4 + $0xd0] sm:$0xff] %vm4380_vm8, %v4311_v39  ;;  %v4418_v39 = vld [vmem:[#allocation3 + $0x31] sm:$0xff] }
 0x6dd   : > { %v4301_v60 = vpop.permute.xlu0 %4300  ;;  %4592 = vperm.xlu1 %7915, %v11386_v48  }
 0x6de   : > { %4389 = vst.msk [vmem:[#allocation4 + $0x80] sm:$0xff] %vm4380_vm8, %v4301_v60 }
 0x6df   : > { %v4309_v22 = vpop.permute.xlu1 %4308 }
 0x6e0   : > { %4393 = vst.msk [vmem:[#allocation4 + $0xc0] sm:$0xff] %vm4380_vm8, %v4309_v22  ;;  %4567 = vperm.xlu2 %7916, %v4465_v7  }
 0x6e2   : > { %v4317_v61 = vpop.permute.xlu2 %4316 }
 0x6e3   : > { %4602 = vperm.xlu0 %7914, %v4472_v25   ;;  %4397 = vst.msk [vmem:[#allocation4 + $0x100] sm:$0xff] %vm4380_vm8, %v4317_v61  ;;  %v4419_v61 = vld [vmem:[#allocation3 + $0x39] sm:$0xff] }
 0x6e5   : > { %v4307_v58 = vpop.permute.xlu0 %4306  ;;  %4607 = vperm.xlu1 %7915, %v11401_v24  }
 0x6e6   : > { %4392 = vst.msk [vmem:[#allocation4 + $0xb0] sm:$0xff] %vm4380_vm8, %v4307_v58 }
 0x6e7   : > { %v4315_v13 = vpop.permute.xlu1 %4314 }
 0x6e8   : > { %4396 = vst.msk [vmem:[#allocation4 + $0xf0] sm:$0xff] %vm4380_vm8, %v4315_v13  ;;  %4582 = vperm.xlu2 %7916, %v4468_v17   ;;  %v4423_v13 = vld [vmem:[#allocation3 + $0x59] sm:$0xff] }
 0x6ea   : > { %v4323_v27 = vpop.permute.xlu2 %4322 }
 0x6eb   : > { %4617 = vperm.xlu0 %7914, %v4475_v28   ;;  %4400 = vst.msk [vmem:[#allocation4 + $0x130] sm:$0xff] %vm4380_vm8, %v4323_v27 }
 0x6ed   : > { %v4313_v44 = vpop.permute.xlu0 %4312  ;;  %4622 = vperm.xlu1 %7915, %v11416_v45  }
 0x6ee   : > { %4395 = vst.msk [vmem:[#allocation4 + $0xe0] sm:$0xff] %vm4380_vm8, %v4313_v44  ;;  %v4421_v44 = vld [vmem:[#allocation3 + $0x49] sm:$0xff] }
 0x6ef   : > { %v4321_v1 = vpop.permute.xlu1 %4320 }
 0x6f0   : > { %4399 = vst.msk [vmem:[#allocation4 + $0x120] sm:$0xff] %vm4380_vm8, %v4321_v1  ;;  %4597 = vperm.xlu2 %7916, %v4471_v8  }
 0x6f2   : > { %v4329_v53 = vpop.permute.xlu2 %4328 }
 0x6f3   : > { %4632 = vperm.xlu0 %7914, %v4478_v29   ;;  %4403 = vst.msk [vmem:[#allocation4 + $0x160] sm:$0xff] %vm4380_vm8, %v4329_v53  ;;  %v4422_v53 = vld [vmem:[#allocation3 + $0x51] sm:$0xff] }
 0x6f5   : > { %v4319_v5 = vpop.permute.xlu0 %4318  ;;  %4637 = vperm.xlu1 %7915, %v11431_v36  }
 0x6f6   : > { %4398 = vst.msk [vmem:[#allocation4 + $0x110] sm:$0xff] %vm4380_vm8, %v4319_v5 }
 0x6f7   : > { %v4327_v54 = vpop.permute.xlu1 %4326 }
 0x6f8   : > { %4402 = vst.msk [vmem:[#allocation4 + $0x150] sm:$0xff] %vm4380_vm8, %v4327_v54  ;;  %4612 = vperm.xlu2 %7916, %v4474_v19   ;;  %v4426_v54 = vld [vmem:[#allocation3 + $0x71] sm:$0xff] }
 0x6fa   : > { %v4335_v20 = vpop.permute.xlu2 %4334 }
 0x6fb   : > { %4647 = vperm.xlu0 %7914, %v4481_v23   ;;  %4406 = vst.msk [vmem:[#allocation4 + $0x190] sm:$0xff] %vm4380_vm8, %v4335_v20 }
 0x6fd   : > { %v4325_v10 = vpop.permute.xlu0 %4324  ;;  %4652 = vperm.xlu1 %7915, %v11446_v18  }
 0x6fe   : > { %4401 = vst.msk [vmem:[#allocation4 + $0x140] sm:$0xff] %vm4380_vm8, %v4325_v10  ;;  %v4424_v10 = vld [vmem:[#allocation3 + $0x61] sm:$0xff] }
 0x6ff   : > { %v4333_v43 = vpop.permute.xlu1 %4332 }
 0x700   : > { %4405 = vst.msk [vmem:[#allocation4 + $0x180] sm:$0xff] %vm4380_vm8, %v4333_v43  ;;  %4627 = vperm.xlu2 %7916, %v4477_v41  }
 0x702   : > { %v4341_v34 = vpop.permute.xlu2 %4340 }
 0x703   : > { %7918 = vset.pattern.permute.xlu0 %v8143_v3  ;;  %4409 = vst.msk [vmem:[#allocation4 + $0x1c0] sm:$0xff] %vm4380_vm8, %v4341_v34  ;;  %v4425_v34 = vld [vmem:[#allocation3 + $0x69] sm:$0xff] }
 0x705   : > { %v4331_v31 = vpop.permute.xlu0 %4330  ;;  %7919 = vset.pattern.permute.xlu1 %v8143_v3 }
 0x706   : > { %4404 = vst.msk [vmem:[#allocation4 + $0x170] sm:$0xff] %vm4380_vm8, %v4331_v31 }
 0x707   : > { %v4339_v30 = vpop.permute.xlu1 %4338 }
 0x708   : > { %4408 = vst.msk [vmem:[#allocation4 + $0x1b0] sm:$0xff] %vm4380_vm8, %v4339_v30  ;;  %4642 = vperm.xlu2 %7916, %v4480_v15   ;;  %v4429_v30 = vld [vmem:[#allocation3 + $0x89] sm:$0xff] }
 0x70a   : > { %v4347_v33 = vpop.permute.xlu2 %4346 }
 0x70b   : > { %4412 = vst.msk [vmem:[#allocation4 + $0x1f0] sm:$0xff] %vm4380_vm8, %v4347_v33 }
 0x70d   : > { %v4337_v59 = vpop.permute.xlu0 %4336 }
 0x70e   : > { %4407 = vst.msk [vmem:[#allocation4 + $0x1a0] sm:$0xff] %vm4380_vm8, %v4337_v59  ;;  %v4427_v59 = vld [vmem:[#allocation3 + $0x79] sm:$0xff] }
 0x70f   : > { %v4345_v16 = vpop.permute.xlu1 %4344 }
 0x710   : > { %4411 = vst.msk [vmem:[#allocation4 + $0x1e0] sm:$0xff] %vm4380_vm8, %v4345_v16  ;;  %4657 = vperm.xlu2 %7916, %v4483_v50  }
 0x712   : > { %v4498_v42 = vpop.permute.xlu2 %4497 }
 0x713   : > { %v11475_v57 = vmul.f32 %v4498_v42, %v4415_v62  ;;  %v4428_v42 = vld [vmem:[#allocation3 + $0x81] sm:$0xff] }
 0x715   : > { %v4343_v26 = vpop.permute.xlu0 %4342  ;;  %4737 = vrot.lane.b32.xlu0 %v11475_v57, %s8158_s25 }
 0x716   : > { %4410 = vst.msk [vmem:[#allocation4 + $0x1d0] sm:$0xff] %vm4380_vm8, %v4343_v26 }
 0x717   : > { %v4493_v49 = vpop.permute.xlu1 %4492 }
 0x718   : > { %v4666_v11 = vmul.f32 %v4493_v49, %v4414_v40  ;;  %7917 = vset.pattern.permute.xlu2 %v8143_v3  ;;  %v4416_v3 = vld [vmem:[#allocation3 + $0x21] sm:$0xff] }
 0x719   : > { %v4432_v49 = vld [vmem:[#allocation3 + $0xa1] sm:$0xff] }
 0x71a   : > { %4735 = vrot.lane.b32.xlu2 %v4666_v11, %s8158_s25  ;;  %v4508_v52 = vpop.permute.xlu2 %4507 }
 0x71b   : > { %v11482_v37 = vmul.f32 %v4508_v52, %v4417_v2  ;;  %v4430_v2 = vld [vmem:[#allocation3 + $0x91] sm:$0xff] }
 0x71d   : > { %v4488_v46 = vpop.permute.xlu0 %4487  ;;  %4993 = vst.msk [vmem:[#allocation4 + $0x8] sm:$0xff] %vm403_vm0, %v11482_v37 }
 0x71e   : > { %v4665_v32 = vmul.f32 %v4488_v46, %v4413_v63 }
 0x71f   : > { %v4503_v21 = vpop.permute.xlu1 %4502 }
 0x720   : > { %4733 = vrot.lane.b32.xlu1 %v4665_v32, %s8158_s25  ;;  %v11491_v22 = vmul.f32 %v4503_v21, %v4416_v3  ;;  %v4431_v21 = vld [vmem:[#allocation3 + $0x99] sm:$0xff] }
 0x721   : > { %v4435_v3 = vld [vmem:[#allocation3 + $0xb9] sm:$0xff] }
 0x722   : > { %4741 = vrot.lane.b32.xlu2 %v11482_v37, %s8158_s25  ;;  %v4523_v4 = vpop.permute.xlu2 %4522 }
 0x723   : > { %v11489_v47 = vmul.f32 %v4523_v4, %v4420_v9 }
 0x724   : > { %v5026_v7 = vld [vmem:[#allocation4 + $0x8] sm:$0xff] }
 0x725   : > { %v4513_v60 = vpop.permute.xlu0 %4512  ;;  %4996 = vst.msk [vmem:[#allocation4 + $0x38] sm:$0xff] %vm403_vm0, %v11489_v47  ;;  %7806 = vmatmul.msk.f32.vlgmr.msrb.gmra.mxu2 %vm403_vm0, %v5026_v7  ;;  %v4433_v7 = vld [vmem:[#allocation3 + $0xa9] sm:$0xff] }
 0x726   : > { %v11493_v25 = vmul.f32 %v4513_v60, %v4418_v39 }
 0x727   : > { %v4518_v58 = vpop.permute.xlu1 %4517 }
 0x728   : > { %4994 = vst.msk [vmem:[#allocation4 + $0x18] sm:$0xff] %vm403_vm0, %v11493_v25  ;;  %4743 = vrot.lane.b32.xlu0 %v11493_v25, %s8158_s25  ;;  %4739 = vrot.lane.b32.xlu1 %v11491_v22, %s8158_s25  ;;  %v11504_v17 = vmul.f32 %v4518_v58, %v4419_v61 }
 0x72a   : > { %4995 = vst.msk [vmem:[#allocation4 + $0x28] sm:$0xff] %vm403_vm0, %v11504_v17  ;;  %4747 = vrot.lane.b32.xlu2 %v11489_v47, %s8158_s25  ;;  %v4538_v28 = vpop.permute.xlu2 %4537 }
 0x72b   : > { %v11510_v27 = vmul.f32 %v4538_v28, %v4423_v13  ;;  %v4434_v28 = vld [vmem:[#allocation3 + $0xb1] sm:$0xff] }
 0x72c   : > { %v5032_v62 = vld [vmem:[#allocation4 + $0x38] sm:$0xff] }
 0x72d   : > { %v4528_v8 = vpop.permute.xlu0 %4527  ;;  %4999 = vst.msk [vmem:[#allocation4 + $0x68] sm:$0xff] %vm403_vm0, %v11510_v27 }
 0x72e   : > { %v11512_v1 = vmul.f32 %v4528_v8, %v4421_v44 }
 0x72f   : > { %v5028_v29 = vld [vmem:[#allocation4 + $0x18] sm:$0xff]  ;;  %v4533_v5 = vpop.permute.xlu1 %4532 }
 0x730   : > { %4997 = vst.msk [vmem:[#allocation4 + $0x48] sm:$0xff] %vm403_vm0, %v11512_v1  ;;  %4749 = vrot.lane.b32.xlu0 %v11512_v1, %s8158_s25  ;;  %7807 = vmatmul.msk.f32.gmra.mxu2 %vm403_vm0, %v5028_v29  ;;  %v11521_v19 = vmul.f32 %v4533_v5, %v4422_v53  ;;  %v4438_v29 = vld [vmem:[#allocation3 + $0xd1] sm:$0xff] }
 0x731   : > { %4745 = vrot.lane.b32.xlu1 %v11504_v17, %s8158_s25  ;;  %v5030_v14 = vld [vmem:[#allocation4 + $0x28] sm:$0xff] }
 0x732   : > { %4998 = vst.msk [vmem:[#allocation4 + $0x58] sm:$0xff] %vm403_vm0, %v11521_v19  ;;  %4753 = vrot.lane.b32.xlu2 %v11510_v27, %s8158_s25  ;;  %v4553_v23 = vpop.permute.xlu2 %4552 }
 0x733   : > { %v11529_v20 = vmul.f32 %v4553_v23, %v4426_v54  ;;  %v4436_v54 = vld [vmem:[#allocation3 + $0xc1] sm:$0xff] }
 0x735   : > { %v4543_v41 = vpop.permute.xlu0 %4542  ;;  %5002 = vst.msk [vmem:[#allocation4 + $0x98] sm:$0xff] %vm403_vm0, %v11529_v20 }
 0x736   : > { %v11531_v43 = vmul.f32 %v4543_v41, %v4424_v10  ;;  %v5038_v41 = vld [vmem:[#allocation4 + $0x68] sm:$0xff] }
 0x737   : > { %v4548_v31 = vpop.permute.xlu1 %4547  ;;  %v5034_v32 = vld [vmem:[#allocation4 + $0x48] sm:$0xff] }
 0x738   : > { %5000 = vst.msk [vmem:[#allocation4 + $0x78] sm:$0xff] %vm403_vm0, %v11531_v43  ;;  %4755 = vrot.lane.b32.xlu0 %v11531_v43, %s8158_s25  ;;  %7808 = vmatmul.msk.f32.gmra.mxu2 %vm403_vm0, %v5030_v14  ;;  %v11540_v15 = vmul.f32 %v4548_v31, %v4425_v34  ;;  %v4437_v14 = vld [vmem:[#allocation3 + $0xc9] sm:$0xff] }
 0x739   : > { %4751 = vrot.lane.b32.xlu1 %v11521_v19, %s8158_s25  ;;  %v5036_v13 = vld [vmem:[#allocation4 + $0x58] sm:$0xff] }
 0x73a   : > { %5001 = vst.msk [vmem:[#allocation4 + $0x88] sm:$0xff] %vm403_vm0, %v11540_v15  ;;  %4759 = vrot.lane.b32.xlu2 %v11529_v20, %s8158_s25  ;;  %v4568_v6 = vpop.permute.xlu2 %4567 }
 0x73b   : > { %v11548_v33 = vmul.f32 %v4568_v6, %v4429_v30  ;;  %v4441_v30 = vld [vmem:[#allocation3 + $0xe9] sm:$0xff] }
 0x73d   : > { %v4558_v50 = vpop.permute.xlu0 %4557  ;;  %5005 = vst.msk [vmem:[#allocation4 + $0xc8] sm:$0xff] %vm403_vm0, %v11548_v33 }
 0x73e   : > { %v11550_v16 = vmul.f32 %v4558_v50, %v4427_v59  ;;  %v4439_v50 = vld [vmem:[#allocation3 + $0xd9] sm:$0xff] }
 0x73f   : > { %v4563_v26 = vpop.permute.xlu1 %4562 }
 0x740   : > { %5003 = vst.msk [vmem:[#allocation4 + $0xa8] sm:$0xff] %vm403_vm0, %v11550_v16  ;;  %4761 = vrot.lane.b32.xlu0 %v11550_v16, %s8158_s25  ;;  %7809 = vmatmul.msk.f32.gmra.mxu2 %vm403_vm0, %v5032_v62  ;;  %v11559_v40 = vmul.f32 %v4563_v26, %v4428_v42  ;;  %v5040_v26 = vld [vmem:[#allocation4 + $0x78] sm:$0xff] }
 0x741   : > { %4757 = vrot.lane.b32.xlu1 %v11540_v15, %s8158_s25 }
 0x742   : > { %5004 = vst.msk [vmem:[#allocation4 + $0xb8] sm:$0xff] %vm403_vm0, %v11559_v40  ;;  %4765 = vrot.lane.b32.xlu2 %v11548_v33, %s8158_s25  ;;  %v4583_v11 = vpop.permute.xlu2 %4582 }
 0x743   : > { %v11567_v63 = vmul.f32 %v4583_v11, %v4432_v49  ;;  %v4440_v49 = vld [vmem:[#allocation3 + $0xe1] sm:$0xff] }
 0x745   : > { %v4573_v52 = vpop.permute.xlu0 %4572  ;;  %5008 = vst.msk [vmem:[#allocation4 + $0xf8] sm:$0xff] %vm403_vm0, %v11567_v63 }
 0x746   : > { %v11569_v46 = vmul.f32 %v4573_v52, %v4430_v2  ;;  %v4444_v52 = vld [vmem:[#allocation3 + $0x101] sm:$0xff] }
 0x747   : > { %v4578_v9 = vpop.permute.xlu1 %4577 }
 0x748   : > { %5006 = vst.msk [vmem:[#allocation4 + $0xd8] sm:$0xff] %vm403_vm0, %v11569_v46  ;;  %4767 = vrot.lane.b32.xlu0 %v11569_v46, %s8158_s25  ;;  %7810 = vmatmul.msk.f32.gmra.mxu2 %vm403_vm0, %v5034_v32  ;;  %v11578_v4 = vmul.f32 %v4578_v9, %v4431_v21  ;;  %v4442_v9 = vld [vmem:[#allocation3 + $0xf1] sm:$0xff] }
 0x749   : > { %4763 = vrot.lane.b32.xlu1 %v11559_v40, %s8158_s25 }
 0x74a   : > { %5007 = vst.msk [vmem:[#allocation4 + $0xe8] sm:$0xff] %vm403_vm0, %v11578_v4  ;;  %4771 = vrot.lane.b32.xlu2 %v11567_v63, %s8158_s25  ;;  %v4598_v39 = vpop.permute.xlu2 %4597 }
 0x74b   : > { %v11586_v60 = vmul.f32 %v4598_v39, %v4435_v3 }
 0x74d   : > { %v4588_v61 = vpop.permute.xlu0 %4587  ;;  %5011 = vst.msk [vmem:[#allocation4 + $0x128] sm:$0xff] %vm403_vm0, %v11586_v60 }
 0x74e   : > { %v11588_v58 = vmul.f32 %v4588_v61, %v4433_v7  ;;  %v5042_v7 = vld [vmem:[#allocation4 + $0x88] sm:$0xff] }
 0x74f   : > { %v4593_v44 = vpop.permute.xlu1 %4592  ;;  %v4443_v61 = vld [vmem:[#allocation3 + $0xf9] sm:$0xff] }
 0x750   : > { %5009 = vst.msk [vmem:[#allocation4 + $0x108] sm:$0xff] %vm403_vm0, %v11588_v58  ;;  %4773 = vrot.lane.b32.xlu0 %v11588_v58, %s8158_s25  ;;  %7811 = vmatmul.msk.f32.gmra.mxu2 %vm403_vm0, %v5036_v13  ;;  %v11597_v8 = vmul.f32 %v4593_v44, %v4434_v28  ;;  %v4447_v44 = vld [vmem:[#allocation3 + $0x119] sm:$0xff] }
 0x751   : > { %4769 = vrot.lane.b32.xlu1 %v11578_v4, %s8158_s25 }
 0x752   : > { %5010 = vst.msk [vmem:[#allocation4 + $0x118] sm:$0xff] %vm403_vm0, %v11597_v8  ;;  %4777 = vrot.lane.b32.xlu2 %v11586_v60, %s8158_s25  ;;  %v4613_v53 = vpop.permute.xlu2 %4612 }
 0x753   : > { %v11605_v5 = vmul.f32 %v4613_v53, %v4438_v29 }
 0x755   : > { %v4603_v23 = vpop.permute.xlu0 %4602  ;;  %5014 = vst.msk [vmem:[#allocation4 + $0x158] sm:$0xff] %vm403_vm0, %v11605_v5 }
 0x756   : > { %v11607_v10 = vmul.f32 %v4603_v23, %v4436_v54  ;;  %v4445_v54 = vld [vmem:[#allocation3 + $0x109] sm:$0xff] }
 0x757   : > { %v4608_v34 = vpop.permute.xlu1 %4607 }
 0x758   : > { %5012 = vst.msk [vmem:[#allocation4 + $0x138] sm:$0xff] %vm403_vm0, %v11607_v10  ;;  %4779 = vrot.lane.b32.xlu0 %v11607_v10, %s8158_s25  ;;  %7812 = vmatmul.msk.f32.gmra.mxu2 %vm403_vm0, %v5038_v41  ;;  %v11616_v31 = vmul.f32 %v4608_v34, %v4437_v14  ;;  %v5044_v14 = vld [vmem:[#allocation4 + $0x98] sm:$0xff]  ;;  %v4446_v34 = vld [vmem:[#allocation3 + $0x111] sm:$0xff] }
 0x759   : > { %4775 = vrot.lane.b32.xlu1 %v11597_v8, %s8158_s25 }
 0x75a   : > { %5013 = vst.msk [vmem:[#allocation4 + $0x148] sm:$0xff] %vm403_vm0, %v11616_v31  ;;  %4783 = vrot.lane.b32.xlu2 %v11605_v5, %s8158_s25  ;;  %v4628_v6 = vpop.permute.xlu2 %4627 }
 0x75b   : > { %v11624_v59 = vmul.f32 %v4628_v6, %v4441_v30 }
 0x75d   : > { %v4618_v62 = vpop.permute.xlu0 %4617  ;;  %5017 = vst.msk [vmem:[#allocation4 + $0x188] sm:$0xff] %vm403_vm0, %v11624_v59 }
 0x75e   : > { %v11626_v42 = vmul.f32 %v4618_v62, %v4439_v50  ;;  %v5046_v62 = vld [vmem:[#allocation4 + $0xa8] sm:$0xff] }
 0x75f   : > { %v4623_v11 = vpop.permute.xlu1 %4622 }
 0x760   : > { %5015 = vst.msk [vmem:[#allocation4 + $0x168] sm:$0xff] %vm403_vm0, %v11626_v42  ;;  %4785 = vrot.lane.b32.xlu0 %v11626_v42, %s8158_s25  ;;  %7813 = vmatmul.msk.f32.gmra.mxu2 %vm403_vm0, %v5040_v26  ;;  %v11635_v2 = vmul.f32 %v4623_v11, %v4440_v49  ;;  %v5102_v26 = vld [vmem:[%s13360_s5 + $0x68] sm:$0xff] }
 0x761   : > { %4781 = vrot.lane.b32.xlu1 %v11616_v31, %s8158_s25  ;;  %v5054_v49 = vld [vmem:[#allocation4 + $0xe8] sm:$0xff] }
 0x762   : > { %5016 = vst.msk [vmem:[#allocation4 + $0x178] sm:$0xff] %vm403_vm0, %v11635_v2  ;;  %4789 = vrot.lane.b32.xlu2 %v11624_v59, %s8158_s25  ;;  %v4643_v32 = vpop.permute.xlu2 %4642 }
 0x763   : > { %v11643_v21 = vmul.f32 %v4643_v32, %v4444_v52  ;;  %v5100_v52 = vld [vmem:[%s13360_s5 + $0x58] sm:$0xff] }
 0x765   : > { %v4633_v3 = vpop.permute.xlu0 %4632  ;;  %5020 = vst.msk [vmem:[#allocation4 + $0x1b8] sm:$0xff] %vm403_vm0, %v11643_v21 }
 0x766   : > { %v11645_v39 = vmul.f32 %v4633_v3, %v4442_v9  ;;  %v5098_v3 = vld [vmem:[%s13360_s5 + $0x48] sm:$0xff] }
 0x767   : > { %v4638_v13 = vpop.permute.xlu1 %4637 }
 0x768   : > { %5018 = vst.msk [vmem:[#allocation4 + $0x198] sm:$0xff] %vm403_vm0, %v11645_v39  ;;  %4791 = vrot.lane.b32.xlu0 %v11645_v39, %s8158_s25  ;;  %7814 = vmatmul.msk.f32.gmra.mxu2 %vm403_vm0, %v5042_v7  ;;  %v11654_v28 = vmul.f32 %v4638_v13, %v4443_v61  ;;  %v5096_v13 = vld [vmem:[%s13360_s5 + $0x38] sm:$0xff] }
 0x769   : > { %4787 = vrot.lane.b32.xlu1 %v11635_v2, %s8158_s25 }
 0x76a   : > { %5019 = vst.msk [vmem:[#allocation4 + $0x1a8] sm:$0xff] %vm403_vm0, %v11654_v28  ;;  %4795 = vrot.lane.b32.xlu2 %v11643_v21, %s8158_s25  ;;  %v4658_v29 = vpop.permute.xlu2 %4657 }
 0x76b   : > { %v4699_v53 = vmul.f32 %v4658_v29, %v4447_v44 }
 0x76d   : > { %v4648_v23 = vpop.permute.xlu0 %4647  ;;  %5023 = vst.msk [vmem:[#allocation4 + $0x1e8] sm:$0xff] %vm403_vm0, %v4699_v53  ;;  %v5094_v53 = vld [vmem:[%s13360_s5 + $0x28] sm:$0xff] }
 0x76e   : > { %v11662_v41 = vmul.f32 %v4648_v23, %v4445_v54 }
 0x76f   : > { %v4653_v30 = vpop.permute.xlu1 %4652 }
 0x770   : > { %5021 = vst.msk [vmem:[#allocation4 + $0x1c8] sm:$0xff] %vm403_vm0, %v11662_v41  ;;  %4864 = vrot.lane.b32.xlu0 %v11475_v57, %s8159_s26  ;;  %7815 = vmatmul.msk.f32.gmra.mxu2 %vm403_vm0, %v5044_v14  ;;  %v11670_v6 = vmul.f32 %v4653_v30, %v4446_v34  ;;  %v5092_v14 = vld [vmem:[%s13360_s5 + $0x18] sm:$0xff] }
 0x771   : > { %4793 = vrot.lane.b32.xlu1 %v11654_v28, %s8158_s25 }
 0x772   : > { %5022 = vst.msk [vmem:[#allocation4 + $0x1d8] sm:$0xff] %vm403_vm0, %v11670_v6  ;;  %4868 = vrot.lane.b32.xlu2 %v11482_v37, %s8159_s26  ;;  %v5048_v37 = vld [vmem:[#allocation4 + $0xb8] sm:$0xff] }
 0x774   : > { %v4736_v50 = vpop.permute.xlu2 %4735 }
 0x775   : > { %4831 = vst.msk [vmem:[#allocation4 + $0x10] sm:$0xff] %vm4829_vm9, %v4736_v50  ;;  %v5090_v50 = vld [vmem:[%s13360_s5 + $0x8] sm:$0xff] }
 0x778   : > { %4870 = vrot.lane.b32.xlu0 %v11493_v25, %s8159_s26  ;;  %7816 = vmatmul.msk.f32.gmra.mxu2 %vm403_vm0, %v5046_v62  ;;  %v5066_v62 = vld [vmem:[#allocation4 + $0x148] sm:$0xff] }
 0x779   : > { %4866 = vrot.lane.b32.xlu1 %v11491_v22, %s8159_s26  ;;  %v5050_v22 = vld [vmem:[#allocation4 + $0xc8] sm:$0xff] }
 0x77a   : > { %4874 = vrot.lane.b32.xlu2 %v11489_v47, %s8159_s26 }
 0x77c   : > { %v4742_v57 = vpop.permute.xlu2 %4741 }
 0x77d   : > { %4834 = vst.msk [vmem:[#allocation4 + $0x40] sm:$0xff] %vm4829_vm9, %v4742_v57 }
 0x780   : > { %4876 = vrot.lane.b32.xlu0 %v11512_v1, %s8159_s26  ;;  %7817 = vmatmul.msk.f32.gmra.mxu2 %vm403_vm0, %v5048_v37  ;;  %v5103_v1 = vld [vmem:[%s13360_s5 + $0x70] sm:$0xff] }
 0x781   : > { %4872 = vrot.lane.b32.xlu1 %v11504_v17, %s8159_s26 }
 0x782   : > { %4880 = vrot.lane.b32.xlu2 %v11510_v27, %s8159_s26  ;;  %v5104_v27 = vld [vmem:[%s13360_s5 + $0x78] sm:$0xff] }
 0x783   : > { %5207 = vmatpush.msrb.mxu1 %v5104_v27 }
 0x784   : > { %v4748_v25 = vpop.permute.xlu2 %4747 }
 0x785   : > { %4837 = vst.msk [vmem:[#allocation4 + $0x70] sm:$0xff] %vm4829_vm9, %v4748_v25  ;;  %5208 = vmatpush.msrb.mxu1 %v5103_v1  ;;  %v5068_v25 = vld [vmem:[#allocation4 + $0x158] sm:$0xff] }
 0x787   : > { %v4738_v47 = vpop.permute.xlu0 %4737  ;;  %5209 = vmatpush.msrb.mxu1 %v5102_v26  ;;  %v5535_v26 = vld [vmem:[%s13364_s9 + $0x10] sm:$0xff] }
 0x788   : > { %4882 = vrot.lane.b32.xlu0 %v11531_v43, %s8159_s26  ;;  %7818 = vmatmul.msk.f32.gmra.mxu2 %vm403_vm0, %v5050_v22  ;;  %4832 = vst.msk [vmem:[#allocation4 + $0x20] sm:$0xff] %vm4829_vm9, %v4738_v47  ;;  %v5052_v43 = vld [vmem:[#allocation4 + $0xd8] sm:$0xff]  ;;  %v5070_v47 = vld [vmem:[#allocation4 + $0x168] sm:$0xff] }
 0x789   : > { %4878 = vrot.lane.b32.xlu1 %v11521_v19, %s8159_s26 }
 0x78a   : > { %4886 = vrot.lane.b32.xlu2 %v11529_v20, %s8159_s26 }
 0x78c   : > { %v4754_v17 = vpop.permute.xlu2 %4753 }
 0x78d   : > { %4840 = vst.msk [vmem:[#allocation4 + $0xa0] sm:$0xff] %vm4829_vm9, %v4754_v17 }
 0x790   : > { %4888 = vrot.lane.b32.xlu0 %v11550_v16, %s8159_s26  ;;  %7819 = vmatmul.msk.f32.gmra.mxu2 %vm403_vm0, %v5052_v43  ;;  %v5101_v16 = vld [vmem:[%s13360_s5 + $0x60] sm:$0xff]  ;;  %v5072_v43 = vld [vmem:[#allocation4 + $0x178] sm:$0xff] }
 0x791   : > { %4884 = vrot.lane.b32.xlu1 %v11540_v15, %s8159_s26  ;;  %5210 = vmatpush.msrb.mxu1 %v5101_v16 }
 0x792   : > { %v4734_v19 = vpop.permute.xlu1 %4733  ;;  %4892 = vrot.lane.b32.xlu2 %v11548_v33, %s8159_s26 }
 0x793   : > { %4830 = vst.msk [vmem:[#allocation4] sm:$0xff] %vm4829_vm9, %v4734_v19  ;;  %5211 = vmatpush.msrb.mxu1 %v5100_v52  ;;  %v5076_v52 = vld [vmem:[#allocation4 + $0x198] sm:$0xff] }
 0x794   : > { %v4760_v20 = vpop.permute.xlu2 %4759 }
 0x795   : > { %4843 = vst.msk [vmem:[#allocation4 + $0xd0] sm:$0xff] %vm4829_vm9, %v4760_v20 }
 0x798   : > { %4894 = vrot.lane.b32.xlu0 %v11569_v46, %s8159_s26  ;;  %7820 = vmatmul.msk.f32.gmra.mxu2 %vm403_vm0, %v5054_v49  ;;  %v5056_v46 = vld [vmem:[#allocation4 + $0xf8] sm:$0xff]  ;;  %v5074_v49 = vld [vmem:[#allocation4 + $0x188] sm:$0xff] }
 0x799   : > { %4890 = vrot.lane.b32.xlu1 %v11559_v40, %s8159_s26  ;;  %v5099_v40 = vld [vmem:[%s13360_s5 + $0x50] sm:$0xff] }
 0x79a   : > { %v4744_v15 = vpop.permute.xlu0 %4743  ;;  %v4740_v33 = vpop.permute.xlu1 %4739  ;;  %4898 = vrot.lane.b32.xlu2 %v11567_v63, %s8159_s26  ;;  %5212 = vmatpush.msrb.mxu1 %v5099_v40 }
 0x79b   : > { %4835 = vst.msk [vmem:[#allocation4 + $0x50] sm:$0xff] %vm4829_vm9, %v4744_v15 }
 0x79c   : > { %4833 = vst.msk [vmem:[#allocation4 + $0x30] sm:$0xff] %vm4829_vm9, %v4740_v33  ;;  %v4766_v11 = vpop.permute.xlu2 %4765  ;;  %5213 = vmatpush.msrb.mxu1 %v5098_v3  ;;  %v5078_v3 = vld [vmem:[#allocation4 + $0x1a8] sm:$0xff] }
 0x79d   : > { %4846 = vst.msk [vmem:[#allocation4 + $0x100] sm:$0xff] %vm4829_vm9, %v4766_v11 }
 0x7a0   : > { %4900 = vrot.lane.b32.xlu0 %v11588_v58, %s8159_s26  ;;  %7821 = vmatmul.msk.f32.gmra.mxu2 %vm403_vm0, %v5056_v46  ;;  %v5058_v58 = vld [vmem:[#allocation4 + $0x108] sm:$0xff] }
 0x7a1   : > { %4896 = vrot.lane.b32.xlu1 %v11578_v4, %s8159_s26  ;;  %v5097_v4 = vld [vmem:[%s13360_s5 + $0x40] sm:$0xff] }
 0x7a2   : > { %v4750_v63 = vpop.permute.xlu0 %4749  ;;  %4904 = vrot.lane.b32.xlu2 %v11586_v60, %s8159_s26  ;;  %5214 = vmatpush.msrb.mxu1 %v5097_v4 }
 0x7a3   : > { %4838 = vst.msk [vmem:[#allocation4 + $0x80] sm:$0xff] %vm4829_vm9, %v4750_v63  ;;  %v4746_v32 = vpop.permute.xlu1 %4745 }
 0x7a4   : > { %4836 = vst.msk [vmem:[#allocation4 + $0x60] sm:$0xff] %vm4829_vm9, %v4746_v32  ;;  %v4772_v9 = vpop.permute.xlu2 %4771  ;;  %5215 = vmatpush.msrb.mxu1 %v5096_v13 }
 0x7a5   : > { %4849 = vst.msk [vmem:[#allocation4 + $0x130] sm:$0xff] %vm4829_vm9, %v4772_v9  ;;  %v5537_v9 = vld [vmem:[%s13364_s9 + $0x20] sm:$0xff] }
 0x7a8   : > { %4906 = vrot.lane.b32.xlu0 %v11607_v10, %s8159_s26  ;;  %7822 = vmatmul.msk.f32.gmra.mxu2 %vm403_vm0, %v5058_v58  ;;  %v5060_v10 = vld [vmem:[#allocation4 + $0x118] sm:$0xff]  ;;  %v11836_v1 = vpop.f32.mrf.mxu2 }
 0x7a9   : > { %4902 = vrot.lane.b32.xlu1 %v11597_v8, %s8159_s26  ;;  %v5095_v8 = vld [vmem:[%s13360_s5 + $0x30] sm:$0xff] }
 0x7aa   : > { %v4756_v60 = vpop.permute.xlu0 %4755  ;;  %4910 = vrot.lane.b32.xlu2 %v11605_v5, %s8159_s26  ;;  %5216 = vmatpush.msrb.mxu1 %v5095_v8 }
 0x7ab   : > { %4841 = vst.msk [vmem:[#allocation4 + $0xb0] sm:$0xff] %vm4829_vm9, %v4756_v60  ;;  %v4752_v7 = vpop.permute.xlu1 %4751 }
 0x7ac   : > { %4839 = vst.msk [vmem:[#allocation4 + $0x90] sm:$0xff] %vm4829_vm9, %v4752_v7  ;;  %v4778_v61 = vpop.permute.xlu2 %4777  ;;  %5217 = vmatpush.msrb.mxu1 %v5094_v53 }
 0x7ad   : > { %4852 = vst.msk [vmem:[#allocation4 + $0x160] sm:$0xff] %vm4829_vm9, %v4778_v61  ;;  %v5533_v61 = vld [vmem:[%s13364_s9] sm:$0xff] }
 0x7b0   : > { %4912 = vrot.lane.b32.xlu0 %v11626_v42, %s8159_s26  ;;  %7823 = vmatmul.msk.f32.gmra.mxu2 %vm403_vm0, %v5060_v10  ;;  %v5062_v42 = vld [vmem:[#allocation4 + $0x128] sm:$0xff] }
 0x7b1   : > { %4908 = vrot.lane.b32.xlu1 %v11616_v31, %s8159_s26  ;;  %v5093_v31 = vld [vmem:[%s13360_s5 + $0x20] sm:$0xff] }
 0x7b2   : > { %v4762_v5 = vpop.permute.xlu0 %4761  ;;  %4916 = vrot.lane.b32.xlu2 %v11624_v59, %s8159_s26  ;;  %5218 = vmatpush.msrb.mxu1 %v5093_v31 }
 0x7b3   : > { %4844 = vst.msk [vmem:[#allocation4 + $0xe0] sm:$0xff] %vm4829_vm9, %v4762_v5  ;;  %v4758_v44 = vpop.permute.xlu1 %4757  ;;  %v11846_v16 = vpop.f32.mrf.mxu2 }
 0x7b4   : > { %4842 = vst.msk [vmem:[#allocation4 + $0xc0] sm:$0xff] %vm4829_vm9, %v4758_v44  ;;  %v4784_v29 = vpop.permute.xlu2 %4783  ;;  %5219 = vmatpush.msrb.mxu1 %v5092_v14  ;;  %v5084_v14 = vld [vmem:[#allocation4 + $0x1d8] sm:$0xff] }
 0x7b5   : > { %4855 = vst.msk [vmem:[#allocation4 + $0x190] sm:$0xff] %vm4829_vm9, %v4784_v29  ;;  %v5536_v29 = vld [vmem:[%s13364_s9 + $0x18] sm:$0xff] }
 0x7b8   : > { %4918 = vrot.lane.b32.xlu0 %v11645_v39, %s8159_s26  ;;  %7824 = vmatmul.msk.f32.gmra.mxu2 %vm403_vm0, %v5062_v42  ;;  %v5064_v39 = vld [vmem:[#allocation4 + $0x138] sm:$0xff] }
 0x7b9   : > { %4914 = vrot.lane.b32.xlu1 %v11635_v2, %s8159_s26  ;;  %v5091_v2 = vld [vmem:[%s13360_s5 + $0x10] sm:$0xff] }
 0x7ba   : > { %v4768_v59 = vpop.permute.xlu0 %4767  ;;  %4922 = vrot.lane.b32.xlu2 %v11643_v21, %s8159_s26  ;;  %5220 = vmatpush.msrb.mxu1 %v5091_v2 }
 0x7bb   : > { %4847 = vst.msk [vmem:[#allocation4 + $0x110] sm:$0xff] %vm4829_vm9, %v4768_v59  ;;  %v4764_v54 = vpop.permute.xlu1 %4763  ;;  %v11853_v40 = vpop.f32.mrf.mxu2 }
 0x7bc   : > { %4845 = vst.msk [vmem:[#allocation4 + $0xf0] sm:$0xff] %vm4829_vm9, %v4764_v54  ;;  %v4790_v23 = vpop.permute.xlu2 %4789  ;;  %5221 = vmatpush.msrb.mxu1 %v5090_v50  ;;  %v5540_v54 = vld [vmem:[%s13364_s9 + $0x38] sm:$0xff]  ;;  %v5543_v50 = vld [vmem:[%s13364_s9 + $0x50] sm:$0xff] }
 0x7bd   : > { %4858 = vst.msk [vmem:[#allocation4 + $0x1c0] sm:$0xff] %vm4829_vm9, %v4790_v23  ;;  %v5538_v23 = vld [vmem:[%s13364_s9 + $0x28] sm:$0xff] }
 0x7c0   : > { %4924 = vrot.lane.b32.xlu0 %v11662_v41, %s8159_s26  ;;  %7825 = vmatmul.msk.f32.gmra.mxu2 %vm403_vm0, %v5064_v39  ;;  %v5089_v41 = vld [vmem:[%s13360_s5] sm:$0xff] }
 0x7c1   : > { %4920 = vrot.lane.b32.xlu1 %v11654_v28, %s8159_s26  ;;  %5222 = vmatpush.msrb.mxu1 %v5089_v41 }
 0x7c2   : > { %v4774_v21 = vpop.permute.xlu0 %4773  ;;  %5571 = vperm.xlu2 %7917, %v5533_v61   ;;  %v5562_v61 = vld [vmem:[%s13364_s9 + $0xe8] sm:$0xff] }
 0x7c3   : > { %4850 = vst.msk [vmem:[#allocation4 + $0x140] sm:$0xff] %vm4829_vm9, %v4774_v21  ;;  %v4770_v34 = vpop.permute.xlu1 %4769 }
 0x7c4   : > { %4848 = vst.msk [vmem:[#allocation4 + $0x120] sm:$0xff] %vm4829_vm9, %v4770_v34  ;;  %v4796_v30 = vpop.permute.xlu2 %4795 }
 0x7c5   : > { %4861 = vst.msk [vmem:[#allocation4 + $0x1f0] sm:$0xff] %vm4829_vm9, %v4796_v30  ;;  %v5541_v30 = vld [vmem:[%s13364_s9 + $0x40] sm:$0xff] }
 0x7c8   : > { %5576 = vperm.xlu0 %7918, %v11285_v0   ;;  %7826 = vmatmul.msk.f32.gmra.mxu2 %vm403_vm0, %v5066_v62 }
 0x7c9   : > { %4926 = vrot.lane.b32.xlu1 %v11670_v6, %s8159_s26 }
 0x7ca   : > { %v4780_v28 = vpop.permute.xlu0 %4779  ;;  %5586 = vperm.xlu2 %7917, %v5536_v29  }
 0x7cb   : > { %4853 = vst.msk [vmem:[#allocation4 + $0x170] sm:$0xff] %vm4829_vm9, %v4780_v28  ;;  %v4776_v57 = vpop.permute.xlu1 %4775 }
 0x7cc   : > { %4851 = vst.msk [vmem:[#allocation4 + $0x150] sm:$0xff] %vm4829_vm9, %v4776_v57  ;;  %v4869_v37 = vpop.permute.xlu2 %4868 }
 0x7cd   : > { %4963 = vst.msk [vmem:[#allocation4 + $0x20] sm:$0xff] %vm4960_vm10, %v4869_v37  ;;  %v5544_v37 = vld [vmem:[%s13364_s9 + $0x58] sm:$0xff] }
 0x7d0   : > { %5601 = vperm.xlu0 %7918, %v11311_v35   ;;  %7827 = vmatmul.msk.f32.gmra.mxu2 %vm403_vm0, %v5068_v25  ;;  %v5546_v25 = vld [vmem:[%s13364_s9 + $0x68] sm:$0xff] }
 0x7d1   : > { %5581 = vperm.xlu1 %7919, %v5535_v26  }
 0x7d2   : > { %v4786_v0 = vpop.permute.xlu0 %4785  ;;  %5596 = vperm.xlu2 %7917, %v5538_v23  }
 0x7d3   : > { %4856 = vst.msk [vmem:[#allocation4 + $0x1a0] sm:$0xff] %vm4829_vm9, %v4786_v0  ;;  %v4782_v22 = vpop.permute.xlu1 %4781 }
 0x7d4   : > { %4854 = vst.msk [vmem:[#allocation4 + $0x180] sm:$0xff] %vm4829_vm9, %v4782_v22  ;;  %v4875_v6 = vpop.permute.xlu2 %4874  ;;  %v5029_v60 = vld [vmem:[#allocation4 + $0x20] sm:$0xff] }
 0x7d5   : > { %4966 = vst.msk [vmem:[#allocation4 + $0x50] sm:$0xff] %vm4960_vm10, %v4875_v6  ;;  %v5547_v6 = vld [vmem:[%s13364_s9 + $0x70] sm:$0xff] }
 0x7d8   : > { %5616 = vperm.xlu0 %7918, %v11326_v12   ;;  %7828 = vmatmul.msk.f32.gmra.mxu2 %vm403_vm0, %v5070_v47  ;;  %v5549_v47 = vld [vmem:[%s13364_s9 + $0x80] sm:$0xff] }
 0x7d9   : > { %5591 = vperm.xlu1 %7919, %v5537_v9  }
 0x7da   : > { %v4792_v17 = vpop.permute.xlu0 %4791  ;;  %5611 = vperm.xlu2 %7917, %v5541_v30  }
 0x7db   : > { %4859 = vst.msk [vmem:[#allocation4 + $0x1d0] sm:$0xff] %vm4829_vm9, %v4792_v17  ;;  %v4788_v35 = vpop.permute.xlu1 %4787 }
 0x7dc   : > { %4857 = vst.msk [vmem:[#allocation4 + $0x1b0] sm:$0xff] %vm4829_vm9, %v4788_v35  ;;  %v4881_v27 = vpop.permute.xlu2 %4880  ;;  %v5035_v21 = vld [vmem:[#allocation4 + $0x50] sm:$0xff] }
 0x7dd   : > { %4969 = vst.msk [vmem:[#allocation4 + $0x80] sm:$0xff] %vm4960_vm10, %v4881_v27 }
 0x7e0   : > { %5631 = vperm.xlu0 %7918, %v11341_v38   ;;  %7829 = vmatmul.msk.f32.gmra.mxu2 %vm403_vm0, %v5072_v43  ;;  %v5550_v43 = vld [vmem:[%s13364_s9 + $0x88] sm:$0xff] }
 0x7e1   : > { %5606 = vperm.xlu1 %7919, %v5540_v54  }
 0x7e2   : > { %v4865_v19 = vpop.permute.xlu0 %4864  ;;  %5626 = vperm.xlu2 %7917, %v5544_v37  }
 0x7e3   : > { %4961 = vst.msk [vmem:[#allocation4] sm:$0xff] %vm4960_vm10, %v4865_v19  ;;  %v4794_v12 = vpop.permute.xlu1 %4793  ;;  %v5552_v19 = vld [vmem:[%s13364_s9 + $0x98] sm:$0xff] }
 0x7e4   : > { %4860 = vst.msk [vmem:[#allocation4 + $0x1e0] sm:$0xff] %vm4829_vm9, %v4794_v12  ;;  %v4887_v20 = vpop.permute.xlu2 %4886  ;;  %v5041_v27 = vld [vmem:[#allocation4 + $0x80] sm:$0xff] }
 0x7e5   : > { %4972 = vst.msk [vmem:[#allocation4 + $0xb0] sm:$0xff] %vm4960_vm10, %v4887_v20 }
 0x7e8   : > { %5646 = vperm.xlu0 %7918, %v11356_v55   ;;  %7830 = vmatmul.msk.f32.gmra.mxu2 %vm403_vm0, %v5074_v49  ;;  %v5553_v49 = vld [vmem:[%s13364_s9 + $0xa0] sm:$0xff] }
 0x7e9   : > { %5621 = vperm.xlu1 %7919, %v5543_v50  }
 0x7ea   : > { %v4871_v38 = vpop.permute.xlu0 %4870  ;;  %v5025_v15 = vld [vmem:[#allocation4] sm:$0xff]  ;;  %5641 = vperm.xlu2 %7917, %v5547_v6  }
 0x7eb   : > { %4964 = vst.msk [vmem:[#allocation4 + $0x30] sm:$0xff] %vm4960_vm10, %v4871_v38  ;;  %v4867_v33 = vpop.permute.xlu1 %4866  ;;  %5223 = vmatmul.f32.vlgmr.msrb.gmra.mxu1 %v5025_v15  ;;  %v5555_v38 = vld [vmem:[%s13364_s9 + $0xb0] sm:$0xff]  ;;  %v5498_v15 = vld [vmem:[#allocation3 + $0xf] sm:$0xff] }
 0x7ec   : > { %4962 = vst.msk [vmem:[#allocation4 + $0x10] sm:$0xff] %vm4960_vm10, %v4867_v33  ;;  %v4893_v11 = vpop.permute.xlu2 %4892  ;;  %v5047_v9 = vld [vmem:[#allocation4 + $0xb0] sm:$0xff] }
 0x7ed   : > { %4975 = vst.msk [vmem:[#allocation4 + $0xe0] sm:$0xff] %vm4960_vm10, %v4893_v11 }
 0x7f0   : > { %5661 = vperm.xlu0 %7918, %v11371_v56   ;;  %7831 = vmatmul.msk.f32.gmra.mxu2 %vm403_vm0, %v5076_v52  ;;  %v11865_v56 = vpop.f32.mrf.mxu2 }
 0x7f1   : > { %5636 = vperm.xlu1 %7919, %v5546_v25  }
 0x7f2   : > { %v4877_v55 = vpop.permute.xlu0 %4876  ;;  %v5031_v10 = vld [vmem:[#allocation4 + $0x30] sm:$0xff]  ;;  %5656 = vperm.xlu2 %7917, %v5550_v43  }
 0x7f3   : > { %4967 = vst.msk [vmem:[#allocation4 + $0x60] sm:$0xff] %vm4960_vm10, %v4877_v55  ;;  %v4873_v46 = vpop.permute.xlu1 %4872  ;;  %v5027_v63 = vld [vmem:[#allocation4 + $0x10] sm:$0xff] }
 0x7f4   : > { %4965 = vst.msk [vmem:[#allocation4 + $0x40] sm:$0xff] %vm4960_vm10, %v4873_v46  ;;  %5226 = vmatmul.f32.gmra.mxu1 %v5027_v63  ;;  %v4899_v32 = vpop.permute.xlu2 %4898  ;;  %v5556_v46 = vld [vmem:[%s13364_s9 + $0xb8] sm:$0xff]  ;;  %v5558_v63 = vld [vmem:[%s13364_s9 + $0xc8] sm:$0xff] }
 0x7f5   : > { %4978 = vst.msk [vmem:[#allocation4 + $0x110] sm:$0xff] %vm4960_vm10, %v4899_v32  ;;  %v4484_v32 = vld [vmem:[%s13364_s9 + $0x118] sm:$0xff] }
 0x7f8   : > { %5676 = vperm.xlu0 %7918, %v11386_v48   ;;  %7832 = vmatmul.msk.f32.gmra.mxu2 %vm403_vm0, %v5078_v3  ;;  %v5080_v48 = vld [vmem:[#allocation4 + $0x1b8] sm:$0xff]  ;;  %v11876_v5 = vpop.f32.mrf.mxu2 }
 0x7f9   : > { %5651 = vperm.xlu1 %7919, %v5549_v47  }
 0x7fa   : > { %v4883_v4 = vpop.permute.xlu0 %4882  ;;  %v5037_v57 = vld [vmem:[#allocation4 + $0x60] sm:$0xff]  ;;  %5671 = vperm.xlu2 %7917, %v5553_v49  }
 0x7fb   : > { %4970 = vst.msk [vmem:[#allocation4 + $0x90] sm:$0xff] %vm4960_vm10, %v4883_v4  ;;  %v4879_v58 = vpop.permute.xlu1 %4878  ;;  %v5033_v42 = vld [vmem:[#allocation4 + $0x40] sm:$0xff]  ;;  %v5559_v4 = vld [vmem:[%s13364_s9 + $0xd0] sm:$0xff] }
 0x7fc   : > { %4968 = vst.msk [vmem:[#allocation4 + $0x70] sm:$0xff] %vm4960_vm10, %v4879_v58  ;;  %5229 = vmatmul.f32.gmra.mxu1 %v5029_v60  ;;  %v4905_v7 = vpop.permute.xlu2 %4904  ;;  %v5561_v58 = vld [vmem:[%s13364_s9 + $0xe0] sm:$0xff] }
 0x7fd   : > { %4981 = vst.msk [vmem:[#allocation4 + $0x140] sm:$0xff] %vm4960_vm10, %v4905_v7 }
 0x800   : > { %5691 = vperm.xlu0 %7918, %v11401_v24   ;;  %7833 = vmatmul.msk.f32.gmra.mxu2 %vm403_vm0, %v5080_v48  ;;  %v5082_v24 = vld [vmem:[#allocation4 + $0x1c8] sm:$0xff]  ;;  %v5564_v48 = vld [vmem:[%s13364_s9 + $0xf8] sm:$0xff] }
 0x801   : > { %5666 = vperm.xlu1 %7919, %v5552_v19  }
 0x802   : > { %v4889_v13 = vpop.permute.xlu0 %4888  ;;  %v5043_v26 = vld [vmem:[#allocation4 + $0x90] sm:$0xff]  ;;  %5686 = vperm.xlu2 %7917, %v5556_v46  }
 0x803   : > { %4973 = vst.msk [vmem:[#allocation4 + $0xc0] sm:$0xff] %vm4960_vm10, %v4889_v13  ;;  %v4885_v8 = vpop.permute.xlu1 %4884  ;;  %v5039_v22 = vld [vmem:[#allocation4 + $0x70] sm:$0xff] }
 0x804   : > { %4971 = vst.msk [vmem:[#allocation4 + $0xa0] sm:$0xff] %vm4960_vm10, %v4885_v8  ;;  %5232 = vmatmul.f32.gmra.mxu1 %v5031_v10  ;;  %v4911_v44 = vpop.permute.xlu2 %4910  ;;  %v5497_v13 = vld [vmem:[#allocation3 + $0x7] sm:$0xff]  ;;  %v5065_v46 = vld [vmem:[#allocation4 + $0x140] sm:$0xff] }
 0x805   : > { %4984 = vst.msk [vmem:[#allocation4 + $0x170] sm:$0xff] %vm4960_vm10, %v4911_v44  ;;  %v5053_v44 = vld [vmem:[#allocation4 + $0xe0] sm:$0xff] }
 0x808   : > { %5706 = vperm.xlu0 %7918, %v11416_v45   ;;  %7834 = vmatmul.msk.f32.gmra.mxu2 %vm403_vm0, %v5082_v24  ;;  %v11894_v45 = vpop.f32.mrf.mxu2  ;;  %v5565_v24 = vld [vmem:[%s13364_s9 + $0x100] sm:$0xff] }
 0x809   : > { %5681 = vperm.xlu1 %7919, %v5555_v38  }
 0x80a   : > { %v4895_v53 = vpop.permute.xlu0 %4894  ;;  %v5049_v3 = vld [vmem:[#allocation4 + $0xc0] sm:$0xff]  ;;  %5701 = vperm.xlu2 %7917, %v5559_v4  }
 0x80b   : > { %4976 = vst.msk [vmem:[#allocation4 + $0xf0] sm:$0xff] %vm4960_vm10, %v4895_v53  ;;  %v4891_v31 = vpop.permute.xlu1 %4890  ;;  %v5045_v55 = vld [vmem:[#allocation4 + $0xa0] sm:$0xff]  ;;  %v5567_v53 = vld [vmem:[%s13364_s9 + $0x110] sm:$0xff] }
 0x80c   : > { %4974 = vst.msk [vmem:[#allocation4 + $0xd0] sm:$0xff] %vm4960_vm10, %v4891_v31  ;;  %5235 = vmatmul.f32.gmra.mxu1 %v5033_v42  ;;  %v4917_v59 = vpop.permute.xlu2 %4916  ;;  %v11981_v42 = vld [vmem:[%s13361_s6] ss:$0 sm:$0xff] }
 0x80d   : > { %4987 = vst.msk [vmem:[#allocation4 + $0x1a0] sm:$0xff] %vm4960_vm10, %v4917_v59 }
 0x810   : > { %5721 = vperm.xlu0 %7918, %v11431_v36   ;;  %7835 = vmatmul.msk.f32.gmra.mxu2 %vm403_vm0, %v5084_v14  ;;  %v5086_v36 = vld [vmem:[#allocation4 + $0x1e8] sm:$0xff]  ;;  %v11907_v41 = vpop.f32.mrf.mxu2 }
 0x811   : > { %5696 = vperm.xlu1 %7919, %v5558_v63  }
 0x812   : > { %v4901_v2 = vpop.permute.xlu0 %4900  ;;  %5716 = vperm.xlu2 %7917, %v5562_v61   ;;  %v5055_v31 = vld [vmem:[#allocation4 + $0xf0] sm:$0xff] }
 0x813   : > { %4979 = vst.msk [vmem:[#allocation4 + $0x120] sm:$0xff] %vm4960_vm10, %v4901_v2  ;;  %v4897_v39 = vpop.permute.xlu1 %4896  ;;  %v5051_v60 = vld [vmem:[#allocation4 + $0xd0] sm:$0xff] }
 0x814   : > { %4977 = vst.msk [vmem:[#allocation4 + $0x100] sm:$0xff] %vm4960_vm10, %v4897_v39  ;;  %5238 = vmatmul.f32.gmra.mxu1 %v5035_v21  ;;  %v4923_v34 = vpop.permute.xlu2 %4922 }
 0x815   : > { %4990 = vst.msk [vmem:[#allocation4 + $0x1d0] sm:$0xff] %vm4960_vm10, %v4923_v34 }
 0x818   : > { %5736 = vperm.xlu0 %7918, %v11446_v18   ;;  %7836 = vmatmul.msk.f32.gmra.mxu2 %vm403_vm0, %v5086_v36  ;;  %v11991_v50 = vpop.f32.mrf.mxu2  ;;  %v5059_v36 = vld [vmem:[#allocation4 + $0x110] sm:$0xff] }
 0x819   : > { %5711 = vperm.xlu1 %7919, %v5561_v58  }
 0x81a   : > { %v4907_v62 = vpop.permute.xlu0 %4906  ;;  %5731 = vperm.xlu2 %7917, %v5565_v24  }
 0x81b   : > { %4982 = vst.msk [vmem:[#allocation4 + $0x150] sm:$0xff] %vm4960_vm10, %v4907_v62  ;;  %v4903_v28 = vpop.permute.xlu1 %4902  ;;  %v5057_v2 = vld [vmem:[#allocation4 + $0x100] sm:$0xff] }
 0x81c   : > { %4980 = vst.msk [vmem:[#allocation4 + $0x130] sm:$0xff] %vm4960_vm10, %v4903_v28  ;;  %5241 = vmatmul.f32.gmra.mxu1 %v5037_v57  ;;  %v5572_v8 = vpop.permute.xlu2 %5571 }
 0x81d   : > { %v5749_v10 = vmul.f32 %v5572_v8, %v5497_v13 }
 0x81f   : > { %5785 = vst.msk [vmem:[#allocation4] sm:$0xff] %vm403_vm0, %v5749_v10 }
 0x820   : > { %7920 = vset.pattern.permute.xlu0 %v8150_v51 }
 0x821   : > { %4662 = vperm.xlu0 %7920, %v4484_v32   ;;  %5726 = vperm.xlu1 %7919, %v5564_v48  }
 0x822   : > { %v4913_v18 = vpop.permute.xlu0 %4912  ;;  %5746 = vperm.xlu2 %7917, %v4484_v32   ;;  %v5067_v48 = vld [vmem:[#allocation4 + $0x150] sm:$0xff] }
 0x823   : > { %4985 = vst.msk [vmem:[#allocation4 + $0x180] sm:$0xff] %vm4960_vm10, %v4913_v18  ;;  %v4909_v0 = vpop.permute.xlu1 %4908 }
 0x824   : > { %4983 = vst.msk [vmem:[#allocation4 + $0x160] sm:$0xff] %vm4960_vm10, %v4909_v0  ;;  %5244 = vmatmul.f32.gmra.mxu1 %v5039_v22  ;;  %v5587_v21 = vpop.permute.xlu2 %5586  ;;  %v5061_v22 = vld [vmem:[#allocation4 + $0x120] sm:$0xff] }
 0x829   : > { %5741 = vperm.xlu1 %7919, %v5567_v53  }
 0x82a   : > { %v4919_v17 = vpop.permute.xlu0 %4918  ;;  %7922 = vset.pattern.permute.xlu2 %v8150_v51 }
 0x82b   : > { %4988 = vst.msk [vmem:[#allocation4 + $0x1b0] sm:$0xff] %vm4960_vm10, %v4919_v17  ;;  %v4915_v35 = vpop.permute.xlu1 %4914 }
 0x82c   : > { %4986 = vst.msk [vmem:[#allocation4 + $0x190] sm:$0xff] %vm4960_vm10, %v4915_v35  ;;  %5247 = vmatmul.f32.gmra.mxu1 %v5041_v27  ;;  %v5597_v25 = vpop.permute.xlu2 %5596 }
 0x831   : > { %7921 = vset.pattern.permute.xlu1 %v8150_v51 }
 0x832   : > { %v4925_v12 = vpop.permute.xlu0 %4924 }
 0x833   : > { %4991 = vst.msk [vmem:[#allocation4 + $0x1e0] sm:$0xff] %vm4960_vm10, %v4925_v12  ;;  %v4921_v20 = vpop.permute.xlu1 %4920 }
 0x834   : > { %4989 = vst.msk [vmem:[#allocation4 + $0x1c0] sm:$0xff] %vm4960_vm10, %v4921_v20  ;;  %5250 = vmatmul.f32.gmra.mxu1 %v5043_v26  ;;  %v12006_v43 = vpop.permute.xlu2 %5611 }
 0x83a   : > { %v5577_v33 = vpop.permute.xlu0 %5576 }
 0x83b   : > { %v5750_v11 = vmul.f32 %v5577_v33, %v5498_v15  ;;  %v4927_v52 = vpop.permute.xlu1 %4926 }
 0x83c   : > { %4992 = vst.msk [vmem:[#allocation4 + $0x1f0] sm:$0xff] %vm4960_vm10, %v4927_v52  ;;  %5253 = vmatmul.f32.gmra.mxu1 %v5045_v55 }
 0x83d   : > { %5786 = vst.msk [vmem:[#allocation4 + $0x10] sm:$0xff] %vm403_vm0, %v5750_v11 }
 0x842   : > { %v11961_v7 = vpop.permute.xlu0 %5601 }
 0x844   : > { %5256 = vmatmul.f32.gmra.mxu1 %v5047_v9 }
 0x84a   : > { %v11970_v29 = vpop.permute.xlu0 %5616 }
 0x84c   : > { %5259 = vmatmul.f32.gmra.mxu1 %v5049_v3 }
 0x852   : > { %v11985_v23 = vpop.permute.xlu0 %5631 }
 0x854   : > { %5262 = vmatmul.f32.gmra.mxu1 %v5051_v60 }
 0x85a   : > { %v11993_v62 = vpop.permute.xlu0 %5646 }
 0x85c   : > { %5265 = vmatmul.f32.gmra.mxu1 %v5053_v44 }
 0x862   : > { %v12003_v47 = vpop.permute.xlu0 %5661 }
 0x864   : > { %5268 = vmatmul.f32.gmra.mxu1 %v5055_v31 }
 0x868   : > { %v5224_v59 = vpop.f32.mrf.mxu1 }
 0x869   : > { %v5225_v54 = vadd.f32 %v11981_v42, %v5224_v59 }
 0x86a   : > { %v12014_v33 = vpop.permute.xlu0 %5676 }
 0x86b   : > { %v5338_v14 = vadd.f32 %v11836_v1, %v5225_v54  ;;  %v5582_v1 = vpop.permute.xlu1 %5581  ;;  %v5069_v54 = vld [vmem:[#allocation4 + $0x160] sm:$0xff] }
 0x86c   : > { %5271 = vmatmul.f32.gmra.mxu1 %v5057_v2 }
 0x86d   : > { %v5433_v39 = vmax.f32 %v5338_v14, 0.0 }
 0x86f   : > { %5465 = vst.msk [vmem:[#allocation3 + $0x18] sm:$0xff] %vm403_vm0, %v5433_v39 }
 0x871   : > { %v5227_v34 = vpop.f32.mrf.mxu1 }
 0x872   : > { %v5228_v30 = vadd.f32 %v11981_v42, %v5227_v34  ;;  %v12032_v60 = vpop.permute.xlu0 %5691 }
 0x873   : > { %v5592_v26 = vpop.permute.xlu1 %5591 }
 0x874   : > { %v5341_v28 = vadd.f32 %v11846_v16, %v5228_v30  ;;  %5274 = vmatmul.f32.gmra.mxu1 %v5059_v36  ;;  %v12001_v16 = vpop.f32.mrf.mxu2 }
 0x876   : > { %v5434_v57 = vmax.f32 %v5341_v28, 0.0  ;;  %v5499_v37 = vld [vmem:[#allocation3 + $0x17] sm:$0xff]  ;;  %v5071_v28 = vld [vmem:[#allocation4 + $0x170] sm:$0xff] }
 0x877   : > { %v5751_v18 = vmul.f32 %v5582_v1, %v5499_v37 }
 0x878   : > { %5466 = vst.msk [vmem:[#allocation3 + $0x20] sm:$0xff] %vm403_vm0, %v5434_v57 }
 0x879   : > { %5787 = vst.msk [vmem:[#allocation4 + $0x20] sm:$0xff] %vm403_vm0, %v5751_v18  ;;  %v5230_v51 = vpop.f32.mrf.mxu1  ;;  %5849 = vrot.lane.b32.xlu0 %v5751_v18, %s8154_s18 }
 0x87a   : > { %v5231_v0 = vadd.f32 %v11981_v42, %v5230_v51  ;;  %v12053_v14 = vpop.permute.xlu0 %5706 }
 0x87c   : > { %v5344_v6 = vadd.f32 %v11853_v40, %v5231_v0  ;;  %5277 = vmatmul.f32.gmra.mxu1 %v5061_v22  ;;  %v5063_v40 = vld [vmem:[#allocation4 + $0x130] sm:$0xff]  ;;  %v12012_v38 = vpop.f32.mrf.mxu2 }
 0x87e   : > { %v5435_v17 = vmax.f32 %v5344_v6, 0.0 }
 0x87f   : > { %v5500_v35 = vld [vmem:[#allocation3 + $0x1f] sm:$0xff] }
 0x880   : > { %5467 = vst.msk [vmem:[#allocation3 + $0x28] sm:$0xff] %vm403_vm0, %v5435_v17  ;;  %v5752_v27 = vmul.f32 %v5587_v21, %v5500_v35 }
 0x881   : > { %v5233_v19 = vpop.f32.mrf.mxu1 }
 0x882   : > { %5788 = vst.msk [vmem:[#allocation4 + $0x30] sm:$0xff] %vm403_vm0, %v5752_v27  ;;  %v5234_v12 = vadd.f32 %v11981_v42, %v5233_v19  ;;  %5851 = vrot.lane.b32.xlu1 %v5752_v27, %s8154_s18  ;;  %v12071_v37 = vpop.permute.xlu0 %5721 }
 0x884   : > { %v5347_v20 = vadd.f32 %v11865_v56, %v5234_v12  ;;  %5280 = vmatmul.f32.gmra.mxu1 %v5063_v40  ;;  %v12024_v56 = vpop.permute.xlu2 %5626  ;;  %v12030_v4 = vpop.f32.mrf.mxu2 }
 0x886   : > { %v5436_v49 = vmax.f32 %v5347_v20, 0.0 }
 0x887   : > { %v5501_v15 = vld [vmem:[#allocation3 + $0x27] sm:$0xff] }
 0x888   : > { %5468 = vst.msk [vmem:[#allocation3 + $0x30] sm:$0xff] %vm403_vm0, %v5436_v49  ;;  %v12017_v11 = vmul.f32 %v5592_v26, %v5501_v15  ;;  %v5075_v49 = vld [vmem:[#allocation4 + $0x190] sm:$0xff] }
 0x889   : > { %v5236_v52 = vpop.f32.mrf.mxu1 }
 0x88a   : > { %5789 = vst.msk [vmem:[#allocation4 + $0x40] sm:$0xff] %vm403_vm0, %v12017_v11  ;;  %v5237_v55 = vadd.f32 %v11981_v42, %v5236_v52  ;;  %5853 = vrot.lane.b32.xlu2 %v12017_v11, %s8154_s18  ;;  %v12089_v12 = vpop.permute.xlu0 %5736 }
 0x88c   : > { %v5350_v63 = vadd.f32 %v11876_v5, %v5237_v55  ;;  %5283 = vmatmul.f32.gmra.mxu1 %v5065_v46  ;;  %v5607_v5 = vpop.permute.xlu1 %5606  ;;  %v12040_v8 = vpop.permute.xlu2 %5641 }
 0x88d   : > { %v12051_v59 = vpop.f32.mrf.mxu2 }
 0x88e   : > { %v5437_v32 = vmax.f32 %v5350_v63, 0.0  ;;  %v4448_v63 = vld [vmem:[#allocation3 + $0x121] sm:$0xff] }
 0x88f   : > { %v5502_v9 = vld [vmem:[#allocation3 + $0x2f] sm:$0xff] }
 0x890   : > { %5469 = vst.msk [vmem:[#allocation3 + $0x38] sm:$0xff] %vm403_vm0, %v5437_v32  ;;  %v12028_v3 = vmul.f32 %v5597_v25, %v5502_v9 }
 0x891   : > { %v5239_v58 = vpop.f32.mrf.mxu1 }
 0x892   : > { %5790 = vst.msk [vmem:[#allocation4 + $0x50] sm:$0xff] %vm403_vm0, %v12028_v3  ;;  %v5240_v61 = vadd.f32 %v11981_v42, %v5239_v58  ;;  %5855 = vrot.lane.b32.xlu0 %v12028_v3, %s8154_s18 }
 0x893   : > { %v4663_v32 = vpop.permute.xlu0 %4662 }
 0x894   : > { %v5353_v13 = vadd.f32 %v11894_v45, %v5240_v61  ;;  %5286 = vmatmul.f32.gmra.mxu1 %v5067_v48  ;;  %v5622_v45 = vpop.permute.xlu1 %5621  ;;  %v12056_v39 = vpop.permute.xlu2 %5656  ;;  %v4700_v61 = vmul.f32 %v4663_v32, %v4448_v63 }
 0x895   : > { %v12069_v57 = vpop.f32.mrf.mxu2 }
 0x896   : > { %v5438_v10 = vmax.f32 %v5353_v13, 0.0  ;;  %5024 = vst.msk [vmem:[#allocation4 + $0x1f8] sm:$0xff] %vm403_vm0, %v4700_v61 }
 0x897   : > { %v5503_v44 = vld [vmem:[#allocation3 + $0x37] sm:$0xff] }
 0x898   : > { %5470 = vst.msk [vmem:[#allocation3 + $0x40] sm:$0xff] %vm403_vm0, %v5438_v10  ;;  %v12044_v24 = vmul.f32 %v11961_v7, %v5503_v44 }
 0x899   : > { %v5242_v53 = vpop.f32.mrf.mxu1 }
 0x89a   : > { %v5243_v31 = vadd.f32 %v11981_v42, %v5242_v53  ;;  %5857 = vrot.lane.b32.xlu1 %v12044_v24, %s8154_s18  ;;  %5791 = vst.msk [vmem:[#allocation4 + $0x60] sm:$0xff] %vm403_vm0, %v12044_v24 }
 0x89c   : > { %v5356_v2 = vadd.f32 %v11907_v41, %v5243_v31  ;;  %5289 = vmatmul.f32.gmra.mxu1 %v5069_v54  ;;  %v12067_v1 = vpop.permute.xlu1 %5636  ;;  %v12077_v0 = vpop.permute.xlu2 %5671 }
 0x89d   : > { %v5088_v54 = vld [vmem:[#allocation4 + $0x1f8] sm:$0xff] }
 0x89e   : > { %v5439_v7 = vmax.f32 %v5356_v2, 0.0  ;;  %7837 = vmatmul.msk.f32.gmra.mxu2 %vm403_vm0, %v5088_v54 }
 0x89f   : > { %v5504_v21 = vld [vmem:[#allocation3 + $0x3f] sm:$0xff] }
 0x8a0   : > { %5471 = vst.msk [vmem:[#allocation3 + $0x48] sm:$0xff] %vm403_vm0, %v5439_v7  ;;  %v12059_v34 = vmul.f32 %v5607_v5, %v5504_v21  ;;  %v5077_v5 = vld [vmem:[#allocation4 + $0x1a0] sm:$0xff]  ;;  %v5079_v7 = vld [vmem:[#allocation4 + $0x1b0] sm:$0xff] }
 0x8a1   : > { %v5245_v30 = vpop.f32.mrf.mxu1 }
 0x8a2   : > { %5792 = vst.msk [vmem:[#allocation4 + $0x70] sm:$0xff] %vm403_vm0, %v12059_v34  ;;  %v5246_v36 = vadd.f32 %v11981_v42, %v5245_v30  ;;  %5859 = vrot.lane.b32.xlu2 %v12059_v34, %s8154_s18 }
 0x8a4   : > { %v5359_v41 = vadd.f32 %v11991_v50, %v5246_v36  ;;  %5292 = vmatmul.f32.gmra.mxu1 %v5071_v28  ;;  %v5073_v50 = vld [vmem:[#allocation4 + $0x180] sm:$0xff]  ;;  %v12085_v27 = vpop.permute.xlu1 %5651 }
 0x8a6   : > { %v5440_v25 = vmax.f32 %v5359_v41, 0.0 }
 0x8a7   : > { %v5505_v18 = vld [vmem:[#allocation3 + $0x47] sm:$0xff] }
 0x8a8   : > { %5472 = vst.msk [vmem:[#allocation3 + $0x50] sm:$0xff] %vm403_vm0, %v5440_v25  ;;  %v12075_v51 = vmul.f32 %v12006_v43, %v5505_v18  ;;  %v12087_v43 = vpop.f32.mrf.mxu2 }
 0x8a9   : > { %v5248_v22 = vpop.f32.mrf.mxu1 }
 0x8aa   : > { %v5249_v6 = vadd.f32 %v11981_v42, %v5248_v22  ;;  %5861 = vrot.lane.b32.xlu0 %v12075_v51, %s8154_s18  ;;  %5793 = vst.msk [vmem:[#allocation4 + $0x80] sm:$0xff] %vm403_vm0, %v12075_v51 }
 0x8ac   : > { %v5362_v17 = vadd.f32 %v12001_v16, %v5249_v6  ;;  %5295 = vmatmul.f32.gmra.mxu1 %v5073_v50  ;;  %v12100_v16 = vpop.permute.xlu2 %5686 }
 0x8ae   : > { %v5441_v35 = vmax.f32 %v5362_v17, 0.0 }
 0x8af   : > { %v5506_v19 = vld [vmem:[#allocation3 + $0x4f] sm:$0xff] }
 0x8b0   : > { %5473 = vst.msk [vmem:[#allocation3 + $0x58] sm:$0xff] %vm403_vm0, %v5441_v35  ;;  %v12093_v40 = vmul.f32 %v11970_v29, %v5506_v19  ;;  %v12106_v29 = vpop.permute.xlu1 %5666  ;;  %v12108_v9 = vpop.f32.mrf.mxu2 }
 0x8b1   : > { %v5251_v20 = vpop.f32.mrf.mxu1 }
 0x8b2   : > { %v5252_v26 = vadd.f32 %v11981_v42, %v5251_v20  ;;  %5863 = vrot.lane.b32.xlu1 %v12093_v40, %s8154_s18  ;;  %5794 = vst.msk [vmem:[#allocation4 + $0x90] sm:$0xff] %vm403_vm0, %v12093_v40 }
 0x8b4   : > { %v5365_v15 = vadd.f32 %v12012_v38, %v5252_v26  ;;  %5298 = vmatmul.f32.gmra.mxu1 %v5075_v49  ;;  %v12117_v13 = vpop.permute.xlu2 %5701 }
 0x8b6   : > { %v5442_v52 = vmax.f32 %v5365_v15, 0.0 }
 0x8b7   : > { %v5507_v55 = vld [vmem:[#allocation3 + $0x57] sm:$0xff] }
 0x8b8   : > { %v12103_v46 = vmul.f32 %v5622_v45, %v5507_v55  ;;  %5474 = vst.msk [vmem:[#allocation3 + $0x60] sm:$0xff] %vm403_vm0, %v5442_v52  ;;  %v5382_v2 = vpop.f32.mrf.mxu2 }
 0x8b9   : > { %v5254_v58 = vpop.f32.mrf.mxu1 }
 0x8ba   : > { %5795 = vst.msk [vmem:[#allocation4 + $0xa0] sm:$0xff] %vm403_vm0, %v12103_v46  ;;  %v5255_v38 = vadd.f32 %v11981_v42, %v5254_v58  ;;  %5865 = vrot.lane.b32.xlu2 %v12103_v46, %s8154_s18  ;;  %v5085_v58 = vld [vmem:[#allocation4 + $0x1e0] sm:$0xff] }
 0x8bc   : > { %v5368_v48 = vadd.f32 %v12030_v4, %v5255_v38  ;;  %5301 = vmatmul.f32.gmra.mxu1 %v5077_v5  ;;  %v12128_v4 = vpop.permute.xlu1 %5681  ;;  %v12132_v30 = vpop.permute.xlu2 %5716 }
 0x8be   : > { %v5443_v10 = vmax.f32 %v5368_v48, 0.0 }
 0x8bf   : > { %v5508_v44 = vld [vmem:[#allocation3 + $0x5f] sm:$0xff] }
 0x8c0   : > { %5475 = vst.msk [vmem:[#allocation3 + $0x68] sm:$0xff] %vm403_vm0, %v5443_v10  ;;  %v12121_v53 = vmul.f32 %v12024_v56, %v5508_v44  ;;  %v5385_v6 = vpop.f32.mrf.mxu2 }
 0x8c1   : > { %v5257_v31 = vpop.f32.mrf.mxu1 }
 0x8c2   : > { %v5258_v45 = vadd.f32 %v11981_v42, %v5257_v31  ;;  %5867 = vrot.lane.b32.xlu0 %v12121_v53, %s8154_s18  ;;  %5796 = vst.msk [vmem:[#allocation4 + $0xb0] sm:$0xff] %vm403_vm0, %v12121_v53 }
 0x8c4   : > { %v5371_v21 = vadd.f32 %v12051_v59, %v5258_v45  ;;  %5304 = vmatmul.f32.gmra.mxu1 %v5079_v7  ;;  %v5081_v59 = vld [vmem:[#allocation4 + $0x1c0] sm:$0xff]  ;;  %v12144_v22 = vpop.permute.xlu1 %5696  ;;  %v12150_v35 = vpop.permute.xlu2 %5731 }
 0x8c6   : > { %v5444_v56 = vmax.f32 %v5371_v21, 0.0 }
 0x8c7   : > { %v5509_v36 = vld [vmem:[#allocation3 + $0x67] sm:$0xff] }
 0x8c8   : > { %5476 = vst.msk [vmem:[#allocation3 + $0x70] sm:$0xff] %vm403_vm0, %v5444_v56  ;;  %v12136_v28 = vmul.f32 %v11985_v23, %v5509_v36 }
 0x8c9   : > { %v5260_v41 = vpop.f32.mrf.mxu1 }
 0x8ca   : > { %v5261_v25 = vadd.f32 %v11981_v42, %v5260_v41  ;;  %5869 = vrot.lane.b32.xlu1 %v12136_v28, %s8154_s18  ;;  %5797 = vst.msk [vmem:[#allocation4 + $0xc0] sm:$0xff] %vm403_vm0, %v12136_v28 }
 0x8cc   : > { %v5374_v18 = vadd.f32 %v12069_v57, %v5261_v25  ;;  %5307 = vmatmul.f32.gmra.mxu1 %v5081_v59  ;;  %v5083_v57 = vld [vmem:[#allocation4 + $0x1d0] sm:$0xff]  ;;  %v12158_v15 = vpop.permute.xlu1 %5711 }
 0x8ce   : > { %v5445_v50 = vmax.f32 %v5374_v18, 0.0 }
 0x8cf   : > { %v5510_v17 = vld [vmem:[#allocation3 + $0x6f] sm:$0xff] }
 0x8d0   : > { %5477 = vst.msk [vmem:[#allocation3 + $0x78] sm:$0xff] %vm403_vm0, %v5445_v50  ;;  %v12148_v23 = vmul.f32 %v12067_v1, %v5510_v17  ;;  %v5388_v1 = vpop.f32.mrf.mxu2 }
 0x8d1   : > { %v5263_v19 = vpop.f32.mrf.mxu1 }
 0x8d2   : > { %v5264_v20 = vadd.f32 %v11981_v42, %v5263_v19  ;;  %5871 = vrot.lane.b32.xlu2 %v12148_v23, %s8154_s18  ;;  %5798 = vst.msk [vmem:[#allocation4 + $0xd0] sm:$0xff] %vm403_vm0, %v12148_v23 }
 0x8d4   : > { %v5377_v26 = vadd.f32 %v12087_v43, %v5264_v20  ;;  %5310 = vmatmul.f32.gmra.mxu1 %v5083_v57  ;;  %v12169_v43 = vpop.permute.xlu2 %5746  ;;  %v12176_v48 = vpop.permute.xlu1 %5726 }
 0x8d6   : > { %v5446_v49 = vmax.f32 %v5377_v26, 0.0 }
 0x8d7   : > { %v5511_v52 = vld [vmem:[#allocation3 + $0x77] sm:$0xff] }
 0x8d8   : > { %5478 = vst.msk [vmem:[#allocation3 + $0x80] sm:$0xff] %vm403_vm0, %v5446_v49  ;;  %v12162_v55 = vmul.f32 %v12040_v8, %v5511_v52  ;;  %v5391_v10 = vpop.f32.mrf.mxu2 }
 0x8d9   : > { %v5266_v63 = vpop.f32.mrf.mxu1 }
 0x8da   : > { %v5267_v32 = vadd.f32 %v11981_v42, %v5266_v63  ;;  %5873 = vrot.lane.b32.xlu0 %v12162_v55, %s8154_s18  ;;  %5799 = vst.msk [vmem:[#allocation4 + $0xe0] sm:$0xff] %vm403_vm0, %v12162_v55 }
 0x8dc   : > { %v5380_v61 = vadd.f32 %v12108_v9, %v5267_v32  ;;  %5313 = vmatmul.f32.gmra.mxu1 %v5085_v58  ;;  %v5087_v9 = vld [vmem:[#allocation4 + $0x1f0] sm:$0xff] }
 0x8de   : > { %v5447_v38 = vmax.f32 %v5380_v61, 0.0 }
 0x8df   : > { %v5512_v5 = vld [vmem:[#allocation3 + $0x7f] sm:$0xff] }
 0x8e0   : > { %5479 = vst.msk [vmem:[#allocation3 + $0x88] sm:$0xff] %vm403_vm0, %v5447_v38  ;;  %v12174_v8 = vmul.f32 %v11993_v62, %v5512_v5  ;;  %v5394_v41 = vpop.f32.mrf.mxu2 }
 0x8e1   : > { %v5269_v44 = vpop.f32.mrf.mxu1 }
 0x8e2   : > { %v5270_v31 = vadd.f32 %v11981_v42, %v5269_v44  ;;  %5875 = vrot.lane.b32.xlu1 %v12174_v8, %s8154_s18  ;;  %5800 = vst.msk [vmem:[#allocation4 + $0xf0] sm:$0xff] %vm403_vm0, %v12174_v8 }
 0x8e4   : > { %v5383_v45 = vadd.f32 %v5382_v2, %v5270_v31  ;;  %5316 = vmatmul.f32.gmra.mxu1 %v5087_v9  ;;  %v5854_v54 = vpop.permute.xlu2 %5853  ;;  %v12193_v2 = vpop.permute.xlu1 %5741 }
 0x8e5   : > { %5947 = vst.msk [vmem:[#allocation4 + $0x20] sm:$0xff] %vm3790_vm4, %v5854_v54 }
 0x8e6   : > { %v5448_v62 = vmax.f32 %v5383_v45, 0.0 }
 0x8e7   : > { %v5513_v7 = vld [vmem:[#allocation3 + $0x87] sm:$0xff] }
 0x8e8   : > { %5480 = vst.msk [vmem:[#allocation3 + $0x90] sm:$0xff] %vm403_vm0, %v5448_v62  ;;  %v12186_v21 = vmul.f32 %v12085_v27, %v5513_v7  ;;  %v5397_v57 = vpop.f32.mrf.mxu2 }
 0x8e9   : > { %v5272_v56 = vpop.f32.mrf.mxu1 }
 0x8ea   : > { %v5273_v36 = vadd.f32 %v11981_v42, %v5272_v56  ;;  %5877 = vrot.lane.b32.xlu2 %v12186_v21, %s8154_s18  ;;  %5801 = vst.msk [vmem:[#allocation4 + $0x100] sm:$0xff] %vm403_vm0, %v12186_v21 }
 0x8eb   : > { %v5850_v25 = vpop.permute.xlu0 %5849 }
 0x8ec   : > { %v5386_v59 = vadd.f32 %v5385_v6, %v5273_v36  ;;  %5945 = vst.msk [vmem:[#allocation4] sm:$0xff] %vm3790_vm4, %v5850_v25 }
 0x8ee   : > { %v5449_v18 = vmax.f32 %v5386_v59, 0.0 }
 0x8ef   : > { %v5514_v50 = vld [vmem:[#allocation3 + $0x8f] sm:$0xff] }
 0x8f0   : > { %5481 = vst.msk [vmem:[#allocation3 + $0x98] sm:$0xff] %vm403_vm0, %v5449_v18  ;;  %v12198_v27 = vmul.f32 %v12056_v39, %v5514_v50  ;;  %v5400_v61 = vpop.f32.mrf.mxu2 }
 0x8f1   : > { %v5275_v17 = vpop.f32.mrf.mxu1 }
 0x8f2   : > { %v5276_v19 = vadd.f32 %v11981_v42, %v5275_v17  ;;  %5879 = vrot.lane.b32.xlu0 %v12198_v27, %s8154_s18  ;;  %5802 = vst.msk [vmem:[#allocation4 + $0x110] sm:$0xff] %vm403_vm0, %v12198_v27 }
 0x8f4   : > { %v5389_v20 = vadd.f32 %v5388_v1, %v5276_v19  ;;  %v5852_v6 = vpop.permute.xlu1 %5851 }
 0x8f5   : > { %5946 = vst.msk [vmem:[#allocation4 + $0x10] sm:$0xff] %vm3790_vm4, %v5852_v6 }
 0x8f6   : > { %v5450_v26 = vmax.f32 %v5389_v20, 0.0 }
 0x8f7   : > { %v5515_v49 = vld [vmem:[#allocation3 + $0x97] sm:$0xff] }
 0x8f8   : > { %5482 = vst.msk [vmem:[#allocation3 + $0xa0] sm:$0xff] %vm403_vm0, %v5450_v26  ;;  %v12208_v39 = vmul.f32 %v12003_v47, %v5515_v49  ;;  %v5403_v54 = vpop.f32.mrf.mxu2 }
 0x8f9   : > { %v5278_v52 = vpop.f32.mrf.mxu1 }
 0x8fa   : > { %v5279_v63 = vadd.f32 %v11981_v42, %v5278_v52  ;;  %5881 = vrot.lane.b32.xlu1 %v12208_v39, %s8154_s18  ;;  %5803 = vst.msk [vmem:[#allocation4 + $0x120] sm:$0xff] %vm403_vm0, %v12208_v39 }
 0x8fc   : > { %v5392_v1 = vadd.f32 %v5391_v10, %v5279_v63  ;;  %v5860_v32 = vpop.permute.xlu2 %5859 }
 0x8fd   : > { %5950 = vst.msk [vmem:[#allocation4 + $0x50] sm:$0xff] %vm3790_vm4, %v5860_v32 }
 0x8fe   : > { %v5451_v58 = vmax.f32 %v5392_v1, 0.0 }
 0x8ff   : > { %v5516_v38 = vld [vmem:[#allocation3 + $0x9f] sm:$0xff] }
 0x900   : > { %5483 = vst.msk [vmem:[#allocation3 + $0xa8] sm:$0xff] %vm403_vm0, %v5451_v58  ;;  %v12218_v47 = vmul.f32 %v12106_v29, %v5516_v38  ;;  %v5406_v50 = vpop.f32.mrf.mxu2 }
 0x901   : > { %v5281_v5 = vpop.f32.mrf.mxu1 }
 0x902   : > { %v5282_v44 = vadd.f32 %v11981_v42, %v5281_v5  ;;  %5883 = vrot.lane.b32.xlu2 %v12218_v47, %s8154_s18  ;;  %5804 = vst.msk [vmem:[#allocation4 + $0x130] sm:$0xff] %vm403_vm0, %v12218_v47 }
 0x904   : > { %v5395_v10 = vadd.f32 %v5394_v41, %v5282_v44  ;;  %v5856_v31 = vpop.permute.xlu0 %5855 }
 0x905   : > { %5948 = vst.msk [vmem:[#allocation4 + $0x30] sm:$0xff] %vm3790_vm4, %v5856_v31 }
 0x906   : > { %v5452_v9 = vmax.f32 %v5395_v10, 0.0 }
 0x907   : > { %v5517_v45 = vld [vmem:[#allocation3 + $0xa7] sm:$0xff] }
 0x908   : > { %5484 = vst.msk [vmem:[#allocation3 + $0xb0] sm:$0xff] %vm403_vm0, %v5452_v9  ;;  %v12228_v29 = vmul.f32 %v12077_v0, %v5517_v45  ;;  %v5409_v63 = vpop.f32.mrf.mxu2 }
 0x909   : > { %v5284_v62 = vpop.f32.mrf.mxu1 }
 0x90a   : > { %v5285_v7 = vadd.f32 %v11981_v42, %v5284_v62  ;;  %5885 = vrot.lane.b32.xlu0 %v12228_v29, %s8154_s18  ;;  %5805 = vst.msk [vmem:[#allocation4 + $0x140] sm:$0xff] %vm403_vm0, %v12228_v29 }
 0x90c   : > { %v5398_v56 = vadd.f32 %v5397_v57, %v5285_v7  ;;  %v5858_v36 = vpop.permute.xlu1 %5857 }
 0x90d   : > { %5949 = vst.msk [vmem:[#allocation4 + $0x40] sm:$0xff] %vm3790_vm4, %v5858_v36 }
 0x90e   : > { %v5453_v41 = vmax.f32 %v5398_v56, 0.0 }
 0x90f   : > { %v5518_v25 = vld [vmem:[#allocation3 + $0xaf] sm:$0xff] }
 0x910   : > { %5485 = vst.msk [vmem:[#allocation3 + $0xb8] sm:$0xff] %vm403_vm0, %v5453_v41  ;;  %v12238_v0 = vmul.f32 %v12014_v33, %v5518_v25  ;;  %v5412_v10 = vpop.f32.mrf.mxu2 }
 0x911   : > { %v5287_v59 = vpop.f32.mrf.mxu1 }
 0x912   : > { %v5288_v18 = vadd.f32 %v11981_v42, %v5287_v59  ;;  %5887 = vrot.lane.b32.xlu1 %v12238_v0, %s8154_s18  ;;  %5806 = vst.msk [vmem:[#allocation4 + $0x150] sm:$0xff] %vm403_vm0, %v12238_v0 }
 0x914   : > { %v5401_v17 = vadd.f32 %v5400_v61, %v5288_v18  ;;  %v5866_v19 = vpop.permute.xlu2 %5865 }
 0x915   : > { %5953 = vst.msk [vmem:[#allocation4 + $0x80] sm:$0xff] %vm3790_vm4, %v5866_v19 }
 0x916   : > { %v5454_v20 = vmax.f32 %v5401_v17, 0.0 }
 0x917   : > { %v5519_v6 = vld [vmem:[#allocation3 + $0xb7] sm:$0xff] }
 0x918   : > { %5486 = vst.msk [vmem:[#allocation3 + $0xc0] sm:$0xff] %vm403_vm0, %v5454_v20  ;;  %v12248_v33 = vmul.f32 %v12128_v4, %v5519_v6  ;;  %v5415_v36 = vpop.f32.mrf.mxu2 }
 0x919   : > { %v5290_v57 = vpop.f32.mrf.mxu1 }
 0x91a   : > { %v5291_v26 = vadd.f32 %v11981_v42, %v5290_v57  ;;  %5889 = vrot.lane.b32.xlu2 %v12248_v33, %s8154_s18  ;;  %5807 = vst.msk [vmem:[#allocation4 + $0x160] sm:$0xff] %vm403_vm0, %v12248_v33 }
 0x91c   : > { %v5404_v49 = vadd.f32 %v5403_v54, %v5291_v26  ;;  %v5862_v52 = vpop.permute.xlu0 %5861 }
 0x91d   : > { %5951 = vst.msk [vmem:[#allocation4 + $0x60] sm:$0xff] %vm3790_vm4, %v5862_v52 }
 0x91e   : > { %v5455_v1 = vmax.f32 %v5404_v49, 0.0 }
 0x91f   : > { %v5520_v32 = vld [vmem:[#allocation3 + $0xbf] sm:$0xff] }
 0x920   : > { %5487 = vst.msk [vmem:[#allocation3 + $0xc8] sm:$0xff] %vm403_vm0, %v5455_v1  ;;  %v12258_v4 = vmul.f32 %v12100_v16, %v5520_v32  ;;  %v5418_v6 = vpop.f32.mrf.mxu2 }
 0x921   : > { %v5293_v58 = vpop.f32.mrf.mxu1 }
 0x922   : > { %v5294_v61 = vadd.f32 %v11981_v42, %v5293_v58  ;;  %5891 = vrot.lane.b32.xlu0 %v12258_v4, %s8154_s18  ;;  %5808 = vst.msk [vmem:[#allocation4 + $0x170] sm:$0xff] %vm403_vm0, %v12258_v4 }
 0x924   : > { %v5407_v38 = vadd.f32 %v5406_v50, %v5294_v61  ;;  %v5864_v5 = vpop.permute.xlu1 %5863 }
 0x925   : > { %5952 = vst.msk [vmem:[#allocation4 + $0x70] sm:$0xff] %vm3790_vm4, %v5864_v5 }
 0x926   : > { %v5456_v44 = vmax.f32 %v5407_v38, 0.0 }
 0x927   : > { %v5521_v31 = vld [vmem:[#allocation3 + $0xc7] sm:$0xff] }
 0x928   : > { %5488 = vst.msk [vmem:[#allocation3 + $0xd0] sm:$0xff] %vm403_vm0, %v5456_v44  ;;  %v12268_v16 = vmul.f32 %v12032_v60, %v5521_v31  ;;  %v5421_v61 = vpop.f32.mrf.mxu2 }
 0x929   : > { %v5296_v9 = vpop.f32.mrf.mxu1 }
 0x92a   : > { %v5297_v45 = vadd.f32 %v11981_v42, %v5296_v9  ;;  %5893 = vrot.lane.b32.xlu1 %v12268_v16, %s8154_s18  ;;  %5809 = vst.msk [vmem:[#allocation4 + $0x180] sm:$0xff] %vm403_vm0, %v12268_v16 }
 0x92c   : > { %v5410_v54 = vadd.f32 %v5409_v63, %v5297_v45  ;;  %v5872_v62 = vpop.permute.xlu2 %5871 }
 0x92d   : > { %5956 = vst.msk [vmem:[#allocation4 + $0xb0] sm:$0xff] %vm3790_vm4, %v5872_v62 }
 0x92e   : > { %v5457_v7 = vmax.f32 %v5410_v54, 0.0 }
 0x92f   : > { %v5522_v56 = vld [vmem:[#allocation3 + $0xcf] sm:$0xff] }
 0x930   : > { %5489 = vst.msk [vmem:[#allocation3 + $0xd8] sm:$0xff] %vm403_vm0, %v5457_v7  ;;  %v12278_v60 = vmul.f32 %v12144_v22, %v5522_v56  ;;  %v5424_v54 = vpop.f32.mrf.mxu2 }
 0x931   : > { %v5299_v41 = vpop.f32.mrf.mxu1 }
 0x932   : > { %v5300_v25 = vadd.f32 %v11981_v42, %v5299_v41  ;;  %5895 = vrot.lane.b32.xlu2 %v12278_v60, %s8154_s18  ;;  %5810 = vst.msk [vmem:[#allocation4 + $0x190] sm:$0xff] %vm403_vm0, %v12278_v60 }
 0x934   : > { %v5413_v59 = vadd.f32 %v5412_v10, %v5300_v25  ;;  %v5868_v18 = vpop.permute.xlu0 %5867 }
 0x935   : > { %5954 = vst.msk [vmem:[#allocation4 + $0x90] sm:$0xff] %vm3790_vm4, %v5868_v18 }
 0x936   : > { %v5458_v50 = vmax.f32 %v5413_v59, 0.0 }
 0x937   : > { %v5523_v17 = vld [vmem:[#allocation3 + $0xd7] sm:$0xff] }
 0x938   : > { %5490 = vst.msk [vmem:[#allocation3 + $0xe0] sm:$0xff] %vm403_vm0, %v5458_v50  ;;  %v12288_v22 = vmul.f32 %v12117_v13, %v5523_v17  ;;  %v5427_v18 = vpop.f32.mrf.mxu2 }
 0x939   : > { %v5302_v19 = vpop.f32.mrf.mxu1 }
 0x93a   : > { %v5303_v20 = vadd.f32 %v11981_v42, %v5302_v19  ;;  %5897 = vrot.lane.b32.xlu0 %v12288_v22, %s8154_s18  ;;  %5811 = vst.msk [vmem:[#allocation4 + $0x1a0] sm:$0xff] %vm403_vm0, %v12288_v22 }
 0x93c   : > { %v5416_v57 = vadd.f32 %v5415_v36, %v5303_v20  ;;  %v5870_v26 = vpop.permute.xlu1 %5869 }
 0x93d   : > { %5955 = vst.msk [vmem:[#allocation4 + $0xa0] sm:$0xff] %vm3790_vm4, %v5870_v26 }
 0x93e   : > { %v5459_v49 = vmax.f32 %v5416_v57, 0.0 }
 0x93f   : > { %v5524_v52 = vld [vmem:[#allocation3 + $0xdf] sm:$0xff] }
 0x940   : > { %5491 = vst.msk [vmem:[#allocation3 + $0xe8] sm:$0xff] %vm403_vm0, %v5459_v49  ;;  %v12298_v13 = vmul.f32 %v12053_v14, %v5524_v52  ;;  %v5430_v49 = vpop.f32.mrf.mxu2 }
 0x941   : > { %v5305_v63 = vpop.f32.mrf.mxu1 }
 0x942   : > { %v5306_v1 = vadd.f32 %v11981_v42, %v5305_v63  ;;  %5899 = vrot.lane.b32.xlu1 %v12298_v13, %s8154_s18  ;;  %5812 = vst.msk [vmem:[#allocation4 + $0x1b0] sm:$0xff] %vm403_vm0, %v12298_v13 }
 0x944   : > { %v5419_v32 = vadd.f32 %v5418_v6, %v5306_v1  ;;  %v5878_v58 = vpop.permute.xlu2 %5877 }
 0x945   : > { %5959 = vst.msk [vmem:[#allocation4 + $0xe0] sm:$0xff] %vm3790_vm4, %v5878_v58 }
 0x946   : > { %v5460_v38 = vmax.f32 %v5419_v32, 0.0 }
 0x947   : > { %v5525_v5 = vld [vmem:[#allocation3 + $0xe7] sm:$0xff] }
 0x948   : > { %5492 = vst.msk [vmem:[#allocation3 + $0xf0] sm:$0xff] %vm403_vm0, %v5460_v38  ;;  %v12308_v14 = vmul.f32 %v12158_v15, %v5525_v5  ;;  %v12454_v5 = vld [vmem:[#allocation3 + $0x58] sm:$0xff] }
 0x949   : > { %v5308_v44 = vpop.f32.mrf.mxu1 }
 0x94a   : > { %v5309_v10 = vadd.f32 %v11981_v42, %v5308_v44  ;;  %5901 = vrot.lane.b32.xlu2 %v12308_v14, %s8154_s18  ;;  %5813 = vst.msk [vmem:[#allocation4 + $0x1c0] sm:$0xff] %vm403_vm0, %v12308_v14 }
 0x94c   : > { %v5422_v31 = vadd.f32 %v5421_v61, %v5309_v10  ;;  %v5874_v9 = vpop.permute.xlu0 %5873  ;;  %v12460_v10 = vld [vmem:[#allocation3 + $0x50] sm:$0xff] }
 0x94d   : > { %5957 = vst.msk [vmem:[#allocation4 + $0xc0] sm:$0xff] %vm3790_vm4, %v5874_v9  ;;  %v12468_v9 = vld [vmem:[#allocation3 + $0x70] sm:$0xff] }
 0x94e   : > { %v5461_v45 = vmax.f32 %v5422_v31, 0.0  ;;  %v12462_v31 = vld [vmem:[#allocation3 + $0x60] sm:$0xff] }
 0x94f   : > { %v5526_v62 = vld [vmem:[#allocation3 + $0xef] sm:$0xff] }
 0x950   : > { %5493 = vst.msk [vmem:[#allocation3 + $0xf8] sm:$0xff] %vm403_vm0, %v5461_v45  ;;  %v12318_v15 = vmul.f32 %v12132_v30, %v5526_v62 }
 0x951   : > { %v5311_v7 = vpop.f32.mrf.mxu1 }
 0x952   : > { %v5312_v56 = vadd.f32 %v11981_v42, %v5311_v7  ;;  %5903 = vrot.lane.b32.xlu0 %v12318_v15, %s8154_s18  ;;  %5814 = vst.msk [vmem:[#allocation4 + $0x1d0] sm:$0xff] %vm403_vm0, %v12318_v15  ;;  %v12477_v7 = vld [vmem:[#allocation3 + $0x78] sm:$0xff] }
 0x954   : > { %v5425_v36 = vadd.f32 %v5424_v54, %v5312_v56  ;;  %v5876_v41 = vpop.permute.xlu1 %5875  ;;  %v12483_v56 = vld [vmem:[#allocation3 + $0x88] sm:$0xff] }
 0x955   : > { %5958 = vst.msk [vmem:[#allocation4 + $0xd0] sm:$0xff] %vm3790_vm4, %v5876_v41 }
 0x956   : > { %v5462_v25 = vmax.f32 %v5425_v36, 0.0 }
 0x957   : > { %v5527_v59 = vld [vmem:[#allocation3 + $0xf7] sm:$0xff] }
 0x958   : > { %5494 = vst.msk [vmem:[#allocation3 + $0x100] sm:$0xff] %vm403_vm0, %v5462_v25  ;;  %v12328_v30 = vmul.f32 %v12071_v37, %v5527_v59  ;;  %v12490_v59 = vld [vmem:[#allocation3 + $0x80] sm:$0xff] }
 0x959   : > { %v5314_v50 = vpop.f32.mrf.mxu1 }
 0x95a   : > { %v5315_v17 = vadd.f32 %v11981_v42, %v5314_v50  ;;  %5905 = vrot.lane.b32.xlu1 %v12328_v30, %s8154_s18  ;;  %5815 = vst.msk [vmem:[#allocation4 + $0x1e0] sm:$0xff] %vm403_vm0, %v12328_v30 }
 0x95c   : > { %v5428_v19 = vadd.f32 %v5427_v18, %v5315_v17  ;;  %v5884_v20 = vpop.permute.xlu2 %5883  ;;  %v12498_v18 = vld [vmem:[#allocation3 + $0xa0] sm:$0xff] }
 0x95d   : > { %5962 = vst.msk [vmem:[#allocation4 + $0x110] sm:$0xff] %vm3790_vm4, %v5884_v20  ;;  %v12505_v20 = vld [vmem:[#allocation3 + $0x98] sm:$0xff] }
 0x95e   : > { %v5463_v6 = vmax.f32 %v5428_v19, 0.0 }
 0x95f   : > { %v5528_v57 = vld [vmem:[#allocation3 + $0xff] sm:$0xff] }
 0x960   : > { %5495 = vst.msk [vmem:[#allocation3 + $0x108] sm:$0xff] %vm403_vm0, %v5463_v6  ;;  %v5780_v37 = vmul.f32 %v12176_v48, %v5528_v57  ;;  %v12507_v6 = vld [vmem:[#allocation3 + $0xa8] sm:$0xff]  ;;  %v12513_v57 = vld [vmem:[#allocation3 + $0xb8] sm:$0xff] }
 0x961   : > { %v5317_v26 = vpop.f32.mrf.mxu1 }
 0x962   : > { %v5318_v52 = vadd.f32 %v11981_v42, %v5317_v26  ;;  %5907 = vrot.lane.b32.xlu2 %v5780_v37, %s8154_s18  ;;  %5816 = vst.msk [vmem:[#allocation4 + $0x1f0] sm:$0xff] %vm403_vm0, %v5780_v37 }
 0x964   : > { %v5431_v63 = vadd.f32 %v5430_v49, %v5318_v52  ;;  %v5880_v1 = vpop.permute.xlu0 %5879  ;;  %v12520_v52 = vld [vmem:[#allocation3 + $0xb0] sm:$0xff] }
 0x965   : > { %5960 = vst.msk [vmem:[#allocation4 + $0xf0] sm:$0xff] %vm3790_vm4, %v5880_v1  ;;  %v12528_v1 = vld [vmem:[#allocation3 + $0xd0] sm:$0xff] }
 0x966   : > { %v5464_v32 = vmax.f32 %v5431_v63, 0.0  ;;  %v12522_v63 = vld [vmem:[#allocation3 + $0xc0] sm:$0xff] }
 0x967   : > { %v5529_v58 = vld [vmem:[#allocation3 + $0x107] sm:$0xff] }
 0x968   : > { %5496 = vst.msk [vmem:[#allocation3 + $0x110] sm:$0xff] %vm403_vm0, %v5464_v32  ;;  %v5781_v61 = vmul.f32 %v12150_v35, %v5529_v58 }
 0x96a   : > { %5909 = vrot.lane.b32.xlu0 %v5781_v61, %s8154_s18  ;;  %5979 = vrot.lane.b32.xlu2 %v12017_v11, %s8155_s4 }
 0x96c   : > { %v5882_v42 = vpop.permute.xlu1 %5881 }
 0x96d   : > { %5961 = vst.msk [vmem:[#allocation4 + $0x100] sm:$0xff] %vm3790_vm4, %v5882_v42  ;;  %v12535_v42 = vld [vmem:[#allocation3 + $0xc8] sm:$0xff] }
 0x96f   : > { %v5530_v48 = vld [vmem:[#allocation3 + $0x10f] sm:$0xff] }
 0x970   : > { %v5782_v38 = vmul.f32 %v12089_v12, %v5530_v48  ;;  %v12537_v48 = vld [vmem:[#allocation3 + $0xd8] sm:$0xff] }
 0x972   : > { %5911 = vrot.lane.b32.xlu1 %v5782_v38, %s8154_s18  ;;  %5981 = vrot.lane.b32.xlu0 %v12028_v3, %s8155_s4 }
 0x973   : > { %5985 = vrot.lane.b32.xlu2 %v12059_v34, %s8155_s4 }
 0x974   : > { %v5890_v35 = vpop.permute.xlu2 %5889 }
 0x975   : > { %5965 = vst.msk [vmem:[#allocation4 + $0x140] sm:$0xff] %vm3790_vm4, %v5890_v35 }
 0x97a   : > { %5983 = vrot.lane.b32.xlu1 %v12044_v24, %s8155_s4  ;;  %5987 = vrot.lane.b32.xlu0 %v12075_v51, %s8155_s4 }
 0x97b   : > { %5991 = vrot.lane.b32.xlu2 %v12103_v46, %s8155_s4 }
 0x97c   : > { %v5886_v11 = vpop.permute.xlu0 %5885 }
 0x97d   : > { %5963 = vst.msk [vmem:[#allocation4 + $0x120] sm:$0xff] %vm3790_vm4, %v5886_v11 }
 0x982   : > { %5989 = vrot.lane.b32.xlu1 %v12093_v40, %s8155_s4  ;;  %5993 = vrot.lane.b32.xlu0 %v12121_v53, %s8155_s4  ;;  %v5531_v53 = vld [vmem:[#allocation3 + $0x117] sm:$0xff] }
 0x983   : > { %5997 = vrot.lane.b32.xlu2 %v12148_v23, %s8155_s4 }
 0x984   : > { %v5888_v3 = vpop.permute.xlu1 %5887 }
 0x985   : > { %5964 = vst.msk [vmem:[#allocation4 + $0x130] sm:$0xff] %vm3790_vm4, %v5888_v3 }
 0x98a   : > { %5995 = vrot.lane.b32.xlu1 %v12136_v28, %s8155_s4  ;;  %5999 = vrot.lane.b32.xlu0 %v12162_v55, %s8155_s4  ;;  %v5783_v28 = vmul.f32 %v12193_v2, %v5531_v53  ;;  %v5532_v55 = vld [vmem:[#allocation3 + $0x11f] sm:$0xff] }
 0x98b   : > { %6003 = vrot.lane.b32.xlu2 %v12186_v21, %s8155_s4  ;;  %v6108_v21 = vld [vmem:[#allocation3 + $0x10] sm:$0xff]  ;;  %v12565_v53 = vld [vmem:[#allocation3 + $0xf8] sm:$0xff] }
 0x98c   : > { %v5896_v24 = vpop.permute.xlu2 %5895 }
 0x98d   : > { %5968 = vst.msk [vmem:[#allocation4 + $0x170] sm:$0xff] %vm3790_vm4, %v5896_v24  ;;  %v12550_v24 = vld [vmem:[#allocation3 + $0xe0] sm:$0xff] }
 0x992   : > { %6001 = vrot.lane.b32.xlu1 %v12174_v8, %s8155_s4  ;;  %6005 = vrot.lane.b32.xlu0 %v12198_v27, %s8155_s4  ;;  %v5784_v8 = vmul.f32 %v12169_v43, %v5532_v55  ;;  %v12427_v43 = vld [vmem:[#allocation3 + $0x28] sm:$0xff] }
 0x993   : > { %6009 = vrot.lane.b32.xlu2 %v12218_v47, %s8155_s4  ;;  %v12422_v47 = vld [vmem:[#allocation3 + $0x18] sm:$0xff] }
 0x994   : > { %v5892_v34 = vpop.permute.xlu0 %5891 }
 0x995   : > { %5966 = vst.msk [vmem:[#allocation4 + $0x150] sm:$0xff] %vm3790_vm4, %v5892_v34  ;;  %v12552_v34 = vld [vmem:[#allocation3 + $0xf0] sm:$0xff] }
 0x99a   : > { %6007 = vrot.lane.b32.xlu1 %v12208_v39, %s8155_s4  ;;  %6011 = vrot.lane.b32.xlu0 %v12228_v29, %s8155_s4  ;;  %v6107_v39 = vld [vmem:[#allocation3 + $0x8] sm:$0xff] }
 0x99b   : > { %6015 = vrot.lane.b32.xlu2 %v12248_v33, %s8155_s4  ;;  %v12433_v33 = vld [vmem:[#allocation3 + $0x20] sm:$0xff] }
 0x99c   : > { %v5894_v51 = vpop.permute.xlu1 %5893 }
 0x99d   : > { %5967 = vst.msk [vmem:[#allocation4 + $0x160] sm:$0xff] %vm3790_vm4, %v5894_v51  ;;  %v12558_v51 = vld [vmem:[#allocation3 + $0x100] sm:$0xff] }
 0x9a2   : > { %6013 = vrot.lane.b32.xlu1 %v12238_v0, %s8155_s4  ;;  %6017 = vrot.lane.b32.xlu0 %v12258_v4, %s8155_s4  ;;  %v12435_v4 = vld [vmem:[#allocation3 + $0x30] sm:$0xff] }
 0x9a3   : > { %6021 = vrot.lane.b32.xlu2 %v12278_v60, %s8155_s4 }
 0x9a4   : > { %v5902_v12 = vpop.permute.xlu2 %5901 }
 0x9a5   : > { %5971 = vst.msk [vmem:[#allocation4 + $0x1a0] sm:$0xff] %vm3790_vm4, %v5902_v12 }
 0x9aa   : > { %6019 = vrot.lane.b32.xlu1 %v12268_v16, %s8155_s4  ;;  %6023 = vrot.lane.b32.xlu0 %v12288_v22, %s8155_s4  ;;  %v12441_v16 = vld [vmem:[#allocation3 + $0x40] sm:$0xff]  ;;  %v12446_v22 = vld [vmem:[#allocation3 + $0x38] sm:$0xff] }
 0x9ab   : > { %6027 = vrot.lane.b32.xlu2 %v12308_v14, %s8155_s4 }
 0x9ac   : > { %v5898_v40 = vpop.permute.xlu0 %5897 }
 0x9ad   : > { %5969 = vst.msk [vmem:[#allocation4 + $0x180] sm:$0xff] %vm3790_vm4, %v5898_v40 }
 0x9b2   : > { %6025 = vrot.lane.b32.xlu1 %v12298_v13, %s8155_s4  ;;  %6029 = vrot.lane.b32.xlu0 %v12318_v15, %s8155_s4  ;;  %v12448_v13 = vld [vmem:[#allocation3 + $0x48] sm:$0xff] }
 0x9b3   : > { %6033 = vrot.lane.b32.xlu2 %v5780_v37, %s8155_s4  ;;  %v12475_v15 = vld [vmem:[#allocation3 + $0x68] sm:$0xff] }
 0x9b4   : > { %v5900_v46 = vpop.permute.xlu1 %5899 }
 0x9b5   : > { %5970 = vst.msk [vmem:[#allocation4 + $0x190] sm:$0xff] %vm3790_vm4, %v5900_v46 }
 0x9ba   : > { %6031 = vrot.lane.b32.xlu1 %v12328_v30, %s8155_s4  ;;  %6035 = vrot.lane.b32.xlu0 %v5781_v61, %s8155_s4  ;;  %v12492_v30 = vld [vmem:[#allocation3 + $0x90] sm:$0xff] }
 0x9bb   : > { %6039 = vrot.lane.b32.xlu2 %v5783_v28, %s8155_s4 }
 0x9bc   : > { %v5908_v23 = vpop.permute.xlu2 %5907 }
 0x9bd   : > { %5974 = vst.msk [vmem:[#allocation4 + $0x1d0] sm:$0xff] %vm3790_vm4, %v5908_v23 }
 0x9c2   : > { %6037 = vrot.lane.b32.xlu1 %v5782_v38, %s8155_s4  ;;  %6041 = vrot.lane.b32.xlu0 %v5784_v8, %s8155_s4  ;;  %v12543_v38 = vld [vmem:[#allocation3 + $0xe8] sm:$0xff] }
 0x9c3   : > { %6177 = vrot.lane.b32.xlu2 %v6108_v21, %s8153_s23 }
 0x9c4   : > { %v5904_v2 = vpop.permute.xlu0 %5903  ;;  %v5980_v27 = vpop.permute.xlu2 %5979 }
 0x9c5   : > { %5972 = vst.msk [vmem:[#allocation4 + $0x1b0] sm:$0xff] %vm3790_vm4, %v5904_v2 }
 0x9c6   : > { %6075 = vst.msk [vmem:[#allocation4] sm:$0xff] %vm3921_vm5, %v5980_v27 }
 0x9ca   : > { %6175 = vrot.lane.b32.xlu1 %v6107_v39, %s8153_s23  ;;  %6179 = vrot.lane.b32.xlu0 %v12422_v47, %s8153_s23 }
 0x9cb   : > { %6183 = vrot.lane.b32.xlu2 %v12427_v43, %s8153_s23 }
 0x9cc   : > { %v5906_v29 = vpop.permute.xlu1 %5905 }
 0x9cd   : > { %v5986_v0 = vpop.permute.xlu2 %5985  ;;  %5973 = vst.msk [vmem:[#allocation4 + $0x1c0] sm:$0xff] %vm3790_vm4, %v5906_v29 }
 0x9ce   : > { %6078 = vst.msk [vmem:[#allocation4 + $0x30] sm:$0xff] %vm3921_vm5, %v5986_v0 }
 0x9d2   : > { %6181 = vrot.lane.b32.xlu1 %v12433_v33, %s8153_s23  ;;  %6185 = vrot.lane.b32.xlu0 %v12435_v4, %s8153_s23 }
 0x9d3   : > { %6189 = vrot.lane.b32.xlu2 %v12441_v16, %s8153_s23 }
 0x9d5   : > { %v5992_v60 = vpop.permute.xlu2 %5991 }
 0x9d6   : > { %6081 = vst.msk [vmem:[#allocation4 + $0x60] sm:$0xff] %vm3921_vm5, %v5992_v60 }
 0x9da   : > { %6187 = vrot.lane.b32.xlu1 %v12446_v22, %s8153_s23  ;;  %6191 = vrot.lane.b32.xlu0 %v12448_v13, %s8153_s23 }
 0x9db   : > { %6195 = vrot.lane.b32.xlu2 %v12454_v5, %s8153_s23 }
 0x9dc   : > { %v5910_v14 = vpop.permute.xlu0 %5909 }
 0x9dd   : > { %5975 = vst.msk [vmem:[#allocation4 + $0x1e0] sm:$0xff] %vm3790_vm4, %v5910_v14  ;;  %v5998_v44 = vpop.permute.xlu2 %5997 }
 0x9de   : > { %6084 = vst.msk [vmem:[#allocation4 + $0x90] sm:$0xff] %vm3921_vm5, %v5998_v44 }
 0x9e2   : > { %6193 = vrot.lane.b32.xlu1 %v12460_v10, %s8153_s23  ;;  %6197 = vrot.lane.b32.xlu0 %v12462_v31, %s8153_s23 }
 0x9e3   : > { %6201 = vrot.lane.b32.xlu2 %v12468_v9, %s8153_s23 }
 0x9e4   : > { %v5982_v45 = vpop.permute.xlu0 %5981  ;;  %v5912_v54 = vpop.permute.xlu1 %5911 }
 0x9e5   : > { %6076 = vst.msk [vmem:[#allocation4 + $0x10] sm:$0xff] %vm3921_vm5, %v5982_v45  ;;  %v6004_v62 = vpop.permute.xlu2 %6003 }
 0x9e6   : > { %6087 = vst.msk [vmem:[#allocation4 + $0xc0] sm:$0xff] %vm3921_vm5, %v6004_v62 }
 0x9e7   : > { %5976 = vst.msk [vmem:[#allocation4 + $0x1f0] sm:$0xff] %vm3790_vm4, %v5912_v54 }
 0x9ea   : > { %6199 = vrot.lane.b32.xlu1 %v12475_v15, %s8153_s23  ;;  %6203 = vrot.lane.b32.xlu0 %v12477_v7, %s8153_s23 }
 0x9eb   : > { %6207 = vrot.lane.b32.xlu2 %v12483_v56, %s8153_s23 }
 0x9ec   : > { %v5988_v36 = vpop.permute.xlu0 %5987  ;;  %v5984_v41 = vpop.permute.xlu1 %5983 }
 0x9ed   : > { %6079 = vst.msk [vmem:[#allocation4 + $0x40] sm:$0xff] %vm3921_vm5, %v5988_v36  ;;  %v6010_v25 = vpop.permute.xlu2 %6009 }
 0x9ee   : > { %6090 = vst.msk [vmem:[#allocation4 + $0xf0] sm:$0xff] %vm3921_vm5, %v6010_v25 }
 0x9ef   : > { %6077 = vst.msk [vmem:[#allocation4 + $0x20] sm:$0xff] %vm3921_vm5, %v5984_v41 }
 0x9f2   : > { %6205 = vrot.lane.b32.xlu1 %v12490_v59, %s8153_s23  ;;  %6209 = vrot.lane.b32.xlu0 %v12492_v30, %s8153_s23 }
 0x9f3   : > { %6213 = vrot.lane.b32.xlu2 %v12498_v18, %s8153_s23 }
 0x9f4   : > { %v5994_v50 = vpop.permute.xlu0 %5993  ;;  %v5990_v17 = vpop.permute.xlu1 %5989 }
 0x9f5   : > { %6082 = vst.msk [vmem:[#allocation4 + $0x70] sm:$0xff] %vm3921_vm5, %v5994_v50  ;;  %v6016_v19 = vpop.permute.xlu2 %6015 }
 0x9f6   : > { %6093 = vst.msk [vmem:[#allocation4 + $0x120] sm:$0xff] %vm3921_vm5, %v6016_v19 }
 0x9f7   : > { %6080 = vst.msk [vmem:[#allocation4 + $0x50] sm:$0xff] %vm3921_vm5, %v5990_v17 }
 0x9fa   : > { %6211 = vrot.lane.b32.xlu1 %v12505_v20, %s8153_s23  ;;  %6215 = vrot.lane.b32.xlu0 %v12507_v6, %s8153_s23 }
 0x9fb   : > { %6219 = vrot.lane.b32.xlu2 %v12513_v57, %s8153_s23 }
 0x9fc   : > { %v6000_v37 = vpop.permute.xlu0 %5999  ;;  %v5996_v26 = vpop.permute.xlu1 %5995 }
 0x9fd   : > { %6085 = vst.msk [vmem:[#allocation4 + $0xa0] sm:$0xff] %vm3921_vm5, %v6000_v37  ;;  %v6022_v49 = vpop.permute.xlu2 %6021 }
 0x9fe   : > { %6096 = vst.msk [vmem:[#allocation4 + $0x150] sm:$0xff] %vm3921_vm5, %v6022_v49 }
 0x9ff   : > { %6083 = vst.msk [vmem:[#allocation4 + $0x80] sm:$0xff] %vm3921_vm5, %v5996_v26 }
 0xa02   : > { %6217 = vrot.lane.b32.xlu1 %v12520_v52, %s8153_s23  ;;  %6221 = vrot.lane.b32.xlu0 %v12522_v63, %s8153_s23 }
 0xa03   : > { %6225 = vrot.lane.b32.xlu2 %v12528_v1, %s8153_s23 }
 0xa04   : > { %v6006_v32 = vpop.permute.xlu0 %6005  ;;  %v6002_v58 = vpop.permute.xlu1 %6001 }
 0xa05   : > { %6088 = vst.msk [vmem:[#allocation4 + $0xd0] sm:$0xff] %vm3921_vm5, %v6006_v32  ;;  %v6028_v61 = vpop.permute.xlu2 %6027 }
 0xa06   : > { %6099 = vst.msk [vmem:[#allocation4 + $0x180] sm:$0xff] %vm3921_vm5, %v6028_v61 }
 0xa07   : > { %6086 = vst.msk [vmem:[#allocation4 + $0xb0] sm:$0xff] %vm3921_vm5, %v6002_v58  ;;  %v6140_v58 = vld [vmem:[#allocation3 + $0x110] sm:$0xff] }
 0xa0a   : > { %6223 = vrot.lane.b32.xlu1 %v12535_v42, %s8153_s23  ;;  %6227 = vrot.lane.b32.xlu0 %v12537_v48, %s8153_s23 }
 0xa0b   : > { %6231 = vrot.lane.b32.xlu2 %v12543_v38, %s8153_s23 }
 0xa0c   : > { %v6012_v35 = vpop.permute.xlu0 %6011  ;;  %v6008_v11 = vpop.permute.xlu1 %6007 }
 0xa0d   : > { %6091 = vst.msk [vmem:[#allocation4 + $0x100] sm:$0xff] %vm3921_vm5, %v6012_v35  ;;  %v6034_v3 = vpop.permute.xlu2 %6033  ;;  %v6600_v35 = vld [vmem:[%s13364_s9 + $0x8] sm:$0xff] }
 0xa0e   : > { %6102 = vst.msk [vmem:[#allocation4 + $0x1b0] sm:$0xff] %vm3921_vm5, %v6034_v3 }
 0xa0f   : > { %6089 = vst.msk [vmem:[#allocation4 + $0xe0] sm:$0xff] %vm3921_vm5, %v6008_v11 }
 0xa12   : > { %6229 = vrot.lane.b32.xlu1 %v12550_v24, %s8153_s23  ;;  %6233 = vrot.lane.b32.xlu0 %v12552_v34, %s8153_s23 }
 0xa13   : > { %6237 = vrot.lane.b32.xlu2 %v12558_v51, %s8153_s23 }
 0xa14   : > { %v6018_v12 = vpop.permute.xlu0 %6017  ;;  %v6014_v40 = vpop.permute.xlu1 %6013 }
 0xa15   : > { %6094 = vst.msk [vmem:[#allocation4 + $0x130] sm:$0xff] %vm3921_vm5, %v6018_v12  ;;  %v6040_v46 = vpop.permute.xlu2 %6039  ;;  %v6605_v12 = vld [vmem:[%s13364_s9 + $0x30] sm:$0xff] }
 0xa16   : > { %6105 = vst.msk [vmem:[#allocation4 + $0x1e0] sm:$0xff] %vm3921_vm5, %v6040_v46 }
 0xa17   : > { %6092 = vst.msk [vmem:[#allocation4 + $0x110] sm:$0xff] %vm3921_vm5, %v6014_v40 }
 0xa1a   : > { %6235 = vrot.lane.b32.xlu1 %v12565_v53, %s8153_s23  ;;  %6305 = vrot.lane.b32.xlu0 %v12422_v47, %s8156_s19 }
 0xa1b   : > { %6309 = vrot.lane.b32.xlu2 %v12427_v43, %s8156_s19 }
 0xa1c   : > { %v6024_v28 = vpop.permute.xlu0 %6023  ;;  %v6020_v23 = vpop.permute.xlu1 %6019 }
 0xa1d   : > { %6097 = vst.msk [vmem:[#allocation4 + $0x160] sm:$0xff] %vm3921_vm5, %v6024_v28  ;;  %v6178_v55 = vpop.permute.xlu2 %6177  ;;  %v6607_v28 = vld [vmem:[%s13364_s9 + $0x40] sm:$0xff] }
 0xa1e   : > { %6272 = vst.msk [vmem:[#allocation4 + $0x10] sm:$0xff] %vm4118_vm6, %v6178_v55 }
 0xa1f   : > { %6095 = vst.msk [vmem:[#allocation4 + $0x140] sm:$0xff] %vm3921_vm5, %v6020_v23  ;;  %v6604_v23 = vld [vmem:[%s13364_s9 + $0x28] sm:$0xff] }
 0xa22   : > { %6307 = vrot.lane.b32.xlu1 %v12433_v33, %s8156_s19  ;;  %6311 = vrot.lane.b32.xlu0 %v12435_v4, %s8156_s19 }
 0xa23   : > { %6315 = vrot.lane.b32.xlu2 %v12441_v16, %s8156_s19 }
 0xa24   : > { %v6030_v8 = vpop.permute.xlu0 %6029  ;;  %v6026_v21 = vpop.permute.xlu1 %6025 }
 0xa25   : > { %6100 = vst.msk [vmem:[#allocation4 + $0x190] sm:$0xff] %vm3921_vm5, %v6030_v8  ;;  %v6184_v2 = vpop.permute.xlu2 %6183 }
 0xa26   : > { %6275 = vst.msk [vmem:[#allocation4 + $0x40] sm:$0xff] %vm4118_vm6, %v6184_v2  ;;  %v6608_v2 = vld [vmem:[%s13364_s9 + $0x48] sm:$0xff] }
 0xa27   : > { %6098 = vst.msk [vmem:[#allocation4 + $0x170] sm:$0xff] %vm3921_vm5, %v6026_v21 }
 0xa2a   : > { %6313 = vrot.lane.b32.xlu1 %v12446_v22, %s8156_s19  ;;  %6317 = vrot.lane.b32.xlu0 %v12448_v13, %s8156_s19 }
 0xa2b   : > { %6321 = vrot.lane.b32.xlu2 %v12454_v5, %s8156_s19 }
 0xa2c   : > { %v6036_v27 = vpop.permute.xlu0 %6035  ;;  %v6032_v39 = vpop.permute.xlu1 %6031 }
 0xa2d   : > { %6103 = vst.msk [vmem:[#allocation4 + $0x1c0] sm:$0xff] %vm3921_vm5, %v6036_v27  ;;  %v6190_v47 = vpop.permute.xlu2 %6189 }
 0xa2e   : > { %6278 = vst.msk [vmem:[#allocation4 + $0x70] sm:$0xff] %vm4118_vm6, %v6190_v47 }
 0xa2f   : > { %6101 = vst.msk [vmem:[#allocation4 + $0x1a0] sm:$0xff] %vm3921_vm5, %v6032_v39 }
 0xa32   : > { %6319 = vrot.lane.b32.xlu1 %v12460_v10, %s8156_s19  ;;  %6323 = vrot.lane.b32.xlu0 %v12462_v31, %s8156_s19 }
 0xa33   : > { %6327 = vrot.lane.b32.xlu2 %v12468_v9, %s8156_s19 }
 0xa34   : > { %v6042_v29 = vpop.permute.xlu0 %6041  ;;  %v6038_v0 = vpop.permute.xlu1 %6037 }
 0xa35   : > { %6106 = vst.msk [vmem:[#allocation4 + $0x1f0] sm:$0xff] %vm3921_vm5, %v6042_v29  ;;  %v6196_v33 = vpop.permute.xlu2 %6195  ;;  %v6609_v29 = vld [vmem:[%s13364_s9 + $0x50] sm:$0xff] }
 0xa36   : > { %6281 = vst.msk [vmem:[#allocation4 + $0xa0] sm:$0xff] %vm4118_vm6, %v6196_v33 }
 0xa37   : > { %6104 = vst.msk [vmem:[#allocation4 + $0x1d0] sm:$0xff] %vm3921_vm5, %v6038_v0 }
 0xa3a   : > { %6325 = vrot.lane.b32.xlu1 %v12475_v15, %s8156_s19  ;;  %6329 = vrot.lane.b32.xlu0 %v12477_v7, %s8156_s19 }
 0xa3b   : > { %6333 = vrot.lane.b32.xlu2 %v12483_v56, %s8156_s19 }
 0xa3c   : > { %v6180_v60 = vpop.permute.xlu0 %6179  ;;  %v6176_v14 = vpop.permute.xlu1 %6175 }
 0xa3d   : > { %6273 = vst.msk [vmem:[#allocation4 + $0x20] sm:$0xff] %vm4118_vm6, %v6180_v60  ;;  %v6202_v44 = vpop.permute.xlu2 %6201 }
 0xa3e   : > { %6284 = vst.msk [vmem:[#allocation4 + $0xd0] sm:$0xff] %vm4118_vm6, %v6202_v44 }
 0xa3f   : > { %6271 = vst.msk [vmem:[#allocation4] sm:$0xff] %vm4118_vm6, %v6176_v14  ;;  %v6610_v14 = vld [vmem:[%s13364_s9 + $0x58] sm:$0xff] }
 0xa42   : > { %6331 = vrot.lane.b32.xlu1 %v12490_v59, %s8156_s19  ;;  %6335 = vrot.lane.b32.xlu0 %v12492_v30, %s8156_s19 }
 0xa43   : > { %6339 = vrot.lane.b32.xlu2 %v12498_v18, %s8156_s19 }
 0xa44   : > { %v6186_v45 = vpop.permute.xlu0 %6185  ;;  %v6182_v54 = vpop.permute.xlu1 %6181 }
 0xa45   : > { %6276 = vst.msk [vmem:[#allocation4 + $0x50] sm:$0xff] %vm4118_vm6, %v6186_v45  ;;  %v6208_v62 = vpop.permute.xlu2 %6207 }
 0xa46   : > { %6287 = vst.msk [vmem:[#allocation4 + $0x100] sm:$0xff] %vm4118_vm6, %v6208_v62 }
 0xa47   : > { %6274 = vst.msk [vmem:[#allocation4 + $0x30] sm:$0xff] %vm4118_vm6, %v6182_v54 }
 0xa4a   : > { %6341 = vrot.lane.b32.xlu0 %v12507_v6, %s8156_s19  ;;  %6337 = vrot.lane.b32.xlu1 %v12505_v20, %s8156_s19 }
 0xa4b   : > { %6345 = vrot.lane.b32.xlu2 %v12513_v57, %s8156_s19 }
 0xa4c   : > { %v6192_v36 = vpop.permute.xlu0 %6191  ;;  %v6188_v41 = vpop.permute.xlu1 %6187 }
 0xa4d   : > { %6279 = vst.msk [vmem:[#allocation4 + $0x80] sm:$0xff] %vm4118_vm6, %v6192_v36  ;;  %v6214_v25 = vpop.permute.xlu2 %6213 }
 0xa4e   : > { %6290 = vst.msk [vmem:[#allocation4 + $0x130] sm:$0xff] %vm4118_vm6, %v6214_v25 }
 0xa4f   : > { %6277 = vst.msk [vmem:[#allocation4 + $0x60] sm:$0xff] %vm4118_vm6, %v6188_v41 }
 0xa52   : > { %6347 = vrot.lane.b32.xlu0 %v12522_v63, %s8156_s19  ;;  %6343 = vrot.lane.b32.xlu1 %v12520_v52, %s8156_s19  ;;  %v6139_v52 = vld [vmem:[#allocation3 + $0x108] sm:$0xff] }
 0xa53   : > { %6351 = vrot.lane.b32.xlu2 %v12528_v1, %s8156_s19 }
 0xa54   : > { %v6198_v30 = vpop.permute.xlu0 %6197  ;;  %v6194_v50 = vpop.permute.xlu1 %6193 }
 0xa55   : > { %6282 = vst.msk [vmem:[#allocation4 + $0xb0] sm:$0xff] %vm4118_vm6, %v6198_v30  ;;  %v6220_v17 = vpop.permute.xlu2 %6219 }
 0xa56   : > { %6293 = vst.msk [vmem:[#allocation4 + $0x160] sm:$0xff] %vm4118_vm6, %v6220_v17 }
 0xa57   : > { %6280 = vst.msk [vmem:[#allocation4 + $0x90] sm:$0xff] %vm4118_vm6, %v6194_v50 }
 0xa5a   : > { %6353 = vrot.lane.b32.xlu0 %v12537_v48, %s8156_s19  ;;  %6349 = vrot.lane.b32.xlu1 %v12535_v42, %s8156_s19  ;;  %v6601_v48 = vld [vmem:[%s13364_s9 + $0x10] sm:$0xff] }
 0xa5b   : > { %6357 = vrot.lane.b32.xlu2 %v12543_v38, %s8156_s19 }
 0xa5c   : > { %v6204_v19 = vpop.permute.xlu0 %6203  ;;  %v6200_v6 = vpop.permute.xlu1 %6199 }
 0xa5d   : > { %6285 = vst.msk [vmem:[#allocation4 + $0xe0] sm:$0xff] %vm4118_vm6, %v6204_v19  ;;  %v6226_v57 = vpop.permute.xlu2 %6225 }
 0xa5e   : > { %6296 = vst.msk [vmem:[#allocation4 + $0x190] sm:$0xff] %vm4118_vm6, %v6226_v57  ;;  %v12754_v57 = vld [vmem:[%s13362_s7 + $0x80] sm:$0xff] }
 0xa5f   : > { %6283 = vst.msk [vmem:[#allocation4 + $0xc0] sm:$0xff] %vm4118_vm6, %v6200_v6 }
 0xa62   : > { %6359 = vrot.lane.b32.xlu0 %v12552_v34, %s8156_s19  ;;  %6355 = vrot.lane.b32.xlu1 %v12550_v24, %s8156_s19  ;;  %v6606_v34 = vld [vmem:[%s13364_s9 + $0x38] sm:$0xff] }
 0xa63   : > { %6363 = vrot.lane.b32.xlu2 %v12558_v51, %s8156_s19  ;;  %v6602_v51 = vld [vmem:[%s13364_s9 + $0x18] sm:$0xff] }
 0xa64   : > { %v6210_v37 = vpop.permute.xlu0 %6209  ;;  %v6206_v26 = vpop.permute.xlu1 %6205 }
 0xa65   : > { %6288 = vst.msk [vmem:[#allocation4 + $0x110] sm:$0xff] %vm4118_vm6, %v6210_v37  ;;  %v6232_v49 = vpop.permute.xlu2 %6231 }
 0xa66   : > { %6299 = vst.msk [vmem:[#allocation4 + $0x1c0] sm:$0xff] %vm4118_vm6, %v6232_v49 }
 0xa67   : > { %6286 = vst.msk [vmem:[#allocation4 + $0xf0] sm:$0xff] %vm4118_vm6, %v6206_v26 }
 0xa6a   : > { %6365 = vrot.lane.b32.xlu0 %v6139_v52, %s8156_s19  ;;  %6361 = vrot.lane.b32.xlu1 %v12565_v53, %s8156_s19 }
 0xa6b   : > { %6435 = vrot.lane.b32.xlu2 %v12427_v43, %s8157_s20 }
 0xa6c   : > { %v6216_v63 = vpop.permute.xlu0 %6215  ;;  %v6212_v1 = vpop.permute.xlu1 %6211 }
 0xa6d   : > { %6291 = vst.msk [vmem:[#allocation4 + $0x140] sm:$0xff] %vm4118_vm6, %v6216_v63  ;;  %v6238_v32 = vpop.permute.xlu2 %6237 }
 0xa6e   : > { %6302 = vst.msk [vmem:[#allocation4 + $0x1f0] sm:$0xff] %vm4118_vm6, %v6238_v32 }
 0xa6f   : > { %6289 = vst.msk [vmem:[#allocation4 + $0x120] sm:$0xff] %vm4118_vm6, %v6212_v1  ;;  %v6565_v1 = vld [vmem:[#allocation3 + $0x19] sm:$0xff] }
 0xa72   : > { %6437 = vrot.lane.b32.xlu0 %v12435_v4, %s8157_s20  ;;  %6367 = vrot.lane.b32.xlu1 %v6140_v58, %s8156_s19 }
 0xa73   : > { %6441 = vrot.lane.b32.xlu2 %v12441_v16, %s8157_s20 }
 0xa74   : > { %v6222_v61 = vpop.permute.xlu0 %6221  ;;  %v6218_v43 = vpop.permute.xlu1 %6217 }
 0xa75   : > { %6294 = vst.msk [vmem:[#allocation4 + $0x170] sm:$0xff] %vm4118_vm6, %v6222_v61  ;;  %v6310_v42 = vpop.permute.xlu2 %6309 }
 0xa76   : > { %6403 = vst.msk [vmem:[#allocation4 + $0x20] sm:$0xff] %vm4249_vm7, %v6310_v42  ;;  %v6567_v42 = vld [vmem:[#allocation3 + $0x29] sm:$0xff] }
 0xa77   : > { %6292 = vst.msk [vmem:[#allocation4 + $0x150] sm:$0xff] %vm4118_vm6, %v6218_v43 }
 0xa7a   : > { %6443 = vrot.lane.b32.xlu0 %v12448_v13, %s8157_s20  ;;  %6439 = vrot.lane.b32.xlu1 %v12446_v22, %s8157_s20  ;;  %v6599_v13 = vld [vmem:[%s13364_s9] sm:$0xff] }
 0xa7b   : > { %6647 = vperm.xlu2 %7922, %v6601_v48   ;;  %v6603_v22 = vld [vmem:[%s13364_s9 + $0x20] sm:$0xff] }
 0xa7c   : > { %v6228_v4 = vpop.permute.xlu0 %6227  ;;  %v6224_v16 = vpop.permute.xlu1 %6223 }
 0xa7d   : > { %6297 = vst.msk [vmem:[#allocation4 + $0x1a0] sm:$0xff] %vm4118_vm6, %v6228_v4  ;;  %v6316_v38 = vpop.permute.xlu2 %6315 }
 0xa7e   : > { %6406 = vst.msk [vmem:[#allocation4 + $0x50] sm:$0xff] %vm4249_vm7, %v6316_v38 }
 0xa7f   : > { %6295 = vst.msk [vmem:[#allocation4 + $0x180] sm:$0xff] %vm4118_vm6, %v6224_v16 }
 0xa82   : > { %6642 = vperm.xlu0 %7920, %v6600_v35   ;;  %6637 = vperm.xlu1 %7921, %v6599_v13   ;;  %v6569_v35 = vld [vmem:[#allocation3 + $0x39] sm:$0xff] }
 0xa83   : > { %6657 = vperm.xlu2 %7922, %v6603_v22  }
 0xa84   : > { %v6234_v11 = vpop.permute.xlu0 %6233  ;;  %v6230_v3 = vpop.permute.xlu1 %6229 }
 0xa85   : > { %6300 = vst.msk [vmem:[#allocation4 + $0x1d0] sm:$0xff] %vm4118_vm6, %v6234_v11  ;;  %v6322_v24 = vpop.permute.xlu2 %6321 }
 0xa86   : > { %6409 = vst.msk [vmem:[#allocation4 + $0x80] sm:$0xff] %vm4249_vm7, %v6322_v24 }
 0xa87   : > { %6298 = vst.msk [vmem:[#allocation4 + $0x1b0] sm:$0xff] %vm4118_vm6, %v6230_v3 }
 0xa8a   : > { %6672 = vperm.xlu0 %7920, %v6606_v34   ;;  %6652 = vperm.xlu1 %7921, %v6602_v51   ;;  %v6563_v34 = vld [vmem:[#allocation3 + $0x9] sm:$0xff] }
 0xa8b   : > { %6667 = vperm.xlu2 %7922, %v6605_v12  }
 0xa8c   : > { %v6306_v40 = vpop.permute.xlu0 %6305  ;;  %v6236_v46 = vpop.permute.xlu1 %6235 }
 0xa8d   : > { %6401 = vst.msk [vmem:[#allocation4] sm:$0xff] %vm4249_vm7, %v6306_v40  ;;  %v6328_v53 = vpop.permute.xlu2 %6327 }
 0xa8e   : > { %6412 = vst.msk [vmem:[#allocation4 + $0xb0] sm:$0xff] %vm4249_vm7, %v6328_v53  ;;  %v6570_v53 = vld [vmem:[#allocation3 + $0x41] sm:$0xff] }
 0xa8f   : > { %6301 = vst.msk [vmem:[#allocation4 + $0x1e0] sm:$0xff] %vm4118_vm6, %v6236_v46  ;;  %v6564_v46 = vld [vmem:[#allocation3 + $0x11] sm:$0xff] }
 0xa92   : > { %6677 = vperm.xlu0 %7920, %v6607_v28   ;;  %6662 = vperm.xlu1 %7921, %v6604_v23   ;;  %v6566_v23 = vld [vmem:[#allocation3 + $0x21] sm:$0xff] }
 0xa94   : > { %v6312_v55 = vpop.permute.xlu0 %6311  ;;  %v6308_v8 = vpop.permute.xlu1 %6307 }
 0xa95   : > { %6404 = vst.msk [vmem:[#allocation4 + $0x30] sm:$0xff] %vm4249_vm7, %v6312_v55  ;;  %v6334_v21 = vpop.permute.xlu2 %6333 }
 0xa96   : > { %6415 = vst.msk [vmem:[#allocation4 + $0xe0] sm:$0xff] %vm4249_vm7, %v6334_v21 }
 0xa97   : > { %6402 = vst.msk [vmem:[#allocation4 + $0x10] sm:$0xff] %vm4249_vm7, %v6308_v8 }
 0xa9a   : > { %6682 = vperm.xlu0 %7920, %v6608_v2  }
 0xa9c   : > { %v6318_v27 = vpop.permute.xlu0 %6317  ;;  %v6314_v39 = vpop.permute.xlu1 %6313 }
 0xa9d   : > { %6407 = vst.msk [vmem:[#allocation4 + $0x60] sm:$0xff] %vm4249_vm7, %v6318_v27  ;;  %v6340_v47 = vpop.permute.xlu2 %6339  ;;  %v6571_v27 = vld [vmem:[#allocation3 + $0x49] sm:$0xff] }
 0xa9e   : > { %6418 = vst.msk [vmem:[#allocation4 + $0x110] sm:$0xff] %vm4249_vm7, %v6340_v47  ;;  %v6568_v47 = vld [vmem:[#allocation3 + $0x31] sm:$0xff] }
 0xa9f   : > { %6405 = vst.msk [vmem:[#allocation4 + $0x40] sm:$0xff] %vm4249_vm7, %v6314_v39 }
 0xaa2   : > { %6687 = vperm.xlu0 %7920, %v6609_v29  }
 0xaa4   : > { %v6324_v0 = vpop.permute.xlu0 %6323  ;;  %v6320_v33 = vpop.permute.xlu1 %6319 }
 0xaa5   : > { %6410 = vst.msk [vmem:[#allocation4 + $0x90] sm:$0xff] %vm4249_vm7, %v6324_v0  ;;  %v6346_v60 = vpop.permute.xlu2 %6345 }
 0xaa6   : > { %6421 = vst.msk [vmem:[#allocation4 + $0x140] sm:$0xff] %vm4249_vm7, %v6346_v60  ;;  %v6572_v60 = vld [vmem:[#allocation3 + $0x51] sm:$0xff] }
 0xaa7   : > { %6408 = vst.msk [vmem:[#allocation4 + $0x70] sm:$0xff] %vm4249_vm7, %v6320_v33 }
 0xaaa   : > { %6692 = vperm.xlu0 %7920, %v6610_v14  }
 0xaac   : > { %v6330_v44 = vpop.permute.xlu0 %6329  ;;  %v6326_v45 = vpop.permute.xlu1 %6325 }
 0xaad   : > { %6413 = vst.msk [vmem:[#allocation4 + $0xc0] sm:$0xff] %vm4249_vm7, %v6330_v44  ;;  %v6352_v54 = vpop.permute.xlu2 %6351  ;;  %v6613_v44 = vld [vmem:[%s13364_s9 + $0x70] sm:$0xff] }
 0xaae   : > { %6424 = vst.msk [vmem:[#allocation4 + $0x170] sm:$0xff] %vm4249_vm7, %v6352_v54 }
 0xaaf   : > { %6411 = vst.msk [vmem:[#allocation4 + $0xa0] sm:$0xff] %vm4249_vm7, %v6326_v45 }
 0xab2   : > { %6445 = vrot.lane.b32.xlu0 %v12460_v10, %s8157_s20  ;;  %v12745_v10 = vld [vmem:[%s13362_s7 + $0x88] sm:$0xff] }
 0xab3   : > { %7482 = vmatpush.msrb.mxu0 %v12745_v10 }
 0xab4   : > { %v6336_v62 = vpop.permute.xlu0 %6335  ;;  %v6332_v36 = vpop.permute.xlu1 %6331 }
 0xab5   : > { %6416 = vst.msk [vmem:[#allocation4 + $0xf0] sm:$0xff] %vm4249_vm7, %v6336_v62  ;;  %v6358_v41 = vpop.permute.xlu2 %6357  ;;  %7483 = vmatpush.msrb.mxu0 %v12754_v57  ;;  %v6573_v62 = vld [vmem:[#allocation3 + $0x59] sm:$0xff] }
 0xab6   : > { %6427 = vst.msk [vmem:[#allocation4 + $0x1a0] sm:$0xff] %vm4249_vm7, %v6358_v41 }
 0xab7   : > { %6414 = vst.msk [vmem:[#allocation4 + $0xd0] sm:$0xff] %vm4249_vm7, %v6332_v36 }
 0xabc   : > { %v6342_v25 = vpop.permute.xlu0 %6341  ;;  %v6338_v30 = vpop.permute.xlu1 %6337 }
 0xabd   : > { %6419 = vst.msk [vmem:[#allocation4 + $0x120] sm:$0xff] %vm4249_vm7, %v6342_v25  ;;  %v6364_v50 = vpop.permute.xlu2 %6363 }
 0xabe   : > { %6430 = vst.msk [vmem:[#allocation4 + $0x1d0] sm:$0xff] %vm4249_vm7, %v6364_v50 }
 0xabf   : > { %6417 = vst.msk [vmem:[#allocation4 + $0x100] sm:$0xff] %vm4249_vm7, %v6338_v30  ;;  %v6574_v30 = vld [vmem:[#allocation3 + $0x61] sm:$0xff] }
 0xac4   : > { %v6348_v17 = vpop.permute.xlu0 %6347  ;;  %v6344_v19 = vpop.permute.xlu1 %6343 }
 0xac5   : > { %6422 = vst.msk [vmem:[#allocation4 + $0x150] sm:$0xff] %vm4249_vm7, %v6348_v17  ;;  %v6436_v6 = vpop.permute.xlu2 %6435  ;;  %v6611_v17 = vld [vmem:[%s13364_s9 + $0x60] sm:$0xff] }
 0xac6   : > { %6531 = vst.msk [vmem:[#allocation4] sm:$0xff] %vm4380_vm8, %v6436_v6 }
 0xac7   : > { %6420 = vst.msk [vmem:[#allocation4 + $0x130] sm:$0xff] %vm4249_vm7, %v6344_v19 }
 0xacc   : > { %v6354_v37 = vpop.permute.xlu0 %6353  ;;  %v6350_v26 = vpop.permute.xlu1 %6349 }
 0xacd   : > { %6425 = vst.msk [vmem:[#allocation4 + $0x180] sm:$0xff] %vm4249_vm7, %v6354_v37  ;;  %v6442_v49 = vpop.permute.xlu2 %6441  ;;  %v6612_v37 = vld [vmem:[%s13364_s9 + $0x68] sm:$0xff] }
 0xace   : > { %6534 = vst.msk [vmem:[#allocation4 + $0x30] sm:$0xff] %vm4380_vm8, %v6442_v49  ;;  %v6616_v49 = vld [vmem:[%s13364_s9 + $0x88] sm:$0xff] }
 0xacf   : > { %6423 = vst.msk [vmem:[#allocation4 + $0x160] sm:$0xff] %vm4249_vm7, %v6350_v26 }
 0xad4   : > { %v6360_v52 = vpop.permute.xlu0 %6359  ;;  %v6356_v63 = vpop.permute.xlu1 %6355 }
 0xad5   : > { %6428 = vst.msk [vmem:[#allocation4 + $0x1b0] sm:$0xff] %vm4249_vm7, %v6360_v52  ;;  %v6648_v32 = vpop.permute.xlu2 %6647 }
 0xad6   : > { %v6817_v58 = vmul.f32 %v6648_v32, %v6565_v1  ;;  %6426 = vst.msk [vmem:[#allocation4 + $0x190] sm:$0xff] %vm4249_vm7, %v6356_v63  ;;  %v7251_v63 = vld [vmem:[%s13362_s7 + $0x70] sm:$0xff]  ;;  %v7249_v32 = vld [vmem:[%s13362_s7 + $0x60] sm:$0xff] }
 0xad8   : > { %7013 = vrot.lane.b32.xlu2 %v6817_v58, %s8159_s26 }
 0xadc   : > { %v6366_v61 = vpop.permute.xlu0 %6365  ;;  %v6362_v43 = vpop.permute.xlu1 %6361 }
 0xadd   : > { %6431 = vst.msk [vmem:[#allocation4 + $0x1e0] sm:$0xff] %vm4249_vm7, %v6366_v61  ;;  %v6658_v48 = vpop.permute.xlu2 %6657  ;;  %v7247_v61 = vld [vmem:[%s13362_s7 + $0x50] sm:$0xff] }
 0xade   : > { %v6819_v4 = vmul.f32 %v6658_v48, %v6567_v42  ;;  %6429 = vst.msk [vmem:[#allocation4 + $0x1c0] sm:$0xff] %vm4249_vm7, %v6362_v43  ;;  %v7246_v42 = vld [vmem:[%s13362_s7 + $0x48] sm:$0xff]  ;;  %v7245_v48 = vld [vmem:[%s13362_s7 + $0x40] sm:$0xff] }
 0xae0   : > { %7141 = vst.msk [vmem:[#allocation4 + $0x8] sm:$0xff] %vm403_vm0, %v6819_v4 }
 0xae4   : > { %v6438_v16 = vpop.permute.xlu0 %6437  ;;  %v6368_v38 = vpop.permute.xlu1 %6367 }
 0xae5   : > { %6532 = vst.msk [vmem:[#allocation4 + $0x10] sm:$0xff] %vm4380_vm8, %v6438_v16  ;;  %v6668_v13 = vpop.permute.xlu2 %6667  ;;  %v6615_v16 = vld [vmem:[%s13364_s9 + $0x80] sm:$0xff] }
 0xae6   : > { %v6821_v22 = vmul.f32 %v6668_v13, %v6569_v35  ;;  %6432 = vst.msk [vmem:[#allocation4 + $0x1f0] sm:$0xff] %vm4249_vm7, %v6368_v38  ;;  %v7243_v38 = vld [vmem:[%s13362_s7 + $0x30] sm:$0xff]  ;;  %v7242_v35 = vld [vmem:[%s13362_s7 + $0x28] sm:$0xff]  ;;  %v7241_v13 = vld [vmem:[%s13362_s7 + $0x20] sm:$0xff] }
 0xae7   : > { %v7174_v11 = vld [vmem:[#allocation4 + $0x8] sm:$0xff] }
 0xae8   : > { %7143 = vst.msk [vmem:[#allocation4 + $0x28] sm:$0xff] %vm403_vm0, %v6821_v22  ;;  %7838 = vmatmul.msk.f32.vlgmr.msrb.gmra.mxu0 %vm403_vm0, %v7174_v11  ;;  %v7238_v11 = vld [vmem:[%s13362_s7 + $0x8] sm:$0xff] }
 0xaec   : > { %v6444_v3 = vpop.permute.xlu0 %6443  ;;  %v6440_v24 = vpop.permute.xlu1 %6439 }
 0xaed   : > { %6535 = vst.msk [vmem:[#allocation4 + $0x40] sm:$0xff] %vm4380_vm8, %v6444_v3 }
 0xaee   : > { %6533 = vst.msk [vmem:[#allocation4 + $0x20] sm:$0xff] %vm4380_vm8, %v6440_v24  ;;  %v7237_v24 = vld [vmem:[%s13362_s7] sm:$0xff] }
 0xaef   : > { %v7178_v25 = vld [vmem:[#allocation4 + $0x28] sm:$0xff] }
 0xaf4   : > { %v6643_v51 = vpop.permute.xlu0 %6642  ;;  %v6638_v12 = vpop.permute.xlu1 %6637 }
 0xaf5   : > { %v6815_v40 = vmul.f32 %v6638_v12, %v6563_v34  ;;  %v6816_v8 = vmul.f32 %v6643_v51, %v6564_v46 }
 0xaf7   : > { %6883 = vrot.lane.b32.xlu1 %v6815_v40, %s8158_s25 }
 0xafc   : > { %v6673_v28 = vpop.permute.xlu0 %6672  ;;  %v6653_v55 = vpop.permute.xlu1 %6652 }
 0xafd   : > { %v12773_v21 = vmul.f32 %v6673_v28, %v6570_v53  ;;  %v6818_v2 = vmul.f32 %v6653_v55, %v6566_v23 }
 0xaff   : > { %7144 = vst.msk [vmem:[#allocation4 + $0x38] sm:$0xff] %vm403_vm0, %v12773_v21  ;;  %7023 = vrot.lane.b32.xlu0 %v12773_v21, %s8159_s26  ;;  %6885 = vrot.lane.b32.xlu1 %v6816_v8, %s8158_s25  ;;  %v6577_v8 = vld [vmem:[#allocation3 + $0x79] sm:$0xff] }
 0xb00   : > { %7015 = vrot.lane.b32.xlu2 %v6818_v2, %s8159_s26 }
 0xb04   : > { %v6678_v39 = vpop.permute.xlu0 %6677  ;;  %v6663_v29 = vpop.permute.xlu1 %6662 }
 0xb05   : > { %v12781_v0 = vmul.f32 %v6678_v39, %v6571_v27  ;;  %v6820_v33 = vmul.f32 %v6663_v29, %v6568_v47  ;;  %v6576_v39 = vld [vmem:[#allocation3 + $0x71] sm:$0xff] }
 0xb07   : > { %7145 = vst.msk [vmem:[#allocation4 + $0x48] sm:$0xff] %vm403_vm0, %v12781_v0  ;;  %6895 = vrot.lane.b32.xlu0 %v6821_v22, %s8158_s25  ;;  %6887 = vrot.lane.b32.xlu1 %v6817_v58, %s8158_s25  ;;  %v6614_v58 = vld [vmem:[%s13364_s9 + $0x78] sm:$0xff] }
 0xb08   : > { %7142 = vst.msk [vmem:[#allocation4 + $0x18] sm:$0xff] %vm403_vm0, %v6820_v33  ;;  %7017 = vrot.lane.b32.xlu2 %v6819_v4, %s8159_s26 }
 0xb0c   : > { %v6683_v14 = vpop.permute.xlu0 %6682 }
 0xb0d   : > { %v6824_v45 = vmul.f32 %v6683_v14, %v6572_v60 }
 0xb0e   : > { %v7182_v26 = vld [vmem:[#allocation4 + $0x48] sm:$0xff] }
 0xb0f   : > { %7146 = vst.msk [vmem:[#allocation4 + $0x58] sm:$0xff] %vm403_vm0, %v6824_v45  ;;  %6707 = vperm.xlu0 %7920, %v6613_v44   ;;  %6889 = vrot.lane.b32.xlu1 %v6818_v2, %s8158_s25  ;;  %v7176_v54 = vld [vmem:[#allocation4 + $0x18] sm:$0xff] }
 0xb10   : > { %7019 = vrot.lane.b32.xlu2 %v6820_v33, %s8159_s26  ;;  %7839 = vmatmul.msk.f32.gmra.mxu0 %vm403_vm0, %v7176_v54  ;;  %v6575_v54 = vld [vmem:[#allocation3 + $0x69] sm:$0xff] }
 0xb14   : > { %v6688_v36 = vpop.permute.xlu0 %6687 }
 0xb15   : > { %v12796_v41 = vmul.f32 %v6688_v36, %v6573_v62  ;;  %v6620_v36 = vld [vmem:[%s13364_s9 + $0xa8] sm:$0xff] }
 0xb16   : > { %v7184_v52 = vld [vmem:[#allocation4 + $0x58] sm:$0xff] }
 0xb17   : > { %7147 = vst.msk [vmem:[#allocation4 + $0x68] sm:$0xff] %vm403_vm0, %v12796_v41  ;;  %6451 = vrot.lane.b32.xlu0 %v12475_v15, %s8157_s20  ;;  %6891 = vrot.lane.b32.xlu1 %v6819_v4, %s8158_s25  ;;  %v7180_v15 = vld [vmem:[#allocation4 + $0x38] sm:$0xff] }
 0xb18   : > { %7021 = vrot.lane.b32.xlu2 %v6821_v22, %s8159_s26  ;;  %7840 = vmatmul.msk.f32.gmra.mxu0 %vm403_vm0, %v7178_v25  ;;  %v7244_v4 = vld [vmem:[%s13362_s7 + $0x38] sm:$0xff] }
 0xb19   : > { %v7240_v22 = vld [vmem:[%s13362_s7 + $0x18] sm:$0xff] }
 0xb1c   : > { %v6693_v50 = vpop.permute.xlu0 %6692 }
 0xb1d   : > { %v12808_v19 = vmul.f32 %v6693_v50, %v6574_v30 }
 0xb1e   : > { %v7186_v1 = vld [vmem:[#allocation4 + $0x68] sm:$0xff] }
 0xb1f   : > { %7148 = vst.msk [vmem:[#allocation4 + $0x78] sm:$0xff] %vm403_vm0, %v12808_v19  ;;  %7029 = vrot.lane.b32.xlu0 %v12796_v41, %s8159_s26  ;;  %6697 = vperm.xlu1 %7921, %v6611_v17  }
 0xb20   : > { %6893 = vrot.lane.b32.xlu2 %v6820_v33, %s8158_s25  ;;  %7841 = vmatmul.msk.f32.gmra.mxu0 %vm403_vm0, %v7180_v15  ;;  %v6619_v15 = vld [vmem:[%s13364_s9 + $0xa0] sm:$0xff] }
 0xb24   : > { %v6446_v6 = vpop.permute.xlu0 %6445 }
 0xb25   : > { %6536 = vst.msk [vmem:[#allocation4 + $0x50] sm:$0xff] %vm4380_vm8, %v6446_v6 }
 0xb26   : > { %v7188_v43 = vld [vmem:[#allocation4 + $0x78] sm:$0xff] }
 0xb27   : > { %6901 = vrot.lane.b32.xlu0 %v6824_v45, %s8158_s25  ;;  %6447 = vrot.lane.b32.xlu1 %v12454_v5, %s8157_s20  ;;  %v7252_v5 = vld [vmem:[%s13362_s7 + $0x78] sm:$0xff] }
 0xb28   : > { %6702 = vperm.xlu2 %7922, %v6612_v37   ;;  %7842 = vmatmul.msk.f32.gmra.mxu0 %vm403_vm0, %v7182_v26 }
 0xb29   : > { %7355 = vmatpush.msrb.mxu3 %v7252_v5 }
 0xb2b   : > { %7356 = vmatpush.msrb.mxu3 %v7251_v63 }
 0xb2f   : > { %6722 = vperm.xlu0 %7920, %v6616_v49   ;;  %7025 = vrot.lane.b32.xlu1 %v12781_v0, %s8159_s26  ;;  %v6580_v49 = vld [vmem:[#allocation3 + $0x91] sm:$0xff] }
 0xb30   : > { %6449 = vrot.lane.b32.xlu2 %v12462_v31, %s8157_s20  ;;  %7843 = vmatmul.msk.f32.gmra.mxu0 %vm403_vm0, %v7184_v52  ;;  %v7250_v31 = vld [vmem:[%s13362_s7 + $0x68] sm:$0xff] }
 0xb31   : > { %7357 = vmatpush.msrb.mxu3 %v7250_v31 }
 0xb32   : > { %v7014_v3 = vpop.permute.xlu2 %7013 }
 0xb33   : > { %7358 = vmatpush.msrb.mxu3 %v7249_v32 }
 0xb37   : > { %6457 = vrot.lane.b32.xlu0 %v12490_v59, %s8157_s20  ;;  %6897 = vrot.lane.b32.xlu1 %v12773_v21, %s8158_s25  ;;  %v7248_v59 = vld [vmem:[%s13362_s7 + $0x58] sm:$0xff] }
 0xb38   : > { %7027 = vrot.lane.b32.xlu2 %v6824_v45, %s8159_s26  ;;  %7844 = vmatmul.msk.f32.gmra.mxu0 %vm403_vm0, %v7186_v1  ;;  %v6579_v1 = vld [vmem:[#allocation3 + $0x89] sm:$0xff] }
 0xb39   : > { %7359 = vmatpush.msrb.mxu3 %v7248_v59 }
 0xb3b   : > { %7360 = vmatpush.msrb.mxu3 %v7247_v61 }
 0xb3d   : > { %7361 = vmatpush.msrb.mxu3 %v7246_v42 }
 0xb3f   : > { %6712 = vperm.xlu1 %7921, %v6614_v58   ;;  %7362 = vmatpush.msrb.mxu3 %v7245_v48  ;;  %v6578_v48 = vld [vmem:[#allocation3 + $0x81] sm:$0xff] }
 0xb40   : > { %6899 = vrot.lane.b32.xlu2 %v12781_v0, %s8158_s25  ;;  %7845 = vmatmul.msk.f32.gmra.mxu0 %vm403_vm0, %v7188_v43 }
 0xb41   : > { %7363 = vmatpush.msrb.mxu3 %v7244_v4 }
 0xb43   : > { %7364 = vmatpush.msrb.mxu3 %v7243_v38 }
 0xb45   : > { %7365 = vmatpush.msrb.mxu3 %v7242_v35 }
 0xb47   : > { %6453 = vrot.lane.b32.xlu1 %v12468_v9, %s8157_s20  ;;  %7366 = vmatpush.msrb.mxu3 %v7241_v13  ;;  %v7239_v9 = vld [vmem:[%s13362_s7 + $0x10] sm:$0xff] }
 0xb48   : > { %6717 = vperm.xlu2 %7922, %v6615_v16   ;;  %v6623_v16 = vld [vmem:[%s13364_s9 + $0xc0] sm:$0xff] }
 0xb49   : > { %7367 = vmatpush.msrb.mxu3 %v7240_v22  ;;  %v6622_v22 = vld [vmem:[%s13364_s9 + $0xb8] sm:$0xff] }
 0xb4b   : > { %7368 = vmatpush.msrb.mxu3 %v7239_v9 }
 0xb4d   : > { %7369 = vmatpush.msrb.mxu3 %v7238_v11 }
 0xb4f   : > { %7031 = vrot.lane.b32.xlu1 %v12808_v19, %s8159_s26  ;;  %7370 = vmatpush.msrb.mxu3 %v7237_v24 }
 0xb50   : > { %6455 = vrot.lane.b32.xlu2 %v12477_v7, %s8157_s20  ;;  %v6617_v7 = vld [vmem:[%s13364_s9 + $0x90] sm:$0xff] }
 0xb51   : > { %7878 = vmatpush.msra.mxu3 %v12745_v10 }
 0xb53   : > { %7879 = vmatpush.msra.mxu3 %v12754_v57 }
 0xb57   : > { %6903 = vrot.lane.b32.xlu1 %v12796_v41, %s8158_s25 }
 0xb5a   : > { %v7016_v34 = vpop.permute.xlu2 %7015 }
 0xb5f   : > { %6727 = vperm.xlu1 %7921, %v6617_v7   ;;  %v8089_v7 = vld [vmem:[#allocation3 + $0xb0] sm:$0xff] }
 0xb62   : > { %v7018_v51 = vpop.permute.xlu2 %7017 }
 0xb67   : > { %6459 = vrot.lane.b32.xlu1 %v12483_v56, %s8157_s20 }
 0xb69   : > { %v6884_v12 = vpop.permute.xlu1 %6883 }
 0xb6a   : > { %v7020_v40 = vpop.permute.xlu2 %7019  ;;  %6979 = vst.msk [vmem:[#allocation4] sm:$0xff] %vm4829_vm9, %v6884_v12 }
 0xb6b   : > { %7109 = vst.msk [vmem:[#allocation4] sm:$0xff] %vm4960_vm10, %v7014_v3  ;;  %v8088_v3 = vld [vmem:[#allocation3 + $0xb8] sm:$0xff] }
 0xb71   : > { %v7024_v10 = vpop.permute.xlu0 %7023  ;;  %v6886_v46 = vpop.permute.xlu1 %6885 }
 0xb72   : > { %v7022_v53 = vpop.permute.xlu2 %7021  ;;  %6980 = vst.msk [vmem:[#allocation4 + $0x10] sm:$0xff] %vm4829_vm9, %v6886_v46  ;;  %v7173_v57 = vld [vmem:[#allocation4] sm:$0xff] }
 0xb73   : > { %7110 = vst.msk [vmem:[#allocation4 + $0x10] sm:$0xff] %vm4960_vm10, %v7016_v34  ;;  %7371 = vmatmul.f32.vlgmr.msrb.gmra.mxu3 %v7173_v57  ;;  %v6621_v34 = vld [vmem:[%s13364_s9 + $0xb0] sm:$0xff] }
 0xb79   : > { %v6896_v28 = vpop.permute.xlu0 %6895  ;;  %v6888_v23 = vpop.permute.xlu1 %6887 }
 0xb7a   : > { %v6894_v55 = vpop.permute.xlu2 %6893  ;;  %6981 = vst.msk [vmem:[#allocation4 + $0x20] sm:$0xff] %vm4829_vm9, %v6888_v23  ;;  %v7175_v56 = vld [vmem:[#allocation4 + $0x10] sm:$0xff] }
 0xb7b   : > { %6984 = vst.msk [vmem:[#allocation4 + $0x50] sm:$0xff] %vm4829_vm9, %v6894_v55  ;;  %7374 = vmatmul.f32.gmra.mxu3 %v7175_v56  ;;  %v6624_v56 = vld [vmem:[%s13364_s9 + $0xc8] sm:$0xff] }
 0xb7c   : > { %7114 = vst.msk [vmem:[#allocation4 + $0x50] sm:$0xff] %vm4960_vm10, %v7024_v10  ;;  %v8090_v10 = vld [vmem:[#allocation3 + $0xa8] sm:$0xff] }
 0xb7d   : > { %7111 = vst.msk [vmem:[#allocation4 + $0x20] sm:$0xff] %vm4960_vm10, %v7018_v51 }
 0xb81   : > { %v6708_v21 = vpop.permute.xlu0 %6707  ;;  %v6890_v2 = vpop.permute.xlu1 %6889 }
 0xb82   : > { %v12918_v27 = vmul.f32 %v6708_v21, %v6577_v8  ;;  %v6703_v47 = vpop.permute.xlu2 %6702  ;;  %6982 = vst.msk [vmem:[#allocation4 + $0x30] sm:$0xff] %vm4829_vm9, %v6890_v2  ;;  %v8091_v8 = vld [vmem:[#allocation3 + $0xc0] sm:$0xff]  ;;  %v7485_v2 = vpop.f32.mrf.mxu0 }
 0xb83   : > { %v6828_v29 = vmul.f32 %v6703_v47, %v6576_v39  ;;  %7112 = vst.msk [vmem:[#allocation4 + $0x30] sm:$0xff] %vm4960_vm10, %v7020_v40  ;;  %v7183_v26 = vld [vmem:[#allocation4 + $0x50] sm:$0xff] }
 0xb84   : > { %7151 = vst.msk [vmem:[#allocation4 + $0xa8] sm:$0xff] %vm403_vm0, %v12918_v27  ;;  %v7177_v0 = vld [vmem:[#allocation4 + $0x20] sm:$0xff]  ;;  %7037 = vrot.lane.b32.xlu1 %v12918_v27, %s8159_s26 }
 0xb85   : > { %7150 = vst.msk [vmem:[#allocation4 + $0x98] sm:$0xff] %vm403_vm0, %v6828_v29  ;;  %7377 = vmatmul.f32.gmra.mxu3 %v7177_v0  ;;  %7035 = vrot.lane.b32.xlu0 %v6828_v29, %s8159_s26 }
 0xb89   : > { %v6452_v33 = vpop.permute.xlu0 %6451  ;;  %v6892_v60 = vpop.permute.xlu1 %6891 }
 0xb8a   : > { %6539 = vst.msk [vmem:[#allocation4 + $0x80] sm:$0xff] %vm4380_vm8, %v6452_v33  ;;  %v6450_v14 = vpop.permute.xlu2 %6449  ;;  %v7179_v44 = vld [vmem:[#allocation4 + $0x30] sm:$0xff] }
 0xb8b   : > { %6538 = vst.msk [vmem:[#allocation4 + $0x70] sm:$0xff] %vm4380_vm8, %v6450_v14  ;;  %v7194_v42 = vld [vmem:[#allocation4 + $0xa8] sm:$0xff] }
 0xb8c   : > { %6983 = vst.msk [vmem:[#allocation4 + $0x40] sm:$0xff] %vm4829_vm9, %v6892_v60  ;;  %6909 = vrot.lane.b32.xlu1 %v6828_v29, %s8158_s25 }
 0xb8d   : > { %7113 = vst.msk [vmem:[#allocation4 + $0x40] sm:$0xff] %vm4960_vm10, %v7022_v53  ;;  %7380 = vmatmul.f32.gmra.mxu3 %v7179_v44  ;;  %v6581_v53 = vld [vmem:[#allocation3 + $0x99] sm:$0xff]  ;;  %v7488_v14 = vpop.f32.mrf.mxu0 }
 0xb91   : > { %v7030_v45 = vpop.permute.xlu0 %7029  ;;  %v6698_v62 = vpop.permute.xlu1 %6697 }
 0xb92   : > { %v7028_v41 = vpop.permute.xlu2 %7027  ;;  %v6827_v25 = vmul.f32 %v6698_v62, %v6575_v54 }
 0xb94   : > { %7149 = vst.msk [vmem:[#allocation4 + $0x88] sm:$0xff] %vm403_vm0, %v6827_v25  ;;  %v7181_v30 = vld [vmem:[#allocation4 + $0x40] sm:$0xff]  ;;  %6742 = vperm.xlu1 %7921, %v6620_v36   ;;  %6907 = vrot.lane.b32.xlu0 %v6827_v25, %s8158_s25 }
 0xb95   : > { %7383 = vmatmul.f32.gmra.mxu3 %v7181_v30  ;;  %7033 = vrot.lane.b32.xlu2 %v6827_v25, %s8159_s26  ;;  %v6582_v30 = vld [vmem:[#allocation3 + $0xa1] sm:$0xff] }
 0xb99   : > { %v6902_v50 = vpop.permute.xlu0 %6901  ;;  %v6448_v17 = vpop.permute.xlu1 %6447 }
 0xb9a   : > { %v6900_v6 = vpop.permute.xlu2 %6899  ;;  %6537 = vst.msk [vmem:[#allocation4 + $0x60] sm:$0xff] %vm4380_vm8, %v6448_v17 }
 0xb9b   : > { %6987 = vst.msk [vmem:[#allocation4 + $0x80] sm:$0xff] %vm4829_vm9, %v6900_v6  ;;  %v7190_v37 = vld [vmem:[#allocation4 + $0x88] sm:$0xff] }
 0xb9c   : > { %7117 = vst.msk [vmem:[#allocation4 + $0x80] sm:$0xff] %vm4960_vm10, %v7030_v45  ;;  %6465 = vrot.lane.b32.xlu1 %v12498_v18, %s8157_s20  ;;  %6737 = vperm.xlu0 %7920, %v6619_v15   ;;  %v6618_v18 = vld [vmem:[%s13364_s9 + $0x98] sm:$0xff]  ;;  %v8092_v45 = vld [vmem:[%s8255_s12] sm:$0xff] }
 0xb9d   : > { %6985 = vst.msk [vmem:[#allocation4 + $0x60] sm:$0xff] %vm4829_vm9, %v6896_v28  ;;  %7386 = vmatmul.f32.gmra.mxu3 %v7183_v26  ;;  %6905 = vrot.lane.b32.xlu2 %v12808_v19, %s8158_s25  ;;  %v7192_v19 = vld [vmem:[#allocation4 + $0x98] sm:$0xff]  ;;  %v8093_v26 = vld [vmem:[%s8255_s12 + $0x8] sm:$0xff] }
 0xb9e   : > { %7846 = vmatmul.msk.f32.gmra.mxu0 %vm403_vm0, %v7190_v37  ;;  %v7491_v37 = vpop.f32.mrf.mxu0 }
 0xba1   : > { %v6723_v52 = vpop.permute.xlu0 %6722  ;;  %v7026_v5 = vpop.permute.xlu1 %7025 }
 0xba2   : > { %v12951_v63 = vmul.f32 %v6723_v52, %v6580_v49  ;;  %v6718_v31 = vpop.permute.xlu2 %6717  ;;  %7115 = vst.msk [vmem:[#allocation4 + $0x60] sm:$0xff] %vm4960_vm10, %v7026_v5 }
 0xba3   : > { %v6831_v32 = vmul.f32 %v6718_v31, %v6579_v1  ;;  %v7189_v11 = vld [vmem:[#allocation4 + $0x80] sm:$0xff] }
 0xba4   : > { %7154 = vst.msk [vmem:[#allocation4 + $0xd8] sm:$0xff] %vm403_vm0, %v12951_v63  ;;  %7043 = vrot.lane.b32.xlu1 %v12951_v63, %s8159_s26  ;;  %6463 = vrot.lane.b32.xlu0 %v12505_v20, %s8157_s20  ;;  %v8087_v20 = vld [vmem:[#allocation3 + $0x90] sm:$0xff] }
 0xba5   : > { %7153 = vst.msk [vmem:[#allocation4 + $0xc8] sm:$0xff] %vm403_vm0, %v6831_v32  ;;  %6732 = vperm.xlu2 %7922, %v6618_v18  }
 0xba6   : > { %7847 = vmatmul.msk.f32.gmra.mxu0 %vm403_vm0, %v7192_v19 }
 0xba9   : > { %v6458_v59 = vpop.permute.xlu0 %6457  ;;  %v6898_v58 = vpop.permute.xlu1 %6897  ;;  %v7185_v61 = vld [vmem:[#allocation4 + $0x60] sm:$0xff] }
 0xbaa   : > { %6542 = vst.msk [vmem:[#allocation4 + $0xb0] sm:$0xff] %vm4380_vm8, %v6458_v59  ;;  %v6456_v43 = vpop.permute.xlu2 %6455  ;;  %7389 = vmatmul.f32.gmra.mxu3 %v7185_v61  ;;  %v7494_v61 = vpop.f32.mrf.mxu0 }
 0xbab   : > { %6541 = vst.msk [vmem:[#allocation4 + $0xa0] sm:$0xff] %vm4380_vm8, %v6456_v43  ;;  %v7200_v46 = vld [vmem:[#allocation4 + $0xd8] sm:$0xff]  ;;  %v8094_v43 = vld [vmem:[%s8255_s12 + $0x10] sm:$0xff] }
 0xbac   : > { %6986 = vst.msk [vmem:[#allocation4 + $0x70] sm:$0xff] %vm4829_vm9, %v6898_v58  ;;  %6915 = vrot.lane.b32.xlu1 %v6831_v32, %s8158_s25  ;;  %7041 = vrot.lane.b32.xlu0 %v6831_v32, %s8159_s26  ;;  %v7198_v51 = vld [vmem:[#allocation4 + $0xc8] sm:$0xff] }
 0xbad   : > { %7116 = vst.msk [vmem:[#allocation4 + $0x70] sm:$0xff] %vm4960_vm10, %v7028_v41  ;;  %6461 = vrot.lane.b32.xlu2 %v8087_v20, %s8157_s20 }
 0xbae   : > { %7848 = vmatmul.msk.f32.gmra.mxu0 %vm403_vm0, %v7194_v42  ;;  %v6583_v42 = vld [vmem:[#allocation3 + $0xa9] sm:$0xff] }
 0xbb1   : > { %v6713_v4 = vpop.permute.xlu1 %6712 }
 0xbb2   : > { %v6830_v38 = vmul.f32 %v6713_v4, %v6578_v48 }
 0xbb4   : > { %7152 = vst.msk [vmem:[#allocation4 + $0xb8] sm:$0xff] %vm403_vm0, %v6830_v38  ;;  %v7187_v35 = vld [vmem:[#allocation4 + $0x70] sm:$0xff]  ;;  %6757 = vperm.xlu1 %7921, %v6623_v16   ;;  %6913 = vrot.lane.b32.xlu0 %v6830_v38, %s8158_s25 }
 0xbb5   : > { %7392 = vmatmul.f32.gmra.mxu3 %v7187_v35  ;;  %7039 = vrot.lane.b32.xlu2 %v6830_v38, %s8159_s26 }
 0xbb9   : > { %v6454_v13 = vpop.permute.xlu1 %6453 }
 0xbba   : > { %6540 = vst.msk [vmem:[#allocation4 + $0x90] sm:$0xff] %vm4380_vm8, %v6454_v13  ;;  %v6625_v13 = vld [vmem:[%s13364_s9 + $0xd0] sm:$0xff] }
 0xbbb   : > { %6988 = vst.msk [vmem:[#allocation4 + $0x90] sm:$0xff] %vm4829_vm9, %v6902_v50  ;;  %v7196_v9 = vld [vmem:[#allocation4 + $0xb8] sm:$0xff] }
 0xbbc   : > { %6471 = vrot.lane.b32.xlu1 %v8088_v3, %s8157_s20  ;;  %6752 = vperm.xlu0 %7920, %v6622_v22  }
 0xbbd   : > { %7395 = vmatmul.f32.gmra.mxu3 %v7189_v11  ;;  %6911 = vrot.lane.b32.xlu2 %v12918_v27, %s8158_s25  ;;  %v13011_v27 = vld [vmem:[%s13363_s8] ss:$0 sm:$0xff] }
 0xbbe   : > { %7849 = vmatmul.msk.f32.gmra.mxu0 %vm403_vm0, %v7196_v9 }
 0xbc1   : > { %v7032_v24 = vpop.permute.xlu1 %7031 }
 0xbc2   : > { %7118 = vst.msk [vmem:[#allocation4 + $0x90] sm:$0xff] %vm4960_vm10, %v7032_v24  ;;  %v8095_v24 = vld [vmem:[%s8255_s12 + $0x18] sm:$0xff] }
 0xbc4   : > { %6469 = vrot.lane.b32.xlu0 %v8089_v7, %s8157_s20 }
 0xbc5   : > { %6747 = vperm.xlu2 %7922, %v6621_v34  }
 0xbc6   : > { %7850 = vmatmul.msk.f32.gmra.mxu0 %vm403_vm0, %v7198_v51 }
 0xbc9   : > { %v6904_v12 = vpop.permute.xlu1 %6903  ;;  %v7191_v40 = vld [vmem:[#allocation4 + $0x90] sm:$0xff] }
 0xbca   : > { %6989 = vst.msk [vmem:[#allocation4 + $0xa0] sm:$0xff] %vm4829_vm9, %v6904_v12  ;;  %7398 = vmatmul.f32.gmra.mxu3 %v7191_v40 }
 0xbcd   : > { %6467 = vrot.lane.b32.xlu2 %v8090_v10, %s8157_s20 }
 0xbce   : > { %7851 = vmatmul.msk.f32.gmra.mxu0 %vm403_vm0, %v7200_v46  ;;  %v7497_v46 = vpop.f32.mrf.mxu0 }
 0xbd1   : > { %v6728_v57 = vpop.permute.xlu1 %6727 }
 0xbd2   : > { %v6833_v28 = vmul.f32 %v6728_v57, %v6581_v53  ;;  %v6627_v57 = vld [vmem:[%s13364_s9 + $0xe0] sm:$0xff] }
 0xbd4   : > { %7155 = vst.msk [vmem:[#allocation4 + $0xe8] sm:$0xff] %vm403_vm0, %v6833_v28 }
 0xbd5   : > { %7045 = vrot.lane.b32.xlu2 %v6833_v28, %s8159_s26 }
 0xbd9   : > { %v6460_v23 = vpop.permute.xlu1 %6459 }
 0xbda   : > { %6543 = vst.msk [vmem:[#allocation4 + $0xc0] sm:$0xff] %vm4380_vm8, %v6460_v23 }
 0xbdb   : > { %v7202_v55 = vld [vmem:[#allocation4 + $0xe8] sm:$0xff] }
 0xbdc   : > { %7852 = vmatmul.msk.f32.gmra.mxu0 %vm403_vm0, %v7202_v55  ;;  %v8096_v55 = vld [vmem:[#allocation3 + $0xc8] sm:$0xff] }
 0xbdd   : > { %6917 = vrot.lane.b32.xlu2 %v12951_v63, %s8158_s25  ;;  %v6584_v63 = vld [vmem:[#allocation3 + $0xb1] sm:$0xff] }
 0xbe5   : > { %6762 = vperm.xlu2 %7922, %v6624_v56  }
 0xbed   : > { %6473 = vrot.lane.b32.xlu2 %v8091_v8, %s8157_s20  ;;  %v8097_v8 = vld [vmem:[%s8255_s12 + $0x20] sm:$0xff] }
 0xbef   : > { %v7034_v21 = vpop.permute.xlu2 %7033 }
 0xbf0   : > { %7119 = vst.msk [vmem:[#allocation4 + $0xa0] sm:$0xff] %vm4960_vm10, %v7034_v21 }
 0xbf6   : > { %v7372_v39 = vpop.f32.mrf.mxu3  ;;  %v7038_v47 = vpop.permute.xlu1 %7037 }
 0xbf7   : > { %v7036_v29 = vpop.permute.xlu0 %7035  ;;  %v7373_v0 = vadd.f32 %v13011_v27, %v7372_v39  ;;  %v6906_v33 = vpop.permute.xlu2 %6905  ;;  %v7193_v60 = vld [vmem:[#allocation4 + $0xa0] sm:$0xff] }
 0xbf8   : > { %6990 = vst.msk [vmem:[#allocation4 + $0xb0] sm:$0xff] %vm4829_vm9, %v6906_v33  ;;  %7401 = vmatmul.f32.gmra.mxu3 %v7193_v60 }
 0xbf9   : > { %v7486_v44 = vadd.f32 %v7485_v2, %v7373_v0  ;;  %7120 = vst.msk [vmem:[#allocation4 + $0xb0] sm:$0xff] %vm4960_vm10, %v7036_v29  ;;  %v6585_v0 = vld [vmem:[#allocation3 + $0xb9] sm:$0xff] }
 0xbfb   : > { %v7581_v54 = vadd.f32 %v8092_v45, %v7486_v44 }
 0xbfd   : > { %v7613_v62 = vmax.f32 %v7581_v54, 0.0  ;;  %v7500_v54 = vpop.f32.mrf.mxu0 }
 0xbfe   : > { %v7375_v36 = vpop.f32.mrf.mxu3  ;;  %v6910_v41 = vpop.permute.xlu1 %6909 }
 0xbff   : > { %7645 = vst.msk [vmem:[%s13022_s21] sm:$0xff] %vm403_vm0, %v7613_v62  ;;  %v7376_v25 = vadd.f32 %v13011_v27, %v7375_v36  ;;  %v6733_v50 = vpop.permute.xlu2 %6732  ;;  %v8098_v36 = vld [vmem:[#allocation3 + $0xd8] sm:$0xff] }
 0xc00   : > { %v13027_v17 = vmul.f32 %v6733_v50, %v6582_v30  ;;  %v7195_v15 = vld [vmem:[#allocation4 + $0xb0] sm:$0xff]  ;;  %v6587_v50 = vld [vmem:[#allocation3 + $0xc9] sm:$0xff] }
 0xc01   : > { %v7489_v6 = vadd.f32 %v7488_v14, %v7376_v25  ;;  %7404 = vmatmul.f32.gmra.mxu3 %v7195_v15 }
 0xc02   : > { %7156 = vst.msk [vmem:[#allocation4 + $0xf8] sm:$0xff] %vm403_vm0, %v13027_v17  ;;  %7047 = vrot.lane.b32.xlu0 %v13027_v17, %s8159_s26 }
 0xc03   : > { %v7582_v49 = vadd.f32 %v8093_v26, %v7489_v6 }
 0xc05   : > { %v7614_v52 = vmax.f32 %v7582_v49, 0.0  ;;  %v8100_v49 = vld [vmem:[#allocation3 + $0xd0] sm:$0xff] }
 0xc06   : > { %v6908_v5 = vpop.permute.xlu0 %6907  ;;  %v6743_v1 = vpop.permute.xlu1 %6742 }
 0xc07   : > { %7646 = vst.msk [vmem:[%s13022_s21 + $0x8] sm:$0xff] %vm403_vm0, %v7614_v52  ;;  %v6462_v31 = vpop.permute.xlu2 %6461  ;;  %v13036_v18 = vmul.f32 %v6743_v1, %v6584_v63  ;;  %v6586_v1 = vld [vmem:[#allocation3 + $0xc1] sm:$0xff] }
 0xc08   : > { %v7378_v32 = vpop.f32.mrf.mxu3  ;;  %6991 = vst.msk [vmem:[#allocation4 + $0xc0] sm:$0xff] %vm4829_vm9, %v6908_v5 }
 0xc09   : > { %v7379_v19 = vadd.f32 %v13011_v27, %v7378_v32  ;;  %7121 = vst.msk [vmem:[#allocation4 + $0xc0] sm:$0xff] %vm4960_vm10, %v7038_v47  ;;  %v7204_v59 = vld [vmem:[#allocation4 + $0xf8] sm:$0xff]  ;;  %7051 = vrot.lane.b32.xlu2 %v13036_v18, %s8159_s26 }
 0xc0a   : > { %6544 = vst.msk [vmem:[#allocation4 + $0xd0] sm:$0xff] %vm4380_vm8, %v6462_v31  ;;  %6919 = vrot.lane.b32.xlu0 %v6833_v28, %s8158_s25  ;;  %7853 = vmatmul.msk.f32.gmra.mxu0 %vm403_vm0, %v7204_v59  ;;  %v6626_v47 = vld [vmem:[%s13364_s9 + $0xd8] sm:$0xff] }
 0xc0b   : > { %v7492_v58 = vadd.f32 %v7491_v37, %v7379_v19  ;;  %6992 = vst.msk [vmem:[#allocation4 + $0xd0] sm:$0xff] %vm4829_vm9, %v6910_v41  ;;  %v8099_v41 = vld [vmem:[%s8255_s12 + $0x28] sm:$0xff]  ;;  %v7503_v19 = vpop.f32.mrf.mxu0 }
 0xc0c   : > { %7158 = vst.msk [vmem:[#allocation4 + $0x118] sm:$0xff] %vm403_vm0, %v13036_v18 }
 0xc0d   : > { %v7583_v20 = vadd.f32 %v8094_v43, %v7492_v58 }
 0xc0e   : > { %v6738_v48 = vpop.permute.xlu0 %6737  ;;  %v6466_v4 = vpop.permute.xlu1 %6465 }
 0xc0f   : > { %v7615_v16 = vmax.f32 %v7583_v20, 0.0  ;;  %v6835_v38 = vmul.f32 %v6738_v48, %v6583_v42  ;;  %v7040_v35 = vpop.permute.xlu2 %7039  ;;  %6546 = vst.msk [vmem:[#allocation4 + $0xf0] sm:$0xff] %vm4380_vm8, %v6466_v4  ;;  %v8101_v20 = vld [vmem:[%s8255_s12 + $0x30] sm:$0xff] }
 0xc10   : > { %v7381_v22 = vpop.f32.mrf.mxu3  ;;  %7122 = vst.msk [vmem:[#allocation4 + $0xd0] sm:$0xff] %vm4960_vm10, %v7040_v35  ;;  %v7197_v9 = vld [vmem:[#allocation4 + $0xc0] sm:$0xff] }
 0xc11   : > { %7647 = vst.msk [vmem:[%s13022_s21 + $0x10] sm:$0xff] %vm403_vm0, %v7615_v16  ;;  %v7382_v11 = vadd.f32 %v13011_v27, %v7381_v22  ;;  %7407 = vmatmul.f32.gmra.mxu3 %v7197_v9  ;;  %7049 = vrot.lane.b32.xlu1 %v6835_v38, %s8159_s26  ;;  %v6630_v22 = vld [vmem:[%s13364_s9 + $0xf8] sm:$0xff] }
 0xc12   : > { %7157 = vst.msk [vmem:[#allocation4 + $0x108] sm:$0xff] %vm403_vm0, %v6835_v38  ;;  %6767 = vperm.xlu0 %7920, %v6625_v13   ;;  %6923 = vrot.lane.b32.xlu2 %v6835_v38, %s8158_s25 }
 0xc13   : > { %v7495_v3 = vadd.f32 %v7494_v61, %v7382_v11  ;;  %v7208_v45 = vld [vmem:[#allocation4 + $0x118] sm:$0xff]  ;;  %v6628_v61 = vld [vmem:[%s13364_s9 + $0xe8] sm:$0xff]  ;;  %v7506_v11 = vpop.f32.mrf.mxu0 }
 0xc15   : > { %v7584_v34 = vadd.f32 %v8095_v24, %v7495_v3  ;;  %v8102_v3 = vld [vmem:[#allocation3 + $0xe0] sm:$0xff] }
 0xc16   : > { %v6464_v7 = vpop.permute.xlu0 %6463  ;;  %v7044_v51 = vpop.permute.xlu1 %7043 }
 0xc17   : > { %v7616_v12 = vmax.f32 %v7584_v34, 0.0  ;;  %6545 = vst.msk [vmem:[#allocation4 + $0xe0] sm:$0xff] %vm4380_vm8, %v6464_v7  ;;  %v6912_v40 = vpop.permute.xlu2 %6911  ;;  %v7199_v10 = vld [vmem:[#allocation4 + $0xd0] sm:$0xff]  ;;  %v8103_v34 = vld [vmem:[%s8255_s12 + $0x38] sm:$0xff] }
 0xc18   : > { %v7384_v53 = vpop.f32.mrf.mxu3  ;;  %6993 = vst.msk [vmem:[#allocation4 + $0xe0] sm:$0xff] %vm4829_vm9, %v6912_v40  ;;  %v6588_v40 = vld [vmem:[#allocation3 + $0xd1] sm:$0xff] }
 0xc19   : > { %7648 = vst.msk [vmem:[%s13022_s21 + $0x18] sm:$0xff] %vm403_vm0, %v7616_v12  ;;  %v7385_v28 = vadd.f32 %v13011_v27, %v7384_v53  ;;  %7410 = vmatmul.f32.gmra.mxu3 %v7199_v10  ;;  %6921 = vrot.lane.b32.xlu1 %v13027_v17, %s8158_s25  ;;  %v7206_v23 = vld [vmem:[#allocation4 + $0x108] sm:$0xff] }
 0xc1a   : > { %6475 = vrot.lane.b32.xlu0 %v8096_v55, %s8157_s20  ;;  %7854 = vmatmul.msk.f32.gmra.mxu0 %vm403_vm0, %v7206_v23 }
 0xc1b   : > { %v7498_v56 = vadd.f32 %v7497_v46, %v7385_v28  ;;  %6777 = vperm.xlu2 %7922, %v6627_v57   ;;  %v7509_v23 = vpop.f32.mrf.mxu0 }
 0xc1d   : > { %v7585_v21 = vadd.f32 %v8097_v8, %v7498_v56  ;;  %v8104_v56 = vld [vmem:[#allocation3 + $0xf0] sm:$0xff] }
 0xc1e   : > { %v7042_v2 = vpop.permute.xlu0 %7041  ;;  %v6916_v39 = vpop.permute.xlu1 %6915  ;;  %v8105_v8 = vld [vmem:[%s8255_s12 + $0x40] sm:$0xff] }
 0xc1f   : > { %v7617_v29 = vmax.f32 %v7585_v21, 0.0  ;;  %7123 = vst.msk [vmem:[#allocation4 + $0xe0] sm:$0xff] %vm4960_vm10, %v7042_v2  ;;  %v6748_v33 = vpop.permute.xlu2 %6747 }
 0xc20   : > { %v7387_v60 = vpop.f32.mrf.mxu3  ;;  %v13079_v14 = vmul.f32 %v6748_v33, %v6585_v0 }
 0xc21   : > { %7649 = vst.msk [vmem:[%s13022_s21 + $0x20] sm:$0xff] %vm403_vm0, %v7617_v29  ;;  %v7388_v44 = vadd.f32 %v13011_v27, %v7387_v60  ;;  %6772 = vperm.xlu1 %7921, %v6626_v47   ;;  %v8106_v47 = vld [vmem:[#allocation3 + $0xe8] sm:$0xff] }
 0xc22   : > { %7159 = vst.msk [vmem:[#allocation4 + $0x128] sm:$0xff] %vm403_vm0, %v13079_v14  ;;  %7053 = vrot.lane.b32.xlu0 %v13079_v14, %s8159_s26  ;;  %7855 = vmatmul.msk.f32.gmra.mxu0 %vm403_vm0, %v7208_v45  ;;  %v8107_v45 = vld [vmem:[%s8255_s12 + $0x48] sm:$0xff] }
 0xc23   : > { %v7501_v62 = vadd.f32 %v7500_v54, %v7388_v44  ;;  %6479 = vrot.lane.b32.xlu2 %v8098_v36, %s8157_s20  ;;  %v7512_v60 = vpop.f32.mrf.mxu0  ;;  %v8108_v36 = vld [vmem:[#allocation3 + $0xf8] sm:$0xff] }
 0xc25   : > { %v7586_v25 = vadd.f32 %v8099_v41, %v7501_v62 }
 0xc26   : > { %v6914_v30 = vpop.permute.xlu0 %6913  ;;  %v6758_v17 = vpop.permute.xlu1 %6757  ;;  %v7201_v15 = vld [vmem:[#allocation4 + $0xe0] sm:$0xff] }
 0xc27   : > { %v7618_v6 = vmax.f32 %v7586_v25, 0.0  ;;  %6994 = vst.msk [vmem:[#allocation4 + $0xf0] sm:$0xff] %vm4829_vm9, %v6914_v30  ;;  %v6468_v37 = vpop.permute.xlu2 %6467  ;;  %v13092_v26 = vmul.f32 %v6758_v17, %v6587_v50  ;;  %7413 = vmatmul.f32.gmra.mxu3 %v7201_v15  ;;  %v6591_v50 = vld [vmem:[#allocation3 + $0xe9] sm:$0xff] }
 0xc28   : > { %7124 = vst.msk [vmem:[#allocation4 + $0xf0] sm:$0xff] %vm4960_vm10, %v7044_v51  ;;  %v6629_v51 = vld [vmem:[%s13364_s9 + $0xf0] sm:$0xff] }
 0xc29   : > { %7650 = vst.msk [vmem:[%s13022_s21 + $0x28] sm:$0xff] %vm403_vm0, %v7618_v6  ;;  %6477 = vrot.lane.b32.xlu1 %v8100_v49, %s8157_s20  ;;  %v7210_v52 = vld [vmem:[#allocation4 + $0x128] sm:$0xff] }
 0xc2a   : > { %6547 = vst.msk [vmem:[#allocation4 + $0x100] sm:$0xff] %vm4380_vm8, %v6468_v37  ;;  %6925 = vrot.lane.b32.xlu0 %v13036_v18, %s8158_s25  ;;  %7856 = vmatmul.msk.f32.gmra.mxu0 %vm403_vm0, %v7210_v52 }
 0xc2b   : > { %6995 = vst.msk [vmem:[#allocation4 + $0x100] sm:$0xff] %vm4829_vm9, %v6916_v39  ;;  %7057 = vrot.lane.b32.xlu2 %v13092_v26, %s8159_s26  ;;  %v7515_v52 = vpop.f32.mrf.mxu0 }
 0xc2c   : > { %7161 = vst.msk [vmem:[#allocation4 + $0x148] sm:$0xff] %vm403_vm0, %v13092_v26 }
 0xc2d   : > { %v7390_v5 = vpop.f32.mrf.mxu3 }
 0xc2e   : > { %v7391_v63 = vadd.f32 %v13011_v27, %v7390_v5  ;;  %v6753_v31 = vpop.permute.xlu0 %6752  ;;  %v6472_v32 = vpop.permute.xlu1 %6471 }
 0xc2f   : > { %v6838_v18 = vmul.f32 %v6753_v31, %v6586_v1  ;;  %v7046_v59 = vpop.permute.xlu2 %7045  ;;  %6549 = vst.msk [vmem:[#allocation4 + $0x120] sm:$0xff] %vm4380_vm8, %v6472_v32  ;;  %v7203_v58 = vld [vmem:[#allocation4 + $0xf0] sm:$0xff] }
 0xc30   : > { %v7504_v43 = vadd.f32 %v7503_v19, %v7391_v63  ;;  %7125 = vst.msk [vmem:[#allocation4 + $0x100] sm:$0xff] %vm4960_vm10, %v7046_v59  ;;  %7416 = vmatmul.f32.gmra.mxu3 %v7203_v58  ;;  %v8109_v1 = vld [vmem:[%s8255_s12 + $0x50] sm:$0xff] }
 0xc31   : > { %7160 = vst.msk [vmem:[#allocation4 + $0x138] sm:$0xff] %vm403_vm0, %v6838_v18  ;;  %7055 = vrot.lane.b32.xlu1 %v6838_v18, %s8159_s26  ;;  %v6589_v59 = vld [vmem:[#allocation3 + $0xd9] sm:$0xff] }
 0xc32   : > { %v7587_v42 = vadd.f32 %v8101_v20, %v7504_v43  ;;  %6782 = vperm.xlu0 %7920, %v6628_v61  }
 0xc33   : > { %6929 = vrot.lane.b32.xlu2 %v6838_v18, %s8158_s25  ;;  %v7214_v57 = vld [vmem:[#allocation4 + $0x148] sm:$0xff] }
 0xc34   : > { %v7619_v48 = vmax.f32 %v7587_v42, 0.0 }
 0xc36   : > { %7651 = vst.msk [vmem:[%s13022_s21 + $0x30] sm:$0xff] %vm403_vm0, %v7619_v48  ;;  %v6470_v4 = vpop.permute.xlu0 %6469 }
 0xc37   : > { %6548 = vst.msk [vmem:[#allocation4 + $0x110] sm:$0xff] %vm4380_vm8, %v6470_v4  ;;  %v6918_v16 = vpop.permute.xlu2 %6917  ;;  %v7205_v38 = vld [vmem:[#allocation4 + $0x100] sm:$0xff]  ;;  %v8110_v4 = vld [vmem:[%s8255_s12 + $0x58] sm:$0xff] }
 0xc38   : > { %v7393_v35 = vpop.f32.mrf.mxu3  ;;  %6996 = vst.msk [vmem:[#allocation4 + $0x110] sm:$0xff] %vm4829_vm9, %v6918_v16  ;;  %7419 = vmatmul.f32.gmra.mxu3 %v7205_v38  ;;  %v7212_v13 = vld [vmem:[#allocation4 + $0x138] sm:$0xff] }
 0xc39   : > { %v7394_v9 = vadd.f32 %v13011_v27, %v7393_v35  ;;  %6927 = vrot.lane.b32.xlu1 %v13079_v14, %s8158_s25  ;;  %7857 = vmatmul.msk.f32.gmra.mxu0 %vm403_vm0, %v7212_v13  ;;  %v6631_v14 = vld [vmem:[%s13364_s9 + $0x100] sm:$0xff] }
 0xc3a   : > { %6481 = vrot.lane.b32.xlu0 %v8102_v3, %s8157_s20 }
 0xc3b   : > { %v7507_v24 = vadd.f32 %v7506_v11, %v7394_v9  ;;  %6792 = vperm.xlu2 %7922, %v6630_v22   ;;  %v7518_v42 = vpop.f32.mrf.mxu0 }
 0xc3d   : > { %v7588_v7 = vadd.f32 %v8103_v34, %v7507_v24  ;;  %v6590_v24 = vld [vmem:[#allocation3 + $0xe1] sm:$0xff] }
 0xc3f   : > { %v7620_v12 = vmax.f32 %v7588_v7, 0.0  ;;  %v6763_v10 = vpop.permute.xlu2 %6762 }
 0xc40   : > { %v7396_v46 = vpop.f32.mrf.mxu3  ;;  %v13133_v53 = vmul.f32 %v6763_v10, %v6588_v40  ;;  %v6632_v40 = vld [vmem:[%s13364_s9 + $0x108] sm:$0xff] }
 0xc41   : > { %7652 = vst.msk [vmem:[%s13022_s21 + $0x38] sm:$0xff] %vm403_vm0, %v7620_v12  ;;  %v7397_v28 = vadd.f32 %v13011_v27, %v7396_v46  ;;  %6787 = vperm.xlu1 %7921, %v6629_v51   ;;  %7858 = vmatmul.msk.f32.gmra.mxu0 %vm403_vm0, %v7214_v57  ;;  %v6594_v46 = vld [vmem:[#allocation3 + $0x101] sm:$0xff] }
 0xc42   : > { %7162 = vst.msk [vmem:[#allocation4 + $0x158] sm:$0xff] %vm403_vm0, %v13133_v53  ;;  %7059 = vrot.lane.b32.xlu0 %v13133_v53, %s8159_s26 }
 0xc43   : > { %v7510_v55 = vadd.f32 %v7509_v23, %v7397_v28  ;;  %6485 = vrot.lane.b32.xlu2 %v8104_v56, %s8157_s20  ;;  %v7521_v3 = vpop.f32.mrf.mxu0 }
 0xc45   : > { %v7589_v21 = vadd.f32 %v8105_v8, %v7510_v55  ;;  %v8111_v55 = vld [vmem:[%s8255_s12 + $0x60] sm:$0xff] }
 0xc47   : > { %v7621_v2 = vmax.f32 %v7589_v21, 0.0  ;;  %v6474_v39 = vpop.permute.xlu2 %6473 }
 0xc48   : > { %6550 = vst.msk [vmem:[#allocation4 + $0x130] sm:$0xff] %vm4380_vm8, %v6474_v39 }
 0xc49   : > { %7653 = vst.msk [vmem:[%s13022_s21 + $0x40] sm:$0xff] %vm403_vm0, %v7621_v2  ;;  %6483 = vrot.lane.b32.xlu1 %v8106_v47, %s8157_s20  ;;  %v7216_v29 = vld [vmem:[#allocation4 + $0x158] sm:$0xff] }
 0xc4a   : > { %6931 = vrot.lane.b32.xlu0 %v13092_v26, %s8158_s25  ;;  %7859 = vmatmul.msk.f32.gmra.mxu0 %vm403_vm0, %v7216_v29 }
 0xc4d   : > { %v7399_v0 = vpop.f32.mrf.mxu3 }
 0xc4e   : > { %v7400_v33 = vadd.f32 %v13011_v27, %v7399_v0 }
 0xc50   : > { %v7513_v44 = vadd.f32 %v7512_v60, %v7400_v33  ;;  %v7524_v60 = vpop.f32.mrf.mxu0 }
 0xc52   : > { %v7590_v54 = vadd.f32 %v8107_v45, %v7513_v44  ;;  %6797 = vperm.xlu0 %7920, %v6631_v14   ;;  %v8112_v44 = vld [vmem:[#allocation3 + $0x100] sm:$0xff]  ;;  %v8113_v45 = vld [vmem:[%s8255_s12 + $0x68] sm:$0xff] }
 0xc54   : > { %v7622_v62 = vmax.f32 %v7590_v54, 0.0 }
 0xc56   : > { %7654 = vst.msk [vmem:[%s13022_s21 + $0x48] sm:$0xff] %vm403_vm0, %v7622_v62 }
 0xc5a   : > { %6487 = vrot.lane.b32.xlu0 %v8108_v36, %s8157_s20 }
 0xc63   : > { %v7052_v41 = vpop.permute.xlu2 %7051 }
 0xc6c   : > { %v6924_v25 = vpop.permute.xlu2 %6923 }
 0xc74   : > { %v7048_v30 = vpop.permute.xlu0 %7047 }
 0xc75   : > { %7126 = vst.msk [vmem:[#allocation4 + $0x110] sm:$0xff] %vm4960_vm10, %v7048_v30  ;;  %v6778_v17 = vpop.permute.xlu2 %6777 }
 0xc76   : > { %v13161_v15 = vmul.f32 %v6778_v17, %v6591_v50  ;;  %v8114_v17 = vld [vmem:[#allocation3 + $0x108] sm:$0xff] }
 0xc78   : > { %7165 = vst.msk [vmem:[#allocation4 + $0x188] sm:$0xff] %vm403_vm0, %v13161_v15  ;;  %7065 = vrot.lane.b32.xlu0 %v13161_v15, %s8159_s26 }
 0xc7b   : > { %v7402_v6 = vpop.f32.mrf.mxu3 }
 0xc7c   : > { %v7403_v37 = vadd.f32 %v13011_v27, %v7402_v6  ;;  %v6920_v26 = vpop.permute.xlu0 %6919  ;;  %v7207_v49 = vld [vmem:[#allocation4 + $0x110] sm:$0xff] }
 0xc7d   : > { %6997 = vst.msk [vmem:[#allocation4 + $0x120] sm:$0xff] %vm4829_vm9, %v6920_v26  ;;  %v6480_v5 = vpop.permute.xlu2 %6479  ;;  %7422 = vmatmul.f32.gmra.mxu3 %v7207_v49 }
 0xc7e   : > { %v7516_v63 = vadd.f32 %v7515_v52, %v7403_v37  ;;  %6553 = vst.msk [vmem:[#allocation4 + $0x160] sm:$0xff] %vm4380_vm8, %v6480_v5  ;;  %v7527_v52 = vpop.f32.mrf.mxu0 }
 0xc7f   : > { %v7222_v50 = vld [vmem:[#allocation4 + $0x188] sm:$0xff] }
 0xc80   : > { %v7591_v31 = vadd.f32 %v8109_v1, %v7516_v63 }
 0xc82   : > { %v7623_v32 = vmax.f32 %v7591_v31, 0.0  ;;  %v8115_v31 = vld [vmem:[%s8255_s12 + $0x70] sm:$0xff] }
 0xc83   : > { %v7050_v19 = vpop.permute.xlu1 %7049 }
 0xc84   : > { %7655 = vst.msk [vmem:[%s13022_s21 + $0x50] sm:$0xff] %vm403_vm0, %v7623_v32  ;;  %v7405_v18 = vpop.f32.mrf.mxu3  ;;  %v6768_v58 = vpop.permute.xlu0 %6767 }
 0xc85   : > { %v7406_v61 = vadd.f32 %v13011_v27, %v7405_v18  ;;  %v6841_v43 = vmul.f32 %v6768_v58, %v6589_v59  ;;  %v13174_v20 = vpop.permute.xlu2 %7057  ;;  %7127 = vst.msk [vmem:[#allocation4 + $0x120] sm:$0xff] %vm4960_vm10, %v7050_v19  ;;  %v8116_v19 = vld [vmem:[#allocation3 + $0x110] sm:$0xff]  ;;  %v6593_v58 = vld [vmem:[#allocation3 + $0xf9] sm:$0xff] }
 0xc87   : > { %v7519_v48 = vadd.f32 %v7518_v42, %v7406_v61  ;;  %7163 = vst.msk [vmem:[#allocation4 + $0x168] sm:$0xff] %vm403_vm0, %v6841_v43  ;;  %7061 = vrot.lane.b32.xlu1 %v6841_v43, %s8159_s26 }
 0xc89   : > { %v7592_v16 = vadd.f32 %v8110_v4, %v7519_v48  ;;  %v6141_v48 = vld [vmem:[#allocation3 + $0x118] sm:$0xff]  ;;  %v7530_v4 = vpop.f32.mrf.mxu0 }
 0xc8b   : > { %v7624_v38 = vmax.f32 %v7592_v16, 0.0  ;;  %v6922_v35 = vpop.permute.xlu1 %6921 }
 0xc8c   : > { %v6476_v13 = vpop.permute.xlu0 %6475  ;;  %6998 = vst.msk [vmem:[#allocation4 + $0x130] sm:$0xff] %vm4829_vm9, %v6922_v35  ;;  %v7209_v22 = vld [vmem:[#allocation4 + $0x120] sm:$0xff] }
 0xc8d   : > { %7656 = vst.msk [vmem:[%s13022_s21 + $0x58] sm:$0xff] %vm403_vm0, %v7624_v38  ;;  %v13183_v9 = vpop.permute.xlu2 %6929  ;;  %7425 = vmatmul.f32.gmra.mxu3 %v7209_v22  ;;  %v8117_v38 = vld [vmem:[%s8255_s12 + $0x78] sm:$0xff] }
 0xc8e   : > { %6551 = vst.msk [vmem:[#allocation4 + $0x140] sm:$0xff] %vm4380_vm8, %v6476_v13  ;;  %v7218_v11 = vld [vmem:[#allocation4 + $0x168] sm:$0xff] }
 0xc8f   : > { %6999 = vst.msk [vmem:[#allocation4 + $0x140] sm:$0xff] %vm4829_vm9, %v6924_v25  ;;  %6933 = vrot.lane.b32.xlu1 %v13133_v53, %s8158_s25  ;;  %7860 = vmatmul.msk.f32.gmra.mxu0 %vm403_vm0, %v7218_v11 }
 0xc90   : > { %7128 = vst.msk [vmem:[#allocation4 + $0x130] sm:$0xff] %vm4960_vm10, %v7052_v41  ;;  %v6592_v41 = vld [vmem:[#allocation3 + $0xf1] sm:$0xff] }
 0xc93   : > { %v6773_v34 = vpop.permute.xlu1 %6772 }
 0xc94   : > { %v7054_v7 = vpop.permute.xlu0 %7053  ;;  %v7408_v51 = vpop.f32.mrf.mxu3  ;;  %v6842_v12 = vmul.f32 %v6773_v34, %v6590_v24  ;;  %v6142_v34 = vld [vmem:[#allocation3 + $0x120] sm:$0xff] }
 0xc95   : > { %7129 = vst.msk [vmem:[#allocation4 + $0x140] sm:$0xff] %vm4960_vm10, %v7054_v7  ;;  %v7409_v10 = vadd.f32 %v13011_v27, %v7408_v51  ;;  %v6793_v53 = vpop.permute.xlu2 %6792 }
 0xc96   : > { %v13196_v57 = vmul.f32 %v6793_v53, %v6594_v46  ;;  %7164 = vst.msk [vmem:[#allocation4 + $0x178] sm:$0xff] %vm403_vm0, %v6842_v12  ;;  %7063 = vrot.lane.b32.xlu2 %v6842_v12, %s8159_s26  ;;  %v6595_v53 = vld [vmem:[#allocation3 + $0x109] sm:$0xff] }
 0xc97   : > { %v7522_v28 = vadd.f32 %v7521_v3, %v7409_v10  ;;  %v7211_v23 = vld [vmem:[#allocation4 + $0x130] sm:$0xff]  ;;  %6802 = vperm.xlu1 %7921, %v6632_v40   ;;  %v7533_v7 = vpop.f32.mrf.mxu0  ;;  %v8118_v40 = vld [vmem:[%s8255_s12 + $0x80] sm:$0xff] }
 0xc98   : > { %7168 = vst.msk [vmem:[#allocation4 + $0x1b8] sm:$0xff] %vm403_vm0, %v13196_v57  ;;  %7428 = vmatmul.f32.gmra.mxu3 %v7211_v23  ;;  %v6633_v23 = vld [vmem:[%s13364_s9 + $0x110] sm:$0xff] }
 0xc99   : > { %v7593_v56 = vadd.f32 %v8111_v55, %v7522_v28 }
 0xc9b   : > { %v7625_v8 = vmax.f32 %v7593_v56, 0.0  ;;  %v6478_v21 = vpop.permute.xlu1 %6477 }
 0xc9c   : > { %v7411_v2 = vpop.f32.mrf.mxu3  ;;  %v6926_v39 = vpop.permute.xlu0 %6925  ;;  %6552 = vst.msk [vmem:[#allocation4 + $0x150] sm:$0xff] %vm4380_vm8, %v6478_v21  ;;  %v7213_v0 = vld [vmem:[#allocation4 + $0x140] sm:$0xff] }
 0xc9d   : > { %7657 = vst.msk [vmem:[%s13022_s21 + $0x60] sm:$0xff] %vm403_vm0, %v7625_v8  ;;  %v7412_v47 = vadd.f32 %v13011_v27, %v7411_v2  ;;  %v6486_v29 = vpop.permute.xlu2 %6485  ;;  %v7220_v33 = vld [vmem:[#allocation4 + $0x178] sm:$0xff] }
 0xc9e   : > { %6556 = vst.msk [vmem:[#allocation4 + $0x190] sm:$0xff] %vm4380_vm8, %v6486_v29  ;;  %6935 = vrot.lane.b32.xlu2 %v6841_v43, %s8158_s25  ;;  %7861 = vmatmul.msk.f32.gmra.mxu0 %vm403_vm0, %v7220_v33  ;;  %v6634_v8 = vld [vmem:[%s13364_s9 + $0x118] sm:$0xff] }
 0xc9f   : > { %v7525_v14 = vadd.f32 %v7524_v60, %v7412_v47  ;;  %7000 = vst.msk [vmem:[#allocation4 + $0x150] sm:$0xff] %vm4829_vm9, %v6926_v39  ;;  %6489 = vrot.lane.b32.xlu1 %v8112_v44, %s8157_s20  ;;  %v7228_v56 = vld [vmem:[#allocation4 + $0x1b8] sm:$0xff]  ;;  %v7536_v44 = vpop.f32.mrf.mxu0 }
 0xca0   : > { %7431 = vmatmul.f32.gmra.mxu3 %v7213_v0 }
 0xca1   : > { %v7594_v54 = vadd.f32 %v8113_v45, %v7525_v14 }
 0xca3   : > { %v7626_v62 = vmax.f32 %v7594_v54, 0.0  ;;  %v7056_v36 = vpop.permute.xlu1 %7055 }
 0xca4   : > { %v6783_v25 = vpop.permute.xlu0 %6782  ;;  %7130 = vst.msk [vmem:[#allocation4 + $0x150] sm:$0xff] %vm4960_vm10, %v7056_v36 }
 0xca5   : > { %7658 = vst.msk [vmem:[%s13022_s21 + $0x68] sm:$0xff] %vm403_vm0, %v7626_v62  ;;  %v6844_v30 = vmul.f32 %v6783_v25, %v6592_v41  ;;  %v8119_v62 = vld [vmem:[%s8255_s12 + $0x88] sm:$0xff] }
 0xca6   : > { %6937 = vrot.lane.b32.xlu2 %v6842_v12, %s8158_s25  ;;  %7862 = vmatmul.msk.f32.gmra.mxu0 %vm403_vm0, %v7222_v50 }
 0xca7   : > { %7166 = vst.msk [vmem:[#allocation4 + $0x198] sm:$0xff] %vm403_vm0, %v6844_v30  ;;  %6491 = vrot.lane.b32.xlu1 %v8114_v17, %s8157_s20  ;;  %7067 = vrot.lane.b32.xlu0 %v6844_v30, %s8159_s26 }
 0xcaa   : > { %v7414_v6 = vpop.f32.mrf.mxu3 }
 0xcab   : > { %v7415_v37 = vadd.f32 %v13011_v27, %v7414_v6  ;;  %v6928_v26 = vpop.permute.xlu1 %6927  ;;  %v7215_v49 = vld [vmem:[#allocation4 + $0x150] sm:$0xff] }
 0xcac   : > { %v6482_v5 = vpop.permute.xlu0 %6481  ;;  %7001 = vst.msk [vmem:[#allocation4 + $0x160] sm:$0xff] %vm4829_vm9, %v6928_v26  ;;  %7434 = vmatmul.f32.gmra.mxu3 %v7215_v49 }
 0xcad   : > { %v7528_v63 = vadd.f32 %v7527_v52, %v7415_v37  ;;  %6554 = vst.msk [vmem:[#allocation4 + $0x170] sm:$0xff] %vm4380_vm8, %v6482_v5  ;;  %v7539_v5 = vpop.f32.mrf.mxu0 }
 0xcae   : > { %7002 = vst.msk [vmem:[#allocation4 + $0x170] sm:$0xff] %vm4829_vm9, %v13183_v9  ;;  %6939 = vrot.lane.b32.xlu2 %v13161_v15, %s8158_s25  ;;  %v7224_v1 = vld [vmem:[#allocation4 + $0x198] sm:$0xff] }
 0xcaf   : > { %v7595_v32 = vadd.f32 %v8115_v31, %v7528_v63  ;;  %7131 = vst.msk [vmem:[#allocation4 + $0x160] sm:$0xff] %vm4960_vm10, %v13174_v20  ;;  %6493 = vrot.lane.b32.xlu1 %v8116_v19, %s8157_s20  ;;  %7863 = vmatmul.msk.f32.gmra.mxu0 %vm403_vm0, %v7224_v1 }
 0xcb1   : > { %v7627_v18 = vmax.f32 %v7595_v32, 0.0  ;;  %v8120_v32 = vld [vmem:[%s8255_s12 + $0x90] sm:$0xff] }
 0xcb3   : > { %7659 = vst.msk [vmem:[%s13022_s21 + $0x70] sm:$0xff] %vm403_vm0, %v7627_v18  ;;  %v7417_v59 = vpop.f32.mrf.mxu3  ;;  %v6788_v61 = vpop.permute.xlu1 %6787 }
 0xcb4   : > { %v7060_v43 = vpop.permute.xlu0 %7059  ;;  %v7418_v15 = vadd.f32 %v13011_v27, %v7417_v59  ;;  %v6845_v42 = vmul.f32 %v6788_v61, %v6593_v58 }
 0xcb5   : > { %7132 = vst.msk [vmem:[#allocation4 + $0x170] sm:$0xff] %vm4960_vm10, %v7060_v43 }
 0xcb6   : > { %v7531_v20 = vadd.f32 %v7530_v4, %v7418_v15  ;;  %7167 = vst.msk [vmem:[#allocation4 + $0x1a8] sm:$0xff] %vm403_vm0, %v6845_v42  ;;  %v7217_v16 = vld [vmem:[#allocation4 + $0x160] sm:$0xff]  ;;  %6941 = vrot.lane.b32.xlu2 %v6844_v30, %s8158_s25  ;;  %7069 = vrot.lane.b32.xlu0 %v6845_v42, %s8159_s26  ;;  %v7542_v43 = vpop.f32.mrf.mxu0  ;;  %v8121_v4 = vld [vmem:[%s8255_s12 + $0x98] sm:$0xff] }
 0xcb7   : > { %7437 = vmatmul.f32.gmra.mxu3 %v7217_v16  ;;  %6495 = vrot.lane.b32.xlu1 %v6141_v48, %s8157_s20  ;;  %v6596_v30 = vld [vmem:[#allocation3 + $0x111] sm:$0xff] }
 0xcb8   : > { %v7596_v35 = vadd.f32 %v8117_v38, %v7531_v20 }
 0xcba   : > { %v7628_v13 = vmax.f32 %v7596_v35, 0.0 }
 0xcbb   : > { %v7420_v22 = vpop.f32.mrf.mxu3  ;;  %v6484_v9 = vpop.permute.xlu1 %6483 }
 0xcbc   : > { %7660 = vst.msk [vmem:[%s13022_s21 + $0x78] sm:$0xff] %vm403_vm0, %v7628_v13  ;;  %v7421_v11 = vadd.f32 %v13011_v27, %v7420_v22  ;;  %v6932_v3 = vpop.permute.xlu0 %6931  ;;  %v7219_v24 = vld [vmem:[#allocation4 + $0x170] sm:$0xff] }
 0xcbd   : > { %6555 = vst.msk [vmem:[#allocation4 + $0x180] sm:$0xff] %vm4380_vm8, %v6484_v9  ;;  %v7226_v51 = vld [vmem:[#allocation4 + $0x1a8] sm:$0xff] }
 0xcbe   : > { %v7534_v12 = vadd.f32 %v7533_v7, %v7421_v11  ;;  %7003 = vst.msk [vmem:[#allocation4 + $0x180] sm:$0xff] %vm4829_vm9, %v6932_v3  ;;  %6943 = vrot.lane.b32.xlu2 %v6845_v42, %s8158_s25  ;;  %7071 = vrot.lane.b32.xlu0 %v13196_v57, %s8159_s26  ;;  %v7545_v11 = vpop.f32.mrf.mxu0 }
 0xcbf   : > { %7440 = vmatmul.f32.gmra.mxu3 %v7219_v24  ;;  %6497 = vrot.lane.b32.xlu1 %v6142_v34, %s8157_s20  ;;  %v6598_v24 = vld [vmem:[#allocation3 + $0x121] sm:$0xff]  ;;  %v8122_v34 = vld [vmem:[%s8255_s12 + $0xa0] sm:$0xff] }
 0xcc0   : > { %v7597_v10 = vadd.f32 %v8118_v40, %v7534_v12  ;;  %7864 = vmatmul.msk.f32.gmra.mxu0 %vm403_vm0, %v7226_v51 }
 0xcc2   : > { %v7629_v46 = vmax.f32 %v7597_v10, 0.0 }
 0xcc4   : > { %7661 = vst.msk [vmem:[%s13022_s21 + $0x80] sm:$0xff] %vm403_vm0, %v7629_v46  ;;  %v6798_v28 = vpop.permute.xlu0 %6797 }
 0xcc5   : > { %v6847_v55 = vmul.f32 %v6798_v28, %v6595_v53 }
 0xcc6   : > { %6945 = vrot.lane.b32.xlu2 %v13196_v57, %s8158_s25 }
 0xcc7   : > { %7169 = vst.msk [vmem:[#allocation4 + $0x1c8] sm:$0xff] %vm403_vm0, %v6847_v55  ;;  %6807 = vperm.xlu1 %7921, %v6633_v23   ;;  %7073 = vrot.lane.b32.xlu0 %v6847_v55, %s8159_s26 }
 0xcc8   : > { %7865 = vmatmul.msk.f32.gmra.mxu0 %vm403_vm0, %v7228_v56  ;;  %v7548_v56 = vpop.f32.mrf.mxu0 }
 0xccc   : > { %v6488_v21 = vpop.permute.xlu0 %6487 }
 0xccd   : > { %6557 = vst.msk [vmem:[#allocation4 + $0x1a0] sm:$0xff] %vm4380_vm8, %v6488_v21 }
 0xcce   : > { %6812 = vperm.xlu2 %7922, %v6634_v8   ;;  %v7230_v2 = vld [vmem:[#allocation4 + $0x1c8] sm:$0xff] }
 0xcd0   : > { %7866 = vmatmul.msk.f32.gmra.mxu0 %vm403_vm0, %v7230_v2  ;;  %v8123_v2 = vld [vmem:[%s8255_s12 + $0xa8] sm:$0xff] }
 0xcea   : > { %v7066_v47 = vpop.permute.xlu0 %7065 }
 0xcf0   : > { %v7064_v57 = vpop.permute.xlu2 %7063 }
 0xcf8   : > { %v6936_v39 = vpop.permute.xlu2 %6935 }
 0xcf9   : > { %7005 = vst.msk [vmem:[#allocation4 + $0x1a0] sm:$0xff] %vm4829_vm9, %v6936_v39  ;;  %v7062_v29 = vpop.permute.xlu1 %7061 }
 0xcfa   : > { %7135 = vst.msk [vmem:[#allocation4 + $0x1a0] sm:$0xff] %vm4960_vm10, %v7066_v47  ;;  %v6597_v47 = vld [vmem:[#allocation3 + $0x119] sm:$0xff] }
 0xcfb   : > { %7133 = vst.msk [vmem:[#allocation4 + $0x180] sm:$0xff] %vm4960_vm10, %v7062_v29 }
 0xd00   : > { %v7423_v0 = vpop.f32.mrf.mxu3  ;;  %v6938_v33 = vpop.permute.xlu2 %6937 }
 0xd01   : > { %v7424_v60 = vadd.f32 %v13011_v27, %v7423_v0  ;;  %v6934_v14 = vpop.permute.xlu1 %6933  ;;  %v7225_v63 = vld [vmem:[#allocation4 + $0x1a0] sm:$0xff] }
 0xd02   : > { %7004 = vst.msk [vmem:[#allocation4 + $0x190] sm:$0xff] %vm4829_vm9, %v6934_v14  ;;  %v7221_v45 = vld [vmem:[#allocation4 + $0x180] sm:$0xff] }
 0xd03   : > { %v7537_v54 = vadd.f32 %v7536_v44, %v7424_v60  ;;  %7134 = vst.msk [vmem:[#allocation4 + $0x190] sm:$0xff] %vm4960_vm10, %v7064_v57  ;;  %7443 = vmatmul.f32.gmra.mxu3 %v7221_v45 }
 0xd05   : > { %v7598_v36 = vadd.f32 %v8119_v62, %v7537_v54  ;;  %v8124_v62 = vld [vmem:[%s8255_s12 + $0xb0] sm:$0xff] }
 0xd07   : > { %v7630_v41 = vmax.f32 %v7598_v36, 0.0 }
 0xd08   : > { %v6940_v25 = vpop.permute.xlu2 %6939 }
 0xd09   : > { %7662 = vst.msk [vmem:[%s13022_s21 + $0x88] sm:$0xff] %vm403_vm0, %v7630_v41  ;;  %v6803_v50 = vpop.permute.xlu1 %6802 }
 0xd0a   : > { %v6848_v17 = vmul.f32 %v6803_v50, %v6596_v30  ;;  %v7223_v6 = vld [vmem:[#allocation4 + $0x190] sm:$0xff] }
 0xd0b   : > { %7446 = vmatmul.f32.gmra.mxu3 %v7223_v6 }
 0xd0c   : > { %7170 = vst.msk [vmem:[#allocation4 + $0x1d8] sm:$0xff] %vm403_vm0, %v6848_v17  ;;  %7075 = vrot.lane.b32.xlu0 %v6848_v17, %s8159_s26  ;;  %v7551_v45 = vpop.f32.mrf.mxu0 }
 0xd10   : > { %v7426_v37 = vpop.f32.mrf.mxu3  ;;  %v6942_v26 = vpop.permute.xlu2 %6941 }
 0xd11   : > { %v7427_v49 = vadd.f32 %v13011_v27, %v7426_v37  ;;  %v6490_v52 = vpop.permute.xlu1 %6489  ;;  %v8125_v37 = vld [vmem:[%s8255_s12 + $0xb8] sm:$0xff] }
 0xd12   : > { %6558 = vst.msk [vmem:[#allocation4 + $0x1b0] sm:$0xff] %vm4380_vm8, %v6490_v52 }
 0xd13   : > { %v7540_v1 = vadd.f32 %v7539_v5, %v7427_v49  ;;  %7006 = vst.msk [vmem:[#allocation4 + $0x1b0] sm:$0xff] %vm4829_vm9, %v6938_v33  ;;  %7449 = vmatmul.f32.gmra.mxu3 %v7225_v63  ;;  %v7232_v31 = vld [vmem:[#allocation4 + $0x1d8] sm:$0xff] }
 0xd14   : > { %7867 = vmatmul.msk.f32.gmra.mxu0 %vm403_vm0, %v7232_v31 }
 0xd15   : > { %v7599_v19 = vadd.f32 %v8120_v32, %v7540_v1 }
 0xd17   : > { %v7631_v18 = vmax.f32 %v7599_v19, 0.0  ;;  %v8126_v19 = vld [vmem:[%s8255_s12 + $0xc0] sm:$0xff] }
 0xd18   : > { %v6944_v59 = vpop.permute.xlu2 %6943 }
 0xd19   : > { %7663 = vst.msk [vmem:[%s13022_s21 + $0x90] sm:$0xff] %vm403_vm0, %v7631_v18  ;;  %v7068_v58 = vpop.permute.xlu0 %7067  ;;  %v6492_v61 = vpop.permute.xlu1 %6491 }
 0xd1a   : > { %7136 = vst.msk [vmem:[#allocation4 + $0x1b0] sm:$0xff] %vm4960_vm10, %v7068_v58 }
 0xd1b   : > { %v7429_v15 = vpop.f32.mrf.mxu3  ;;  %6559 = vst.msk [vmem:[#allocation4 + $0x1c0] sm:$0xff] %vm4380_vm8, %v6492_v61  ;;  %v7554_v17 = vpop.f32.mrf.mxu0 }
 0xd1c   : > { %v7430_v42 = vadd.f32 %v13011_v27, %v7429_v15  ;;  %7007 = vst.msk [vmem:[#allocation4 + $0x1c0] sm:$0xff] %vm4829_vm9, %v6940_v25 }
 0xd1e   : > { %v7543_v48 = vadd.f32 %v7542_v43, %v7430_v42 }
 0xd20   : > { %v7600_v20 = vadd.f32 %v8121_v4, %v7543_v48  ;;  %v6946_v16 = vpop.permute.xlu2 %6945  ;;  %v8127_v48 = vld [vmem:[%s8255_s12 + $0xc8] sm:$0xff] }
 0xd21   : > { %v6494_v38 = vpop.permute.xlu1 %6493  ;;  %v7227_v35 = vld [vmem:[#allocation4 + $0x1b0] sm:$0xff] }
 0xd22   : > { %v7632_v13 = vmax.f32 %v7600_v20, 0.0  ;;  %6560 = vst.msk [vmem:[#allocation4 + $0x1d0] sm:$0xff] %vm4380_vm8, %v6494_v38  ;;  %7452 = vmatmul.f32.gmra.mxu3 %v7227_v35  ;;  %v8128_v35 = vld [vmem:[%s13363_s8] ss:$0 sm:$0xff] }
 0xd23   : > { %v7432_v22 = vpop.f32.mrf.mxu3  ;;  %7008 = vst.msk [vmem:[#allocation4 + $0x1d0] sm:$0xff] %vm4829_vm9, %v6942_v26  ;;  %v7557_v5 = vpop.f32.mrf.mxu0 }
 0xd24   : > { %7664 = vst.msk [vmem:[%s13022_s21 + $0x98] sm:$0xff] %vm403_vm0, %v7632_v13  ;;  %v7433_v9 = vadd.f32 %v13011_v27, %v7432_v22 }
 0xd26   : > { %v7546_v3 = vadd.f32 %v7545_v11, %v7433_v9  ;;  %v8129_v9 = vld [vmem:[%s8255_s12 + $0xd0] sm:$0xff] }
 0xd28   : > { %v7601_v7 = vadd.f32 %v8122_v34, %v7546_v3  ;;  %v6813_v51 = vpop.permute.xlu2 %6812  ;;  %v7070_v12 = vpop.permute.xlu0 %7069 }
 0xd29   : > { %v6850_v40 = vmul.f32 %v6813_v51, %v6598_v24  ;;  %7137 = vst.msk [vmem:[#allocation4 + $0x1c0] sm:$0xff] %vm4960_vm10, %v7070_v12  ;;  %v6496_v10 = vpop.permute.xlu1 %6495  ;;  %v8130_v12 = vld [vmem:[%s8255_s12 + $0xd8] sm:$0xff] }
 0xd2a   : > { %v7633_v46 = vmax.f32 %v7601_v7, 0.0  ;;  %6561 = vst.msk [vmem:[#allocation4 + $0x1e0] sm:$0xff] %vm4380_vm8, %v6496_v10 }
 0xd2b   : > { %7172 = vst.msk [vmem:[#allocation4 + $0x1f8] sm:$0xff] %vm403_vm0, %v6850_v40 }
 0xd2c   : > { %7665 = vst.msk [vmem:[%s13022_s21 + $0xa0] sm:$0xff] %vm403_vm0, %v7633_v46  ;;  %v7560_v15 = vpop.f32.mrf.mxu0 }
 0xd2d   : > { %7009 = vst.msk [vmem:[#allocation4 + $0x1e0] sm:$0xff] %vm4829_vm9, %v6944_v59 }
 0xd2f   : > { %v7435_v53 = vpop.f32.mrf.mxu3 }
 0xd30   : > { %v7436_v28 = vadd.f32 %v13011_v27, %v7435_v53  ;;  %v7072_v23 = vpop.permute.xlu0 %7071  ;;  %v7229_v55 = vld [vmem:[#allocation4 + $0x1c0] sm:$0xff] }
 0xd31   : > { %7138 = vst.msk [vmem:[#allocation4 + $0x1d0] sm:$0xff] %vm4960_vm10, %v7072_v23  ;;  %v6498_v8 = vpop.permute.xlu1 %6497  ;;  %7455 = vmatmul.f32.gmra.mxu3 %v7229_v55  ;;  %v8131_v55 = vld [vmem:[%s8255_s12 + $0xe0] sm:$0xff] }
 0xd32   : > { %v7549_v21 = vadd.f32 %v7548_v56, %v7436_v28  ;;  %6562 = vst.msk [vmem:[#allocation4 + $0x1f0] sm:$0xff] %vm4380_vm8, %v6498_v8  ;;  %v7236_v38 = vld [vmem:[#allocation4 + $0x1f8] sm:$0xff] }
 0xd33   : > { %7010 = vst.msk [vmem:[#allocation4 + $0x1f0] sm:$0xff] %vm4829_vm9, %v6946_v16 }
 0xd34   : > { %v7602_v57 = vadd.f32 %v8123_v2, %v7549_v21 }
 0xd36   : > { %v7634_v39 = vmax.f32 %v7602_v57, 0.0 }
 0xd38   : > { %7666 = vst.msk [vmem:[%s13022_s21 + $0xa8] sm:$0xff] %vm403_vm0, %v7634_v39  ;;  %v7231_v29 = vld [vmem:[#allocation4 + $0x1d0] sm:$0xff] }
 0xd39   : > { %v7074_v0 = vpop.permute.xlu0 %7073  ;;  %v6808_v33 = vpop.permute.xlu1 %6807  ;;  %7458 = vmatmul.f32.gmra.mxu3 %v7231_v29 }
 0xd3a   : > { %v7438_v60 = vpop.f32.mrf.mxu3  ;;  %7139 = vst.msk [vmem:[#allocation4 + $0x1e0] sm:$0xff] %vm4960_vm10, %v7074_v0  ;;  %v6849_v14 = vmul.f32 %v6808_v33, %v6597_v47  ;;  %v8132_v47 = vld [vmem:[%s8255_s12 + $0xe8] sm:$0xff] }
 0xd3b   : > { %v7439_v44 = vadd.f32 %v13011_v27, %v7438_v60 }
 0xd3c   : > { %7171 = vst.msk [vmem:[#allocation4 + $0x1e8] sm:$0xff] %vm403_vm0, %v6849_v14 }
 0xd3d   : > { %v7552_v54 = vadd.f32 %v7551_v45, %v7439_v44 }
 0xd3f   : > { %v7603_v36 = vadd.f32 %v8124_v62, %v7552_v54  ;;  %v8133_v54 = vld [vmem:[%s8255_s12 + $0xf0] sm:$0xff] }
 0xd41   : > { %v7635_v41 = vmax.f32 %v7603_v36, 0.0  ;;  %v7233_v25 = vld [vmem:[#allocation4 + $0x1e0] sm:$0xff] }
 0xd42   : > { %v7441_v30 = vpop.f32.mrf.mxu3  ;;  %7461 = vmatmul.f32.gmra.mxu3 %v7233_v25 }
 0xd43   : > { %7667 = vst.msk [vmem:[%s13022_s21 + $0xb0] sm:$0xff] %vm403_vm0, %v7635_v41  ;;  %v7442_v50 = vadd.f32 %v13011_v27, %v7441_v30  ;;  %v7234_v61 = vld [vmem:[#allocation4 + $0x1e8] sm:$0xff] }
 0xd45   : > { %v7555_v6 = vadd.f32 %v7554_v17, %v7442_v50  ;;  %v8134_v50 = vld [vmem:[%s8255_s12 + $0xf8] sm:$0xff] }
 0xd47   : > { %v7604_v26 = vadd.f32 %v8125_v37, %v7555_v6 }
 0xd49   : > { %v7636_v49 = vmax.f32 %v7604_v26, 0.0 }
 0xd4b   : > { %7668 = vst.msk [vmem:[%s13022_s21 + $0xb8] sm:$0xff] %vm403_vm0, %v7636_v49 }
 0xd7e   : > { %v7076_v52 = vpop.permute.xlu0 %7075 }
 0xd7f   : > { %7140 = vst.msk [vmem:[#allocation4 + $0x1f0] sm:$0xff] %vm4960_vm10, %v7076_v52 }
 0xd86   : > { %v7444_v63 = vpop.f32.mrf.mxu3  ;;  %v7235_v1 = vld [vmem:[#allocation4 + $0x1f0] sm:$0xff] }
 0xd87   : > { %v7445_v31 = vadd.f32 %v13011_v27, %v7444_v63  ;;  %7464 = vmatmul.f32.gmra.mxu3 %v7235_v1 }
 0xd89   : > { %v7558_v32 = vadd.f32 %v7557_v5, %v7445_v31 }
 0xd8b   : > { %v7605_v18 = vadd.f32 %v8126_v19, %v7558_v32 }
 0xd8d   : > { %v7637_v59 = vmax.f32 %v7605_v18, 0.0 }
 0xd8e   : > { %v7447_v58 = vpop.f32.mrf.mxu3 }
 0xd8f   : > { %7669 = vst.msk [vmem:[%s13022_s21 + $0xc0] sm:$0xff] %vm403_vm0, %v7637_v59  ;;  %v7448_v43 = vadd.f32 %v13011_v27, %v7447_v58  ;;  %7868 = vmatmul.msk.f32.vlgmr.msra.gmra.mxu3 %vm403_vm0, %v7234_v61  ;;  %v7563_v27 = vpop.f32.mrf.mxu0 }
 0xd91   : > { %v7561_v42 = vadd.f32 %v7560_v15, %v7448_v43 }
 0xd93   : > { %v7606_v4 = vadd.f32 %v8127_v48, %v7561_v42 }
 0xd95   : > { %v7638_v20 = vmax.f32 %v7606_v4, 0.0 }
 0xd96   : > { %v7450_v16 = vpop.f32.mrf.mxu3 }
 0xd97   : > { %7670 = vst.msk [vmem:[%s13022_s21 + $0xc8] sm:$0xff] %vm403_vm0, %v7638_v20  ;;  %v7451_v13 = vadd.f32 %v8128_v35, %v7450_v16  ;;  %7869 = vmatmul.msk.f32.gmra.mxu3 %vm403_vm0, %v7236_v38  ;;  %v7566_v7 = vpop.f32.mrf.mxu0 }
 0xd99   : > { %v7564_v22 = vadd.f32 %v7563_v27, %v7451_v13 }
 0xd9b   : > { %v7607_v11 = vadd.f32 %v8129_v9, %v7564_v22 }
 0xd9d   : > { %v7639_v3 = vmax.f32 %v7607_v11, 0.0 }
 0xd9f   : > { %7671 = vst.msk [vmem:[%s13022_s21 + $0xd0] sm:$0xff] %vm403_vm0, %v7639_v3  ;;  %v7569_v28 = vpop.f32.mrf.mxu0 }
 0xda5   : > { %v7453_v24 = vpop.f32.mrf.mxu3 }
 0xda6   : > { %v7454_v34 = vadd.f32 %v8128_v35, %v7453_v24 }
 0xda7   : > { %v7572_v57 = vpop.f32.mrf.mxu0 }
 0xda8   : > { %v7567_v51 = vadd.f32 %v7566_v7, %v7454_v34 }
 0xdaa   : > { %v7608_v40 = vadd.f32 %v8130_v12, %v7567_v51 }
 0xdac   : > { %v7640_v10 = vmax.f32 %v7608_v40, 0.0 }
 0xdae   : > { %7672 = vst.msk [vmem:[%s13022_s21 + $0xd8] sm:$0xff] %vm403_vm0, %v7640_v10 }
 0xdb4   : > { %v7456_v46 = vpop.f32.mrf.mxu3 }
 0xdb5   : > { %v7457_v53 = vadd.f32 %v8128_v35, %v7456_v46 }
 0xdb7   : > { %v7570_v23 = vadd.f32 %v7569_v28, %v7457_v53 }
 0xdb9   : > { %v7609_v56 = vadd.f32 %v8131_v55, %v7570_v23 }
 0xdbb   : > { %v7641_v8 = vmax.f32 %v7609_v56, 0.0 }
 0xdbc   : > { %v7459_v21 = vpop.f32.mrf.mxu3 }
 0xdbd   : > { %7673 = vst.msk [vmem:[%s13022_s21 + $0xe0] sm:$0xff] %vm403_vm0, %v7641_v8  ;;  %v7460_v2 = vadd.f32 %v8128_v35, %v7459_v21 }
 0xdbf   : > { %v7573_v39 = vadd.f32 %v7572_v57, %v7460_v2 }
 0xdc1   : > { %v7610_v29 = vadd.f32 %v8132_v47, %v7573_v39 }
 0xdc3   : > { %v7642_v0 = vmax.f32 %v7610_v29, 0.0 }
 0xdc5   : > { %7674 = vst.msk [vmem:[%s13022_s21 + $0xe8] sm:$0xff] %vm403_vm0, %v7642_v0  ;;  %v7462_v33 = vpop.f32.mrf.mxu3 }
 0xdc6   : > { %v7463_v14 = vadd.f32 %v8128_v35, %v7462_v33 }
 0xe0a   : > { %v7465_v60 = vpop.f32.mrf.mxu3 }
 0xe0b   : > { %v7466_v41 = vadd.f32 %v8128_v35, %v7465_v60 }
 0xe12   : > { %v7575_v44 = vpop.f32.mrf.mxu3 }
 0xe13   : > { %v7576_v45 = vadd.f32 %v7575_v44, %v7463_v14 }
 0xe15   : > { %v7611_v62 = vadd.f32 %v8133_v54, %v7576_v45 }
 0xe17   : > { %v7643_v36 = vmax.f32 %v7611_v62, 0.0 }
 0xe19   : > { %7675 = vst.msk [vmem:[%s13022_s21 + $0xf0] sm:$0xff] %vm403_vm0, %v7643_v36 }
 0xe1a   : > { %v7578_v25 = vpop.f32.mrf.mxu3 }
 0xe1b   : > { %v7579_v30 = vadd.f32 %v7578_v25, %v7466_v41 }
 0xe1d   : > { %v7612_v17 = vadd.f32 %v8134_v50, %v7579_v30 }
 0xe1f   : > { %v7644_v6 = vmax.f32 %v7612_v17, 0.0 }
 0xe21   : > { %7676 = vst.msk [vmem:[%s13022_s21 + $0xf8] sm:$0xff] %vm403_vm0, %v7644_v6 }
 0xe22 PF: > { %s21_s15 = sadd.s32 1, %s8141_s15  }
 0xe23   : > { %p18_p4 = scmp.ge.s32.totalorder %s21_s15, 4  }
 0xe25   :  { %20 = sbr.rel (!%p18_p4) target bundleno = 2 (0x2), region = 90 }

</bundles_post_ra>
